<compile_context>
chip_gen: v7x
topology: tpu7x:2x2x1
jax: 0.10.0
libtpu: 0.0.40
codegen_flags: <defaults>
</compile_context>

<pallas_src>
import functools

import jax
import jax.numpy as jnp
from jax import lax
from jax.experimental import pallas as pl
from jax.experimental.pallas import tpu as pltpu


# ----------------------------------------------------------------------------
# Fused kernel: stacked LSTM + BatchNorm1d(channel==timestep) + fc1/ReLU/fc2.
#
# refs layout (inputs, output, scratch):
#   x_ref                                    (T, B, Din)  bf16   timestep-major
#   [wih_l (Din_l,4H) bf16, whh_l (H,4H) bf16, b_l (1,4H) f32] * num_layers   gates [i|f|o|g]
#   gamma (T,1,1) f32, beta (T,1,1) f32
#   w1 (H,H) bf16, b1 (1,H) f32, w2 (H,O_pad) bf16, b2 (1,O_pad) f32
#   out_ref (T, B, O_pad) f32
#   hbuf (T, B, H) f32 scratch  -- per-layer hidden sequence, reused across layers
# ----------------------------------------------------------------------------
def fused_lstm_gateatten_kernel(num_layers, *refs):
    x_ref = refs[0]
    layer_refs = refs[1:1 + 3 * num_layers]
    (gamma_ref, beta_ref, w1_ref, b1_ref, w2_ref, b2_ref,
     out_ref, hbuf_ref) = refs[1 + 3 * num_layers:]

    T, B, H = hbuf_ref.shape
    eps = 1e-5

    # ------------------------------------------------------------- LSTM stack
    for l in range(num_layers):
        wih = layer_refs[3 * l][...]            # (Din_l, 4H) bf16, gate cols [i|f|o|g]
        whh = layer_refs[3 * l + 1][...]        # (H, 4H)     bf16
        b = layer_refs[3 * l + 2][...]          # (1, 4H)     f32

        def step(t, carry, layer=l, wih=wih, whh=whh, b=b):
            h, c = carry                        # (B, H) f32
            if layer == 0:
                x_t = x_ref[t]                  # (B, Din) bf16, aligned leading-axis load
            else:
                # previous layer's h_t (read before this layer's write at the same t)
                x_t = hbuf_ref[t].astype(jnp.bfloat16)
            # Input projection does not depend on the carry; with the loop fully unrolled
            # the scheduler overlaps it with earlier steps (hoisted off the serial chain).
            g_all = (jnp.dot(x_t, wih, preferred_element_type=jnp.float32)
                     + jnp.dot(h.astype(jnp.bfloat16), whh,
                               preferred_element_type=jnp.float32)
                     + b)                                        # (B, 4H) f32
            sig = jax.nn.sigmoid(g_all[:, :3 * H])               # one EUP pass for i|f|o
            g_g = jnp.tanh(g_all[:, 3 * H:])                     # one EUP pass for g
            i_g = sig[:, 0 * H:1 * H]
            f_g = sig[:, 1 * H:2 * H]
            o_g = sig[:, 2 * H:3 * H]
            c_new = f_g * c + i_g * g_g                          # cell state stays f32
            h_new = o_g * jnp.tanh(c_new)
            hbuf_ref[t] = h_new                                  # aligned (B, H) tile store
            return h_new, c_new

        h0 = jnp.zeros((B, H), jnp.float32)
        c0 = jnp.zeros((B, H), jnp.float32)
        lax.fori_loop(0, T, step, (h0, c0), unroll=True)
        # TODO(synk): inter-layer dropout (p=0.5) omitted (stochastic, train-mode only).

    # ------- BatchNorm1d (channel == timestep) + fc1/ReLU/fc2, one aligned tile per timestep
    # Per-timestep stats are plain reductions over the (B, H) slab (segment matmuls removed);
    # centered, biased variance like PyTorch's training-mode BN forward.
    inv_n = 1.0 / float(B * H)
    w1 = w1_ref[...]
    b1 = b1_ref[...]
    w2 = w2_ref[...]
    b2 = b2_ref[...]
    for t in range(T):
        h_t = hbuf_ref[t]                                        # (B, H) f32
        m_t = jnp.sum(jnp.sum(h_t, axis=1, keepdims=True),
                      axis=0, keepdims=True) * inv_n             # (1, 1)
        d_t = h_t - m_t
        v_t = jnp.sum(jnp.sum(d_t * d_t, axis=1, keepdims=True),
                      axis=0, keepdims=True) * inv_n             # (1, 1)
        scale_t = gamma_ref[t] * lax.rsqrt(v_t + eps)            # (1, 1)
        xb = d_t * scale_t + beta_ref[t]                         # (B, H)
        y1 = jnp.maximum(
            jnp.dot(xb.astype(jnp.bfloat16), w1,
                    preferred_element_type=jnp.float32) + b1, 0.0)          # (B, H)
        y2 = jnp.dot(y1.astype(jnp.bfloat16), w2,
                     preferred_element_type=jnp.float32) + b2               # (B, O_pad)
        out_ref[t] = y2.astype(out_ref.dtype)                    # lane-dense 128-wide store


# ----------------------------------------------------------------------------
# Wrapper: pack weights once, call the single fused kernel.
# ----------------------------------------------------------------------------
def _reorder_gate_cols(w):
    # PyTorch packs LSTM gates [i, f, g, o] along the 4H axis; repack to [i, f, o, g] so the
    # kernel runs one sigmoid over the first 3H lanes and one tanh over the last H lanes.
    i, f, g, o = jnp.split(w, 4, axis=-1)
    return jnp.concatenate([i, f, o, g], axis=-1)


def forward_pallas(x_btd, params, num_layers):
    """x_btd: (B, T, input_dim) batch-first, like the PyTorch module."""
    B, T, d_in = x_btd.shape
    H = params["bn_gamma"].shape[0]
    O = params["fc2_w"].shape[0]
    if T != H:
        raise ValueError("BatchNorm1d(hidden_dim) on (B, T, H) requires seq_len == hidden_dim")
    O_pad = ((O + 127) // 128) * 128          # lane-dense output width

    # Timestep-major 3-D input: x[t] is a whole aligned (B, Din) tile inside the kernel.
    x_tm = jnp.transpose(x_btd, (1, 0, 2)).astype(jnp.bfloat16)            # (T, B, Din)

    args = [x_tm]
    for l in range(num_layers):
        w_ih, w_hh, b_ih, b_hh = params["lstm"][l]
        args.append(_reorder_gate_cols(w_ih.T.astype(jnp.bfloat16)))       # (Din_l, 4H)
        args.append(_reorder_gate_cols(w_hh.T.astype(jnp.bfloat16)))       # (H, 4H)
        args.append(_reorder_gate_cols(
            (b_ih + b_hh).astype(jnp.float32)[None, :]))                   # (1, 4H)

    # fc2 zero-padded to O_pad lanes so the final store is unmasked; wrapper slices back to O.
    w2p = jnp.zeros((H, O_pad), jnp.float32).at[:, :O].set(
        params["fc2_w"].T.astype(jnp.float32)).astype(jnp.bfloat16)
    b2p = jnp.zeros((1, O_pad), jnp.float32).at[:, :O].set(
        params["fc2_b"].astype(jnp.float32)[None, :])

    args += [
        params["bn_gamma"].astype(jnp.float32).reshape(T, 1, 1),
        params["bn_beta"].astype(jnp.float32).reshape(T, 1, 1),
        params["fc1_w"].T.astype(jnp.bfloat16),                            # (H, H)
        params["fc1_b"].astype(jnp.float32)[None, :],                      # (1, H)
        w2p,                                                               # (H, O_pad)
        b2p,                                                               # (1, O_pad)
    ]

    out_tm = pl.pallas_call(
        functools.partial(fused_lstm_gateatten_kernel, num_layers),
        out_shape=jax.ShapeDtypeStruct((T, B, O_pad), jnp.float32),
        in_specs=[pl.BlockSpec(memory_space=pltpu.MemorySpace.VMEM)] * len(args),
        out_specs=pl.BlockSpec(memory_space=pltpu.MemorySpace.VMEM),
        scratch_shapes=[pltpu.VMEM((T, B, H), jnp.float32)],   # hidden sequence, reused per layer
        compiler_params=pltpu.CompilerParams(vmem_limit_bytes=32 * 1024 * 1024),
    )(*args)

    # (T, B, O_pad) -> batch-first (B, T, O); tiny slice/transpose in the wrapper.
    return jnp.transpose(out_tm[:, :, :O], (1, 0, 2))


# ----------------------------------------------------------------------------
# Parameter construction (deterministic, shapes match the nn.Module __init__).
# ----------------------------------------------------------------------------
def init_params(key, input_dim, hidden_dim, output_dim, num_layers):
    H = hidden_dim
    params = {"lstm": []}
    bound = 1.0 / jnp.sqrt(H)
    for l in range(num_layers):
        d_in = input_dim if l == 0 else H
        key, k1, k2, k3, k4 = jax.random.split(key, 5)
        w_ih = jax.random.uniform(k1, (4 * H, d_in), jnp.float32, -bound, bound)
        w_hh = jax.random.uniform(k2, (4 * H, H), jnp.float32, -bound, bound)
        b_ih = jax.random.uniform(k3, (4 * H,), jnp.float32, -bound, bound)
        b_hh = jax.random.uniform(k4, (4 * H,), jnp.float32, -bound, bound)
        params["lstm"].append((w_ih, w_hh, b_ih, b_hh))

    key, k1, k2, k3, k4, k5, k6 = jax.random.split(key, 7)
    params["bn_gamma"] = 1.0 + 0.1 * jax.random.normal(k1, (H,), jnp.float32)
    params["bn_beta"] = 0.1 * jax.random.normal(k2, (H,), jnp.float32)
    b1 = 1.0 / jnp.sqrt(H)
    params["fc1_w"] = jax.random.uniform(k3, (H, H), jnp.float32, -b1, b1)
    params["fc1_b"] = jax.random.uniform(k4, (H,), jnp.float32, -b1, b1)
    params["fc2_w"] = jax.random.uniform(k5, (output_dim, H), jnp.float32, -b1, b1)
    params["fc2_b"] = jax.random.uniform(k6, (output_dim,), jnp.float32, -b1, b1)
    return params


# ----------------------------------------------------------------------------
# Pure-JAX reference (same math, mirrors the kernel's bf16 matmul inputs with
# f32 accumulation so the comparison is apples-to-apples).
# ----------------------------------------------------------------------------
def _mm_bf16(a, b):
    return jnp.dot(a.astype(jnp.bfloat16), b.astype(jnp.bfloat16),
                   preferred_element_type=jnp.float32)


def forward_reference(x_btd, params, num_layers):
    B, T, _ = x_btd.shape
    H = params["bn_gamma"].shape[0]
    seq = x_btd.astype(jnp.float32)
    for l in range(num_layers):
        w_ih, w_hh, b_ih, b_hh = params["lstm"][l]
        wih = w_ih.T                                   # (Din, 4H), gate order [i, f, g, o]
        whh = w_hh.T                                   # (H, 4H)
        b = (b_ih + b_hh)[None, :]
        h = jnp.zeros((B, H), jnp.float32)
        c = jnp.zeros((B, H), jnp.float32)
        outs = []
        for t in range(T):
            g_all = _mm_bf16(seq[:, t, :], wih) + _mm_bf16(h, whh) + b
            i = jax.nn.sigmoid(g_all[:, 0 * H:1 * H])
            f = jax.nn.sigmoid(g_all[:, 1 * H:2 * H])
            g = jnp.tanh(g_all[:, 2 * H:3 * H])
            o = jax.nn.sigmoid(g_all[:, 3 * H:4 * H])
            c = f * c + i * g
            h = o * jnp.tanh(c)
            outs.append(h)
        seq = jnp.stack(outs, axis=1)                  # (B, T, H)

    mean = jnp.mean(seq, axis=(0, 2), keepdims=True)   # per-timestep channel stats
    var = jnp.mean((seq - mean) ** 2, axis=(0, 2), keepdims=True)
    xbn = (seq - mean) * lax.rsqrt(var + 1e-5)
    xbn = xbn * params["bn_gamma"][None, :, None] + params["bn_beta"][None, :, None]
    y1 = jnp.maximum(_mm_bf16(xbn, params["fc1_w"].T) + params["fc1_b"], 0.0)
    return _mm_bf16(y1, params["fc2_w"].T) + params["fc2_b"]


if __name__ == "__main__":
    # seq_len must equal hidden_dim for nn.BatchNorm1d(hidden_dim) to accept (B, T, H).
    B, T = 2, 16
    INPUT_DIM, HIDDEN_DIM, OUTPUT_DIM, NUM_LAYERS = 8, 16, 4, 2

    key = jax.random.PRNGKey(0)
    key, kx, kp = jax.random.split(key, 3)
    x = jax.random.normal(kx, (B, T, INPUT_DIM), jnp.float32)
    params = init_params(kp, INPUT_DIM, HIDDEN_DIM, OUTPUT_DIM, NUM_LAYERS)

    fwd = jax.jit(forward_pallas, static_argnums=2)
    out = jax.block_until_ready(fwd(x, params, NUM_LAYERS))
    assert out.shape == (B, T, OUTPUT_DIM), out.shape

    ref = jax.block_until_ready(forward_reference(x, params, NUM_LAYERS))
    if not jnp.allclose(out, ref, rtol=2e-3, atol=2e-3):
        raise AssertionError(
            f"mismatch: max abs err = {float(jnp.max(jnp.abs(out - ref)))}")

    print("KERNEL_OK")
</pallas_src>

<mosaic_0001>
module attributes {stable_mosaic.version = 11 : i64} {
  func.func @fused_lstm_gateatten_kernel(%arg0: memref<16x2x8xbf16, #tpu.memory_space<vmem>>, %arg1: memref<8x64xbf16, #tpu.memory_space<vmem>>, %arg2: memref<16x64xbf16, #tpu.memory_space<vmem>>, %arg3: memref<1x64xf32, #tpu.memory_space<vmem>>, %arg4: memref<16x64xbf16, #tpu.memory_space<vmem>>, %arg5: memref<16x64xbf16, #tpu.memory_space<vmem>>, %arg6: memref<1x64xf32, #tpu.memory_space<vmem>>, %arg7: memref<16x1x1xf32, #tpu.memory_space<vmem>>, %arg8: memref<16x1x1xf32, #tpu.memory_space<vmem>>, %arg9: memref<16x16xbf16, #tpu.memory_space<vmem>>, %arg10: memref<1x16xf32, #tpu.memory_space<vmem>>, %arg11: memref<16x128xbf16, #tpu.memory_space<vmem>>, %arg12: memref<1x128xf32, #tpu.memory_space<vmem>>, %arg13: memref<16x2x128xf32, #tpu.memory_space<vmem>>, %arg14: memref<16x2x16xf32, #tpu.memory_space<vmem>>) attributes {dimension_semantics = [], scalar_prefetch = 0 : i64, scratch_operands = 1 : i64, tpu.core_type = #tpu.core_type<tc>} {
    %c0 = arith.constant 0 : index
    %c0_0 = arith.constant 0 : index
    %0 = vector.load %arg1[%c0, %c0_0] : memref<8x64xbf16, #tpu.memory_space<vmem>>, vector<8x64xbf16>
    %c0_1 = arith.constant 0 : index
    %c0_2 = arith.constant 0 : index
    %1 = vector.load %arg2[%c0_1, %c0_2] : memref<16x64xbf16, #tpu.memory_space<vmem>>, vector<16x64xbf16>
    %c0_3 = arith.constant 0 : index
    %c0_4 = arith.constant 0 : index
    %2 = vector.load %arg3[%c0_3, %c0_4] : memref<1x64xf32, #tpu.memory_space<vmem>>, vector<1x64xf32>
    %cst = arith.constant 0.000000e+00 : f32
    %3 = vector.broadcast %cst : f32 to vector<2x16xf32>
    %cst_5 = arith.constant 0.000000e+00 : f32
    %4 = vector.broadcast %cst_5 : f32 to vector<2x16xf32>
    %c0_i32 = arith.constant 0 : i32
    %5 = arith.index_cast %c0_i32 : i32 to index
    %c0_6 = arith.constant 0 : index
    %c0_7 = arith.constant 0 : index
    %6 = vector.load %arg0[%5, %c0_6, %c0_7] : memref<16x2x8xbf16, #tpu.memory_space<vmem>>, vector<1x2x8xbf16>
    %7 = vector.shape_cast %6 : vector<1x2x8xbf16> to vector<2x8xbf16>
    %cst_8 = arith.constant dense<0.000000e+00> : vector<2x64xf32>
    %8 = tpu.matmul %7, %0, %cst_8 {dimension_numbers = #tpu.dot_dimension_numbers<[1], [0], [0], [1], [0, 0, 1, 1], [], []>} : vector<2x8xbf16>, vector<8x64xbf16>, vector<2x64xf32> -> vector<2x64xf32>
    %9 = arith.truncf %3 : vector<2x16xf32> to vector<2x16xbf16>
    %cst_9 = arith.constant dense<0.000000e+00> : vector<2x64xf32>
    %10 = tpu.matmul %9, %1, %cst_9 {dimension_numbers = #tpu.dot_dimension_numbers<[1], [0], [0], [1], [0, 0, 1, 1], [], []>} : vector<2x16xbf16>, vector<16x64xbf16>, vector<2x64xf32> -> vector<2x64xf32>
    %11 = arith.addf %8, %10 : vector<2x64xf32>
    %12 = vector.broadcast %2 : vector<1x64xf32> to vector<2x64xf32>
    %13 = arith.addf %11, %12 : vector<2x64xf32>
    %14 = vector.extract_strided_slice %13 {offsets = [0, 0], sizes = [2, 48], strides = [1, 1]} : vector<2x64xf32> to vector<2x48xf32>
    %15 = arith.negf %14 : vector<2x48xf32>
    %16 = math.exp %15 : vector<2x48xf32>
    %cst_10 = arith.constant 1.000000e+00 : f32
    %17 = vector.broadcast %cst_10 : f32 to vector<2x48xf32>
    %18 = arith.addf %17, %16 : vector<2x48xf32>
    %19 = arith.divf %17, %18 : vector<2x48xf32>
    %20 = vector.extract_strided_slice %13 {offsets = [0, 48], sizes = [2, 16], strides = [1, 1]} : vector<2x64xf32> to vector<2x16xf32>
    %21 = math.tanh %20 : vector<2x16xf32>
    %22 = vector.extract_strided_slice %19 {offsets = [0, 0], sizes = [2, 16], strides = [1, 1]} : vector<2x48xf32> to vector<2x16xf32>
    %23 = vector.extract_strided_slice %19 {offsets = [0, 16], sizes = [2, 16], strides = [1, 1]} : vector<2x48xf32> to vector<2x16xf32>
    %24 = vector.extract_strided_slice %19 {offsets = [0, 32], sizes = [2, 16], strides = [1, 1]} : vector<2x48xf32> to vector<2x16xf32>
    %25 = arith.mulf %23, %4 : vector<2x16xf32>
    %26 = arith.mulf %22, %21 : vector<2x16xf32>
    %27 = arith.addf %25, %26 : vector<2x16xf32>
    %28 = math.tanh %27 : vector<2x16xf32>
    %29 = arith.mulf %24, %28 : vector<2x16xf32>
    %30 = arith.index_cast %c0_i32 : i32 to index
    %c0_11 = arith.constant 0 : index
    %c0_12 = arith.constant 0 : index
    %31 = vector.load %arg14[%30, %c0_11, %c0_12] : memref<16x2x16xf32, #tpu.memory_space<vmem>>, vector<1x2x16xf32>
    %32 = vector.shape_cast %31 : vector<1x2x16xf32> to vector<2x16xf32>
    %33 = vector.shape_cast %29 : vector<2x16xf32> to vector<1x2x16xf32>
    tpu.vector_store %arg14[%30, %c0_11, %c0_12], %33 {strides = array<i32>} : memref<16x2x16xf32, #tpu.memory_space<vmem>>, vector<1x2x16xf32>,
    %c1_i32 = arith.constant 1 : i32
    %34 = arith.index_cast %c1_i32 : i32 to index
    %c0_13 = arith.constant 0 : index
    %c0_14 = arith.constant 0 : index
    %35 = vector.load %arg0[%34, %c0_13, %c0_14] : memref<16x2x8xbf16, #tpu.memory_space<vmem>>, vector<1x2x8xbf16>
    %36 = vector.shape_cast %35 : vector<1x2x8xbf16> to vector<2x8xbf16>
    %cst_15 = arith.constant dense<0.000000e+00> : vector<2x64xf32>
    %37 = tpu.matmul %36, %0, %cst_15 {dimension_numbers = #tpu.dot_dimension_numbers<[1], [0], [0], [1], [0, 0, 1, 1], [], []>} : vector<2x8xbf16>, vector<8x64xbf16>, vector<2x64xf32> -> vector<2x64xf32>
    %38 = arith.truncf %29 : vector<2x16xf32> to vector<2x16xbf16>
    %cst_16 = arith.constant dense<0.000000e+00> : vector<2x64xf32>
    %39 = tpu.matmul %38, %1, %cst_16 {dimension_numbers = #tpu.dot_dimension_numbers<[1], [0], [0], [1], [0, 0, 1, 1], [], []>} : vector<2x16xbf16>, vector<16x64xbf16>, vector<2x64xf32> -> vector<2x64xf32>
    %40 = arith.addf %37, %39 : vector<2x64xf32>
    %41 = vector.broadcast %2 : vector<1x64xf32> to vector<2x64xf32>
    %42 = arith.addf %40, %41 : vector<2x64xf32>
    %43 = vector.extract_strided_slice %42 {offsets = [0, 0], sizes = [2, 48], strides = [1, 1]} : vector<2x64xf32> to vector<2x48xf32>
    %44 = arith.negf %43 : vector<2x48xf32>
    %45 = math.exp %44 : vector<2x48xf32>
    %cst_17 = arith.constant 1.000000e+00 : f32
    %46 = vector.broadcast %cst_17 : f32 to vector<2x48xf32>
    %47 = arith.addf %46, %45 : vector<2x48xf32>
    %48 = arith.divf %46, %47 : vector<2x48xf32>
    %49 = vector.extract_strided_slice %42 {offsets = [0, 48], sizes = [2, 16], strides = [1, 1]} : vector<2x64xf32> to vector<2x16xf32>
    %50 = math.tanh %49 : vector<2x16xf32>
    %51 = vector.extract_strided_slice %48 {offsets = [0, 0], sizes = [2, 16], strides = [1, 1]} : vector<2x48xf32> to vector<2x16xf32>
    %52 = vector.extract_strided_slice %48 {offsets = [0, 16], sizes = [2, 16], strides = [1, 1]} : vector<2x48xf32> to vector<2x16xf32>
    %53 = vector.extract_strided_slice %48 {offsets = [0, 32], sizes = [2, 16], strides = [1, 1]} : vector<2x48xf32> to vector<2x16xf32>
    %54 = arith.mulf %52, %27 : vector<2x16xf32>
    %55 = arith.mulf %51, %50 : vector<2x16xf32>
    %56 = arith.addf %54, %55 : vector<2x16xf32>
    %57 = math.tanh %56 : vector<2x16xf32>
    %58 = arith.mulf %53, %57 : vector<2x16xf32>
    %59 = arith.index_cast %c1_i32 : i32 to index
    %c0_18 = arith.constant 0 : index
    %c0_19 = arith.constant 0 : index
    %60 = vector.load %arg14[%59, %c0_18, %c0_19] : memref<16x2x16xf32, #tpu.memory_space<vmem>>, vector<1x2x16xf32>
    %61 = vector.shape_cast %60 : vector<1x2x16xf32> to vector<2x16xf32>
    %62 = vector.shape_cast %58 : vector<2x16xf32> to vector<1x2x16xf32>
    tpu.vector_store %arg14[%59, %c0_18, %c0_19], %62 {strides = array<i32>} : memref<16x2x16xf32, #tpu.memory_space<vmem>>, vector<1x2x16xf32>,
    %c2_i32 = arith.constant 2 : i32
    %63 = arith.index_cast %c2_i32 : i32 to index
    %c0_20 = arith.constant 0 : index
    %c0_21 = arith.constant 0 : index
    %64 = vector.load %arg0[%63, %c0_20, %c0_21] : memref<16x2x8xbf16, #tpu.memory_space<vmem>>, vector<1x2x8xbf16>
    %65 = vector.shape_cast %64 : vector<1x2x8xbf16> to vector<2x8xbf16>
    %cst_22 = arith.constant dense<0.000000e+00> : vector<2x64xf32>
    %66 = tpu.matmul %65, %0, %cst_22 {dimension_numbers = #tpu.dot_dimension_numbers<[1], [0], [0], [1], [0, 0, 1, 1], [], []>} : vector<2x8xbf16>, vector<8x64xbf16>, vector<2x64xf32> -> vector<2x64xf32>
    %67 = arith.truncf %58 : vector<2x16xf32> to vector<2x16xbf16>
    %cst_23 = arith.constant dense<0.000000e+00> : vector<2x64xf32>
    %68 = tpu.matmul %67, %1, %cst_23 {dimension_numbers = #tpu.dot_dimension_numbers<[1], [0], [0], [1], [0, 0, 1, 1], [], []>} : vector<2x16xbf16>, vector<16x64xbf16>, vector<2x64xf32> -> vector<2x64xf32>
    %69 = arith.addf %66, %68 : vector<2x64xf32>
    %70 = vector.broadcast %2 : vector<1x64xf32> to vector<2x64xf32>
    %71 = arith.addf %69, %70 : vector<2x64xf32>
    %72 = vector.extract_strided_slice %71 {offsets = [0, 0], sizes = [2, 48], strides = [1, 1]} : vector<2x64xf32> to vector<2x48xf32>
    %73 = arith.negf %72 : vector<2x48xf32>
    %74 = math.exp %73 : vector<2x48xf32>
    %cst_24 = arith.constant 1.000000e+00 : f32
    %75 = vector.broadcast %cst_24 : f32 to vector<2x48xf32>
    %76 = arith.addf %75, %74 : vector<2x48xf32>
    %77 = arith.divf %75, %76 : vector<2x48xf32>
    %78 = vector.extract_strided_slice %71 {offsets = [0, 48], sizes = [2, 16], strides = [1, 1]} : vector<2x64xf32> to vector<2x16xf32>
    %79 = math.tanh %78 : vector<2x16xf32>
    %80 = vector.extract_strided_slice %77 {offsets = [0, 0], sizes = [2, 16], strides = [1, 1]} : vector<2x48xf32> to vector<2x16xf32>
    %81 = vector.extract_strided_slice %77 {offsets = [0, 16], sizes = [2, 16], strides = [1, 1]} : vector<2x48xf32> to vector<2x16xf32>
    %82 = vector.extract_strided_slice %77 {offsets = [0, 32], sizes = [2, 16], strides = [1, 1]} : vector<2x48xf32> to vector<2x16xf32>
    %83 = arith.mulf %81, %56 : vector<2x16xf32>
    %84 = arith.mulf %80, %79 : vector<2x16xf32>
    %85 = arith.addf %83, %84 : vector<2x16xf32>
    %86 = math.tanh %85 : vector<2x16xf32>
    %87 = arith.mulf %82, %86 : vector<2x16xf32>
    %88 = arith.index_cast %c2_i32 : i32 to index
    %c0_25 = arith.constant 0 : index
    %c0_26 = arith.constant 0 : index
    %89 = vector.load %arg14[%88, %c0_25, %c0_26] : memref<16x2x16xf32, #tpu.memory_space<vmem>>, vector<1x2x16xf32>
    %90 = vector.shape_cast %89 : vector<1x2x16xf32> to vector<2x16xf32>
    %91 = vector.shape_cast %87 : vector<2x16xf32> to vector<1x2x16xf32>
    tpu.vector_store %arg14[%88, %c0_25, %c0_26], %91 {strides = array<i32>} : memref<16x2x16xf32, #tpu.memory_space<vmem>>, vector<1x2x16xf32>,
    %c3_i32 = arith.constant 3 : i32
    %92 = arith.index_cast %c3_i32 : i32 to index
    %c0_27 = arith.constant 0 : index
    %c0_28 = arith.constant 0 : index
    %93 = vector.load %arg0[%92, %c0_27, %c0_28] : memref<16x2x8xbf16, #tpu.memory_space<vmem>>, vector<1x2x8xbf16>
    %94 = vector.shape_cast %93 : vector<1x2x8xbf16> to vector<2x8xbf16>
    %cst_29 = arith.constant dense<0.000000e+00> : vector<2x64xf32>
    %95 = tpu.matmul %94, %0, %cst_29 {dimension_numbers = #tpu.dot_dimension_numbers<[1], [0], [0], [1], [0, 0, 1, 1], [], []>} : vector<2x8xbf16>, vector<8x64xbf16>, vector<2x64xf32> -> vector<2x64xf32>
    %96 = arith.truncf %87 : vector<2x16xf32> to vector<2x16xbf16>
    %cst_30 = arith.constant dense<0.000000e+00> : vector<2x64xf32>
    %97 = tpu.matmul %96, %1, %cst_30 {dimension_numbers = #tpu.dot_dimension_numbers<[1], [0], [0], [1], [0, 0, 1, 1], [], []>} : vector<2x16xbf16>, vector<16x64xbf16>, vector<2x64xf32> -> vector<2x64xf32>
    %98 = arith.addf %95, %97 : vector<2x64xf32>
    %99 = vector.broadcast %2 : vector<1x64xf32> to vector<2x64xf32>
    %100 = arith.addf %98, %99 : vector<2x64xf32>
    %101 = vector.extract_strided_slice %100 {offsets = [0, 0], sizes = [2, 48], strides = [1, 1]} : vector<2x64xf32> to vector<2x48xf32>
    %102 = arith.negf %101 : vector<2x48xf32>
    %103 = math.exp %102 : vector<2x48xf32>
    %cst_31 = arith.constant 1.000000e+00 : f32
    %104 = vector.broadcast %cst_31 : f32 to vector<2x48xf32>
    %105 = arith.addf %104, %103 : vector<2x48xf32>
    %106 = arith.divf %104, %105 : vector<2x48xf32>
    %107 = vector.extract_strided_slice %100 {offsets = [0, 48], sizes = [2, 16], strides = [1, 1]} : vector<2x64xf32> to vector<2x16xf32>
    %108 = math.tanh %107 : vector<2x16xf32>
    %109 = vector.extract_strided_slice %106 {offsets = [0, 0], sizes = [2, 16], strides = [1, 1]} : vector<2x48xf32> to vector<2x16xf32>
    %110 = vector.extract_strided_slice %106 {offsets = [0, 16], sizes = [2, 16], strides = [1, 1]} : vector<2x48xf32> to vector<2x16xf32>
    %111 = vector.extract_strided_slice %106 {offsets = [0, 32], sizes = [2, 16], strides = [1, 1]} : vector<2x48xf32> to vector<2x16xf32>
    %112 = arith.mulf %110, %85 : vector<2x16xf32>
    %113 = arith.mulf %109, %108 : vector<2x16xf32>
    %114 = arith.addf %112, %113 : vector<2x16xf32>
    %115 = math.tanh %114 : vector<2x16xf32>
    %116 = arith.mulf %111, %115 : vector<2x16xf32>
    %117 = arith.index_cast %c3_i32 : i32 to index
    %c0_32 = arith.constant 0 : index
    %c0_33 = arith.constant 0 : index
    %118 = vector.load %arg14[%117, %c0_32, %c0_33] : memref<16x2x16xf32, #tpu.memory_space<vmem>>, vector<1x2x16xf32>
    %119 = vector.shape_cast %118 : vector<1x2x16xf32> to vector<2x16xf32>
    %120 = vector.shape_cast %116 : vector<2x16xf32> to vector<1x2x16xf32>
    tpu.vector_store %arg14[%117, %c0_32, %c0_33], %120 {strides = array<i32>} : memref<16x2x16xf32, #tpu.memory_space<vmem>>, vector<1x2x16xf32>,
    %c4_i32 = arith.constant 4 : i32
    %121 = arith.index_cast %c4_i32 : i32 to index
    %c0_34 = arith.constant 0 : index
    %c0_35 = arith.constant 0 : index
    %122 = vector.load %arg0[%121, %c0_34, %c0_35] : memref<16x2x8xbf16, #tpu.memory_space<vmem>>, vector<1x2x8xbf16>
    %123 = vector.shape_cast %122 : vector<1x2x8xbf16> to vector<2x8xbf16>
    %cst_36 = arith.constant dense<0.000000e+00> : vector<2x64xf32>
    %124 = tpu.matmul %123, %0, %cst_36 {dimension_numbers = #tpu.dot_dimension_numbers<[1], [0], [0], [1], [0, 0, 1, 1], [], []>} : vector<2x8xbf16>, vector<8x64xbf16>, vector<2x64xf32> -> vector<2x64xf32>
    %125 = arith.truncf %116 : vector<2x16xf32> to vector<2x16xbf16>
    %cst_37 = arith.constant dense<0.000000e+00> : vector<2x64xf32>
    %126 = tpu.matmul %125, %1, %cst_37 {dimension_numbers = #tpu.dot_dimension_numbers<[1], [0], [0], [1], [0, 0, 1, 1], [], []>} : vector<2x16xbf16>, vector<16x64xbf16>, vector<2x64xf32> -> vector<2x64xf32>
    %127 = arith.addf %124, %126 : vector<2x64xf32>
    %128 = vector.broadcast %2 : vector<1x64xf32> to vector<2x64xf32>
    %129 = arith.addf %127, %128 : vector<2x64xf32>
    %130 = vector.extract_strided_slice %129 {offsets = [0, 0], sizes = [2, 48], strides = [1, 1]} : vector<2x64xf32> to vector<2x48xf32>
    %131 = arith.negf %130 : vector<2x48xf32>
    %132 = math.exp %131 : vector<2x48xf32>
    %cst_38 = arith.constant 1.000000e+00 : f32
    %133 = vector.broadcast %cst_38 : f32 to vector<2x48xf32>
    %134 = arith.addf %133, %132 : vector<2x48xf32>
    %135 = arith.divf %133, %134 : vector<2x48xf32>
    %136 = vector.extract_strided_slice %129 {offsets = [0, 48], sizes = [2, 16], strides = [1, 1]} : vector<2x64xf32> to vector<2x16xf32>
    %137 = math.tanh %136 : vector<2x16xf32>
    %138 = vector.extract_strided_slice %135 {offsets = [0, 0], sizes = [2, 16], strides = [1, 1]} : vector<2x48xf32> to vector<2x16xf32>
    %139 = vector.extract_strided_slice %135 {offsets = [0, 16], sizes = [2, 16], strides = [1, 1]} : vector<2x48xf32> to vector<2x16xf32>
    %140 = vector.extract_strided_slice %135 {offsets = [0, 32], sizes = [2, 16], strides = [1, 1]} : vector<2x48xf32> to vector<2x16xf32>
    %141 = arith.mulf %139, %114 : vector<2x16xf32>
    %142 = arith.mulf %138, %137 : vector<2x16xf32>
    %143 = arith.addf %141, %142 : vector<2x16xf32>
    %144 = math.tanh %143 : vector<2x16xf32>
    %145 = arith.mulf %140, %144 : vector<2x16xf32>
    %146 = arith.index_cast %c4_i32 : i32 to index
    %c0_39 = arith.constant 0 : index
    %c0_40 = arith.constant 0 : index
    %147 = vector.load %arg14[%146, %c0_39, %c0_40] : memref<16x2x16xf32, #tpu.memory_space<vmem>>, vector<1x2x16xf32>
    %148 = vector.shape_cast %147 : vector<1x2x16xf32> to vector<2x16xf32>
    %149 = vector.shape_cast %145 : vector<2x16xf32> to vector<1x2x16xf32>
    tpu.vector_store %arg14[%146, %c0_39, %c0_40], %149 {strides = array<i32>} : memref<16x2x16xf32, #tpu.memory_space<vmem>>, vector<1x2x16xf32>,
    %c5_i32 = arith.constant 5 : i32
    %150 = arith.index_cast %c5_i32 : i32 to index
    %c0_41 = arith.constant 0 : index
    %c0_42 = arith.constant 0 : index
    %151 = vector.load %arg0[%150, %c0_41, %c0_42] : memref<16x2x8xbf16, #tpu.memory_space<vmem>>, vector<1x2x8xbf16>
    %152 = vector.shape_cast %151 : vector<1x2x8xbf16> to vector<2x8xbf16>
    %cst_43 = arith.constant dense<0.000000e+00> : vector<2x64xf32>
    %153 = tpu.matmul %152, %0, %cst_43 {dimension_numbers = #tpu.dot_dimension_numbers<[1], [0], [0], [1], [0, 0, 1, 1], [], []>} : vector<2x8xbf16>, vector<8x64xbf16>, vector<2x64xf32> -> vector<2x64xf32>
    %154 = arith.truncf %145 : vector<2x16xf32> to vector<2x16xbf16>
    %cst_44 = arith.constant dense<0.000000e+00> : vector<2x64xf32>
    %155 = tpu.matmul %154, %1, %cst_44 {dimension_numbers = #tpu.dot_dimension_numbers<[1], [0], [0], [1], [0, 0, 1, 1], [], []>} : vector<2x16xbf16>, vector<16x64xbf16>, vector<2x64xf32> -> vector<2x64xf32>
    %156 = arith.addf %153, %155 : vector<2x64xf32>
    %157 = vector.broadcast %2 : vector<1x64xf32> to vector<2x64xf32>
    %158 = arith.addf %156, %157 : vector<2x64xf32>
    %159 = vector.extract_strided_slice %158 {offsets = [0, 0], sizes = [2, 48], strides = [1, 1]} : vector<2x64xf32> to vector<2x48xf32>
    %160 = arith.negf %159 : vector<2x48xf32>
    %161 = math.exp %160 : vector<2x48xf32>
    %cst_45 = arith.constant 1.000000e+00 : f32
    %162 = vector.broadcast %cst_45 : f32 to vector<2x48xf32>
    %163 = arith.addf %162, %161 : vector<2x48xf32>
    %164 = arith.divf %162, %163 : vector<2x48xf32>
    %165 = vector.extract_strided_slice %158 {offsets = [0, 48], sizes = [2, 16], strides = [1, 1]} : vector<2x64xf32> to vector<2x16xf32>
    %166 = math.tanh %165 : vector<2x16xf32>
    %167 = vector.extract_strided_slice %164 {offsets = [0, 0], sizes = [2, 16], strides = [1, 1]} : vector<2x48xf32> to vector<2x16xf32>
    %168 = vector.extract_strided_slice %164 {offsets = [0, 16], sizes = [2, 16], strides = [1, 1]} : vector<2x48xf32> to vector<2x16xf32>
    %169 = vector.extract_strided_slice %164 {offsets = [0, 32], sizes = [2, 16], strides = [1, 1]} : vector<2x48xf32> to vector<2x16xf32>
    %170 = arith.mulf %168, %143 : vector<2x16xf32>
    %171 = arith.mulf %167, %166 : vector<2x16xf32>
    %172 = arith.addf %170, %171 : vector<2x16xf32>
    %173 = math.tanh %172 : vector<2x16xf32>
    %174 = arith.mulf %169, %173 : vector<2x16xf32>
    %175 = arith.index_cast %c5_i32 : i32 to index
    %c0_46 = arith.constant 0 : index
    %c0_47 = arith.constant 0 : index
    %176 = vector.load %arg14[%175, %c0_46, %c0_47] : memref<16x2x16xf32, #tpu.memory_space<vmem>>, vector<1x2x16xf32>
    %177 = vector.shape_cast %176 : vector<1x2x16xf32> to vector<2x16xf32>
    %178 = vector.shape_cast %174 : vector<2x16xf32> to vector<1x2x16xf32>
    tpu.vector_store %arg14[%175, %c0_46, %c0_47], %178 {strides = array<i32>} : memref<16x2x16xf32, #tpu.memory_space<vmem>>, vector<1x2x16xf32>,
    %c6_i32 = arith.constant 6 : i32
    %179 = arith.index_cast %c6_i32 : i32 to index
    %c0_48 = arith.constant 0 : index
    %c0_49 = arith.constant 0 : index
    %180 = vector.load %arg0[%179, %c0_48, %c0_49] : memref<16x2x8xbf16, #tpu.memory_space<vmem>>, vector<1x2x8xbf16>
    %181 = vector.shape_cast %180 : vector<1x2x8xbf16> to vector<2x8xbf16>
    %cst_50 = arith.constant dense<0.000000e+00> : vector<2x64xf32>
    %182 = tpu.matmul %181, %0, %cst_50 {dimension_numbers = #tpu.dot_dimension_numbers<[1], [0], [0], [1], [0, 0, 1, 1], [], []>} : vector<2x8xbf16>, vector<8x64xbf16>, vector<2x64xf32> -> vector<2x64xf32>
    %183 = arith.truncf %174 : vector<2x16xf32> to vector<2x16xbf16>
    %cst_51 = arith.constant dense<0.000000e+00> : vector<2x64xf32>
    %184 = tpu.matmul %183, %1, %cst_51 {dimension_numbers = #tpu.dot_dimension_numbers<[1], [0], [0], [1], [0, 0, 1, 1], [], []>} : vector<2x16xbf16>, vector<16x64xbf16>, vector<2x64xf32> -> vector<2x64xf32>
    %185 = arith.addf %182, %184 : vector<2x64xf32>
    %186 = vector.broadcast %2 : vector<1x64xf32> to vector<2x64xf32>
    %187 = arith.addf %185, %186 : vector<2x64xf32>
    %188 = vector.extract_strided_slice %187 {offsets = [0, 0], sizes = [2, 48], strides = [1, 1]} : vector<2x64xf32> to vector<2x48xf32>
    %189 = arith.negf %188 : vector<2x48xf32>
    %190 = math.exp %189 : vector<2x48xf32>
    %cst_52 = arith.constant 1.000000e+00 : f32
    %191 = vector.broadcast %cst_52 : f32 to vector<2x48xf32>
    %192 = arith.addf %191, %190 : vector<2x48xf32>
    %193 = arith.divf %191, %192 : vector<2x48xf32>
    %194 = vector.extract_strided_slice %187 {offsets = [0, 48], sizes = [2, 16], strides = [1, 1]} : vector<2x64xf32> to vector<2x16xf32>
    %195 = math.tanh %194 : vector<2x16xf32>
    %196 = vector.extract_strided_slice %193 {offsets = [0, 0], sizes = [2, 16], strides = [1, 1]} : vector<2x48xf32> to vector<2x16xf32>
    %197 = vector.extract_strided_slice %193 {offsets = [0, 16], sizes = [2, 16], strides = [1, 1]} : vector<2x48xf32> to vector<2x16xf32>
    %198 = vector.extract_strided_slice %193 {offsets = [0, 32], sizes = [2, 16], strides = [1, 1]} : vector<2x48xf32> to vector<2x16xf32>
    %199 = arith.mulf %197, %172 : vector<2x16xf32>
    %200 = arith.mulf %196, %195 : vector<2x16xf32>
    %201 = arith.addf %199, %200 : vector<2x16xf32>
    %202 = math.tanh %201 : vector<2x16xf32>
    %203 = arith.mulf %198, %202 : vector<2x16xf32>
    %204 = arith.index_cast %c6_i32 : i32 to index
    %c0_53 = arith.constant 0 : index
    %c0_54 = arith.constant 0 : index
    %205 = vector.load %arg14[%204, %c0_53, %c0_54] : memref<16x2x16xf32, #tpu.memory_space<vmem>>, vector<1x2x16xf32>
    %206 = vector.shape_cast %205 : vector<1x2x16xf32> to vector<2x16xf32>
    %207 = vector.shape_cast %203 : vector<2x16xf32> to vector<1x2x16xf32>
    tpu.vector_store %arg14[%204, %c0_53, %c0_54], %207 {strides = array<i32>} : memref<16x2x16xf32, #tpu.memory_space<vmem>>, vector<1x2x16xf32>,
    %c7_i32 = arith.constant 7 : i32
    %208 = arith.index_cast %c7_i32 : i32 to index
    %c0_55 = arith.constant 0 : index
    %c0_56 = arith.constant 0 : index
    %209 = vector.load %arg0[%208, %c0_55, %c0_56] : memref<16x2x8xbf16, #tpu.memory_space<vmem>>, vector<1x2x8xbf16>
    %210 = vector.shape_cast %209 : vector<1x2x8xbf16> to vector<2x8xbf16>
    %cst_57 = arith.constant dense<0.000000e+00> : vector<2x64xf32>
    %211 = tpu.matmul %210, %0, %cst_57 {dimension_numbers = #tpu.dot_dimension_numbers<[1], [0], [0], [1], [0, 0, 1, 1], [], []>} : vector<2x8xbf16>, vector<8x64xbf16>, vector<2x64xf32> -> vector<2x64xf32>
    %212 = arith.truncf %203 : vector<2x16xf32> to vector<2x16xbf16>
    %cst_58 = arith.constant dense<0.000000e+00> : vector<2x64xf32>
    %213 = tpu.matmul %212, %1, %cst_58 {dimension_numbers = #tpu.dot_dimension_numbers<[1], [0], [0], [1], [0, 0, 1, 1], [], []>} : vector<2x16xbf16>, vector<16x64xbf16>, vector<2x64xf32> -> vector<2x64xf32>
    %214 = arith.addf %211, %213 : vector<2x64xf32>
    %215 = vector.broadcast %2 : vector<1x64xf32> to vector<2x64xf32>
    %216 = arith.addf %214, %215 : vector<2x64xf32>
    %217 = vector.extract_strided_slice %216 {offsets = [0, 0], sizes = [2, 48], strides = [1, 1]} : vector<2x64xf32> to vector<2x48xf32>
    %218 = arith.negf %217 : vector<2x48xf32>
    %219 = math.exp %218 : vector<2x48xf32>
    %cst_59 = arith.constant 1.000000e+00 : f32
    %220 = vector.broadcast %cst_59 : f32 to vector<2x48xf32>
    %221 = arith.addf %220, %219 : vector<2x48xf32>
    %222 = arith.divf %220, %221 : vector<2x48xf32>
    %223 = vector.extract_strided_slice %216 {offsets = [0, 48], sizes = [2, 16], strides = [1, 1]} : vector<2x64xf32> to vector<2x16xf32>
    %224 = math.tanh %223 : vector<2x16xf32>
    %225 = vector.extract_strided_slice %222 {offsets = [0, 0], sizes = [2, 16], strides = [1, 1]} : vector<2x48xf32> to vector<2x16xf32>
    %226 = vector.extract_strided_slice %222 {offsets = [0, 16], sizes = [2, 16], strides = [1, 1]} : vector<2x48xf32> to vector<2x16xf32>
    %227 = vector.extract_strided_slice %222 {offsets = [0, 32], sizes = [2, 16], strides = [1, 1]} : vector<2x48xf32> to vector<2x16xf32>
    %228 = arith.mulf %226, %201 : vector<2x16xf32>
    %229 = arith.mulf %225, %224 : vector<2x16xf32>
    %230 = arith.addf %228, %229 : vector<2x16xf32>
    %231 = math.tanh %230 : vector<2x16xf32>
    %232 = arith.mulf %227, %231 : vector<2x16xf32>
    %233 = arith.index_cast %c7_i32 : i32 to index
    %c0_60 = arith.constant 0 : index
    %c0_61 = arith.constant 0 : index
    %234 = vector.load %arg14[%233, %c0_60, %c0_61] : memref<16x2x16xf32, #tpu.memory_space<vmem>>, vector<1x2x16xf32>
    %235 = vector.shape_cast %234 : vector<1x2x16xf32> to vector<2x16xf32>
    %236 = vector.shape_cast %232 : vector<2x16xf32> to vector<1x2x16xf32>
    tpu.vector_store %arg14[%233, %c0_60, %c0_61], %236 {strides = array<i32>} : memref<16x2x16xf32, #tpu.memory_space<vmem>>, vector<1x2x16xf32>,
    %c8_i32 = arith.constant 8 : i32
    %237 = arith.index_cast %c8_i32 : i32 to index
    %c0_62 = arith.constant 0 : index
    %c0_63 = arith.constant 0 : index
    %238 = vector.load %arg0[%237, %c0_62, %c0_63] : memref<16x2x8xbf16, #tpu.memory_space<vmem>>, vector<1x2x8xbf16>
    %239 = vector.shape_cast %238 : vector<1x2x8xbf16> to vector<2x8xbf16>
    %cst_64 = arith.constant dense<0.000000e+00> : vector<2x64xf32>
    %240 = tpu.matmul %239, %0, %cst_64 {dimension_numbers = #tpu.dot_dimension_numbers<[1], [0], [0], [1], [0, 0, 1, 1], [], []>} : vector<2x8xbf16>, vector<8x64xbf16>, vector<2x64xf32> -> vector<2x64xf32>
    %241 = arith.truncf %232 : vector<2x16xf32> to vector<2x16xbf16>
    %cst_65 = arith.constant dense<0.000000e+00> : vector<2x64xf32>
    %242 = tpu.matmul %241, %1, %cst_65 {dimension_numbers = #tpu.dot_dimension_numbers<[1], [0], [0], [1], [0, 0, 1, 1], [], []>} : vector<2x16xbf16>, vector<16x64xbf16>, vector<2x64xf32> -> vector<2x64xf32>
    %243 = arith.addf %240, %242 : vector<2x64xf32>
    %244 = vector.broadcast %2 : vector<1x64xf32> to vector<2x64xf32>
    %245 = arith.addf %243, %244 : vector<2x64xf32>
    %246 = vector.extract_strided_slice %245 {offsets = [0, 0], sizes = [2, 48], strides = [1, 1]} : vector<2x64xf32> to vector<2x48xf32>
    %247 = arith.negf %246 : vector<2x48xf32>
    %248 = math.exp %247 : vector<2x48xf32>
    %cst_66 = arith.constant 1.000000e+00 : f32
    %249 = vector.broadcast %cst_66 : f32 to vector<2x48xf32>
    %250 = arith.addf %249, %248 : vector<2x48xf32>
    %251 = arith.divf %249, %250 : vector<2x48xf32>
    %252 = vector.extract_strided_slice %245 {offsets = [0, 48], sizes = [2, 16], strides = [1, 1]} : vector<2x64xf32> to vector<2x16xf32>
    %253 = math.tanh %252 : vector<2x16xf32>
    %254 = vector.extract_strided_slice %251 {offsets = [0, 0], sizes = [2, 16], strides = [1, 1]} : vector<2x48xf32> to vector<2x16xf32>
    %255 = vector.extract_strided_slice %251 {offsets = [0, 16], sizes = [2, 16], strides = [1, 1]} : vector<2x48xf32> to vector<2x16xf32>
    %256 = vector.extract_strided_slice %251 {offsets = [0, 32], sizes = [2, 16], strides = [1, 1]} : vector<2x48xf32> to vector<2x16xf32>
    %257 = arith.mulf %255, %230 : vector<2x16xf32>
    %258 = arith.mulf %254, %253 : vector<2x16xf32>
    %259 = arith.addf %257, %258 : vector<2x16xf32>
    %260 = math.tanh %259 : vector<2x16xf32>
    %261 = arith.mulf %256, %260 : vector<2x16xf32>
    %262 = arith.index_cast %c8_i32 : i32 to index
    %c0_67 = arith.constant 0 : index
    %c0_68 = arith.constant 0 : index
    %263 = vector.load %arg14[%262, %c0_67, %c0_68] : memref<16x2x16xf32, #tpu.memory_space<vmem>>, vector<1x2x16xf32>
    %264 = vector.shape_cast %263 : vector<1x2x16xf32> to vector<2x16xf32>
    %265 = vector.shape_cast %261 : vector<2x16xf32> to vector<1x2x16xf32>
    tpu.vector_store %arg14[%262, %c0_67, %c0_68], %265 {strides = array<i32>} : memref<16x2x16xf32, #tpu.memory_space<vmem>>, vector<1x2x16xf32>,
    %c9_i32 = arith.constant 9 : i32
    %266 = arith.index_cast %c9_i32 : i32 to index
    %c0_69 = arith.constant 0 : index
    %c0_70 = arith.constant 0 : index
    %267 = vector.load %arg0[%266, %c0_69, %c0_70] : memref<16x2x8xbf16, #tpu.memory_space<vmem>>, vector<1x2x8xbf16>
    %268 = vector.shape_cast %267 : vector<1x2x8xbf16> to vector<2x8xbf16>
    %cst_71 = arith.constant dense<0.000000e+00> : vector<2x64xf32>
    %269 = tpu.matmul %268, %0, %cst_71 {dimension_numbers = #tpu.dot_dimension_numbers<[1], [0], [0], [1], [0, 0, 1, 1], [], []>} : vector<2x8xbf16>, vector<8x64xbf16>, vector<2x64xf32> -> vector<2x64xf32>
    %270 = arith.truncf %261 : vector<2x16xf32> to vector<2x16xbf16>
    %cst_72 = arith.constant dense<0.000000e+00> : vector<2x64xf32>
    %271 = tpu.matmul %270, %1, %cst_72 {dimension_numbers = #tpu.dot_dimension_numbers<[1], [0], [0], [1], [0, 0, 1, 1], [], []>} : vector<2x16xbf16>, vector<16x64xbf16>, vector<2x64xf32> -> vector<2x64xf32>
    %272 = arith.addf %269, %271 : vector<2x64xf32>
    %273 = vector.broadcast %2 : vector<1x64xf32> to vector<2x64xf32>
    %274 = arith.addf %272, %273 : vector<2x64xf32>
    %275 = vector.extract_strided_slice %274 {offsets = [0, 0], sizes = [2, 48], strides = [1, 1]} : vector<2x64xf32> to vector<2x48xf32>
    %276 = arith.negf %275 : vector<2x48xf32>
    %277 = math.exp %276 : vector<2x48xf32>
    %cst_73 = arith.constant 1.000000e+00 : f32
    %278 = vector.broadcast %cst_73 : f32 to vector<2x48xf32>
    %279 = arith.addf %278, %277 : vector<2x48xf32>
    %280 = arith.divf %278, %279 : vector<2x48xf32>
    %281 = vector.extract_strided_slice %274 {offsets = [0, 48], sizes = [2, 16], strides = [1, 1]} : vector<2x64xf32> to vector<2x16xf32>
    %282 = math.tanh %281 : vector<2x16xf32>
    %283 = vector.extract_strided_slice %280 {offsets = [0, 0], sizes = [2, 16], strides = [1, 1]} : vector<2x48xf32> to vector<2x16xf32>
    %284 = vector.extract_strided_slice %280 {offsets = [0, 16], sizes = [2, 16], strides = [1, 1]} : vector<2x48xf32> to vector<2x16xf32>
    %285 = vector.extract_strided_slice %280 {offsets = [0, 32], sizes = [2, 16], strides = [1, 1]} : vector<2x48xf32> to vector<2x16xf32>
    %286 = arith.mulf %284, %259 : vector<2x16xf32>
    %287 = arith.mulf %283, %282 : vector<2x16xf32>
    %288 = arith.addf %286, %287 : vector<2x16xf32>
    %289 = math.tanh %288 : vector<2x16xf32>
    %290 = arith.mulf %285, %289 : vector<2x16xf32>
    %291 = arith.index_cast %c9_i32 : i32 to index
    %c0_74 = arith.constant 0 : index
    %c0_75 = arith.constant 0 : index
    %292 = vector.load %arg14[%291, %c0_74, %c0_75] : memref<16x2x16xf32, #tpu.memory_space<vmem>>, vector<1x2x16xf32>
    %293 = vector.shape_cast %292 : vector<1x2x16xf32> to vector<2x16xf32>
    %294 = vector.shape_cast %290 : vector<2x16xf32> to vector<1x2x16xf32>
    tpu.vector_store %arg14[%291, %c0_74, %c0_75], %294 {strides = array<i32>} : memref<16x2x16xf32, #tpu.memory_space<vmem>>, vector<1x2x16xf32>,
    %c10_i32 = arith.constant 10 : i32
    %295 = arith.index_cast %c10_i32 : i32 to index
    %c0_76 = arith.constant 0 : index
    %c0_77 = arith.constant 0 : index
    %296 = vector.load %arg0[%295, %c0_76, %c0_77] : memref<16x2x8xbf16, #tpu.memory_space<vmem>>, vector<1x2x8xbf16>
    %297 = vector.shape_cast %296 : vector<1x2x8xbf16> to vector<2x8xbf16>
    %cst_78 = arith.constant dense<0.000000e+00> : vector<2x64xf32>
    %298 = tpu.matmul %297, %0, %cst_78 {dimension_numbers = #tpu.dot_dimension_numbers<[1], [0], [0], [1], [0, 0, 1, 1], [], []>} : vector<2x8xbf16>, vector<8x64xbf16>, vector<2x64xf32> -> vector<2x64xf32>
    %299 = arith.truncf %290 : vector<2x16xf32> to vector<2x16xbf16>
    %cst_79 = arith.constant dense<0.000000e+00> : vector<2x64xf32>
    %300 = tpu.matmul %299, %1, %cst_79 {dimension_numbers = #tpu.dot_dimension_numbers<[1], [0], [0], [1], [0, 0, 1, 1], [], []>} : vector<2x16xbf16>, vector<16x64xbf16>, vector<2x64xf32> -> vector<2x64xf32>
    %301 = arith.addf %298, %300 : vector<2x64xf32>
    %302 = vector.broadcast %2 : vector<1x64xf32> to vector<2x64xf32>
    %303 = arith.addf %301, %302 : vector<2x64xf32>
    %304 = vector.extract_strided_slice %303 {offsets = [0, 0], sizes = [2, 48], strides = [1, 1]} : vector<2x64xf32> to vector<2x48xf32>
    %305 = arith.negf %304 : vector<2x48xf32>
    %306 = math.exp %305 : vector<2x48xf32>
    %cst_80 = arith.constant 1.000000e+00 : f32
    %307 = vector.broadcast %cst_80 : f32 to vector<2x48xf32>
    %308 = arith.addf %307, %306 : vector<2x48xf32>
    %309 = arith.divf %307, %308 : vector<2x48xf32>
    %310 = vector.extract_strided_slice %303 {offsets = [0, 48], sizes = [2, 16], strides = [1, 1]} : vector<2x64xf32> to vector<2x16xf32>
    %311 = math.tanh %310 : vector<2x16xf32>
    %312 = vector.extract_strided_slice %309 {offsets = [0, 0], sizes = [2, 16], strides = [1, 1]} : vector<2x48xf32> to vector<2x16xf32>
    %313 = vector.extract_strided_slice %309 {offsets = [0, 16], sizes = [2, 16], strides = [1, 1]} : vector<2x48xf32> to vector<2x16xf32>
    %314 = vector.extract_strided_slice %309 {offsets = [0, 32], sizes = [2, 16], strides = [1, 1]} : vector<2x48xf32> to vector<2x16xf32>
    %315 = arith.mulf %313, %288 : vector<2x16xf32>
    %316 = arith.mulf %312, %311 : vector<2x16xf32>
    %317 = arith.addf %315, %316 : vector<2x16xf32>
    %318 = math.tanh %317 : vector<2x16xf32>
    %319 = arith.mulf %314, %318 : vector<2x16xf32>
    %320 = arith.index_cast %c10_i32 : i32 to index
    %c0_81 = arith.constant 0 : index
    %c0_82 = arith.constant 0 : index
    %321 = vector.load %arg14[%320, %c0_81, %c0_82] : memref<16x2x16xf32, #tpu.memory_space<vmem>>, vector<1x2x16xf32>
    %322 = vector.shape_cast %321 : vector<1x2x16xf32> to vector<2x16xf32>
    %323 = vector.shape_cast %319 : vector<2x16xf32> to vector<1x2x16xf32>
    tpu.vector_store %arg14[%320, %c0_81, %c0_82], %323 {strides = array<i32>} : memref<16x2x16xf32, #tpu.memory_space<vmem>>, vector<1x2x16xf32>,
    %c11_i32 = arith.constant 11 : i32
    %324 = arith.index_cast %c11_i32 : i32 to index
    %c0_83 = arith.constant 0 : index
    %c0_84 = arith.constant 0 : index
    %325 = vector.load %arg0[%324, %c0_83, %c0_84] : memref<16x2x8xbf16, #tpu.memory_space<vmem>>, vector<1x2x8xbf16>
    %326 = vector.shape_cast %325 : vector<1x2x8xbf16> to vector<2x8xbf16>
    %cst_85 = arith.constant dense<0.000000e+00> : vector<2x64xf32>
    %327 = tpu.matmul %326, %0, %cst_85 {dimension_numbers = #tpu.dot_dimension_numbers<[1], [0], [0], [1], [0, 0, 1, 1], [], []>} : vector<2x8xbf16>, vector<8x64xbf16>, vector<2x64xf32> -> vector<2x64xf32>
    %328 = arith.truncf %319 : vector<2x16xf32> to vector<2x16xbf16>
    %cst_86 = arith.constant dense<0.000000e+00> : vector<2x64xf32>
    %329 = tpu.matmul %328, %1, %cst_86 {dimension_numbers = #tpu.dot_dimension_numbers<[1], [0], [0], [1], [0, 0, 1, 1], [], []>} : vector<2x16xbf16>, vector<16x64xbf16>, vector<2x64xf32> -> vector<2x64xf32>
    %330 = arith.addf %327, %329 : vector<2x64xf32>
    %331 = vector.broadcast %2 : vector<1x64xf32> to vector<2x64xf32>
    %332 = arith.addf %330, %331 : vector<2x64xf32>
    %333 = vector.extract_strided_slice %332 {offsets = [0, 0], sizes = [2, 48], strides = [1, 1]} : vector<2x64xf32> to vector<2x48xf32>
    %334 = arith.negf %333 : vector<2x48xf32>
    %335 = math.exp %334 : vector<2x48xf32>
    %cst_87 = arith.constant 1.000000e+00 : f32
    %336 = vector.broadcast %cst_87 : f32 to vector<2x48xf32>
    %337 = arith.addf %336, %335 : vector<2x48xf32>
    %338 = arith.divf %336, %337 : vector<2x48xf32>
    %339 = vector.extract_strided_slice %332 {offsets = [0, 48], sizes = [2, 16], strides = [1, 1]} : vector<2x64xf32> to vector<2x16xf32>
    %340 = math.tanh %339 : vector<2x16xf32>
    %341 = vector.extract_strided_slice %338 {offsets = [0, 0], sizes = [2, 16], strides = [1, 1]} : vector<2x48xf32> to vector<2x16xf32>
    %342 = vector.extract_strided_slice %338 {offsets = [0, 16], sizes = [2, 16], strides = [1, 1]} : vector<2x48xf32> to vector<2x16xf32>
    %343 = vector.extract_strided_slice %338 {offsets = [0, 32], sizes = [2, 16], strides = [1, 1]} : vector<2x48xf32> to vector<2x16xf32>
    %344 = arith.mulf %342, %317 : vector<2x16xf32>
    %345 = arith.mulf %341, %340 : vector<2x16xf32>
    %346 = arith.addf %344, %345 : vector<2x16xf32>
    %347 = math.tanh %346 : vector<2x16xf32>
    %348 = arith.mulf %343, %347 : vector<2x16xf32>
    %349 = arith.index_cast %c11_i32 : i32 to index
    %c0_88 = arith.constant 0 : index
    %c0_89 = arith.constant 0 : index
    %350 = vector.load %arg14[%349, %c0_88, %c0_89] : memref<16x2x16xf32, #tpu.memory_space<vmem>>, vector<1x2x16xf32>
    %351 = vector.shape_cast %350 : vector<1x2x16xf32> to vector<2x16xf32>
    %352 = vector.shape_cast %348 : vector<2x16xf32> to vector<1x2x16xf32>
    tpu.vector_store %arg14[%349, %c0_88, %c0_89], %352 {strides = array<i32>} : memref<16x2x16xf32, #tpu.memory_space<vmem>>, vector<1x2x16xf32>,
    %c12_i32 = arith.constant 12 : i32
    %353 = arith.index_cast %c12_i32 : i32 to index
    %c0_90 = arith.constant 0 : index
    %c0_91 = arith.constant 0 : index
    %354 = vector.load %arg0[%353, %c0_90, %c0_91] : memref<16x2x8xbf16, #tpu.memory_space<vmem>>, vector<1x2x8xbf16>
    %355 = vector.shape_cast %354 : vector<1x2x8xbf16> to vector<2x8xbf16>
    %cst_92 = arith.constant dense<0.000000e+00> : vector<2x64xf32>
    %356 = tpu.matmul %355, %0, %cst_92 {dimension_numbers = #tpu.dot_dimension_numbers<[1], [0], [0], [1], [0, 0, 1, 1], [], []>} : vector<2x8xbf16>, vector<8x64xbf16>, vector<2x64xf32> -> vector<2x64xf32>
    %357 = arith.truncf %348 : vector<2x16xf32> to vector<2x16xbf16>
    %cst_93 = arith.constant dense<0.000000e+00> : vector<2x64xf32>
    %358 = tpu.matmul %357, %1, %cst_93 {dimension_numbers = #tpu.dot_dimension_numbers<[1], [0], [0], [1], [0, 0, 1, 1], [], []>} : vector<2x16xbf16>, vector<16x64xbf16>, vector<2x64xf32> -> vector<2x64xf32>
    %359 = arith.addf %356, %358 : vector<2x64xf32>
    %360 = vector.broadcast %2 : vector<1x64xf32> to vector<2x64xf32>
    %361 = arith.addf %359, %360 : vector<2x64xf32>
    %362 = vector.extract_strided_slice %361 {offsets = [0, 0], sizes = [2, 48], strides = [1, 1]} : vector<2x64xf32> to vector<2x48xf32>
    %363 = arith.negf %362 : vector<2x48xf32>
    %364 = math.exp %363 : vector<2x48xf32>
    %cst_94 = arith.constant 1.000000e+00 : f32
    %365 = vector.broadcast %cst_94 : f32 to vector<2x48xf32>
    %366 = arith.addf %365, %364 : vector<2x48xf32>
    %367 = arith.divf %365, %366 : vector<2x48xf32>
    %368 = vector.extract_strided_slice %361 {offsets = [0, 48], sizes = [2, 16], strides = [1, 1]} : vector<2x64xf32> to vector<2x16xf32>
    %369 = math.tanh %368 : vector<2x16xf32>
    %370 = vector.extract_strided_slice %367 {offsets = [0, 0], sizes = [2, 16], strides = [1, 1]} : vector<2x48xf32> to vector<2x16xf32>
    %371 = vector.extract_strided_slice %367 {offsets = [0, 16], sizes = [2, 16], strides = [1, 1]} : vector<2x48xf32> to vector<2x16xf32>
    %372 = vector.extract_strided_slice %367 {offsets = [0, 32], sizes = [2, 16], strides = [1, 1]} : vector<2x48xf32> to vector<2x16xf32>
    %373 = arith.mulf %371, %346 : vector<2x16xf32>
    %374 = arith.mulf %370, %369 : vector<2x16xf32>
    %375 = arith.addf %373, %374 : vector<2x16xf32>
    %376 = math.tanh %375 : vector<2x16xf32>
    %377 = arith.mulf %372, %376 : vector<2x16xf32>
    %378 = arith.index_cast %c12_i32 : i32 to index
    %c0_95 = arith.constant 0 : index
    %c0_96 = arith.constant 0 : index
    %379 = vector.load %arg14[%378, %c0_95, %c0_96] : memref<16x2x16xf32, #tpu.memory_space<vmem>>, vector<1x2x16xf32>
    %380 = vector.shape_cast %379 : vector<1x2x16xf32> to vector<2x16xf32>
    %381 = vector.shape_cast %377 : vector<2x16xf32> to vector<1x2x16xf32>
    tpu.vector_store %arg14[%378, %c0_95, %c0_96], %381 {strides = array<i32>} : memref<16x2x16xf32, #tpu.memory_space<vmem>>, vector<1x2x16xf32>,
    %c13_i32 = arith.constant 13 : i32
    %382 = arith.index_cast %c13_i32 : i32 to index
    %c0_97 = arith.constant 0 : index
    %c0_98 = arith.constant 0 : index
    %383 = vector.load %arg0[%382, %c0_97, %c0_98] : memref<16x2x8xbf16, #tpu.memory_space<vmem>>, vector<1x2x8xbf16>
    %384 = vector.shape_cast %383 : vector<1x2x8xbf16> to vector<2x8xbf16>
    %cst_99 = arith.constant dense<0.000000e+00> : vector<2x64xf32>
    %385 = tpu.matmul %384, %0, %cst_99 {dimension_numbers = #tpu.dot_dimension_numbers<[1], [0], [0], [1], [0, 0, 1, 1], [], []>} : vector<2x8xbf16>, vector<8x64xbf16>, vector<2x64xf32> -> vector<2x64xf32>
    %386 = arith.truncf %377 : vector<2x16xf32> to vector<2x16xbf16>
    %cst_100 = arith.constant dense<0.000000e+00> : vector<2x64xf32>
    %387 = tpu.matmul %386, %1, %cst_100 {dimension_numbers = #tpu.dot_dimension_numbers<[1], [0], [0], [1], [0, 0, 1, 1], [], []>} : vector<2x16xbf16>, vector<16x64xbf16>, vector<2x64xf32> -> vector<2x64xf32>
    %388 = arith.addf %385, %387 : vector<2x64xf32>
    %389 = vector.broadcast %2 : vector<1x64xf32> to vector<2x64xf32>
    %390 = arith.addf %388, %389 : vector<2x64xf32>
    %391 = vector.extract_strided_slice %390 {offsets = [0, 0], sizes = [2, 48], strides = [1, 1]} : vector<2x64xf32> to vector<2x48xf32>
    %392 = arith.negf %391 : vector<2x48xf32>
    %393 = math.exp %392 : vector<2x48xf32>
    %cst_101 = arith.constant 1.000000e+00 : f32
    %394 = vector.broadcast %cst_101 : f32 to vector<2x48xf32>
    %395 = arith.addf %394, %393 : vector<2x48xf32>
    %396 = arith.divf %394, %395 : vector<2x48xf32>
    %397 = vector.extract_strided_slice %390 {offsets = [0, 48], sizes = [2, 16], strides = [1, 1]} : vector<2x64xf32> to vector<2x16xf32>
    %398 = math.tanh %397 : vector<2x16xf32>
    %399 = vector.extract_strided_slice %396 {offsets = [0, 0], sizes = [2, 16], strides = [1, 1]} : vector<2x48xf32> to vector<2x16xf32>
    %400 = vector.extract_strided_slice %396 {offsets = [0, 16], sizes = [2, 16], strides = [1, 1]} : vector<2x48xf32> to vector<2x16xf32>
    %401 = vector.extract_strided_slice %396 {offsets = [0, 32], sizes = [2, 16], strides = [1, 1]} : vector<2x48xf32> to vector<2x16xf32>
    %402 = arith.mulf %400, %375 : vector<2x16xf32>
    %403 = arith.mulf %399, %398 : vector<2x16xf32>
    %404 = arith.addf %402, %403 : vector<2x16xf32>
    %405 = math.tanh %404 : vector<2x16xf32>
    %406 = arith.mulf %401, %405 : vector<2x16xf32>
    %407 = arith.index_cast %c13_i32 : i32 to index
    %c0_102 = arith.constant 0 : index
    %c0_103 = arith.constant 0 : index
    %408 = vector.load %arg14[%407, %c0_102, %c0_103] : memref<16x2x16xf32, #tpu.memory_space<vmem>>, vector<1x2x16xf32>
    %409 = vector.shape_cast %408 : vector<1x2x16xf32> to vector<2x16xf32>
    %410 = vector.shape_cast %406 : vector<2x16xf32> to vector<1x2x16xf32>
    tpu.vector_store %arg14[%407, %c0_102, %c0_103], %410 {strides = array<i32>} : memref<16x2x16xf32, #tpu.memory_space<vmem>>, vector<1x2x16xf32>,
    %c14_i32 = arith.constant 14 : i32
    %411 = arith.index_cast %c14_i32 : i32 to index
    %c0_104 = arith.constant 0 : index
    %c0_105 = arith.constant 0 : index
    %412 = vector.load %arg0[%411, %c0_104, %c0_105] : memref<16x2x8xbf16, #tpu.memory_space<vmem>>, vector<1x2x8xbf16>
    %413 = vector.shape_cast %412 : vector<1x2x8xbf16> to vector<2x8xbf16>
    %cst_106 = arith.constant dense<0.000000e+00> : vector<2x64xf32>
    %414 = tpu.matmul %413, %0, %cst_106 {dimension_numbers = #tpu.dot_dimension_numbers<[1], [0], [0], [1], [0, 0, 1, 1], [], []>} : vector<2x8xbf16>, vector<8x64xbf16>, vector<2x64xf32> -> vector<2x64xf32>
    %415 = arith.truncf %406 : vector<2x16xf32> to vector<2x16xbf16>
    %cst_107 = arith.constant dense<0.000000e+00> : vector<2x64xf32>
    %416 = tpu.matmul %415, %1, %cst_107 {dimension_numbers = #tpu.dot_dimension_numbers<[1], [0], [0], [1], [0, 0, 1, 1], [], []>} : vector<2x16xbf16>, vector<16x64xbf16>, vector<2x64xf32> -> vector<2x64xf32>
    %417 = arith.addf %414, %416 : vector<2x64xf32>
    %418 = vector.broadcast %2 : vector<1x64xf32> to vector<2x64xf32>
    %419 = arith.addf %417, %418 : vector<2x64xf32>
    %420 = vector.extract_strided_slice %419 {offsets = [0, 0], sizes = [2, 48], strides = [1, 1]} : vector<2x64xf32> to vector<2x48xf32>
    %421 = arith.negf %420 : vector<2x48xf32>
    %422 = math.exp %421 : vector<2x48xf32>
    %cst_108 = arith.constant 1.000000e+00 : f32
    %423 = vector.broadcast %cst_108 : f32 to vector<2x48xf32>
    %424 = arith.addf %423, %422 : vector<2x48xf32>
    %425 = arith.divf %423, %424 : vector<2x48xf32>
    %426 = vector.extract_strided_slice %419 {offsets = [0, 48], sizes = [2, 16], strides = [1, 1]} : vector<2x64xf32> to vector<2x16xf32>
    %427 = math.tanh %426 : vector<2x16xf32>
    %428 = vector.extract_strided_slice %425 {offsets = [0, 0], sizes = [2, 16], strides = [1, 1]} : vector<2x48xf32> to vector<2x16xf32>
    %429 = vector.extract_strided_slice %425 {offsets = [0, 16], sizes = [2, 16], strides = [1, 1]} : vector<2x48xf32> to vector<2x16xf32>
    %430 = vector.extract_strided_slice %425 {offsets = [0, 32], sizes = [2, 16], strides = [1, 1]} : vector<2x48xf32> to vector<2x16xf32>
    %431 = arith.mulf %429, %404 : vector<2x16xf32>
    %432 = arith.mulf %428, %427 : vector<2x16xf32>
    %433 = arith.addf %431, %432 : vector<2x16xf32>
    %434 = math.tanh %433 : vector<2x16xf32>
    %435 = arith.mulf %430, %434 : vector<2x16xf32>
    %436 = arith.index_cast %c14_i32 : i32 to index
    %c0_109 = arith.constant 0 : index
    %c0_110 = arith.constant 0 : index
    %437 = vector.load %arg14[%436, %c0_109, %c0_110] : memref<16x2x16xf32, #tpu.memory_space<vmem>>, vector<1x2x16xf32>
    %438 = vector.shape_cast %437 : vector<1x2x16xf32> to vector<2x16xf32>
    %439 = vector.shape_cast %435 : vector<2x16xf32> to vector<1x2x16xf32>
    tpu.vector_store %arg14[%436, %c0_109, %c0_110], %439 {strides = array<i32>} : memref<16x2x16xf32, #tpu.memory_space<vmem>>, vector<1x2x16xf32>,
    %c15_i32 = arith.constant 15 : i32
    %440 = arith.index_cast %c15_i32 : i32 to index
    %c0_111 = arith.constant 0 : index
    %c0_112 = arith.constant 0 : index
    %441 = vector.load %arg0[%440, %c0_111, %c0_112] : memref<16x2x8xbf16, #tpu.memory_space<vmem>>, vector<1x2x8xbf16>
    %442 = vector.shape_cast %441 : vector<1x2x8xbf16> to vector<2x8xbf16>
    %cst_113 = arith.constant dense<0.000000e+00> : vector<2x64xf32>
    %443 = tpu.matmul %442, %0, %cst_113 {dimension_numbers = #tpu.dot_dimension_numbers<[1], [0], [0], [1], [0, 0, 1, 1], [], []>} : vector<2x8xbf16>, vector<8x64xbf16>, vector<2x64xf32> -> vector<2x64xf32>
    %444 = arith.truncf %435 : vector<2x16xf32> to vector<2x16xbf16>
    %cst_114 = arith.constant dense<0.000000e+00> : vector<2x64xf32>
    %445 = tpu.matmul %444, %1, %cst_114 {dimension_numbers = #tpu.dot_dimension_numbers<[1], [0], [0], [1], [0, 0, 1, 1], [], []>} : vector<2x16xbf16>, vector<16x64xbf16>, vector<2x64xf32> -> vector<2x64xf32>
    %446 = arith.addf %443, %445 : vector<2x64xf32>
    %447 = vector.broadcast %2 : vector<1x64xf32> to vector<2x64xf32>
    %448 = arith.addf %446, %447 : vector<2x64xf32>
    %449 = vector.extract_strided_slice %448 {offsets = [0, 0], sizes = [2, 48], strides = [1, 1]} : vector<2x64xf32> to vector<2x48xf32>
    %450 = arith.negf %449 : vector<2x48xf32>
    %451 = math.exp %450 : vector<2x48xf32>
    %cst_115 = arith.constant 1.000000e+00 : f32
    %452 = vector.broadcast %cst_115 : f32 to vector<2x48xf32>
    %453 = arith.addf %452, %451 : vector<2x48xf32>
    %454 = arith.divf %452, %453 : vector<2x48xf32>
    %455 = vector.extract_strided_slice %448 {offsets = [0, 48], sizes = [2, 16], strides = [1, 1]} : vector<2x64xf32> to vector<2x16xf32>
    %456 = math.tanh %455 : vector<2x16xf32>
    %457 = vector.extract_strided_slice %454 {offsets = [0, 0], sizes = [2, 16], strides = [1, 1]} : vector<2x48xf32> to vector<2x16xf32>
    %458 = vector.extract_strided_slice %454 {offsets = [0, 16], sizes = [2, 16], strides = [1, 1]} : vector<2x48xf32> to vector<2x16xf32>
    %459 = vector.extract_strided_slice %454 {offsets = [0, 32], sizes = [2, 16], strides = [1, 1]} : vector<2x48xf32> to vector<2x16xf32>
    %460 = arith.mulf %458, %433 : vector<2x16xf32>
    %461 = arith.mulf %457, %456 : vector<2x16xf32>
    %462 = arith.addf %460, %461 : vector<2x16xf32>
    %463 = math.tanh %462 : vector<2x16xf32>
    %464 = arith.mulf %459, %463 : vector<2x16xf32>
    %465 = arith.index_cast %c15_i32 : i32 to index
    %c0_116 = arith.constant 0 : index
    %c0_117 = arith.constant 0 : index
    %466 = vector.load %arg14[%465, %c0_116, %c0_117] : memref<16x2x16xf32, #tpu.memory_space<vmem>>, vector<1x2x16xf32>
    %467 = vector.shape_cast %466 : vector<1x2x16xf32> to vector<2x16xf32>
    %468 = vector.shape_cast %464 : vector<2x16xf32> to vector<1x2x16xf32>
    tpu.vector_store %arg14[%465, %c0_116, %c0_117], %468 {strides = array<i32>} : memref<16x2x16xf32, #tpu.memory_space<vmem>>, vector<1x2x16xf32>,
    %c16_i32 = arith.constant 16 : i32
    %c0_118 = arith.constant 0 : index
    %c0_119 = arith.constant 0 : index
    %469 = vector.load %arg4[%c0_118, %c0_119] : memref<16x64xbf16, #tpu.memory_space<vmem>>, vector<16x64xbf16>
    %c0_120 = arith.constant 0 : index
    %c0_121 = arith.constant 0 : index
    %470 = vector.load %arg5[%c0_120, %c0_121] : memref<16x64xbf16, #tpu.memory_space<vmem>>, vector<16x64xbf16>
    %c0_122 = arith.constant 0 : index
    %c0_123 = arith.constant 0 : index
    %471 = vector.load %arg6[%c0_122, %c0_123] : memref<1x64xf32, #tpu.memory_space<vmem>>, vector<1x64xf32>
    %cst_124 = arith.constant 0.000000e+00 : f32
    %472 = vector.broadcast %cst_124 : f32 to vector<2x16xf32>
    %cst_125 = arith.constant 0.000000e+00 : f32
    %473 = vector.broadcast %cst_125 : f32 to vector<2x16xf32>
    %c0_i32_126 = arith.constant 0 : i32
    %474 = arith.index_cast %c0_i32_126 : i32 to index
    %c0_127 = arith.constant 0 : index
    %c0_128 = arith.constant 0 : index
    %475 = vector.load %arg14[%474, %c0_127, %c0_128] : memref<16x2x16xf32, #tpu.memory_space<vmem>>, vector<1x2x16xf32>
    %476 = vector.shape_cast %475 : vector<1x2x16xf32> to vector<2x16xf32>
    %477 = arith.truncf %476 : vector<2x16xf32> to vector<2x16xbf16>
    %cst_129 = arith.constant dense<0.000000e+00> : vector<2x64xf32>
    %478 = tpu.matmul %477, %469, %cst_129 {dimension_numbers = #tpu.dot_dimension_numbers<[1], [0], [0], [1], [0, 0, 1, 1], [], []>} : vector<2x16xbf16>, vector<16x64xbf16>, vector<2x64xf32> -> vector<2x64xf32>
    %479 = arith.truncf %472 : vector<2x16xf32> to vector<2x16xbf16>
    %cst_130 = arith.constant dense<0.000000e+00> : vector<2x64xf32>
    %480 = tpu.matmul %479, %470, %cst_130 {dimension_numbers = #tpu.dot_dimension_numbers<[1], [0], [0], [1], [0, 0, 1, 1], [], []>} : vector<2x16xbf16>, vector<16x64xbf16>, vector<2x64xf32> -> vector<2x64xf32>
    %481 = arith.addf %478, %480 : vector<2x64xf32>
    %482 = vector.broadcast %471 : vector<1x64xf32> to vector<2x64xf32>
    %483 = arith.addf %481, %482 : vector<2x64xf32>
    %484 = vector.extract_strided_slice %483 {offsets = [0, 0], sizes = [2, 48], strides = [1, 1]} : vector<2x64xf32> to vector<2x48xf32>
    %485 = arith.negf %484 : vector<2x48xf32>
    %486 = math.exp %485 : vector<2x48xf32>
    %cst_131 = arith.constant 1.000000e+00 : f32
    %487 = vector.broadcast %cst_131 : f32 to vector<2x48xf32>
    %488 = arith.addf %487, %486 : vector<2x48xf32>
    %489 = arith.divf %487, %488 : vector<2x48xf32>
    %490 = vector.extract_strided_slice %483 {offsets = [0, 48], sizes = [2, 16], strides = [1, 1]} : vector<2x64xf32> to vector<2x16xf32>
    %491 = math.tanh %490 : vector<2x16xf32>
    %492 = vector.extract_strided_slice %489 {offsets = [0, 0], sizes = [2, 16], strides = [1, 1]} : vector<2x48xf32> to vector<2x16xf32>
    %493 = vector.extract_strided_slice %489 {offsets = [0, 16], sizes = [2, 16], strides = [1, 1]} : vector<2x48xf32> to vector<2x16xf32>
    %494 = vector.extract_strided_slice %489 {offsets = [0, 32], sizes = [2, 16], strides = [1, 1]} : vector<2x48xf32> to vector<2x16xf32>
    %495 = arith.mulf %493, %473 : vector<2x16xf32>
    %496 = arith.mulf %492, %491 : vector<2x16xf32>
    %497 = arith.addf %495, %496 : vector<2x16xf32>
    %498 = math.tanh %497 : vector<2x16xf32>
    %499 = arith.mulf %494, %498 : vector<2x16xf32>
    %500 = arith.index_cast %c0_i32_126 : i32 to index
    %c0_132 = arith.constant 0 : index
    %c0_133 = arith.constant 0 : index
    %501 = vector.load %arg14[%500, %c0_132, %c0_133] : memref<16x2x16xf32, #tpu.memory_space<vmem>>, vector<1x2x16xf32>
    %502 = vector.shape_cast %501 : vector<1x2x16xf32> to vector<2x16xf32>
    %503 = vector.shape_cast %499 : vector<2x16xf32> to vector<1x2x16xf32>
    tpu.vector_store %arg14[%500, %c0_132, %c0_133], %503 {strides = array<i32>} : memref<16x2x16xf32, #tpu.memory_space<vmem>>, vector<1x2x16xf32>,
    %c1_i32_134 = arith.constant 1 : i32
    %504 = arith.index_cast %c1_i32_134 : i32 to index
    %c0_135 = arith.constant 0 : index
    %c0_136 = arith.constant 0 : index
    %505 = vector.load %arg14[%504, %c0_135, %c0_136] : memref<16x2x16xf32, #tpu.memory_space<vmem>>, vector<1x2x16xf32>
    %506 = vector.shape_cast %505 : vector<1x2x16xf32> to vector<2x16xf32>
    %507 = arith.truncf %506 : vector<2x16xf32> to vector<2x16xbf16>
    %cst_137 = arith.constant dense<0.000000e+00> : vector<2x64xf32>
    %508 = tpu.matmul %507, %469, %cst_137 {dimension_numbers = #tpu.dot_dimension_numbers<[1], [0], [0], [1], [0, 0, 1, 1], [], []>} : vector<2x16xbf16>, vector<16x64xbf16>, vector<2x64xf32> -> vector<2x64xf32>
    %509 = arith.truncf %499 : vector<2x16xf32> to vector<2x16xbf16>
    %cst_138 = arith.constant dense<0.000000e+00> : vector<2x64xf32>
    %510 = tpu.matmul %509, %470, %cst_138 {dimension_numbers = #tpu.dot_dimension_numbers<[1], [0], [0], [1], [0, 0, 1, 1], [], []>} : vector<2x16xbf16>, vector<16x64xbf16>, vector<2x64xf32> -> vector<2x64xf32>
    %511 = arith.addf %508, %510 : vector<2x64xf32>
    %512 = vector.broadcast %471 : vector<1x64xf32> to vector<2x64xf32>
    %513 = arith.addf %511, %512 : vector<2x64xf32>
    %514 = vector.extract_strided_slice %513 {offsets = [0, 0], sizes = [2, 48], strides = [1, 1]} : vector<2x64xf32> to vector<2x48xf32>
    %515 = arith.negf %514 : vector<2x48xf32>
    %516 = math.exp %515 : vector<2x48xf32>
    %cst_139 = arith.constant 1.000000e+00 : f32
    %517 = vector.broadcast %cst_139 : f32 to vector<2x48xf32>
    %518 = arith.addf %517, %516 : vector<2x48xf32>
    %519 = arith.divf %517, %518 : vector<2x48xf32>
    %520 = vector.extract_strided_slice %513 {offsets = [0, 48], sizes = [2, 16], strides = [1, 1]} : vector<2x64xf32> to vector<2x16xf32>
    %521 = math.tanh %520 : vector<2x16xf32>
    %522 = vector.extract_strided_slice %519 {offsets = [0, 0], sizes = [2, 16], strides = [1, 1]} : vector<2x48xf32> to vector<2x16xf32>
    %523 = vector.extract_strided_slice %519 {offsets = [0, 16], sizes = [2, 16], strides = [1, 1]} : vector<2x48xf32> to vector<2x16xf32>
    %524 = vector.extract_strided_slice %519 {offsets = [0, 32], sizes = [2, 16], strides = [1, 1]} : vector<2x48xf32> to vector<2x16xf32>
    %525 = arith.mulf %523, %497 : vector<2x16xf32>
    %526 = arith.mulf %522, %521 : vector<2x16xf32>
    %527 = arith.addf %525, %526 : vector<2x16xf32>
    %528 = math.tanh %527 : vector<2x16xf32>
    %529 = arith.mulf %524, %528 : vector<2x16xf32>
    %530 = arith.index_cast %c1_i32_134 : i32 to index
    %c0_140 = arith.constant 0 : index
    %c0_141 = arith.constant 0 : index
    %531 = vector.load %arg14[%530, %c0_140, %c0_141] : memref<16x2x16xf32, #tpu.memory_space<vmem>>, vector<1x2x16xf32>
    %532 = vector.shape_cast %531 : vector<1x2x16xf32> to vector<2x16xf32>
    %533 = vector.shape_cast %529 : vector<2x16xf32> to vector<1x2x16xf32>
    tpu.vector_store %arg14[%530, %c0_140, %c0_141], %533 {strides = array<i32>} : memref<16x2x16xf32, #tpu.memory_space<vmem>>, vector<1x2x16xf32>,
    %c2_i32_142 = arith.constant 2 : i32
    %534 = arith.index_cast %c2_i32_142 : i32 to index
    %c0_143 = arith.constant 0 : index
    %c0_144 = arith.constant 0 : index
    %535 = vector.load %arg14[%534, %c0_143, %c0_144] : memref<16x2x16xf32, #tpu.memory_space<vmem>>, vector<1x2x16xf32>
    %536 = vector.shape_cast %535 : vector<1x2x16xf32> to vector<2x16xf32>
    %537 = arith.truncf %536 : vector<2x16xf32> to vector<2x16xbf16>
    %cst_145 = arith.constant dense<0.000000e+00> : vector<2x64xf32>
    %538 = tpu.matmul %537, %469, %cst_145 {dimension_numbers = #tpu.dot_dimension_numbers<[1], [0], [0], [1], [0, 0, 1, 1], [], []>} : vector<2x16xbf16>, vector<16x64xbf16>, vector<2x64xf32> -> vector<2x64xf32>
    %539 = arith.truncf %529 : vector<2x16xf32> to vector<2x16xbf16>
    %cst_146 = arith.constant dense<0.000000e+00> : vector<2x64xf32>
    %540 = tpu.matmul %539, %470, %cst_146 {dimension_numbers = #tpu.dot_dimension_numbers<[1], [0], [0], [1], [0, 0, 1, 1], [], []>} : vector<2x16xbf16>, vector<16x64xbf16>, vector<2x64xf32> -> vector<2x64xf32>
    %541 = arith.addf %538, %540 : vector<2x64xf32>
    %542 = vector.broadcast %471 : vector<1x64xf32> to vector<2x64xf32>
    %543 = arith.addf %541, %542 : vector<2x64xf32>
    %544 = vector.extract_strided_slice %543 {offsets = [0, 0], sizes = [2, 48], strides = [1, 1]} : vector<2x64xf32> to vector<2x48xf32>
    %545 = arith.negf %544 : vector<2x48xf32>
    %546 = math.exp %545 : vector<2x48xf32>
    %cst_147 = arith.constant 1.000000e+00 : f32
    %547 = vector.broadcast %cst_147 : f32 to vector<2x48xf32>
    %548 = arith.addf %547, %546 : vector<2x48xf32>
    %549 = arith.divf %547, %548 : vector<2x48xf32>
    %550 = vector.extract_strided_slice %543 {offsets = [0, 48], sizes = [2, 16], strides = [1, 1]} : vector<2x64xf32> to vector<2x16xf32>
    %551 = math.tanh %550 : vector<2x16xf32>
    %552 = vector.extract_strided_slice %549 {offsets = [0, 0], sizes = [2, 16], strides = [1, 1]} : vector<2x48xf32> to vector<2x16xf32>
    %553 = vector.extract_strided_slice %549 {offsets = [0, 16], sizes = [2, 16], strides = [1, 1]} : vector<2x48xf32> to vector<2x16xf32>
    %554 = vector.extract_strided_slice %549 {offsets = [0, 32], sizes = [2, 16], strides = [1, 1]} : vector<2x48xf32> to vector<2x16xf32>
    %555 = arith.mulf %553, %527 : vector<2x16xf32>
    %556 = arith.mulf %552, %551 : vector<2x16xf32>
    %557 = arith.addf %555, %556 : vector<2x16xf32>
    %558 = math.tanh %557 : vector<2x16xf32>
    %559 = arith.mulf %554, %558 : vector<2x16xf32>
    %560 = arith.index_cast %c2_i32_142 : i32 to index
    %c0_148 = arith.constant 0 : index
    %c0_149 = arith.constant 0 : index
    %561 = vector.load %arg14[%560, %c0_148, %c0_149] : memref<16x2x16xf32, #tpu.memory_space<vmem>>, vector<1x2x16xf32>
    %562 = vector.shape_cast %561 : vector<1x2x16xf32> to vector<2x16xf32>
    %563 = vector.shape_cast %559 : vector<2x16xf32> to vector<1x2x16xf32>
    tpu.vector_store %arg14[%560, %c0_148, %c0_149], %563 {strides = array<i32>} : memref<16x2x16xf32, #tpu.memory_space<vmem>>, vector<1x2x16xf32>,
    %c3_i32_150 = arith.constant 3 : i32
    %564 = arith.index_cast %c3_i32_150 : i32 to index
    %c0_151 = arith.constant 0 : index
    %c0_152 = arith.constant 0 : index
    %565 = vector.load %arg14[%564, %c0_151, %c0_152] : memref<16x2x16xf32, #tpu.memory_space<vmem>>, vector<1x2x16xf32>
    %566 = vector.shape_cast %565 : vector<1x2x16xf32> to vector<2x16xf32>
    %567 = arith.truncf %566 : vector<2x16xf32> to vector<2x16xbf16>
    %cst_153 = arith.constant dense<0.000000e+00> : vector<2x64xf32>
    %568 = tpu.matmul %567, %469, %cst_153 {dimension_numbers = #tpu.dot_dimension_numbers<[1], [0], [0], [1], [0, 0, 1, 1], [], []>} : vector<2x16xbf16>, vector<16x64xbf16>, vector<2x64xf32> -> vector<2x64xf32>
    %569 = arith.truncf %559 : vector<2x16xf32> to vector<2x16xbf16>
    %cst_154 = arith.constant dense<0.000000e+00> : vector<2x64xf32>
    %570 = tpu.matmul %569, %470, %cst_154 {dimension_numbers = #tpu.dot_dimension_numbers<[1], [0], [0], [1], [0, 0, 1, 1], [], []>} : vector<2x16xbf16>, vector<16x64xbf16>, vector<2x64xf32> -> vector<2x64xf32>
    %571 = arith.addf %568, %570 : vector<2x64xf32>
    %572 = vector.broadcast %471 : vector<1x64xf32> to vector<2x64xf32>
    %573 = arith.addf %571, %572 : vector<2x64xf32>
    %574 = vector.extract_strided_slice %573 {offsets = [0, 0], sizes = [2, 48], strides = [1, 1]} : vector<2x64xf32> to vector<2x48xf32>
    %575 = arith.negf %574 : vector<2x48xf32>
    %576 = math.exp %575 : vector<2x48xf32>
    %cst_155 = arith.constant 1.000000e+00 : f32
    %577 = vector.broadcast %cst_155 : f32 to vector<2x48xf32>
    %578 = arith.addf %577, %576 : vector<2x48xf32>
    %579 = arith.divf %577, %578 : vector<2x48xf32>
    %580 = vector.extract_strided_slice %573 {offsets = [0, 48], sizes = [2, 16], strides = [1, 1]} : vector<2x64xf32> to vector<2x16xf32>
    %581 = math.tanh %580 : vector<2x16xf32>
    %582 = vector.extract_strided_slice %579 {offsets = [0, 0], sizes = [2, 16], strides = [1, 1]} : vector<2x48xf32> to vector<2x16xf32>
    %583 = vector.extract_strided_slice %579 {offsets = [0, 16], sizes = [2, 16], strides = [1, 1]} : vector<2x48xf32> to vector<2x16xf32>
    %584 = vector.extract_strided_slice %579 {offsets = [0, 32], sizes = [2, 16], strides = [1, 1]} : vector<2x48xf32> to vector<2x16xf32>
    %585 = arith.mulf %583, %557 : vector<2x16xf32>
    %586 = arith.mulf %582, %581 : vector<2x16xf32>
    %587 = arith.addf %585, %586 : vector<2x16xf32>
    %588 = math.tanh %587 : vector<2x16xf32>
    %589 = arith.mulf %584, %588 : vector<2x16xf32>
    %590 = arith.index_cast %c3_i32_150 : i32 to index
    %c0_156 = arith.constant 0 : index
    %c0_157 = arith.constant 0 : index
    %591 = vector.load %arg14[%590, %c0_156, %c0_157] : memref<16x2x16xf32, #tpu.memory_space<vmem>>, vector<1x2x16xf32>
    %592 = vector.shape_cast %591 : vector<1x2x16xf32> to vector<2x16xf32>
    %593 = vector.shape_cast %589 : vector<2x16xf32> to vector<1x2x16xf32>
    tpu.vector_store %arg14[%590, %c0_156, %c0_157], %593 {strides = array<i32>} : memref<16x2x16xf32, #tpu.memory_space<vmem>>, vector<1x2x16xf32>,
    %c4_i32_158 = arith.constant 4 : i32
    %594 = arith.index_cast %c4_i32_158 : i32 to index
    %c0_159 = arith.constant 0 : index
    %c0_160 = arith.constant 0 : index
    %595 = vector.load %arg14[%594, %c0_159, %c0_160] : memref<16x2x16xf32, #tpu.memory_space<vmem>>, vector<1x2x16xf32>
    %596 = vector.shape_cast %595 : vector<1x2x16xf32> to vector<2x16xf32>
    %597 = arith.truncf %596 : vector<2x16xf32> to vector<2x16xbf16>
    %cst_161 = arith.constant dense<0.000000e+00> : vector<2x64xf32>
    %598 = tpu.matmul %597, %469, %cst_161 {dimension_numbers = #tpu.dot_dimension_numbers<[1], [0], [0], [1], [0, 0, 1, 1], [], []>} : vector<2x16xbf16>, vector<16x64xbf16>, vector<2x64xf32> -> vector<2x64xf32>
    %599 = arith.truncf %589 : vector<2x16xf32> to vector<2x16xbf16>
    %cst_162 = arith.constant dense<0.000000e+00> : vector<2x64xf32>
    %600 = tpu.matmul %599, %470, %cst_162 {dimension_numbers = #tpu.dot_dimension_numbers<[1], [0], [0], [1], [0, 0, 1, 1], [], []>} : vector<2x16xbf16>, vector<16x64xbf16>, vector<2x64xf32> -> vector<2x64xf32>
    %601 = arith.addf %598, %600 : vector<2x64xf32>
    %602 = vector.broadcast %471 : vector<1x64xf32> to vector<2x64xf32>
    %603 = arith.addf %601, %602 : vector<2x64xf32>
    %604 = vector.extract_strided_slice %603 {offsets = [0, 0], sizes = [2, 48], strides = [1, 1]} : vector<2x64xf32> to vector<2x48xf32>
    %605 = arith.negf %604 : vector<2x48xf32>
    %606 = math.exp %605 : vector<2x48xf32>
    %cst_163 = arith.constant 1.000000e+00 : f32
    %607 = vector.broadcast %cst_163 : f32 to vector<2x48xf32>
    %608 = arith.addf %607, %606 : vector<2x48xf32>
    %609 = arith.divf %607, %608 : vector<2x48xf32>
    %610 = vector.extract_strided_slice %603 {offsets = [0, 48], sizes = [2, 16], strides = [1, 1]} : vector<2x64xf32> to vector<2x16xf32>
    %611 = math.tanh %610 : vector<2x16xf32>
    %612 = vector.extract_strided_slice %609 {offsets = [0, 0], sizes = [2, 16], strides = [1, 1]} : vector<2x48xf32> to vector<2x16xf32>
    %613 = vector.extract_strided_slice %609 {offsets = [0, 16], sizes = [2, 16], strides = [1, 1]} : vector<2x48xf32> to vector<2x16xf32>
    %614 = vector.extract_strided_slice %609 {offsets = [0, 32], sizes = [2, 16], strides = [1, 1]} : vector<2x48xf32> to vector<2x16xf32>
    %615 = arith.mulf %613, %587 : vector<2x16xf32>
    %616 = arith.mulf %612, %611 : vector<2x16xf32>
    %617 = arith.addf %615, %616 : vector<2x16xf32>
    %618 = math.tanh %617 : vector<2x16xf32>
    %619 = arith.mulf %614, %618 : vector<2x16xf32>
    %620 = arith.index_cast %c4_i32_158 : i32 to index
    %c0_164 = arith.constant 0 : index
    %c0_165 = arith.constant 0 : index
    %621 = vector.load %arg14[%620, %c0_164, %c0_165] : memref<16x2x16xf32, #tpu.memory_space<vmem>>, vector<1x2x16xf32>
    %622 = vector.shape_cast %621 : vector<1x2x16xf32> to vector<2x16xf32>
    %623 = vector.shape_cast %619 : vector<2x16xf32> to vector<1x2x16xf32>
    tpu.vector_store %arg14[%620, %c0_164, %c0_165], %623 {strides = array<i32>} : memref<16x2x16xf32, #tpu.memory_space<vmem>>, vector<1x2x16xf32>,
    %c5_i32_166 = arith.constant 5 : i32
    %624 = arith.index_cast %c5_i32_166 : i32 to index
    %c0_167 = arith.constant 0 : index
    %c0_168 = arith.constant 0 : index
    %625 = vector.load %arg14[%624, %c0_167, %c0_168] : memref<16x2x16xf32, #tpu.memory_space<vmem>>, vector<1x2x16xf32>
    %626 = vector.shape_cast %625 : vector<1x2x16xf32> to vector<2x16xf32>
    %627 = arith.truncf %626 : vector<2x16xf32> to vector<2x16xbf16>
    %cst_169 = arith.constant dense<0.000000e+00> : vector<2x64xf32>
    %628 = tpu.matmul %627, %469, %cst_169 {dimension_numbers = #tpu.dot_dimension_numbers<[1], [0], [0], [1], [0, 0, 1, 1], [], []>} : vector<2x16xbf16>, vector<16x64xbf16>, vector<2x64xf32> -> vector<2x64xf32>
    %629 = arith.truncf %619 : vector<2x16xf32> to vector<2x16xbf16>
    %cst_170 = arith.constant dense<0.000000e+00> : vector<2x64xf32>
    %630 = tpu.matmul %629, %470, %cst_170 {dimension_numbers = #tpu.dot_dimension_numbers<[1], [0], [0], [1], [0, 0, 1, 1], [], []>} : vector<2x16xbf16>, vector<16x64xbf16>, vector<2x64xf32> -> vector<2x64xf32>
    %631 = arith.addf %628, %630 : vector<2x64xf32>
    %632 = vector.broadcast %471 : vector<1x64xf32> to vector<2x64xf32>
    %633 = arith.addf %631, %632 : vector<2x64xf32>
    %634 = vector.extract_strided_slice %633 {offsets = [0, 0], sizes = [2, 48], strides = [1, 1]} : vector<2x64xf32> to vector<2x48xf32>
    %635 = arith.negf %634 : vector<2x48xf32>
    %636 = math.exp %635 : vector<2x48xf32>
    %cst_171 = arith.constant 1.000000e+00 : f32
    %637 = vector.broadcast %cst_171 : f32 to vector<2x48xf32>
    %638 = arith.addf %637, %636 : vector<2x48xf32>
    %639 = arith.divf %637, %638 : vector<2x48xf32>
    %640 = vector.extract_strided_slice %633 {offsets = [0, 48], sizes = [2, 16], strides = [1, 1]} : vector<2x64xf32> to vector<2x16xf32>
    %641 = math.tanh %640 : vector<2x16xf32>
    %642 = vector.extract_strided_slice %639 {offsets = [0, 0], sizes = [2, 16], strides = [1, 1]} : vector<2x48xf32> to vector<2x16xf32>
    %643 = vector.extract_strided_slice %639 {offsets = [0, 16], sizes = [2, 16], strides = [1, 1]} : vector<2x48xf32> to vector<2x16xf32>
    %644 = vector.extract_strided_slice %639 {offsets = [0, 32], sizes = [2, 16], strides = [1, 1]} : vector<2x48xf32> to vector<2x16xf32>
    %645 = arith.mulf %643, %617 : vector<2x16xf32>
    %646 = arith.mulf %642, %641 : vector<2x16xf32>
    %647 = arith.addf %645, %646 : vector<2x16xf32>
    %648 = math.tanh %647 : vector<2x16xf32>
    %649 = arith.mulf %644, %648 : vector<2x16xf32>
    %650 = arith.index_cast %c5_i32_166 : i32 to index
    %c0_172 = arith.constant 0 : index
    %c0_173 = arith.constant 0 : index
    %651 = vector.load %arg14[%650, %c0_172, %c0_173] : memref<16x2x16xf32, #tpu.memory_space<vmem>>, vector<1x2x16xf32>
    %652 = vector.shape_cast %651 : vector<1x2x16xf32> to vector<2x16xf32>
    %653 = vector.shape_cast %649 : vector<2x16xf32> to vector<1x2x16xf32>
    tpu.vector_store %arg14[%650, %c0_172, %c0_173], %653 {strides = array<i32>} : memref<16x2x16xf32, #tpu.memory_space<vmem>>, vector<1x2x16xf32>,
    %c6_i32_174 = arith.constant 6 : i32
    %654 = arith.index_cast %c6_i32_174 : i32 to index
    %c0_175 = arith.constant 0 : index
    %c0_176 = arith.constant 0 : index
    %655 = vector.load %arg14[%654, %c0_175, %c0_176] : memref<16x2x16xf32, #tpu.memory_space<vmem>>, vector<1x2x16xf32>
    %656 = vector.shape_cast %655 : vector<1x2x16xf32> to vector<2x16xf32>
    %657 = arith.truncf %656 : vector<2x16xf32> to vector<2x16xbf16>
    %cst_177 = arith.constant dense<0.000000e+00> : vector<2x64xf32>
    %658 = tpu.matmul %657, %469, %cst_177 {dimension_numbers = #tpu.dot_dimension_numbers<[1], [0], [0], [1], [0, 0, 1, 1], [], []>} : vector<2x16xbf16>, vector<16x64xbf16>, vector<2x64xf32> -> vector<2x64xf32>
    %659 = arith.truncf %649 : vector<2x16xf32> to vector<2x16xbf16>
    %cst_178 = arith.constant dense<0.000000e+00> : vector<2x64xf32>
    %660 = tpu.matmul %659, %470, %cst_178 {dimension_numbers = #tpu.dot_dimension_numbers<[1], [0], [0], [1], [0, 0, 1, 1], [], []>} : vector<2x16xbf16>, vector<16x64xbf16>, vector<2x64xf32> -> vector<2x64xf32>
    %661 = arith.addf %658, %660 : vector<2x64xf32>
    %662 = vector.broadcast %471 : vector<1x64xf32> to vector<2x64xf32>
    %663 = arith.addf %661, %662 : vector<2x64xf32>
    %664 = vector.extract_strided_slice %663 {offsets = [0, 0], sizes = [2, 48], strides = [1, 1]} : vector<2x64xf32> to vector<2x48xf32>
    %665 = arith.negf %664 : vector<2x48xf32>
    %666 = math.exp %665 : vector<2x48xf32>
    %cst_179 = arith.constant 1.000000e+00 : f32
    %667 = vector.broadcast %cst_179 : f32 to vector<2x48xf32>
    %668 = arith.addf %667, %666 : vector<2x48xf32>
    %669 = arith.divf %667, %668 : vector<2x48xf32>
    %670 = vector.extract_strided_slice %663 {offsets = [0, 48], sizes = [2, 16], strides = [1, 1]} : vector<2x64xf32> to vector<2x16xf32>
    %671 = math.tanh %670 : vector<2x16xf32>
    %672 = vector.extract_strided_slice %669 {offsets = [0, 0], sizes = [2, 16], strides = [1, 1]} : vector<2x48xf32> to vector<2x16xf32>
    %673 = vector.extract_strided_slice %669 {offsets = [0, 16], sizes = [2, 16], strides = [1, 1]} : vector<2x48xf32> to vector<2x16xf32>
    %674 = vector.extract_strided_slice %669 {offsets = [0, 32], sizes = [2, 16], strides = [1, 1]} : vector<2x48xf32> to vector<2x16xf32>
    %675 = arith.mulf %673, %647 : vector<2x16xf32>
    %676 = arith.mulf %672, %671 : vector<2x16xf32>
    %677 = arith.addf %675, %676 : vector<2x16xf32>
    %678 = math.tanh %677 : vector<2x16xf32>
    %679 = arith.mulf %674, %678 : vector<2x16xf32>
    %680 = arith.index_cast %c6_i32_174 : i32 to index
    %c0_180 = arith.constant 0 : index
    %c0_181 = arith.constant 0 : index
    %681 = vector.load %arg14[%680, %c0_180, %c0_181] : memref<16x2x16xf32, #tpu.memory_space<vmem>>, vector<1x2x16xf32>
    %682 = vector.shape_cast %681 : vector<1x2x16xf32> to vector<2x16xf32>
    %683 = vector.shape_cast %679 : vector<2x16xf32> to vector<1x2x16xf32>
    tpu.vector_store %arg14[%680, %c0_180, %c0_181], %683 {strides = array<i32>} : memref<16x2x16xf32, #tpu.memory_space<vmem>>, vector<1x2x16xf32>,
    %c7_i32_182 = arith.constant 7 : i32
    %684 = arith.index_cast %c7_i32_182 : i32 to index
    %c0_183 = arith.constant 0 : index
    %c0_184 = arith.constant 0 : index
    %685 = vector.load %arg14[%684, %c0_183, %c0_184] : memref<16x2x16xf32, #tpu.memory_space<vmem>>, vector<1x2x16xf32>
    %686 = vector.shape_cast %685 : vector<1x2x16xf32> to vector<2x16xf32>
    %687 = arith.truncf %686 : vector<2x16xf32> to vector<2x16xbf16>
    %cst_185 = arith.constant dense<0.000000e+00> : vector<2x64xf32>
    %688 = tpu.matmul %687, %469, %cst_185 {dimension_numbers = #tpu.dot_dimension_numbers<[1], [0], [0], [1], [0, 0, 1, 1], [], []>} : vector<2x16xbf16>, vector<16x64xbf16>, vector<2x64xf32> -> vector<2x64xf32>
    %689 = arith.truncf %679 : vector<2x16xf32> to vector<2x16xbf16>
    %cst_186 = arith.constant dense<0.000000e+00> : vector<2x64xf32>
    %690 = tpu.matmul %689, %470, %cst_186 {dimension_numbers = #tpu.dot_dimension_numbers<[1], [0], [0], [1], [0, 0, 1, 1], [], []>} : vector<2x16xbf16>, vector<16x64xbf16>, vector<2x64xf32> -> vector<2x64xf32>
    %691 = arith.addf %688, %690 : vector<2x64xf32>
    %692 = vector.broadcast %471 : vector<1x64xf32> to vector<2x64xf32>
    %693 = arith.addf %691, %692 : vector<2x64xf32>
    %694 = vector.extract_strided_slice %693 {offsets = [0, 0], sizes = [2, 48], strides = [1, 1]} : vector<2x64xf32> to vector<2x48xf32>
    %695 = arith.negf %694 : vector<2x48xf32>
    %696 = math.exp %695 : vector<2x48xf32>
    %cst_187 = arith.constant 1.000000e+00 : f32
    %697 = vector.broadcast %cst_187 : f32 to vector<2x48xf32>
    %698 = arith.addf %697, %696 : vector<2x48xf32>
    %699 = arith.divf %697, %698 : vector<2x48xf32>
    %700 = vector.extract_strided_slice %693 {offsets = [0, 48], sizes = [2, 16], strides = [1, 1]} : vector<2x64xf32> to vector<2x16xf32>
    %701 = math.tanh %700 : vector<2x16xf32>
    %702 = vector.extract_strided_slice %699 {offsets = [0, 0], sizes = [2, 16], strides = [1, 1]} : vector<2x48xf32> to vector<2x16xf32>
    %703 = vector.extract_strided_slice %699 {offsets = [0, 16], sizes = [2, 16], strides = [1, 1]} : vector<2x48xf32> to vector<2x16xf32>
    %704 = vector.extract_strided_slice %699 {offsets = [0, 32], sizes = [2, 16], strides = [1, 1]} : vector<2x48xf32> to vector<2x16xf32>
    %705 = arith.mulf %703, %677 : vector<2x16xf32>
    %706 = arith.mulf %702, %701 : vector<2x16xf32>
    %707 = arith.addf %705, %706 : vector<2x16xf32>
    %708 = math.tanh %707 : vector<2x16xf32>
    %709 = arith.mulf %704, %708 : vector<2x16xf32>
    %710 = arith.index_cast %c7_i32_182 : i32 to index
    %c0_188 = arith.constant 0 : index
    %c0_189 = arith.constant 0 : index
    %711 = vector.load %arg14[%710, %c0_188, %c0_189] : memref<16x2x16xf32, #tpu.memory_space<vmem>>, vector<1x2x16xf32>
    %712 = vector.shape_cast %711 : vector<1x2x16xf32> to vector<2x16xf32>
    %713 = vector.shape_cast %709 : vector<2x16xf32> to vector<1x2x16xf32>
    tpu.vector_store %arg14[%710, %c0_188, %c0_189], %713 {strides = array<i32>} : memref<16x2x16xf32, #tpu.memory_space<vmem>>, vector<1x2x16xf32>,
    %c8_i32_190 = arith.constant 8 : i32
    %714 = arith.index_cast %c8_i32_190 : i32 to index
    %c0_191 = arith.constant 0 : index
    %c0_192 = arith.constant 0 : index
    %715 = vector.load %arg14[%714, %c0_191, %c0_192] : memref<16x2x16xf32, #tpu.memory_space<vmem>>, vector<1x2x16xf32>
    %716 = vector.shape_cast %715 : vector<1x2x16xf32> to vector<2x16xf32>
    %717 = arith.truncf %716 : vector<2x16xf32> to vector<2x16xbf16>
    %cst_193 = arith.constant dense<0.000000e+00> : vector<2x64xf32>
    %718 = tpu.matmul %717, %469, %cst_193 {dimension_numbers = #tpu.dot_dimension_numbers<[1], [0], [0], [1], [0, 0, 1, 1], [], []>} : vector<2x16xbf16>, vector<16x64xbf16>, vector<2x64xf32> -> vector<2x64xf32>
    %719 = arith.truncf %709 : vector<2x16xf32> to vector<2x16xbf16>
    %cst_194 = arith.constant dense<0.000000e+00> : vector<2x64xf32>
    %720 = tpu.matmul %719, %470, %cst_194 {dimension_numbers = #tpu.dot_dimension_numbers<[1], [0], [0], [1], [0, 0, 1, 1], [], []>} : vector<2x16xbf16>, vector<16x64xbf16>, vector<2x64xf32> -> vector<2x64xf32>
    %721 = arith.addf %718, %720 : vector<2x64xf32>
    %722 = vector.broadcast %471 : vector<1x64xf32> to vector<2x64xf32>
    %723 = arith.addf %721, %722 : vector<2x64xf32>
    %724 = vector.extract_strided_slice %723 {offsets = [0, 0], sizes = [2, 48], strides = [1, 1]} : vector<2x64xf32> to vector<2x48xf32>
    %725 = arith.negf %724 : vector<2x48xf32>
    %726 = math.exp %725 : vector<2x48xf32>
    %cst_195 = arith.constant 1.000000e+00 : f32
    %727 = vector.broadcast %cst_195 : f32 to vector<2x48xf32>
    %728 = arith.addf %727, %726 : vector<2x48xf32>
    %729 = arith.divf %727, %728 : vector<2x48xf32>
    %730 = vector.extract_strided_slice %723 {offsets = [0, 48], sizes = [2, 16], strides = [1, 1]} : vector<2x64xf32> to vector<2x16xf32>
    %731 = math.tanh %730 : vector<2x16xf32>
    %732 = vector.extract_strided_slice %729 {offsets = [0, 0], sizes = [2, 16], strides = [1, 1]} : vector<2x48xf32> to vector<2x16xf32>
    %733 = vector.extract_strided_slice %729 {offsets = [0, 16], sizes = [2, 16], strides = [1, 1]} : vector<2x48xf32> to vector<2x16xf32>
    %734 = vector.extract_strided_slice %729 {offsets = [0, 32], sizes = [2, 16], strides = [1, 1]} : vector<2x48xf32> to vector<2x16xf32>
    %735 = arith.mulf %733, %707 : vector<2x16xf32>
    %736 = arith.mulf %732, %731 : vector<2x16xf32>
    %737 = arith.addf %735, %736 : vector<2x16xf32>
    %738 = math.tanh %737 : vector<2x16xf32>
    %739 = arith.mulf %734, %738 : vector<2x16xf32>
    %740 = arith.index_cast %c8_i32_190 : i32 to index
    %c0_196 = arith.constant 0 : index
    %c0_197 = arith.constant 0 : index
    %741 = vector.load %arg14[%740, %c0_196, %c0_197] : memref<16x2x16xf32, #tpu.memory_space<vmem>>, vector<1x2x16xf32>
    %742 = vector.shape_cast %741 : vector<1x2x16xf32> to vector<2x16xf32>
    %743 = vector.shape_cast %739 : vector<2x16xf32> to vector<1x2x16xf32>
    tpu.vector_store %arg14[%740, %c0_196, %c0_197], %743 {strides = array<i32>} : memref<16x2x16xf32, #tpu.memory_space<vmem>>, vector<1x2x16xf32>,
    %c9_i32_198 = arith.constant 9 : i32
    %744 = arith.index_cast %c9_i32_198 : i32 to index
    %c0_199 = arith.constant 0 : index
    %c0_200 = arith.constant 0 : index
    %745 = vector.load %arg14[%744, %c0_199, %c0_200] : memref<16x2x16xf32, #tpu.memory_space<vmem>>, vector<1x2x16xf32>
    %746 = vector.shape_cast %745 : vector<1x2x16xf32> to vector<2x16xf32>
    %747 = arith.truncf %746 : vector<2x16xf32> to vector<2x16xbf16>
    %cst_201 = arith.constant dense<0.000000e+00> : vector<2x64xf32>
    %748 = tpu.matmul %747, %469, %cst_201 {dimension_numbers = #tpu.dot_dimension_numbers<[1], [0], [0], [1], [0, 0, 1, 1], [], []>} : vector<2x16xbf16>, vector<16x64xbf16>, vector<2x64xf32> -> vector<2x64xf32>
    %749 = arith.truncf %739 : vector<2x16xf32> to vector<2x16xbf16>
    %cst_202 = arith.constant dense<0.000000e+00> : vector<2x64xf32>
    %750 = tpu.matmul %749, %470, %cst_202 {dimension_numbers = #tpu.dot_dimension_numbers<[1], [0], [0], [1], [0, 0, 1, 1], [], []>} : vector<2x16xbf16>, vector<16x64xbf16>, vector<2x64xf32> -> vector<2x64xf32>
    %751 = arith.addf %748, %750 : vector<2x64xf32>
    %752 = vector.broadcast %471 : vector<1x64xf32> to vector<2x64xf32>
    %753 = arith.addf %751, %752 : vector<2x64xf32>
    %754 = vector.extract_strided_slice %753 {offsets = [0, 0], sizes = [2, 48], strides = [1, 1]} : vector<2x64xf32> to vector<2x48xf32>
    %755 = arith.negf %754 : vector<2x48xf32>
    %756 = math.exp %755 : vector<2x48xf32>
    %cst_203 = arith.constant 1.000000e+00 : f32
    %757 = vector.broadcast %cst_203 : f32 to vector<2x48xf32>
    %758 = arith.addf %757, %756 : vector<2x48xf32>
    %759 = arith.divf %757, %758 : vector<2x48xf32>
    %760 = vector.extract_strided_slice %753 {offsets = [0, 48], sizes = [2, 16], strides = [1, 1]} : vector<2x64xf32> to vector<2x16xf32>
    %761 = math.tanh %760 : vector<2x16xf32>
    %762 = vector.extract_strided_slice %759 {offsets = [0, 0], sizes = [2, 16], strides = [1, 1]} : vector<2x48xf32> to vector<2x16xf32>
    %763 = vector.extract_strided_slice %759 {offsets = [0, 16], sizes = [2, 16], strides = [1, 1]} : vector<2x48xf32> to vector<2x16xf32>
    %764 = vector.extract_strided_slice %759 {offsets = [0, 32], sizes = [2, 16], strides = [1, 1]} : vector<2x48xf32> to vector<2x16xf32>
    %765 = arith.mulf %763, %737 : vector<2x16xf32>
    %766 = arith.mulf %762, %761 : vector<2x16xf32>
    %767 = arith.addf %765, %766 : vector<2x16xf32>
    %768 = math.tanh %767 : vector<2x16xf32>
    %769 = arith.mulf %764, %768 : vector<2x16xf32>
    %770 = arith.index_cast %c9_i32_198 : i32 to index
    %c0_204 = arith.constant 0 : index
    %c0_205 = arith.constant 0 : index
    %771 = vector.load %arg14[%770, %c0_204, %c0_205] : memref<16x2x16xf32, #tpu.memory_space<vmem>>, vector<1x2x16xf32>
    %772 = vector.shape_cast %771 : vector<1x2x16xf32> to vector<2x16xf32>
    %773 = vector.shape_cast %769 : vector<2x16xf32> to vector<1x2x16xf32>
    tpu.vector_store %arg14[%770, %c0_204, %c0_205], %773 {strides = array<i32>} : memref<16x2x16xf32, #tpu.memory_space<vmem>>, vector<1x2x16xf32>,
    %c10_i32_206 = arith.constant 10 : i32
    %774 = arith.index_cast %c10_i32_206 : i32 to index
    %c0_207 = arith.constant 0 : index
    %c0_208 = arith.constant 0 : index
    %775 = vector.load %arg14[%774, %c0_207, %c0_208] : memref<16x2x16xf32, #tpu.memory_space<vmem>>, vector<1x2x16xf32>
    %776 = vector.shape_cast %775 : vector<1x2x16xf32> to vector<2x16xf32>
    %777 = arith.truncf %776 : vector<2x16xf32> to vector<2x16xbf16>
    %cst_209 = arith.constant dense<0.000000e+00> : vector<2x64xf32>
    %778 = tpu.matmul %777, %469, %cst_209 {dimension_numbers = #tpu.dot_dimension_numbers<[1], [0], [0], [1], [0, 0, 1, 1], [], []>} : vector<2x16xbf16>, vector<16x64xbf16>, vector<2x64xf32> -> vector<2x64xf32>
    %779 = arith.truncf %769 : vector<2x16xf32> to vector<2x16xbf16>
    %cst_210 = arith.constant dense<0.000000e+00> : vector<2x64xf32>
    %780 = tpu.matmul %779, %470, %cst_210 {dimension_numbers = #tpu.dot_dimension_numbers<[1], [0], [0], [1], [0, 0, 1, 1], [], []>} : vector<2x16xbf16>, vector<16x64xbf16>, vector<2x64xf32> -> vector<2x64xf32>
    %781 = arith.addf %778, %780 : vector<2x64xf32>
    %782 = vector.broadcast %471 : vector<1x64xf32> to vector<2x64xf32>
    %783 = arith.addf %781, %782 : vector<2x64xf32>
    %784 = vector.extract_strided_slice %783 {offsets = [0, 0], sizes = [2, 48], strides = [1, 1]} : vector<2x64xf32> to vector<2x48xf32>
    %785 = arith.negf %784 : vector<2x48xf32>
    %786 = math.exp %785 : vector<2x48xf32>
    %cst_211 = arith.constant 1.000000e+00 : f32
    %787 = vector.broadcast %cst_211 : f32 to vector<2x48xf32>
    %788 = arith.addf %787, %786 : vector<2x48xf32>
    %789 = arith.divf %787, %788 : vector<2x48xf32>
    %790 = vector.extract_strided_slice %783 {offsets = [0, 48], sizes = [2, 16], strides = [1, 1]} : vector<2x64xf32> to vector<2x16xf32>
    %791 = math.tanh %790 : vector<2x16xf32>
    %792 = vector.extract_strided_slice %789 {offsets = [0, 0], sizes = [2, 16], strides = [1, 1]} : vector<2x48xf32> to vector<2x16xf32>
    %793 = vector.extract_strided_slice %789 {offsets = [0, 16], sizes = [2, 16], strides = [1, 1]} : vector<2x48xf32> to vector<2x16xf32>
    %794 = vector.extract_strided_slice %789 {offsets = [0, 32], sizes = [2, 16], strides = [1, 1]} : vector<2x48xf32> to vector<2x16xf32>
    %795 = arith.mulf %793, %767 : vector<2x16xf32>
    %796 = arith.mulf %792, %791 : vector<2x16xf32>
    %797 = arith.addf %795, %796 : vector<2x16xf32>
    %798 = math.tanh %797 : vector<2x16xf32>
    %799 = arith.mulf %794, %798 : vector<2x16xf32>
    %800 = arith.index_cast %c10_i32_206 : i32 to index
    %c0_212 = arith.constant 0 : index
    %c0_213 = arith.constant 0 : index
    %801 = vector.load %arg14[%800, %c0_212, %c0_213] : memref<16x2x16xf32, #tpu.memory_space<vmem>>, vector<1x2x16xf32>
    %802 = vector.shape_cast %801 : vector<1x2x16xf32> to vector<2x16xf32>
    %803 = vector.shape_cast %799 : vector<2x16xf32> to vector<1x2x16xf32>
    tpu.vector_store %arg14[%800, %c0_212, %c0_213], %803 {strides = array<i32>} : memref<16x2x16xf32, #tpu.memory_space<vmem>>, vector<1x2x16xf32>,
    %c11_i32_214 = arith.constant 11 : i32
    %804 = arith.index_cast %c11_i32_214 : i32 to index
    %c0_215 = arith.constant 0 : index
    %c0_216 = arith.constant 0 : index
    %805 = vector.load %arg14[%804, %c0_215, %c0_216] : memref<16x2x16xf32, #tpu.memory_space<vmem>>, vector<1x2x16xf32>
    %806 = vector.shape_cast %805 : vector<1x2x16xf32> to vector<2x16xf32>
    %807 = arith.truncf %806 : vector<2x16xf32> to vector<2x16xbf16>
    %cst_217 = arith.constant dense<0.000000e+00> : vector<2x64xf32>
    %808 = tpu.matmul %807, %469, %cst_217 {dimension_numbers = #tpu.dot_dimension_numbers<[1], [0], [0], [1], [0, 0, 1, 1], [], []>} : vector<2x16xbf16>, vector<16x64xbf16>, vector<2x64xf32> -> vector<2x64xf32>
    %809 = arith.truncf %799 : vector<2x16xf32> to vector<2x16xbf16>
    %cst_218 = arith.constant dense<0.000000e+00> : vector<2x64xf32>
    %810 = tpu.matmul %809, %470, %cst_218 {dimension_numbers = #tpu.dot_dimension_numbers<[1], [0], [0], [1], [0, 0, 1, 1], [], []>} : vector<2x16xbf16>, vector<16x64xbf16>, vector<2x64xf32> -> vector<2x64xf32>
    %811 = arith.addf %808, %810 : vector<2x64xf32>
    %812 = vector.broadcast %471 : vector<1x64xf32> to vector<2x64xf32>
    %813 = arith.addf %811, %812 : vector<2x64xf32>
    %814 = vector.extract_strided_slice %813 {offsets = [0, 0], sizes = [2, 48], strides = [1, 1]} : vector<2x64xf32> to vector<2x48xf32>
    %815 = arith.negf %814 : vector<2x48xf32>
    %816 = math.exp %815 : vector<2x48xf32>
    %cst_219 = arith.constant 1.000000e+00 : f32
    %817 = vector.broadcast %cst_219 : f32 to vector<2x48xf32>
    %818 = arith.addf %817, %816 : vector<2x48xf32>
    %819 = arith.divf %817, %818 : vector<2x48xf32>
    %820 = vector.extract_strided_slice %813 {offsets = [0, 48], sizes = [2, 16], strides = [1, 1]} : vector<2x64xf32> to vector<2x16xf32>
    %821 = math.tanh %820 : vector<2x16xf32>
    %822 = vector.extract_strided_slice %819 {offsets = [0, 0], sizes = [2, 16], strides = [1, 1]} : vector<2x48xf32> to vector<2x16xf32>
    %823 = vector.extract_strided_slice %819 {offsets = [0, 16], sizes = [2, 16], strides = [1, 1]} : vector<2x48xf32> to vector<2x16xf32>
    %824 = vector.extract_strided_slice %819 {offsets = [0, 32], sizes = [2, 16], strides = [1, 1]} : vector<2x48xf32> to vector<2x16xf32>
    %825 = arith.mulf %823, %797 : vector<2x16xf32>
    %826 = arith.mulf %822, %821 : vector<2x16xf32>
    %827 = arith.addf %825, %826 : vector<2x16xf32>
    %828 = math.tanh %827 : vector<2x16xf32>
    %829 = arith.mulf %824, %828 : vector<2x16xf32>
    %830 = arith.index_cast %c11_i32_214 : i32 to index
    %c0_220 = arith.constant 0 : index
    %c0_221 = arith.constant 0 : index
    %831 = vector.load %arg14[%830, %c0_220, %c0_221] : memref<16x2x16xf32, #tpu.memory_space<vmem>>, vector<1x2x16xf32>
    %832 = vector.shape_cast %831 : vector<1x2x16xf32> to vector<2x16xf32>
    %833 = vector.shape_cast %829 : vector<2x16xf32> to vector<1x2x16xf32>
    tpu.vector_store %arg14[%830, %c0_220, %c0_221], %833 {strides = array<i32>} : memref<16x2x16xf32, #tpu.memory_space<vmem>>, vector<1x2x16xf32>,
    %c12_i32_222 = arith.constant 12 : i32
    %834 = arith.index_cast %c12_i32_222 : i32 to index
    %c0_223 = arith.constant 0 : index
    %c0_224 = arith.constant 0 : index
    %835 = vector.load %arg14[%834, %c0_223, %c0_224] : memref<16x2x16xf32, #tpu.memory_space<vmem>>, vector<1x2x16xf32>
    %836 = vector.shape_cast %835 : vector<1x2x16xf32> to vector<2x16xf32>
    %837 = arith.truncf %836 : vector<2x16xf32> to vector<2x16xbf16>
    %cst_225 = arith.constant dense<0.000000e+00> : vector<2x64xf32>
    %838 = tpu.matmul %837, %469, %cst_225 {dimension_numbers = #tpu.dot_dimension_numbers<[1], [0], [0], [1], [0, 0, 1, 1], [], []>} : vector<2x16xbf16>, vector<16x64xbf16>, vector<2x64xf32> -> vector<2x64xf32>
    %839 = arith.truncf %829 : vector<2x16xf32> to vector<2x16xbf16>
    %cst_226 = arith.constant dense<0.000000e+00> : vector<2x64xf32>
    %840 = tpu.matmul %839, %470, %cst_226 {dimension_numbers = #tpu.dot_dimension_numbers<[1], [0], [0], [1], [0, 0, 1, 1], [], []>} : vector<2x16xbf16>, vector<16x64xbf16>, vector<2x64xf32> -> vector<2x64xf32>
    %841 = arith.addf %838, %840 : vector<2x64xf32>
    %842 = vector.broadcast %471 : vector<1x64xf32> to vector<2x64xf32>
    %843 = arith.addf %841, %842 : vector<2x64xf32>
    %844 = vector.extract_strided_slice %843 {offsets = [0, 0], sizes = [2, 48], strides = [1, 1]} : vector<2x64xf32> to vector<2x48xf32>
    %845 = arith.negf %844 : vector<2x48xf32>
    %846 = math.exp %845 : vector<2x48xf32>
    %cst_227 = arith.constant 1.000000e+00 : f32
    %847 = vector.broadcast %cst_227 : f32 to vector<2x48xf32>
    %848 = arith.addf %847, %846 : vector<2x48xf32>
    %849 = arith.divf %847, %848 : vector<2x48xf32>
    %850 = vector.extract_strided_slice %843 {offsets = [0, 48], sizes = [2, 16], strides = [1, 1]} : vector<2x64xf32> to vector<2x16xf32>
    %851 = math.tanh %850 : vector<2x16xf32>
    %852 = vector.extract_strided_slice %849 {offsets = [0, 0], sizes = [2, 16], strides = [1, 1]} : vector<2x48xf32> to vector<2x16xf32>
    %853 = vector.extract_strided_slice %849 {offsets = [0, 16], sizes = [2, 16], strides = [1, 1]} : vector<2x48xf32> to vector<2x16xf32>
    %854 = vector.extract_strided_slice %849 {offsets = [0, 32], sizes = [2, 16], strides = [1, 1]} : vector<2x48xf32> to vector<2x16xf32>
    %855 = arith.mulf %853, %827 : vector<2x16xf32>
    %856 = arith.mulf %852, %851 : vector<2x16xf32>
    %857 = arith.addf %855, %856 : vector<2x16xf32>
    %858 = math.tanh %857 : vector<2x16xf32>
    %859 = arith.mulf %854, %858 : vector<2x16xf32>
    %860 = arith.index_cast %c12_i32_222 : i32 to index
    %c0_228 = arith.constant 0 : index
    %c0_229 = arith.constant 0 : index
    %861 = vector.load %arg14[%860, %c0_228, %c0_229] : memref<16x2x16xf32, #tpu.memory_space<vmem>>, vector<1x2x16xf32>
    %862 = vector.shape_cast %861 : vector<1x2x16xf32> to vector<2x16xf32>
    %863 = vector.shape_cast %859 : vector<2x16xf32> to vector<1x2x16xf32>
    tpu.vector_store %arg14[%860, %c0_228, %c0_229], %863 {strides = array<i32>} : memref<16x2x16xf32, #tpu.memory_space<vmem>>, vector<1x2x16xf32>,
    %c13_i32_230 = arith.constant 13 : i32
    %864 = arith.index_cast %c13_i32_230 : i32 to index
    %c0_231 = arith.constant 0 : index
    %c0_232 = arith.constant 0 : index
    %865 = vector.load %arg14[%864, %c0_231, %c0_232] : memref<16x2x16xf32, #tpu.memory_space<vmem>>, vector<1x2x16xf32>
    %866 = vector.shape_cast %865 : vector<1x2x16xf32> to vector<2x16xf32>
    %867 = arith.truncf %866 : vector<2x16xf32> to vector<2x16xbf16>
    %cst_233 = arith.constant dense<0.000000e+00> : vector<2x64xf32>
    %868 = tpu.matmul %867, %469, %cst_233 {dimension_numbers = #tpu.dot_dimension_numbers<[1], [0], [0], [1], [0, 0, 1, 1], [], []>} : vector<2x16xbf16>, vector<16x64xbf16>, vector<2x64xf32> -> vector<2x64xf32>
    %869 = arith.truncf %859 : vector<2x16xf32> to vector<2x16xbf16>
    %cst_234 = arith.constant dense<0.000000e+00> : vector<2x64xf32>
    %870 = tpu.matmul %869, %470, %cst_234 {dimension_numbers = #tpu.dot_dimension_numbers<[1], [0], [0], [1], [0, 0, 1, 1], [], []>} : vector<2x16xbf16>, vector<16x64xbf16>, vector<2x64xf32> -> vector<2x64xf32>
    %871 = arith.addf %868, %870 : vector<2x64xf32>
    %872 = vector.broadcast %471 : vector<1x64xf32> to vector<2x64xf32>
    %873 = arith.addf %871, %872 : vector<2x64xf32>
    %874 = vector.extract_strided_slice %873 {offsets = [0, 0], sizes = [2, 48], strides = [1, 1]} : vector<2x64xf32> to vector<2x48xf32>
    %875 = arith.negf %874 : vector<2x48xf32>
    %876 = math.exp %875 : vector<2x48xf32>
    %cst_235 = arith.constant 1.000000e+00 : f32
    %877 = vector.broadcast %cst_235 : f32 to vector<2x48xf32>
    %878 = arith.addf %877, %876 : vector<2x48xf32>
    %879 = arith.divf %877, %878 : vector<2x48xf32>
    %880 = vector.extract_strided_slice %873 {offsets = [0, 48], sizes = [2, 16], strides = [1, 1]} : vector<2x64xf32> to vector<2x16xf32>
    %881 = math.tanh %880 : vector<2x16xf32>
    %882 = vector.extract_strided_slice %879 {offsets = [0, 0], sizes = [2, 16], strides = [1, 1]} : vector<2x48xf32> to vector<2x16xf32>
    %883 = vector.extract_strided_slice %879 {offsets = [0, 16], sizes = [2, 16], strides = [1, 1]} : vector<2x48xf32> to vector<2x16xf32>
    %884 = vector.extract_strided_slice %879 {offsets = [0, 32], sizes = [2, 16], strides = [1, 1]} : vector<2x48xf32> to vector<2x16xf32>
    %885 = arith.mulf %883, %857 : vector<2x16xf32>
    %886 = arith.mulf %882, %881 : vector<2x16xf32>
    %887 = arith.addf %885, %886 : vector<2x16xf32>
    %888 = math.tanh %887 : vector<2x16xf32>
    %889 = arith.mulf %884, %888 : vector<2x16xf32>
    %890 = arith.index_cast %c13_i32_230 : i32 to index
    %c0_236 = arith.constant 0 : index
    %c0_237 = arith.constant 0 : index
    %891 = vector.load %arg14[%890, %c0_236, %c0_237] : memref<16x2x16xf32, #tpu.memory_space<vmem>>, vector<1x2x16xf32>
    %892 = vector.shape_cast %891 : vector<1x2x16xf32> to vector<2x16xf32>
    %893 = vector.shape_cast %889 : vector<2x16xf32> to vector<1x2x16xf32>
    tpu.vector_store %arg14[%890, %c0_236, %c0_237], %893 {strides = array<i32>} : memref<16x2x16xf32, #tpu.memory_space<vmem>>, vector<1x2x16xf32>,
    %c14_i32_238 = arith.constant 14 : i32
    %894 = arith.index_cast %c14_i32_238 : i32 to index
    %c0_239 = arith.constant 0 : index
    %c0_240 = arith.constant 0 : index
    %895 = vector.load %arg14[%894, %c0_239, %c0_240] : memref<16x2x16xf32, #tpu.memory_space<vmem>>, vector<1x2x16xf32>
    %896 = vector.shape_cast %895 : vector<1x2x16xf32> to vector<2x16xf32>
    %897 = arith.truncf %896 : vector<2x16xf32> to vector<2x16xbf16>
    %cst_241 = arith.constant dense<0.000000e+00> : vector<2x64xf32>
    %898 = tpu.matmul %897, %469, %cst_241 {dimension_numbers = #tpu.dot_dimension_numbers<[1], [0], [0], [1], [0, 0, 1, 1], [], []>} : vector<2x16xbf16>, vector<16x64xbf16>, vector<2x64xf32> -> vector<2x64xf32>
    %899 = arith.truncf %889 : vector<2x16xf32> to vector<2x16xbf16>
    %cst_242 = arith.constant dense<0.000000e+00> : vector<2x64xf32>
    %900 = tpu.matmul %899, %470, %cst_242 {dimension_numbers = #tpu.dot_dimension_numbers<[1], [0], [0], [1], [0, 0, 1, 1], [], []>} : vector<2x16xbf16>, vector<16x64xbf16>, vector<2x64xf32> -> vector<2x64xf32>
    %901 = arith.addf %898, %900 : vector<2x64xf32>
    %902 = vector.broadcast %471 : vector<1x64xf32> to vector<2x64xf32>
    %903 = arith.addf %901, %902 : vector<2x64xf32>
    %904 = vector.extract_strided_slice %903 {offsets = [0, 0], sizes = [2, 48], strides = [1, 1]} : vector<2x64xf32> to vector<2x48xf32>
    %905 = arith.negf %904 : vector<2x48xf32>
    %906 = math.exp %905 : vector<2x48xf32>
    %cst_243 = arith.constant 1.000000e+00 : f32
    %907 = vector.broadcast %cst_243 : f32 to vector<2x48xf32>
    %908 = arith.addf %907, %906 : vector<2x48xf32>
    %909 = arith.divf %907, %908 : vector<2x48xf32>
    %910 = vector.extract_strided_slice %903 {offsets = [0, 48], sizes = [2, 16], strides = [1, 1]} : vector<2x64xf32> to vector<2x16xf32>
    %911 = math.tanh %910 : vector<2x16xf32>
    %912 = vector.extract_strided_slice %909 {offsets = [0, 0], sizes = [2, 16], strides = [1, 1]} : vector<2x48xf32> to vector<2x16xf32>
    %913 = vector.extract_strided_slice %909 {offsets = [0, 16], sizes = [2, 16], strides = [1, 1]} : vector<2x48xf32> to vector<2x16xf32>
    %914 = vector.extract_strided_slice %909 {offsets = [0, 32], sizes = [2, 16], strides = [1, 1]} : vector<2x48xf32> to vector<2x16xf32>
    %915 = arith.mulf %913, %887 : vector<2x16xf32>
    %916 = arith.mulf %912, %911 : vector<2x16xf32>
    %917 = arith.addf %915, %916 : vector<2x16xf32>
    %918 = math.tanh %917 : vector<2x16xf32>
    %919 = arith.mulf %914, %918 : vector<2x16xf32>
    %920 = arith.index_cast %c14_i32_238 : i32 to index
    %c0_244 = arith.constant 0 : index
    %c0_245 = arith.constant 0 : index
    %921 = vector.load %arg14[%920, %c0_244, %c0_245] : memref<16x2x16xf32, #tpu.memory_space<vmem>>, vector<1x2x16xf32>
    %922 = vector.shape_cast %921 : vector<1x2x16xf32> to vector<2x16xf32>
    %923 = vector.shape_cast %919 : vector<2x16xf32> to vector<1x2x16xf32>
    tpu.vector_store %arg14[%920, %c0_244, %c0_245], %923 {strides = array<i32>} : memref<16x2x16xf32, #tpu.memory_space<vmem>>, vector<1x2x16xf32>,
    %c15_i32_246 = arith.constant 15 : i32
    %924 = arith.index_cast %c15_i32_246 : i32 to index
    %c0_247 = arith.constant 0 : index
    %c0_248 = arith.constant 0 : index
    %925 = vector.load %arg14[%924, %c0_247, %c0_248] : memref<16x2x16xf32, #tpu.memory_space<vmem>>, vector<1x2x16xf32>
    %926 = vector.shape_cast %925 : vector<1x2x16xf32> to vector<2x16xf32>
    %927 = arith.truncf %926 : vector<2x16xf32> to vector<2x16xbf16>
    %cst_249 = arith.constant dense<0.000000e+00> : vector<2x64xf32>
    %928 = tpu.matmul %927, %469, %cst_249 {dimension_numbers = #tpu.dot_dimension_numbers<[1], [0], [0], [1], [0, 0, 1, 1], [], []>} : vector<2x16xbf16>, vector<16x64xbf16>, vector<2x64xf32> -> vector<2x64xf32>
    %929 = arith.truncf %919 : vector<2x16xf32> to vector<2x16xbf16>
    %cst_250 = arith.constant dense<0.000000e+00> : vector<2x64xf32>
    %930 = tpu.matmul %929, %470, %cst_250 {dimension_numbers = #tpu.dot_dimension_numbers<[1], [0], [0], [1], [0, 0, 1, 1], [], []>} : vector<2x16xbf16>, vector<16x64xbf16>, vector<2x64xf32> -> vector<2x64xf32>
    %931 = arith.addf %928, %930 : vector<2x64xf32>
    %932 = vector.broadcast %471 : vector<1x64xf32> to vector<2x64xf32>
    %933 = arith.addf %931, %932 : vector<2x64xf32>
    %934 = vector.extract_strided_slice %933 {offsets = [0, 0], sizes = [2, 48], strides = [1, 1]} : vector<2x64xf32> to vector<2x48xf32>
    %935 = arith.negf %934 : vector<2x48xf32>
    %936 = math.exp %935 : vector<2x48xf32>
    %cst_251 = arith.constant 1.000000e+00 : f32
    %937 = vector.broadcast %cst_251 : f32 to vector<2x48xf32>
    %938 = arith.addf %937, %936 : vector<2x48xf32>
    %939 = arith.divf %937, %938 : vector<2x48xf32>
    %940 = vector.extract_strided_slice %933 {offsets = [0, 48], sizes = [2, 16], strides = [1, 1]} : vector<2x64xf32> to vector<2x16xf32>
    %941 = math.tanh %940 : vector<2x16xf32>
    %942 = vector.extract_strided_slice %939 {offsets = [0, 0], sizes = [2, 16], strides = [1, 1]} : vector<2x48xf32> to vector<2x16xf32>
    %943 = vector.extract_strided_slice %939 {offsets = [0, 16], sizes = [2, 16], strides = [1, 1]} : vector<2x48xf32> to vector<2x16xf32>
    %944 = vector.extract_strided_slice %939 {offsets = [0, 32], sizes = [2, 16], strides = [1, 1]} : vector<2x48xf32> to vector<2x16xf32>
    %945 = arith.mulf %943, %917 : vector<2x16xf32>
    %946 = arith.mulf %942, %941 : vector<2x16xf32>
    %947 = arith.addf %945, %946 : vector<2x16xf32>
    %948 = math.tanh %947 : vector<2x16xf32>
    %949 = arith.mulf %944, %948 : vector<2x16xf32>
    %950 = arith.index_cast %c15_i32_246 : i32 to index
    %c0_252 = arith.constant 0 : index
    %c0_253 = arith.constant 0 : index
    %951 = vector.load %arg14[%950, %c0_252, %c0_253] : memref<16x2x16xf32, #tpu.memory_space<vmem>>, vector<1x2x16xf32>
    %952 = vector.shape_cast %951 : vector<1x2x16xf32> to vector<2x16xf32>
    %953 = vector.shape_cast %949 : vector<2x16xf32> to vector<1x2x16xf32>
    tpu.vector_store %arg14[%950, %c0_252, %c0_253], %953 {strides = array<i32>} : memref<16x2x16xf32, #tpu.memory_space<vmem>>, vector<1x2x16xf32>,
    %c16_i32_254 = arith.constant 16 : i32
    %c0_255 = arith.constant 0 : index
    %c0_256 = arith.constant 0 : index
    %954 = vector.load %arg9[%c0_255, %c0_256] : memref<16x16xbf16, #tpu.memory_space<vmem>>, vector<16x16xbf16>
    %c0_257 = arith.constant 0 : index
    %c0_258 = arith.constant 0 : index
    %955 = vector.load %arg10[%c0_257, %c0_258] : memref<1x16xf32, #tpu.memory_space<vmem>>, vector<1x16xf32>
    %c0_259 = arith.constant 0 : index
    %c0_260 = arith.constant 0 : index
    %956 = vector.load %arg11[%c0_259, %c0_260] : memref<16x128xbf16, #tpu.memory_space<vmem>>, vector<16x128xbf16>
    %c0_261 = arith.constant 0 : index
    %c0_262 = arith.constant 0 : index
    %957 = vector.load %arg12[%c0_261, %c0_262] : memref<1x128xf32, #tpu.memory_space<vmem>>, vector<1x128xf32>
    %c0_263 = arith.constant 0 : index
    %c0_264 = arith.constant 0 : index
    %c0_265 = arith.constant 0 : index
    %958 = vector.load %arg14[%c0_263, %c0_264, %c0_265] : memref<16x2x16xf32, #tpu.memory_space<vmem>>, vector<1x2x16xf32>
    %959 = vector.shape_cast %958 : vector<1x2x16xf32> to vector<2x16xf32>
    %cst_266 = arith.constant dense<0.000000e+00> : vector<2xf32>
    %960 = vector.multi_reduction <add>, %959, %cst_266 [1] : vector<2x16xf32> to vector<2xf32>
    %961 = vector.shape_cast %960 : vector<2xf32> to vector<2x1xf32>
    %cst_267 = arith.constant dense<0.000000e+00> : vector<1xf32>
    %962 = vector.multi_reduction <add>, %961, %cst_267 [0] : vector<2x1xf32> to vector<1xf32>
    %963 = vector.shape_cast %962 : vector<1xf32> to vector<1x1xf32>
    %cst_268 = arith.constant 3.125000e-02 : f32
    %964 = vector.broadcast %cst_268 : f32 to vector<1x1xf32>
    %965 = arith.mulf %963, %964 : vector<1x1xf32>
    %966 = vector.broadcast %965 : vector<1x1xf32> to vector<2x16xf32>
    %967 = arith.subf %959, %966 : vector<2x16xf32>
    %968 = arith.mulf %967, %967 : vector<2x16xf32>
    %cst_269 = arith.constant dense<0.000000e+00> : vector<2xf32>
    %969 = vector.multi_reduction <add>, %968, %cst_269 [1] : vector<2x16xf32> to vector<2xf32>
    %970 = vector.shape_cast %969 : vector<2xf32> to vector<2x1xf32>
    %cst_270 = arith.constant dense<0.000000e+00> : vector<1xf32>
    %971 = vector.multi_reduction <add>, %970, %cst_270 [0] : vector<2x1xf32> to vector<1xf32>
    %972 = vector.shape_cast %971 : vector<1xf32> to vector<1x1xf32>
    %cst_271 = arith.constant 3.125000e-02 : f32
    %973 = vector.broadcast %cst_271 : f32 to vector<1x1xf32>
    %974 = arith.mulf %972, %973 : vector<1x1xf32>
    %c0_272 = arith.constant 0 : index
    %c0_273 = arith.constant 0 : index
    %c0_274 = arith.constant 0 : index
    %975 = vector.load %arg7[%c0_272, %c0_273, %c0_274] : memref<16x1x1xf32, #tpu.memory_space<vmem>>, vector<1x1x1xf32>
    %976 = vector.shape_cast %975 : vector<1x1x1xf32> to vector<1x1xf32>
    %cst_275 = arith.constant 9.99999974E-6 : f32
    %977 = vector.broadcast %cst_275 : f32 to vector<1x1xf32>
    %978 = arith.addf %974, %977 : vector<1x1xf32>
    %979 = math.rsqrt %978 : vector<1x1xf32>
    %980 = arith.mulf %976, %979 : vector<1x1xf32>
    %981 = vector.broadcast %980 : vector<1x1xf32> to vector<2x16xf32>
    %982 = arith.mulf %967, %981 : vector<2x16xf32>
    %c0_276 = arith.constant 0 : index
    %c0_277 = arith.constant 0 : index
    %c0_278 = arith.constant 0 : index
    %983 = vector.load %arg8[%c0_276, %c0_277, %c0_278] : memref<16x1x1xf32, #tpu.memory_space<vmem>>, vector<1x1x1xf32>
    %984 = vector.shape_cast %983 : vector<1x1x1xf32> to vector<1x1xf32>
    %985 = vector.broadcast %984 : vector<1x1xf32> to vector<2x16xf32>
    %986 = arith.addf %982, %985 : vector<2x16xf32>
    %987 = arith.truncf %986 : vector<2x16xf32> to vector<2x16xbf16>
    %cst_279 = arith.constant dense<0.000000e+00> : vector<2x16xf32>
    %988 = tpu.matmul %987, %954, %cst_279 {dimension_numbers = #tpu.dot_dimension_numbers<[1], [0], [0], [1], [0, 0, 1, 1], [], []>} : vector<2x16xbf16>, vector<16x16xbf16>, vector<2x16xf32> -> vector<2x16xf32>
    %989 = vector.broadcast %955 : vector<1x16xf32> to vector<2x16xf32>
    %990 = arith.addf %988, %989 : vector<2x16xf32>
    %cst_280 = arith.constant 0.000000e+00 : f32
    %991 = vector.broadcast %cst_280 : f32 to vector<2x16xf32>
    %992 = arith.maximumf %990, %991 : vector<2x16xf32>
    %993 = arith.truncf %992 : vector<2x16xf32> to vector<2x16xbf16>
    %cst_281 = arith.constant dense<0.000000e+00> : vector<2x128xf32>
    %994 = tpu.matmul %993, %956, %cst_281 {dimension_numbers = #tpu.dot_dimension_numbers<[1], [0], [0], [1], [0, 0, 1, 1], [], []>} : vector<2x16xbf16>, vector<16x128xbf16>, vector<2x128xf32> -> vector<2x128xf32>
    %995 = vector.broadcast %957 : vector<1x128xf32> to vector<2x128xf32>
    %996 = arith.addf %994, %995 : vector<2x128xf32>
    %c0_282 = arith.constant 0 : index
    %c0_283 = arith.constant 0 : index
    %c0_284 = arith.constant 0 : index
    %997 = vector.load %arg13[%c0_282, %c0_283, %c0_284] : memref<16x2x128xf32, #tpu.memory_space<vmem>>, vector<1x2x128xf32>
    %998 = vector.shape_cast %997 : vector<1x2x128xf32> to vector<2x128xf32>
    %999 = vector.shape_cast %996 : vector<2x128xf32> to vector<1x2x128xf32>
    tpu.vector_store %arg13[%c0_282, %c0_283, %c0_284], %999 {strides = array<i32>} : memref<16x2x128xf32, #tpu.memory_space<vmem>>, vector<1x2x128xf32>,
    %c1 = arith.constant 1 : index
    %c0_285 = arith.constant 0 : index
    %c0_286 = arith.constant 0 : index
    %1000 = vector.load %arg14[%c1, %c0_285, %c0_286] : memref<16x2x16xf32, #tpu.memory_space<vmem>>, vector<1x2x16xf32>
    %1001 = vector.shape_cast %1000 : vector<1x2x16xf32> to vector<2x16xf32>
    %cst_287 = arith.constant dense<0.000000e+00> : vector<2xf32>
    %1002 = vector.multi_reduction <add>, %1001, %cst_287 [1] : vector<2x16xf32> to vector<2xf32>
    %1003 = vector.shape_cast %1002 : vector<2xf32> to vector<2x1xf32>
    %cst_288 = arith.constant dense<0.000000e+00> : vector<1xf32>
    %1004 = vector.multi_reduction <add>, %1003, %cst_288 [0] : vector<2x1xf32> to vector<1xf32>
    %1005 = vector.shape_cast %1004 : vector<1xf32> to vector<1x1xf32>
    %cst_289 = arith.constant 3.125000e-02 : f32
    %1006 = vector.broadcast %cst_289 : f32 to vector<1x1xf32>
    %1007 = arith.mulf %1005, %1006 : vector<1x1xf32>
    %1008 = vector.broadcast %1007 : vector<1x1xf32> to vector<2x16xf32>
    %1009 = arith.subf %1001, %1008 : vector<2x16xf32>
    %1010 = arith.mulf %1009, %1009 : vector<2x16xf32>
    %cst_290 = arith.constant dense<0.000000e+00> : vector<2xf32>
    %1011 = vector.multi_reduction <add>, %1010, %cst_290 [1] : vector<2x16xf32> to vector<2xf32>
    %1012 = vector.shape_cast %1011 : vector<2xf32> to vector<2x1xf32>
    %cst_291 = arith.constant dense<0.000000e+00> : vector<1xf32>
    %1013 = vector.multi_reduction <add>, %1012, %cst_291 [0] : vector<2x1xf32> to vector<1xf32>
    %1014 = vector.shape_cast %1013 : vector<1xf32> to vector<1x1xf32>
    %cst_292 = arith.constant 3.125000e-02 : f32
    %1015 = vector.broadcast %cst_292 : f32 to vector<1x1xf32>
    %1016 = arith.mulf %1014, %1015 : vector<1x1xf32>
    %c1_293 = arith.constant 1 : index
    %c0_294 = arith.constant 0 : index
    %c0_295 = arith.constant 0 : index
    %1017 = vector.load %arg7[%c1_293, %c0_294, %c0_295] : memref<16x1x1xf32, #tpu.memory_space<vmem>>, vector<1x1x1xf32>
    %1018 = vector.shape_cast %1017 : vector<1x1x1xf32> to vector<1x1xf32>
    %cst_296 = arith.constant 9.99999974E-6 : f32
    %1019 = vector.broadcast %cst_296 : f32 to vector<1x1xf32>
    %1020 = arith.addf %1016, %1019 : vector<1x1xf32>
    %1021 = math.rsqrt %1020 : vector<1x1xf32>
    %1022 = arith.mulf %1018, %1021 : vector<1x1xf32>
    %1023 = vector.broadcast %1022 : vector<1x1xf32> to vector<2x16xf32>
    %1024 = arith.mulf %1009, %1023 : vector<2x16xf32>
    %c1_297 = arith.constant 1 : index
    %c0_298 = arith.constant 0 : index
    %c0_299 = arith.constant 0 : index
    %1025 = vector.load %arg8[%c1_297, %c0_298, %c0_299] : memref<16x1x1xf32, #tpu.memory_space<vmem>>, vector<1x1x1xf32>
    %1026 = vector.shape_cast %1025 : vector<1x1x1xf32> to vector<1x1xf32>
    %1027 = vector.broadcast %1026 : vector<1x1xf32> to vector<2x16xf32>
    %1028 = arith.addf %1024, %1027 : vector<2x16xf32>
    %1029 = arith.truncf %1028 : vector<2x16xf32> to vector<2x16xbf16>
    %cst_300 = arith.constant dense<0.000000e+00> : vector<2x16xf32>
    %1030 = tpu.matmul %1029, %954, %cst_300 {dimension_numbers = #tpu.dot_dimension_numbers<[1], [0], [0], [1], [0, 0, 1, 1], [], []>} : vector<2x16xbf16>, vector<16x16xbf16>, vector<2x16xf32> -> vector<2x16xf32>
    %1031 = vector.broadcast %955 : vector<1x16xf32> to vector<2x16xf32>
    %1032 = arith.addf %1030, %1031 : vector<2x16xf32>
    %cst_301 = arith.constant 0.000000e+00 : f32
    %1033 = vector.broadcast %cst_301 : f32 to vector<2x16xf32>
    %1034 = arith.maximumf %1032, %1033 : vector<2x16xf32>
    %1035 = arith.truncf %1034 : vector<2x16xf32> to vector<2x16xbf16>
    %cst_302 = arith.constant dense<0.000000e+00> : vector<2x128xf32>
    %1036 = tpu.matmul %1035, %956, %cst_302 {dimension_numbers = #tpu.dot_dimension_numbers<[1], [0], [0], [1], [0, 0, 1, 1], [], []>} : vector<2x16xbf16>, vector<16x128xbf16>, vector<2x128xf32> -> vector<2x128xf32>
    %1037 = vector.broadcast %957 : vector<1x128xf32> to vector<2x128xf32>
    %1038 = arith.addf %1036, %1037 : vector<2x128xf32>
    %c1_303 = arith.constant 1 : index
    %c0_304 = arith.constant 0 : index
    %c0_305 = arith.constant 0 : index
    %1039 = vector.load %arg13[%c1_303, %c0_304, %c0_305] : memref<16x2x128xf32, #tpu.memory_space<vmem>>, vector<1x2x128xf32>
    %1040 = vector.shape_cast %1039 : vector<1x2x128xf32> to vector<2x128xf32>
    %1041 = vector.shape_cast %1038 : vector<2x128xf32> to vector<1x2x128xf32>
    tpu.vector_store %arg13[%c1_303, %c0_304, %c0_305], %1041 {strides = array<i32>} : memref<16x2x128xf32, #tpu.memory_space<vmem>>, vector<1x2x128xf32>,
    %c2 = arith.constant 2 : index
    %c0_306 = arith.constant 0 : index
    %c0_307 = arith.constant 0 : index
    %1042 = vector.load %arg14[%c2, %c0_306, %c0_307] : memref<16x2x16xf32, #tpu.memory_space<vmem>>, vector<1x2x16xf32>
    %1043 = vector.shape_cast %1042 : vector<1x2x16xf32> to vector<2x16xf32>
    %cst_308 = arith.constant dense<0.000000e+00> : vector<2xf32>
    %1044 = vector.multi_reduction <add>, %1043, %cst_308 [1] : vector<2x16xf32> to vector<2xf32>
    %1045 = vector.shape_cast %1044 : vector<2xf32> to vector<2x1xf32>
    %cst_309 = arith.constant dense<0.000000e+00> : vector<1xf32>
    %1046 = vector.multi_reduction <add>, %1045, %cst_309 [0] : vector<2x1xf32> to vector<1xf32>
    %1047 = vector.shape_cast %1046 : vector<1xf32> to vector<1x1xf32>
    %cst_310 = arith.constant 3.125000e-02 : f32
    %1048 = vector.broadcast %cst_310 : f32 to vector<1x1xf32>
    %1049 = arith.mulf %1047, %1048 : vector<1x1xf32>
    %1050 = vector.broadcast %1049 : vector<1x1xf32> to vector<2x16xf32>
    %1051 = arith.subf %1043, %1050 : vector<2x16xf32>
    %1052 = arith.mulf %1051, %1051 : vector<2x16xf32>
    %cst_311 = arith.constant dense<0.000000e+00> : vector<2xf32>
    %1053 = vector.multi_reduction <add>, %1052, %cst_311 [1] : vector<2x16xf32> to vector<2xf32>
    %1054 = vector.shape_cast %1053 : vector<2xf32> to vector<2x1xf32>
    %cst_312 = arith.constant dense<0.000000e+00> : vector<1xf32>
    %1055 = vector.multi_reduction <add>, %1054, %cst_312 [0] : vector<2x1xf32> to vector<1xf32>
    %1056 = vector.shape_cast %1055 : vector<1xf32> to vector<1x1xf32>
    %cst_313 = arith.constant 3.125000e-02 : f32
    %1057 = vector.broadcast %cst_313 : f32 to vector<1x1xf32>
    %1058 = arith.mulf %1056, %1057 : vector<1x1xf32>
    %c2_314 = arith.constant 2 : index
    %c0_315 = arith.constant 0 : index
    %c0_316 = arith.constant 0 : index
    %1059 = vector.load %arg7[%c2_314, %c0_315, %c0_316] : memref<16x1x1xf32, #tpu.memory_space<vmem>>, vector<1x1x1xf32>
    %1060 = vector.shape_cast %1059 : vector<1x1x1xf32> to vector<1x1xf32>
    %cst_317 = arith.constant 9.99999974E-6 : f32
    %1061 = vector.broadcast %cst_317 : f32 to vector<1x1xf32>
    %1062 = arith.addf %1058, %1061 : vector<1x1xf32>
    %1063 = math.rsqrt %1062 : vector<1x1xf32>
    %1064 = arith.mulf %1060, %1063 : vector<1x1xf32>
    %1065 = vector.broadcast %1064 : vector<1x1xf32> to vector<2x16xf32>
    %1066 = arith.mulf %1051, %1065 : vector<2x16xf32>
    %c2_318 = arith.constant 2 : index
    %c0_319 = arith.constant 0 : index
    %c0_320 = arith.constant 0 : index
    %1067 = vector.load %arg8[%c2_318, %c0_319, %c0_320] : memref<16x1x1xf32, #tpu.memory_space<vmem>>, vector<1x1x1xf32>
    %1068 = vector.shape_cast %1067 : vector<1x1x1xf32> to vector<1x1xf32>
    %1069 = vector.broadcast %1068 : vector<1x1xf32> to vector<2x16xf32>
    %1070 = arith.addf %1066, %1069 : vector<2x16xf32>
    %1071 = arith.truncf %1070 : vector<2x16xf32> to vector<2x16xbf16>
    %cst_321 = arith.constant dense<0.000000e+00> : vector<2x16xf32>
    %1072 = tpu.matmul %1071, %954, %cst_321 {dimension_numbers = #tpu.dot_dimension_numbers<[1], [0], [0], [1], [0, 0, 1, 1], [], []>} : vector<2x16xbf16>, vector<16x16xbf16>, vector<2x16xf32> -> vector<2x16xf32>
    %1073 = vector.broadcast %955 : vector<1x16xf32> to vector<2x16xf32>
    %1074 = arith.addf %1072, %1073 : vector<2x16xf32>
    %cst_322 = arith.constant 0.000000e+00 : f32
    %1075 = vector.broadcast %cst_322 : f32 to vector<2x16xf32>
    %1076 = arith.maximumf %1074, %1075 : vector<2x16xf32>
    %1077 = arith.truncf %1076 : vector<2x16xf32> to vector<2x16xbf16>
    %cst_323 = arith.constant dense<0.000000e+00> : vector<2x128xf32>
    %1078 = tpu.matmul %1077, %956, %cst_323 {dimension_numbers = #tpu.dot_dimension_numbers<[1], [0], [0], [1], [0, 0, 1, 1], [], []>} : vector<2x16xbf16>, vector<16x128xbf16>, vector<2x128xf32> -> vector<2x128xf32>
    %1079 = vector.broadcast %957 : vector<1x128xf32> to vector<2x128xf32>
    %1080 = arith.addf %1078, %1079 : vector<2x128xf32>
    %c2_324 = arith.constant 2 : index
    %c0_325 = arith.constant 0 : index
    %c0_326 = arith.constant 0 : index
    %1081 = vector.load %arg13[%c2_324, %c0_325, %c0_326] : memref<16x2x128xf32, #tpu.memory_space<vmem>>, vector<1x2x128xf32>
    %1082 = vector.shape_cast %1081 : vector<1x2x128xf32> to vector<2x128xf32>
    %1083 = vector.shape_cast %1080 : vector<2x128xf32> to vector<1x2x128xf32>
    tpu.vector_store %arg13[%c2_324, %c0_325, %c0_326], %1083 {strides = array<i32>} : memref<16x2x128xf32, #tpu.memory_space<vmem>>, vector<1x2x128xf32>,
    %c3 = arith.constant 3 : index
    %c0_327 = arith.constant 0 : index
    %c0_328 = arith.constant 0 : index
    %1084 = vector.load %arg14[%c3, %c0_327, %c0_328] : memref<16x2x16xf32, #tpu.memory_space<vmem>>, vector<1x2x16xf32>
    %1085 = vector.shape_cast %1084 : vector<1x2x16xf32> to vector<2x16xf32>
    %cst_329 = arith.constant dense<0.000000e+00> : vector<2xf32>
    %1086 = vector.multi_reduction <add>, %1085, %cst_329 [1] : vector<2x16xf32> to vector<2xf32>
    %1087 = vector.shape_cast %1086 : vector<2xf32> to vector<2x1xf32>
    %cst_330 = arith.constant dense<0.000000e+00> : vector<1xf32>
    %1088 = vector.multi_reduction <add>, %1087, %cst_330 [0] : vector<2x1xf32> to vector<1xf32>
    %1089 = vector.shape_cast %1088 : vector<1xf32> to vector<1x1xf32>
    %cst_331 = arith.constant 3.125000e-02 : f32
    %1090 = vector.broadcast %cst_331 : f32 to vector<1x1xf32>
    %1091 = arith.mulf %1089, %1090 : vector<1x1xf32>
    %1092 = vector.broadcast %1091 : vector<1x1xf32> to vector<2x16xf32>
    %1093 = arith.subf %1085, %1092 : vector<2x16xf32>
    %1094 = arith.mulf %1093, %1093 : vector<2x16xf32>
    %cst_332 = arith.constant dense<0.000000e+00> : vector<2xf32>
    %1095 = vector.multi_reduction <add>, %1094, %cst_332 [1] : vector<2x16xf32> to vector<2xf32>
    %1096 = vector.shape_cast %1095 : vector<2xf32> to vector<2x1xf32>
    %cst_333 = arith.constant dense<0.000000e+00> : vector<1xf32>
    %1097 = vector.multi_reduction <add>, %1096, %cst_333 [0] : vector<2x1xf32> to vector<1xf32>
    %1098 = vector.shape_cast %1097 : vector<1xf32> to vector<1x1xf32>
    %cst_334 = arith.constant 3.125000e-02 : f32
    %1099 = vector.broadcast %cst_334 : f32 to vector<1x1xf32>
    %1100 = arith.mulf %1098, %1099 : vector<1x1xf32>
    %c3_335 = arith.constant 3 : index
    %c0_336 = arith.constant 0 : index
    %c0_337 = arith.constant 0 : index
    %1101 = vector.load %arg7[%c3_335, %c0_336, %c0_337] : memref<16x1x1xf32, #tpu.memory_space<vmem>>, vector<1x1x1xf32>
    %1102 = vector.shape_cast %1101 : vector<1x1x1xf32> to vector<1x1xf32>
    %cst_338 = arith.constant 9.99999974E-6 : f32
    %1103 = vector.broadcast %cst_338 : f32 to vector<1x1xf32>
    %1104 = arith.addf %1100, %1103 : vector<1x1xf32>
    %1105 = math.rsqrt %1104 : vector<1x1xf32>
    %1106 = arith.mulf %1102, %1105 : vector<1x1xf32>
    %1107 = vector.broadcast %1106 : vector<1x1xf32> to vector<2x16xf32>
    %1108 = arith.mulf %1093, %1107 : vector<2x16xf32>
    %c3_339 = arith.constant 3 : index
    %c0_340 = arith.constant 0 : index
    %c0_341 = arith.constant 0 : index
    %1109 = vector.load %arg8[%c3_339, %c0_340, %c0_341] : memref<16x1x1xf32, #tpu.memory_space<vmem>>, vector<1x1x1xf32>
    %1110 = vector.shape_cast %1109 : vector<1x1x1xf32> to vector<1x1xf32>
    %1111 = vector.broadcast %1110 : vector<1x1xf32> to vector<2x16xf32>
    %1112 = arith.addf %1108, %1111 : vector<2x16xf32>
    %1113 = arith.truncf %1112 : vector<2x16xf32> to vector<2x16xbf16>
    %cst_342 = arith.constant dense<0.000000e+00> : vector<2x16xf32>
    %1114 = tpu.matmul %1113, %954, %cst_342 {dimension_numbers = #tpu.dot_dimension_numbers<[1], [0], [0], [1], [0, 0, 1, 1], [], []>} : vector<2x16xbf16>, vector<16x16xbf16>, vector<2x16xf32> -> vector<2x16xf32>
    %1115 = vector.broadcast %955 : vector<1x16xf32> to vector<2x16xf32>
    %1116 = arith.addf %1114, %1115 : vector<2x16xf32>
    %cst_343 = arith.constant 0.000000e+00 : f32
    %1117 = vector.broadcast %cst_343 : f32 to vector<2x16xf32>
    %1118 = arith.maximumf %1116, %1117 : vector<2x16xf32>
    %1119 = arith.truncf %1118 : vector<2x16xf32> to vector<2x16xbf16>
    %cst_344 = arith.constant dense<0.000000e+00> : vector<2x128xf32>
    %1120 = tpu.matmul %1119, %956, %cst_344 {dimension_numbers = #tpu.dot_dimension_numbers<[1], [0], [0], [1], [0, 0, 1, 1], [], []>} : vector<2x16xbf16>, vector<16x128xbf16>, vector<2x128xf32> -> vector<2x128xf32>
    %1121 = vector.broadcast %957 : vector<1x128xf32> to vector<2x128xf32>
    %1122 = arith.addf %1120, %1121 : vector<2x128xf32>
    %c3_345 = arith.constant 3 : index
    %c0_346 = arith.constant 0 : index
    %c0_347 = arith.constant 0 : index
    %1123 = vector.load %arg13[%c3_345, %c0_346, %c0_347] : memref<16x2x128xf32, #tpu.memory_space<vmem>>, vector<1x2x128xf32>
    %1124 = vector.shape_cast %1123 : vector<1x2x128xf32> to vector<2x128xf32>
    %1125 = vector.shape_cast %1122 : vector<2x128xf32> to vector<1x2x128xf32>
    tpu.vector_store %arg13[%c3_345, %c0_346, %c0_347], %1125 {strides = array<i32>} : memref<16x2x128xf32, #tpu.memory_space<vmem>>, vector<1x2x128xf32>,
    %c4 = arith.constant 4 : index
    %c0_348 = arith.constant 0 : index
    %c0_349 = arith.constant 0 : index
    %1126 = vector.load %arg14[%c4, %c0_348, %c0_349] : memref<16x2x16xf32, #tpu.memory_space<vmem>>, vector<1x2x16xf32>
    %1127 = vector.shape_cast %1126 : vector<1x2x16xf32> to vector<2x16xf32>
    %cst_350 = arith.constant dense<0.000000e+00> : vector<2xf32>
    %1128 = vector.multi_reduction <add>, %1127, %cst_350 [1] : vector<2x16xf32> to vector<2xf32>
    %1129 = vector.shape_cast %1128 : vector<2xf32> to vector<2x1xf32>
    %cst_351 = arith.constant dense<0.000000e+00> : vector<1xf32>
    %1130 = vector.multi_reduction <add>, %1129, %cst_351 [0] : vector<2x1xf32> to vector<1xf32>
    %1131 = vector.shape_cast %1130 : vector<1xf32> to vector<1x1xf32>
    %cst_352 = arith.constant 3.125000e-02 : f32
    %1132 = vector.broadcast %cst_352 : f32 to vector<1x1xf32>
    %1133 = arith.mulf %1131, %1132 : vector<1x1xf32>
    %1134 = vector.broadcast %1133 : vector<1x1xf32> to vector<2x16xf32>
    %1135 = arith.subf %1127, %1134 : vector<2x16xf32>
    %1136 = arith.mulf %1135, %1135 : vector<2x16xf32>
    %cst_353 = arith.constant dense<0.000000e+00> : vector<2xf32>
    %1137 = vector.multi_reduction <add>, %1136, %cst_353 [1] : vector<2x16xf32> to vector<2xf32>
    %1138 = vector.shape_cast %1137 : vector<2xf32> to vector<2x1xf32>
    %cst_354 = arith.constant dense<0.000000e+00> : vector<1xf32>
    %1139 = vector.multi_reduction <add>, %1138, %cst_354 [0] : vector<2x1xf32> to vector<1xf32>
    %1140 = vector.shape_cast %1139 : vector<1xf32> to vector<1x1xf32>
    %cst_355 = arith.constant 3.125000e-02 : f32
    %1141 = vector.broadcast %cst_355 : f32 to vector<1x1xf32>
    %1142 = arith.mulf %1140, %1141 : vector<1x1xf32>
    %c4_356 = arith.constant 4 : index
    %c0_357 = arith.constant 0 : index
    %c0_358 = arith.constant 0 : index
    %1143 = vector.load %arg7[%c4_356, %c0_357, %c0_358] : memref<16x1x1xf32, #tpu.memory_space<vmem>>, vector<1x1x1xf32>
    %1144 = vector.shape_cast %1143 : vector<1x1x1xf32> to vector<1x1xf32>
    %cst_359 = arith.constant 9.99999974E-6 : f32
    %1145 = vector.broadcast %cst_359 : f32 to vector<1x1xf32>
    %1146 = arith.addf %1142, %1145 : vector<1x1xf32>
    %1147 = math.rsqrt %1146 : vector<1x1xf32>
    %1148 = arith.mulf %1144, %1147 : vector<1x1xf32>
    %1149 = vector.broadcast %1148 : vector<1x1xf32> to vector<2x16xf32>
    %1150 = arith.mulf %1135, %1149 : vector<2x16xf32>
    %c4_360 = arith.constant 4 : index
    %c0_361 = arith.constant 0 : index
    %c0_362 = arith.constant 0 : index
    %1151 = vector.load %arg8[%c4_360, %c0_361, %c0_362] : memref<16x1x1xf32, #tpu.memory_space<vmem>>, vector<1x1x1xf32>
    %1152 = vector.shape_cast %1151 : vector<1x1x1xf32> to vector<1x1xf32>
    %1153 = vector.broadcast %1152 : vector<1x1xf32> to vector<2x16xf32>
    %1154 = arith.addf %1150, %1153 : vector<2x16xf32>
    %1155 = arith.truncf %1154 : vector<2x16xf32> to vector<2x16xbf16>
    %cst_363 = arith.constant dense<0.000000e+00> : vector<2x16xf32>
    %1156 = tpu.matmul %1155, %954, %cst_363 {dimension_numbers = #tpu.dot_dimension_numbers<[1], [0], [0], [1], [0, 0, 1, 1], [], []>} : vector<2x16xbf16>, vector<16x16xbf16>, vector<2x16xf32> -> vector<2x16xf32>
    %1157 = vector.broadcast %955 : vector<1x16xf32> to vector<2x16xf32>
    %1158 = arith.addf %1156, %1157 : vector<2x16xf32>
    %cst_364 = arith.constant 0.000000e+00 : f32
    %1159 = vector.broadcast %cst_364 : f32 to vector<2x16xf32>
    %1160 = arith.maximumf %1158, %1159 : vector<2x16xf32>
    %1161 = arith.truncf %1160 : vector<2x16xf32> to vector<2x16xbf16>
    %cst_365 = arith.constant dense<0.000000e+00> : vector<2x128xf32>
    %1162 = tpu.matmul %1161, %956, %cst_365 {dimension_numbers = #tpu.dot_dimension_numbers<[1], [0], [0], [1], [0, 0, 1, 1], [], []>} : vector<2x16xbf16>, vector<16x128xbf16>, vector<2x128xf32> -> vector<2x128xf32>
    %1163 = vector.broadcast %957 : vector<1x128xf32> to vector<2x128xf32>
    %1164 = arith.addf %1162, %1163 : vector<2x128xf32>
    %c4_366 = arith.constant 4 : index
    %c0_367 = arith.constant 0 : index
    %c0_368 = arith.constant 0 : index
    %1165 = vector.load %arg13[%c4_366, %c0_367, %c0_368] : memref<16x2x128xf32, #tpu.memory_space<vmem>>, vector<1x2x128xf32>
    %1166 = vector.shape_cast %1165 : vector<1x2x128xf32> to vector<2x128xf32>
    %1167 = vector.shape_cast %1164 : vector<2x128xf32> to vector<1x2x128xf32>
    tpu.vector_store %arg13[%c4_366, %c0_367, %c0_368], %1167 {strides = array<i32>} : memref<16x2x128xf32, #tpu.memory_space<vmem>>, vector<1x2x128xf32>,
    %c5 = arith.constant 5 : index
    %c0_369 = arith.constant 0 : index
    %c0_370 = arith.constant 0 : index
    %1168 = vector.load %arg14[%c5, %c0_369, %c0_370] : memref<16x2x16xf32, #tpu.memory_space<vmem>>, vector<1x2x16xf32>
    %1169 = vector.shape_cast %1168 : vector<1x2x16xf32> to vector<2x16xf32>
    %cst_371 = arith.constant dense<0.000000e+00> : vector<2xf32>
    %1170 = vector.multi_reduction <add>, %1169, %cst_371 [1] : vector<2x16xf32> to vector<2xf32>
    %1171 = vector.shape_cast %1170 : vector<2xf32> to vector<2x1xf32>
    %cst_372 = arith.constant dense<0.000000e+00> : vector<1xf32>
    %1172 = vector.multi_reduction <add>, %1171, %cst_372 [0] : vector<2x1xf32> to vector<1xf32>
    %1173 = vector.shape_cast %1172 : vector<1xf32> to vector<1x1xf32>
    %cst_373 = arith.constant 3.125000e-02 : f32
    %1174 = vector.broadcast %cst_373 : f32 to vector<1x1xf32>
    %1175 = arith.mulf %1173, %1174 : vector<1x1xf32>
    %1176 = vector.broadcast %1175 : vector<1x1xf32> to vector<2x16xf32>
    %1177 = arith.subf %1169, %1176 : vector<2x16xf32>
    %1178 = arith.mulf %1177, %1177 : vector<2x16xf32>
    %cst_374 = arith.constant dense<0.000000e+00> : vector<2xf32>
    %1179 = vector.multi_reduction <add>, %1178, %cst_374 [1] : vector<2x16xf32> to vector<2xf32>
    %1180 = vector.shape_cast %1179 : vector<2xf32> to vector<2x1xf32>
    %cst_375 = arith.constant dense<0.000000e+00> : vector<1xf32>
    %1181 = vector.multi_reduction <add>, %1180, %cst_375 [0] : vector<2x1xf32> to vector<1xf32>
    %1182 = vector.shape_cast %1181 : vector<1xf32> to vector<1x1xf32>
    %cst_376 = arith.constant 3.125000e-02 : f32
    %1183 = vector.broadcast %cst_376 : f32 to vector<1x1xf32>
    %1184 = arith.mulf %1182, %1183 : vector<1x1xf32>
    %c5_377 = arith.constant 5 : index
    %c0_378 = arith.constant 0 : index
    %c0_379 = arith.constant 0 : index
    %1185 = vector.load %arg7[%c5_377, %c0_378, %c0_379] : memref<16x1x1xf32, #tpu.memory_space<vmem>>, vector<1x1x1xf32>
    %1186 = vector.shape_cast %1185 : vector<1x1x1xf32> to vector<1x1xf32>
    %cst_380 = arith.constant 9.99999974E-6 : f32
    %1187 = vector.broadcast %cst_380 : f32 to vector<1x1xf32>
    %1188 = arith.addf %1184, %1187 : vector<1x1xf32>
    %1189 = math.rsqrt %1188 : vector<1x1xf32>
    %1190 = arith.mulf %1186, %1189 : vector<1x1xf32>
    %1191 = vector.broadcast %1190 : vector<1x1xf32> to vector<2x16xf32>
    %1192 = arith.mulf %1177, %1191 : vector<2x16xf32>
    %c5_381 = arith.constant 5 : index
    %c0_382 = arith.constant 0 : index
    %c0_383 = arith.constant 0 : index
    %1193 = vector.load %arg8[%c5_381, %c0_382, %c0_383] : memref<16x1x1xf32, #tpu.memory_space<vmem>>, vector<1x1x1xf32>
    %1194 = vector.shape_cast %1193 : vector<1x1x1xf32> to vector<1x1xf32>
    %1195 = vector.broadcast %1194 : vector<1x1xf32> to vector<2x16xf32>
    %1196 = arith.addf %1192, %1195 : vector<2x16xf32>
    %1197 = arith.truncf %1196 : vector<2x16xf32> to vector<2x16xbf16>
    %cst_384 = arith.constant dense<0.000000e+00> : vector<2x16xf32>
    %1198 = tpu.matmul %1197, %954, %cst_384 {dimension_numbers = #tpu.dot_dimension_numbers<[1], [0], [0], [1], [0, 0, 1, 1], [], []>} : vector<2x16xbf16>, vector<16x16xbf16>, vector<2x16xf32> -> vector<2x16xf32>
    %1199 = vector.broadcast %955 : vector<1x16xf32> to vector<2x16xf32>
    %1200 = arith.addf %1198, %1199 : vector<2x16xf32>
    %cst_385 = arith.constant 0.000000e+00 : f32
    %1201 = vector.broadcast %cst_385 : f32 to vector<2x16xf32>
    %1202 = arith.maximumf %1200, %1201 : vector<2x16xf32>
    %1203 = arith.truncf %1202 : vector<2x16xf32> to vector<2x16xbf16>
    %cst_386 = arith.constant dense<0.000000e+00> : vector<2x128xf32>
    %1204 = tpu.matmul %1203, %956, %cst_386 {dimension_numbers = #tpu.dot_dimension_numbers<[1], [0], [0], [1], [0, 0, 1, 1], [], []>} : vector<2x16xbf16>, vector<16x128xbf16>, vector<2x128xf32> -> vector<2x128xf32>
    %1205 = vector.broadcast %957 : vector<1x128xf32> to vector<2x128xf32>
    %1206 = arith.addf %1204, %1205 : vector<2x128xf32>
    %c5_387 = arith.constant 5 : index
    %c0_388 = arith.constant 0 : index
    %c0_389 = arith.constant 0 : index
    %1207 = vector.load %arg13[%c5_387, %c0_388, %c0_389] : memref<16x2x128xf32, #tpu.memory_space<vmem>>, vector<1x2x128xf32>
    %1208 = vector.shape_cast %1207 : vector<1x2x128xf32> to vector<2x128xf32>
    %1209 = vector.shape_cast %1206 : vector<2x128xf32> to vector<1x2x128xf32>
    tpu.vector_store %arg13[%c5_387, %c0_388, %c0_389], %1209 {strides = array<i32>} : memref<16x2x128xf32, #tpu.memory_space<vmem>>, vector<1x2x128xf32>,
    %c6 = arith.constant 6 : index
    %c0_390 = arith.constant 0 : index
    %c0_391 = arith.constant 0 : index
    %1210 = vector.load %arg14[%c6, %c0_390, %c0_391] : memref<16x2x16xf32, #tpu.memory_space<vmem>>, vector<1x2x16xf32>
    %1211 = vector.shape_cast %1210 : vector<1x2x16xf32> to vector<2x16xf32>
    %cst_392 = arith.constant dense<0.000000e+00> : vector<2xf32>
    %1212 = vector.multi_reduction <add>, %1211, %cst_392 [1] : vector<2x16xf32> to vector<2xf32>
    %1213 = vector.shape_cast %1212 : vector<2xf32> to vector<2x1xf32>
    %cst_393 = arith.constant dense<0.000000e+00> : vector<1xf32>
    %1214 = vector.multi_reduction <add>, %1213, %cst_393 [0] : vector<2x1xf32> to vector<1xf32>
    %1215 = vector.shape_cast %1214 : vector<1xf32> to vector<1x1xf32>
    %cst_394 = arith.constant 3.125000e-02 : f32
    %1216 = vector.broadcast %cst_394 : f32 to vector<1x1xf32>
    %1217 = arith.mulf %1215, %1216 : vector<1x1xf32>
    %1218 = vector.broadcast %1217 : vector<1x1xf32> to vector<2x16xf32>
    %1219 = arith.subf %1211, %1218 : vector<2x16xf32>
    %1220 = arith.mulf %1219, %1219 : vector<2x16xf32>
    %cst_395 = arith.constant dense<0.000000e+00> : vector<2xf32>
    %1221 = vector.multi_reduction <add>, %1220, %cst_395 [1] : vector<2x16xf32> to vector<2xf32>
    %1222 = vector.shape_cast %1221 : vector<2xf32> to vector<2x1xf32>
    %cst_396 = arith.constant dense<0.000000e+00> : vector<1xf32>
    %1223 = vector.multi_reduction <add>, %1222, %cst_396 [0] : vector<2x1xf32> to vector<1xf32>
    %1224 = vector.shape_cast %1223 : vector<1xf32> to vector<1x1xf32>
    %cst_397 = arith.constant 3.125000e-02 : f32
    %1225 = vector.broadcast %cst_397 : f32 to vector<1x1xf32>
    %1226 = arith.mulf %1224, %1225 : vector<1x1xf32>
    %c6_398 = arith.constant 6 : index
    %c0_399 = arith.constant 0 : index
    %c0_400 = arith.constant 0 : index
    %1227 = vector.load %arg7[%c6_398, %c0_399, %c0_400] : memref<16x1x1xf32, #tpu.memory_space<vmem>>, vector<1x1x1xf32>
    %1228 = vector.shape_cast %1227 : vector<1x1x1xf32> to vector<1x1xf32>
    %cst_401 = arith.constant 9.99999974E-6 : f32
    %1229 = vector.broadcast %cst_401 : f32 to vector<1x1xf32>
    %1230 = arith.addf %1226, %1229 : vector<1x1xf32>
    %1231 = math.rsqrt %1230 : vector<1x1xf32>
    %1232 = arith.mulf %1228, %1231 : vector<1x1xf32>
    %1233 = vector.broadcast %1232 : vector<1x1xf32> to vector<2x16xf32>
    %1234 = arith.mulf %1219, %1233 : vector<2x16xf32>
    %c6_402 = arith.constant 6 : index
    %c0_403 = arith.constant 0 : index
    %c0_404 = arith.constant 0 : index
    %1235 = vector.load %arg8[%c6_402, %c0_403, %c0_404] : memref<16x1x1xf32, #tpu.memory_space<vmem>>, vector<1x1x1xf32>
    %1236 = vector.shape_cast %1235 : vector<1x1x1xf32> to vector<1x1xf32>
    %1237 = vector.broadcast %1236 : vector<1x1xf32> to vector<2x16xf32>
    %1238 = arith.addf %1234, %1237 : vector<2x16xf32>
    %1239 = arith.truncf %1238 : vector<2x16xf32> to vector<2x16xbf16>
    %cst_405 = arith.constant dense<0.000000e+00> : vector<2x16xf32>
    %1240 = tpu.matmul %1239, %954, %cst_405 {dimension_numbers = #tpu.dot_dimension_numbers<[1], [0], [0], [1], [0, 0, 1, 1], [], []>} : vector<2x16xbf16>, vector<16x16xbf16>, vector<2x16xf32> -> vector<2x16xf32>
    %1241 = vector.broadcast %955 : vector<1x16xf32> to vector<2x16xf32>
    %1242 = arith.addf %1240, %1241 : vector<2x16xf32>
    %cst_406 = arith.constant 0.000000e+00 : f32
    %1243 = vector.broadcast %cst_406 : f32 to vector<2x16xf32>
    %1244 = arith.maximumf %1242, %1243 : vector<2x16xf32>
    %1245 = arith.truncf %1244 : vector<2x16xf32> to vector<2x16xbf16>
    %cst_407 = arith.constant dense<0.000000e+00> : vector<2x128xf32>
    %1246 = tpu.matmul %1245, %956, %cst_407 {dimension_numbers = #tpu.dot_dimension_numbers<[1], [0], [0], [1], [0, 0, 1, 1], [], []>} : vector<2x16xbf16>, vector<16x128xbf16>, vector<2x128xf32> -> vector<2x128xf32>
    %1247 = vector.broadcast %957 : vector<1x128xf32> to vector<2x128xf32>
    %1248 = arith.addf %1246, %1247 : vector<2x128xf32>
    %c6_408 = arith.constant 6 : index
    %c0_409 = arith.constant 0 : index
    %c0_410 = arith.constant 0 : index
    %1249 = vector.load %arg13[%c6_408, %c0_409, %c0_410] : memref<16x2x128xf32, #tpu.memory_space<vmem>>, vector<1x2x128xf32>
    %1250 = vector.shape_cast %1249 : vector<1x2x128xf32> to vector<2x128xf32>
    %1251 = vector.shape_cast %1248 : vector<2x128xf32> to vector<1x2x128xf32>
    tpu.vector_store %arg13[%c6_408, %c0_409, %c0_410], %1251 {strides = array<i32>} : memref<16x2x128xf32, #tpu.memory_space<vmem>>, vector<1x2x128xf32>,
    %c7 = arith.constant 7 : index
    %c0_411 = arith.constant 0 : index
    %c0_412 = arith.constant 0 : index
    %1252 = vector.load %arg14[%c7, %c0_411, %c0_412] : memref<16x2x16xf32, #tpu.memory_space<vmem>>, vector<1x2x16xf32>
    %1253 = vector.shape_cast %1252 : vector<1x2x16xf32> to vector<2x16xf32>
    %cst_413 = arith.constant dense<0.000000e+00> : vector<2xf32>
    %1254 = vector.multi_reduction <add>, %1253, %cst_413 [1] : vector<2x16xf32> to vector<2xf32>
    %1255 = vector.shape_cast %1254 : vector<2xf32> to vector<2x1xf32>
    %cst_414 = arith.constant dense<0.000000e+00> : vector<1xf32>
    %1256 = vector.multi_reduction <add>, %1255, %cst_414 [0] : vector<2x1xf32> to vector<1xf32>
    %1257 = vector.shape_cast %1256 : vector<1xf32> to vector<1x1xf32>
    %cst_415 = arith.constant 3.125000e-02 : f32
    %1258 = vector.broadcast %cst_415 : f32 to vector<1x1xf32>
    %1259 = arith.mulf %1257, %1258 : vector<1x1xf32>
    %1260 = vector.broadcast %1259 : vector<1x1xf32> to vector<2x16xf32>
    %1261 = arith.subf %1253, %1260 : vector<2x16xf32>
    %1262 = arith.mulf %1261, %1261 : vector<2x16xf32>
    %cst_416 = arith.constant dense<0.000000e+00> : vector<2xf32>
    %1263 = vector.multi_reduction <add>, %1262, %cst_416 [1] : vector<2x16xf32> to vector<2xf32>
    %1264 = vector.shape_cast %1263 : vector<2xf32> to vector<2x1xf32>
    %cst_417 = arith.constant dense<0.000000e+00> : vector<1xf32>
    %1265 = vector.multi_reduction <add>, %1264, %cst_417 [0] : vector<2x1xf32> to vector<1xf32>
    %1266 = vector.shape_cast %1265 : vector<1xf32> to vector<1x1xf32>
    %cst_418 = arith.constant 3.125000e-02 : f32
    %1267 = vector.broadcast %cst_418 : f32 to vector<1x1xf32>
    %1268 = arith.mulf %1266, %1267 : vector<1x1xf32>
    %c7_419 = arith.constant 7 : index
    %c0_420 = arith.constant 0 : index
    %c0_421 = arith.constant 0 : index
    %1269 = vector.load %arg7[%c7_419, %c0_420, %c0_421] : memref<16x1x1xf32, #tpu.memory_space<vmem>>, vector<1x1x1xf32>
    %1270 = vector.shape_cast %1269 : vector<1x1x1xf32> to vector<1x1xf32>
    %cst_422 = arith.constant 9.99999974E-6 : f32
    %1271 = vector.broadcast %cst_422 : f32 to vector<1x1xf32>
    %1272 = arith.addf %1268, %1271 : vector<1x1xf32>
    %1273 = math.rsqrt %1272 : vector<1x1xf32>
    %1274 = arith.mulf %1270, %1273 : vector<1x1xf32>
    %1275 = vector.broadcast %1274 : vector<1x1xf32> to vector<2x16xf32>
    %1276 = arith.mulf %1261, %1275 : vector<2x16xf32>
    %c7_423 = arith.constant 7 : index
    %c0_424 = arith.constant 0 : index
    %c0_425 = arith.constant 0 : index
    %1277 = vector.load %arg8[%c7_423, %c0_424, %c0_425] : memref<16x1x1xf32, #tpu.memory_space<vmem>>, vector<1x1x1xf32>
    %1278 = vector.shape_cast %1277 : vector<1x1x1xf32> to vector<1x1xf32>
    %1279 = vector.broadcast %1278 : vector<1x1xf32> to vector<2x16xf32>
    %1280 = arith.addf %1276, %1279 : vector<2x16xf32>
    %1281 = arith.truncf %1280 : vector<2x16xf32> to vector<2x16xbf16>
    %cst_426 = arith.constant dense<0.000000e+00> : vector<2x16xf32>
    %1282 = tpu.matmul %1281, %954, %cst_426 {dimension_numbers = #tpu.dot_dimension_numbers<[1], [0], [0], [1], [0, 0, 1, 1], [], []>} : vector<2x16xbf16>, vector<16x16xbf16>, vector<2x16xf32> -> vector<2x16xf32>
    %1283 = vector.broadcast %955 : vector<1x16xf32> to vector<2x16xf32>
    %1284 = arith.addf %1282, %1283 : vector<2x16xf32>
    %cst_427 = arith.constant 0.000000e+00 : f32
    %1285 = vector.broadcast %cst_427 : f32 to vector<2x16xf32>
    %1286 = arith.maximumf %1284, %1285 : vector<2x16xf32>
    %1287 = arith.truncf %1286 : vector<2x16xf32> to vector<2x16xbf16>
    %cst_428 = arith.constant dense<0.000000e+00> : vector<2x128xf32>
    %1288 = tpu.matmul %1287, %956, %cst_428 {dimension_numbers = #tpu.dot_dimension_numbers<[1], [0], [0], [1], [0, 0, 1, 1], [], []>} : vector<2x16xbf16>, vector<16x128xbf16>, vector<2x128xf32> -> vector<2x128xf32>
    %1289 = vector.broadcast %957 : vector<1x128xf32> to vector<2x128xf32>
    %1290 = arith.addf %1288, %1289 : vector<2x128xf32>
    %c7_429 = arith.constant 7 : index
    %c0_430 = arith.constant 0 : index
    %c0_431 = arith.constant 0 : index
    %1291 = vector.load %arg13[%c7_429, %c0_430, %c0_431] : memref<16x2x128xf32, #tpu.memory_space<vmem>>, vector<1x2x128xf32>
    %1292 = vector.shape_cast %1291 : vector<1x2x128xf32> to vector<2x128xf32>
    %1293 = vector.shape_cast %1290 : vector<2x128xf32> to vector<1x2x128xf32>
    tpu.vector_store %arg13[%c7_429, %c0_430, %c0_431], %1293 {strides = array<i32>} : memref<16x2x128xf32, #tpu.memory_space<vmem>>, vector<1x2x128xf32>,
    %c8 = arith.constant 8 : index
    %c0_432 = arith.constant 0 : index
    %c0_433 = arith.constant 0 : index
    %1294 = vector.load %arg14[%c8, %c0_432, %c0_433] : memref<16x2x16xf32, #tpu.memory_space<vmem>>, vector<1x2x16xf32>
    %1295 = vector.shape_cast %1294 : vector<1x2x16xf32> to vector<2x16xf32>
    %cst_434 = arith.constant dense<0.000000e+00> : vector<2xf32>
    %1296 = vector.multi_reduction <add>, %1295, %cst_434 [1] : vector<2x16xf32> to vector<2xf32>
    %1297 = vector.shape_cast %1296 : vector<2xf32> to vector<2x1xf32>
    %cst_435 = arith.constant dense<0.000000e+00> : vector<1xf32>
    %1298 = vector.multi_reduction <add>, %1297, %cst_435 [0] : vector<2x1xf32> to vector<1xf32>
    %1299 = vector.shape_cast %1298 : vector<1xf32> to vector<1x1xf32>
    %cst_436 = arith.constant 3.125000e-02 : f32
    %1300 = vector.broadcast %cst_436 : f32 to vector<1x1xf32>
    %1301 = arith.mulf %1299, %1300 : vector<1x1xf32>
    %1302 = vector.broadcast %1301 : vector<1x1xf32> to vector<2x16xf32>
    %1303 = arith.subf %1295, %1302 : vector<2x16xf32>
    %1304 = arith.mulf %1303, %1303 : vector<2x16xf32>
    %cst_437 = arith.constant dense<0.000000e+00> : vector<2xf32>
    %1305 = vector.multi_reduction <add>, %1304, %cst_437 [1] : vector<2x16xf32> to vector<2xf32>
    %1306 = vector.shape_cast %1305 : vector<2xf32> to vector<2x1xf32>
    %cst_438 = arith.constant dense<0.000000e+00> : vector<1xf32>
    %1307 = vector.multi_reduction <add>, %1306, %cst_438 [0] : vector<2x1xf32> to vector<1xf32>
    %1308 = vector.shape_cast %1307 : vector<1xf32> to vector<1x1xf32>
    %cst_439 = arith.constant 3.125000e-02 : f32
    %1309 = vector.broadcast %cst_439 : f32 to vector<1x1xf32>
    %1310 = arith.mulf %1308, %1309 : vector<1x1xf32>
    %c8_440 = arith.constant 8 : index
    %c0_441 = arith.constant 0 : index
    %c0_442 = arith.constant 0 : index
    %1311 = vector.load %arg7[%c8_440, %c0_441, %c0_442] : memref<16x1x1xf32, #tpu.memory_space<vmem>>, vector<1x1x1xf32>
    %1312 = vector.shape_cast %1311 : vector<1x1x1xf32> to vector<1x1xf32>
    %cst_443 = arith.constant 9.99999974E-6 : f32
    %1313 = vector.broadcast %cst_443 : f32 to vector<1x1xf32>
    %1314 = arith.addf %1310, %1313 : vector<1x1xf32>
    %1315 = math.rsqrt %1314 : vector<1x1xf32>
    %1316 = arith.mulf %1312, %1315 : vector<1x1xf32>
    %1317 = vector.broadcast %1316 : vector<1x1xf32> to vector<2x16xf32>
    %1318 = arith.mulf %1303, %1317 : vector<2x16xf32>
    %c8_444 = arith.constant 8 : index
    %c0_445 = arith.constant 0 : index
    %c0_446 = arith.constant 0 : index
    %1319 = vector.load %arg8[%c8_444, %c0_445, %c0_446] : memref<16x1x1xf32, #tpu.memory_space<vmem>>, vector<1x1x1xf32>
    %1320 = vector.shape_cast %1319 : vector<1x1x1xf32> to vector<1x1xf32>
    %1321 = vector.broadcast %1320 : vector<1x1xf32> to vector<2x16xf32>
    %1322 = arith.addf %1318, %1321 : vector<2x16xf32>
    %1323 = arith.truncf %1322 : vector<2x16xf32> to vector<2x16xbf16>
    %cst_447 = arith.constant dense<0.000000e+00> : vector<2x16xf32>
    %1324 = tpu.matmul %1323, %954, %cst_447 {dimension_numbers = #tpu.dot_dimension_numbers<[1], [0], [0], [1], [0, 0, 1, 1], [], []>} : vector<2x16xbf16>, vector<16x16xbf16>, vector<2x16xf32> -> vector<2x16xf32>
    %1325 = vector.broadcast %955 : vector<1x16xf32> to vector<2x16xf32>
    %1326 = arith.addf %1324, %1325 : vector<2x16xf32>
    %cst_448 = arith.constant 0.000000e+00 : f32
    %1327 = vector.broadcast %cst_448 : f32 to vector<2x16xf32>
    %1328 = arith.maximumf %1326, %1327 : vector<2x16xf32>
    %1329 = arith.truncf %1328 : vector<2x16xf32> to vector<2x16xbf16>
    %cst_449 = arith.constant dense<0.000000e+00> : vector<2x128xf32>
    %1330 = tpu.matmul %1329, %956, %cst_449 {dimension_numbers = #tpu.dot_dimension_numbers<[1], [0], [0], [1], [0, 0, 1, 1], [], []>} : vector<2x16xbf16>, vector<16x128xbf16>, vector<2x128xf32> -> vector<2x128xf32>
    %1331 = vector.broadcast %957 : vector<1x128xf32> to vector<2x128xf32>
    %1332 = arith.addf %1330, %1331 : vector<2x128xf32>
    %c8_450 = arith.constant 8 : index
    %c0_451 = arith.constant 0 : index
    %c0_452 = arith.constant 0 : index
    %1333 = vector.load %arg13[%c8_450, %c0_451, %c0_452] : memref<16x2x128xf32, #tpu.memory_space<vmem>>, vector<1x2x128xf32>
    %1334 = vector.shape_cast %1333 : vector<1x2x128xf32> to vector<2x128xf32>
    %1335 = vector.shape_cast %1332 : vector<2x128xf32> to vector<1x2x128xf32>
    tpu.vector_store %arg13[%c8_450, %c0_451, %c0_452], %1335 {strides = array<i32>} : memref<16x2x128xf32, #tpu.memory_space<vmem>>, vector<1x2x128xf32>,
    %c9 = arith.constant 9 : index
    %c0_453 = arith.constant 0 : index
    %c0_454 = arith.constant 0 : index
    %1336 = vector.load %arg14[%c9, %c0_453, %c0_454] : memref<16x2x16xf32, #tpu.memory_space<vmem>>, vector<1x2x16xf32>
    %1337 = vector.shape_cast %1336 : vector<1x2x16xf32> to vector<2x16xf32>
    %cst_455 = arith.constant dense<0.000000e+00> : vector<2xf32>
    %1338 = vector.multi_reduction <add>, %1337, %cst_455 [1] : vector<2x16xf32> to vector<2xf32>
    %1339 = vector.shape_cast %1338 : vector<2xf32> to vector<2x1xf32>
    %cst_456 = arith.constant dense<0.000000e+00> : vector<1xf32>
    %1340 = vector.multi_reduction <add>, %1339, %cst_456 [0] : vector<2x1xf32> to vector<1xf32>
    %1341 = vector.shape_cast %1340 : vector<1xf32> to vector<1x1xf32>
    %cst_457 = arith.constant 3.125000e-02 : f32
    %1342 = vector.broadcast %cst_457 : f32 to vector<1x1xf32>
    %1343 = arith.mulf %1341, %1342 : vector<1x1xf32>
    %1344 = vector.broadcast %1343 : vector<1x1xf32> to vector<2x16xf32>
    %1345 = arith.subf %1337, %1344 : vector<2x16xf32>
    %1346 = arith.mulf %1345, %1345 : vector<2x16xf32>
    %cst_458 = arith.constant dense<0.000000e+00> : vector<2xf32>
    %1347 = vector.multi_reduction <add>, %1346, %cst_458 [1] : vector<2x16xf32> to vector<2xf32>
    %1348 = vector.shape_cast %1347 : vector<2xf32> to vector<2x1xf32>
    %cst_459 = arith.constant dense<0.000000e+00> : vector<1xf32>
    %1349 = vector.multi_reduction <add>, %1348, %cst_459 [0] : vector<2x1xf32> to vector<1xf32>
    %1350 = vector.shape_cast %1349 : vector<1xf32> to vector<1x1xf32>
    %cst_460 = arith.constant 3.125000e-02 : f32
    %1351 = vector.broadcast %cst_460 : f32 to vector<1x1xf32>
    %1352 = arith.mulf %1350, %1351 : vector<1x1xf32>
    %c9_461 = arith.constant 9 : index
    %c0_462 = arith.constant 0 : index
    %c0_463 = arith.constant 0 : index
    %1353 = vector.load %arg7[%c9_461, %c0_462, %c0_463] : memref<16x1x1xf32, #tpu.memory_space<vmem>>, vector<1x1x1xf32>
    %1354 = vector.shape_cast %1353 : vector<1x1x1xf32> to vector<1x1xf32>
    %cst_464 = arith.constant 9.99999974E-6 : f32
    %1355 = vector.broadcast %cst_464 : f32 to vector<1x1xf32>
    %1356 = arith.addf %1352, %1355 : vector<1x1xf32>
    %1357 = math.rsqrt %1356 : vector<1x1xf32>
    %1358 = arith.mulf %1354, %1357 : vector<1x1xf32>
    %1359 = vector.broadcast %1358 : vector<1x1xf32> to vector<2x16xf32>
    %1360 = arith.mulf %1345, %1359 : vector<2x16xf32>
    %c9_465 = arith.constant 9 : index
    %c0_466 = arith.constant 0 : index
    %c0_467 = arith.constant 0 : index
    %1361 = vector.load %arg8[%c9_465, %c0_466, %c0_467] : memref<16x1x1xf32, #tpu.memory_space<vmem>>, vector<1x1x1xf32>
    %1362 = vector.shape_cast %1361 : vector<1x1x1xf32> to vector<1x1xf32>
    %1363 = vector.broadcast %1362 : vector<1x1xf32> to vector<2x16xf32>
    %1364 = arith.addf %1360, %1363 : vector<2x16xf32>
    %1365 = arith.truncf %1364 : vector<2x16xf32> to vector<2x16xbf16>
    %cst_468 = arith.constant dense<0.000000e+00> : vector<2x16xf32>
    %1366 = tpu.matmul %1365, %954, %cst_468 {dimension_numbers = #tpu.dot_dimension_numbers<[1], [0], [0], [1], [0, 0, 1, 1], [], []>} : vector<2x16xbf16>, vector<16x16xbf16>, vector<2x16xf32> -> vector<2x16xf32>
    %1367 = vector.broadcast %955 : vector<1x16xf32> to vector<2x16xf32>
    %1368 = arith.addf %1366, %1367 : vector<2x16xf32>
    %cst_469 = arith.constant 0.000000e+00 : f32
    %1369 = vector.broadcast %cst_469 : f32 to vector<2x16xf32>
    %1370 = arith.maximumf %1368, %1369 : vector<2x16xf32>
    %1371 = arith.truncf %1370 : vector<2x16xf32> to vector<2x16xbf16>
    %cst_470 = arith.constant dense<0.000000e+00> : vector<2x128xf32>
    %1372 = tpu.matmul %1371, %956, %cst_470 {dimension_numbers = #tpu.dot_dimension_numbers<[1], [0], [0], [1], [0, 0, 1, 1], [], []>} : vector<2x16xbf16>, vector<16x128xbf16>, vector<2x128xf32> -> vector<2x128xf32>
    %1373 = vector.broadcast %957 : vector<1x128xf32> to vector<2x128xf32>
    %1374 = arith.addf %1372, %1373 : vector<2x128xf32>
    %c9_471 = arith.constant 9 : index
    %c0_472 = arith.constant 0 : index
    %c0_473 = arith.constant 0 : index
    %1375 = vector.load %arg13[%c9_471, %c0_472, %c0_473] : memref<16x2x128xf32, #tpu.memory_space<vmem>>, vector<1x2x128xf32>
    %1376 = vector.shape_cast %1375 : vector<1x2x128xf32> to vector<2x128xf32>
    %1377 = vector.shape_cast %1374 : vector<2x128xf32> to vector<1x2x128xf32>
    tpu.vector_store %arg13[%c9_471, %c0_472, %c0_473], %1377 {strides = array<i32>} : memref<16x2x128xf32, #tpu.memory_space<vmem>>, vector<1x2x128xf32>,
    %c10 = arith.constant 10 : index
    %c0_474 = arith.constant 0 : index
    %c0_475 = arith.constant 0 : index
    %1378 = vector.load %arg14[%c10, %c0_474, %c0_475] : memref<16x2x16xf32, #tpu.memory_space<vmem>>, vector<1x2x16xf32>
    %1379 = vector.shape_cast %1378 : vector<1x2x16xf32> to vector<2x16xf32>
    %cst_476 = arith.constant dense<0.000000e+00> : vector<2xf32>
    %1380 = vector.multi_reduction <add>, %1379, %cst_476 [1] : vector<2x16xf32> to vector<2xf32>
    %1381 = vector.shape_cast %1380 : vector<2xf32> to vector<2x1xf32>
    %cst_477 = arith.constant dense<0.000000e+00> : vector<1xf32>
    %1382 = vector.multi_reduction <add>, %1381, %cst_477 [0] : vector<2x1xf32> to vector<1xf32>
    %1383 = vector.shape_cast %1382 : vector<1xf32> to vector<1x1xf32>
    %cst_478 = arith.constant 3.125000e-02 : f32
    %1384 = vector.broadcast %cst_478 : f32 to vector<1x1xf32>
    %1385 = arith.mulf %1383, %1384 : vector<1x1xf32>
    %1386 = vector.broadcast %1385 : vector<1x1xf32> to vector<2x16xf32>
    %1387 = arith.subf %1379, %1386 : vector<2x16xf32>
    %1388 = arith.mulf %1387, %1387 : vector<2x16xf32>
    %cst_479 = arith.constant dense<0.000000e+00> : vector<2xf32>
    %1389 = vector.multi_reduction <add>, %1388, %cst_479 [1] : vector<2x16xf32> to vector<2xf32>
    %1390 = vector.shape_cast %1389 : vector<2xf32> to vector<2x1xf32>
    %cst_480 = arith.constant dense<0.000000e+00> : vector<1xf32>
    %1391 = vector.multi_reduction <add>, %1390, %cst_480 [0] : vector<2x1xf32> to vector<1xf32>
    %1392 = vector.shape_cast %1391 : vector<1xf32> to vector<1x1xf32>
    %cst_481 = arith.constant 3.125000e-02 : f32
    %1393 = vector.broadcast %cst_481 : f32 to vector<1x1xf32>
    %1394 = arith.mulf %1392, %1393 : vector<1x1xf32>
    %c10_482 = arith.constant 10 : index
    %c0_483 = arith.constant 0 : index
    %c0_484 = arith.constant 0 : index
    %1395 = vector.load %arg7[%c10_482, %c0_483, %c0_484] : memref<16x1x1xf32, #tpu.memory_space<vmem>>, vector<1x1x1xf32>
    %1396 = vector.shape_cast %1395 : vector<1x1x1xf32> to vector<1x1xf32>
    %cst_485 = arith.constant 9.99999974E-6 : f32
    %1397 = vector.broadcast %cst_485 : f32 to vector<1x1xf32>
    %1398 = arith.addf %1394, %1397 : vector<1x1xf32>
    %1399 = math.rsqrt %1398 : vector<1x1xf32>
    %1400 = arith.mulf %1396, %1399 : vector<1x1xf32>
    %1401 = vector.broadcast %1400 : vector<1x1xf32> to vector<2x16xf32>
    %1402 = arith.mulf %1387, %1401 : vector<2x16xf32>
    %c10_486 = arith.constant 10 : index
    %c0_487 = arith.constant 0 : index
    %c0_488 = arith.constant 0 : index
    %1403 = vector.load %arg8[%c10_486, %c0_487, %c0_488] : memref<16x1x1xf32, #tpu.memory_space<vmem>>, vector<1x1x1xf32>
    %1404 = vector.shape_cast %1403 : vector<1x1x1xf32> to vector<1x1xf32>
    %1405 = vector.broadcast %1404 : vector<1x1xf32> to vector<2x16xf32>
    %1406 = arith.addf %1402, %1405 : vector<2x16xf32>
    %1407 = arith.truncf %1406 : vector<2x16xf32> to vector<2x16xbf16>
    %cst_489 = arith.constant dense<0.000000e+00> : vector<2x16xf32>
    %1408 = tpu.matmul %1407, %954, %cst_489 {dimension_numbers = #tpu.dot_dimension_numbers<[1], [0], [0], [1], [0, 0, 1, 1], [], []>} : vector<2x16xbf16>, vector<16x16xbf16>, vector<2x16xf32> -> vector<2x16xf32>
    %1409 = vector.broadcast %955 : vector<1x16xf32> to vector<2x16xf32>
    %1410 = arith.addf %1408, %1409 : vector<2x16xf32>
    %cst_490 = arith.constant 0.000000e+00 : f32
    %1411 = vector.broadcast %cst_490 : f32 to vector<2x16xf32>
    %1412 = arith.maximumf %1410, %1411 : vector<2x16xf32>
    %1413 = arith.truncf %1412 : vector<2x16xf32> to vector<2x16xbf16>
    %cst_491 = arith.constant dense<0.000000e+00> : vector<2x128xf32>
    %1414 = tpu.matmul %1413, %956, %cst_491 {dimension_numbers = #tpu.dot_dimension_numbers<[1], [0], [0], [1], [0, 0, 1, 1], [], []>} : vector<2x16xbf16>, vector<16x128xbf16>, vector<2x128xf32> -> vector<2x128xf32>
    %1415 = vector.broadcast %957 : vector<1x128xf32> to vector<2x128xf32>
    %1416 = arith.addf %1414, %1415 : vector<2x128xf32>
    %c10_492 = arith.constant 10 : index
    %c0_493 = arith.constant 0 : index
    %c0_494 = arith.constant 0 : index
    %1417 = vector.load %arg13[%c10_492, %c0_493, %c0_494] : memref<16x2x128xf32, #tpu.memory_space<vmem>>, vector<1x2x128xf32>
    %1418 = vector.shape_cast %1417 : vector<1x2x128xf32> to vector<2x128xf32>
    %1419 = vector.shape_cast %1416 : vector<2x128xf32> to vector<1x2x128xf32>
    tpu.vector_store %arg13[%c10_492, %c0_493, %c0_494], %1419 {strides = array<i32>} : memref<16x2x128xf32, #tpu.memory_space<vmem>>, vector<1x2x128xf32>,
    %c11 = arith.constant 11 : index
    %c0_495 = arith.constant 0 : index
    %c0_496 = arith.constant 0 : index
    %1420 = vector.load %arg14[%c11, %c0_495, %c0_496] : memref<16x2x16xf32, #tpu.memory_space<vmem>>, vector<1x2x16xf32>
    %1421 = vector.shape_cast %1420 : vector<1x2x16xf32> to vector<2x16xf32>
    %cst_497 = arith.constant dense<0.000000e+00> : vector<2xf32>
    %1422 = vector.multi_reduction <add>, %1421, %cst_497 [1] : vector<2x16xf32> to vector<2xf32>
    %1423 = vector.shape_cast %1422 : vector<2xf32> to vector<2x1xf32>
    %cst_498 = arith.constant dense<0.000000e+00> : vector<1xf32>
    %1424 = vector.multi_reduction <add>, %1423, %cst_498 [0] : vector<2x1xf32> to vector<1xf32>
    %1425 = vector.shape_cast %1424 : vector<1xf32> to vector<1x1xf32>
    %cst_499 = arith.constant 3.125000e-02 : f32
    %1426 = vector.broadcast %cst_499 : f32 to vector<1x1xf32>
    %1427 = arith.mulf %1425, %1426 : vector<1x1xf32>
    %1428 = vector.broadcast %1427 : vector<1x1xf32> to vector<2x16xf32>
    %1429 = arith.subf %1421, %1428 : vector<2x16xf32>
    %1430 = arith.mulf %1429, %1429 : vector<2x16xf32>
    %cst_500 = arith.constant dense<0.000000e+00> : vector<2xf32>
    %1431 = vector.multi_reduction <add>, %1430, %cst_500 [1] : vector<2x16xf32> to vector<2xf32>
    %1432 = vector.shape_cast %1431 : vector<2xf32> to vector<2x1xf32>
    %cst_501 = arith.constant dense<0.000000e+00> : vector<1xf32>
    %1433 = vector.multi_reduction <add>, %1432, %cst_501 [0] : vector<2x1xf32> to vector<1xf32>
    %1434 = vector.shape_cast %1433 : vector<1xf32> to vector<1x1xf32>
    %cst_502 = arith.constant 3.125000e-02 : f32
    %1435 = vector.broadcast %cst_502 : f32 to vector<1x1xf32>
    %1436 = arith.mulf %1434, %1435 : vector<1x1xf32>
    %c11_503 = arith.constant 11 : index
    %c0_504 = arith.constant 0 : index
    %c0_505 = arith.constant 0 : index
    %1437 = vector.load %arg7[%c11_503, %c0_504, %c0_505] : memref<16x1x1xf32, #tpu.memory_space<vmem>>, vector<1x1x1xf32>
    %1438 = vector.shape_cast %1437 : vector<1x1x1xf32> to vector<1x1xf32>
    %cst_506 = arith.constant 9.99999974E-6 : f32
    %1439 = vector.broadcast %cst_506 : f32 to vector<1x1xf32>
    %1440 = arith.addf %1436, %1439 : vector<1x1xf32>
    %1441 = math.rsqrt %1440 : vector<1x1xf32>
    %1442 = arith.mulf %1438, %1441 : vector<1x1xf32>
    %1443 = vector.broadcast %1442 : vector<1x1xf32> to vector<2x16xf32>
    %1444 = arith.mulf %1429, %1443 : vector<2x16xf32>
    %c11_507 = arith.constant 11 : index
    %c0_508 = arith.constant 0 : index
    %c0_509 = arith.constant 0 : index
    %1445 = vector.load %arg8[%c11_507, %c0_508, %c0_509] : memref<16x1x1xf32, #tpu.memory_space<vmem>>, vector<1x1x1xf32>
    %1446 = vector.shape_cast %1445 : vector<1x1x1xf32> to vector<1x1xf32>
    %1447 = vector.broadcast %1446 : vector<1x1xf32> to vector<2x16xf32>
    %1448 = arith.addf %1444, %1447 : vector<2x16xf32>
    %1449 = arith.truncf %1448 : vector<2x16xf32> to vector<2x16xbf16>
    %cst_510 = arith.constant dense<0.000000e+00> : vector<2x16xf32>
    %1450 = tpu.matmul %1449, %954, %cst_510 {dimension_numbers = #tpu.dot_dimension_numbers<[1], [0], [0], [1], [0, 0, 1, 1], [], []>} : vector<2x16xbf16>, vector<16x16xbf16>, vector<2x16xf32> -> vector<2x16xf32>
    %1451 = vector.broadcast %955 : vector<1x16xf32> to vector<2x16xf32>
    %1452 = arith.addf %1450, %1451 : vector<2x16xf32>
    %cst_511 = arith.constant 0.000000e+00 : f32
    %1453 = vector.broadcast %cst_511 : f32 to vector<2x16xf32>
    %1454 = arith.maximumf %1452, %1453 : vector<2x16xf32>
    %1455 = arith.truncf %1454 : vector<2x16xf32> to vector<2x16xbf16>
    %cst_512 = arith.constant dense<0.000000e+00> : vector<2x128xf32>
    %1456 = tpu.matmul %1455, %956, %cst_512 {dimension_numbers = #tpu.dot_dimension_numbers<[1], [0], [0], [1], [0, 0, 1, 1], [], []>} : vector<2x16xbf16>, vector<16x128xbf16>, vector<2x128xf32> -> vector<2x128xf32>
    %1457 = vector.broadcast %957 : vector<1x128xf32> to vector<2x128xf32>
    %1458 = arith.addf %1456, %1457 : vector<2x128xf32>
    %c11_513 = arith.constant 11 : index
    %c0_514 = arith.constant 0 : index
    %c0_515 = arith.constant 0 : index
    %1459 = vector.load %arg13[%c11_513, %c0_514, %c0_515] : memref<16x2x128xf32, #tpu.memory_space<vmem>>, vector<1x2x128xf32>
    %1460 = vector.shape_cast %1459 : vector<1x2x128xf32> to vector<2x128xf32>
    %1461 = vector.shape_cast %1458 : vector<2x128xf32> to vector<1x2x128xf32>
    tpu.vector_store %arg13[%c11_513, %c0_514, %c0_515], %1461 {strides = array<i32>} : memref<16x2x128xf32, #tpu.memory_space<vmem>>, vector<1x2x128xf32>,
    %c12 = arith.constant 12 : index
    %c0_516 = arith.constant 0 : index
    %c0_517 = arith.constant 0 : index
    %1462 = vector.load %arg14[%c12, %c0_516, %c0_517] : memref<16x2x16xf32, #tpu.memory_space<vmem>>, vector<1x2x16xf32>
    %1463 = vector.shape_cast %1462 : vector<1x2x16xf32> to vector<2x16xf32>
    %cst_518 = arith.constant dense<0.000000e+00> : vector<2xf32>
    %1464 = vector.multi_reduction <add>, %1463, %cst_518 [1] : vector<2x16xf32> to vector<2xf32>
    %1465 = vector.shape_cast %1464 : vector<2xf32> to vector<2x1xf32>
    %cst_519 = arith.constant dense<0.000000e+00> : vector<1xf32>
    %1466 = vector.multi_reduction <add>, %1465, %cst_519 [0] : vector<2x1xf32> to vector<1xf32>
    %1467 = vector.shape_cast %1466 : vector<1xf32> to vector<1x1xf32>
    %cst_520 = arith.constant 3.125000e-02 : f32
    %1468 = vector.broadcast %cst_520 : f32 to vector<1x1xf32>
    %1469 = arith.mulf %1467, %1468 : vector<1x1xf32>
    %1470 = vector.broadcast %1469 : vector<1x1xf32> to vector<2x16xf32>
    %1471 = arith.subf %1463, %1470 : vector<2x16xf32>
    %1472 = arith.mulf %1471, %1471 : vector<2x16xf32>
    %cst_521 = arith.constant dense<0.000000e+00> : vector<2xf32>
    %1473 = vector.multi_reduction <add>, %1472, %cst_521 [1] : vector<2x16xf32> to vector<2xf32>
    %1474 = vector.shape_cast %1473 : vector<2xf32> to vector<2x1xf32>
    %cst_522 = arith.constant dense<0.000000e+00> : vector<1xf32>
    %1475 = vector.multi_reduction <add>, %1474, %cst_522 [0] : vector<2x1xf32> to vector<1xf32>
    %1476 = vector.shape_cast %1475 : vector<1xf32> to vector<1x1xf32>
    %cst_523 = arith.constant 3.125000e-02 : f32
    %1477 = vector.broadcast %cst_523 : f32 to vector<1x1xf32>
    %1478 = arith.mulf %1476, %1477 : vector<1x1xf32>
    %c12_524 = arith.constant 12 : index
    %c0_525 = arith.constant 0 : index
    %c0_526 = arith.constant 0 : index
    %1479 = vector.load %arg7[%c12_524, %c0_525, %c0_526] : memref<16x1x1xf32, #tpu.memory_space<vmem>>, vector<1x1x1xf32>
    %1480 = vector.shape_cast %1479 : vector<1x1x1xf32> to vector<1x1xf32>
    %cst_527 = arith.constant 9.99999974E-6 : f32
    %1481 = vector.broadcast %cst_527 : f32 to vector<1x1xf32>
    %1482 = arith.addf %1478, %1481 : vector<1x1xf32>
    %1483 = math.rsqrt %1482 : vector<1x1xf32>
    %1484 = arith.mulf %1480, %1483 : vector<1x1xf32>
    %1485 = vector.broadcast %1484 : vector<1x1xf32> to vector<2x16xf32>
    %1486 = arith.mulf %1471, %1485 : vector<2x16xf32>
    %c12_528 = arith.constant 12 : index
    %c0_529 = arith.constant 0 : index
    %c0_530 = arith.constant 0 : index
    %1487 = vector.load %arg8[%c12_528, %c0_529, %c0_530] : memref<16x1x1xf32, #tpu.memory_space<vmem>>, vector<1x1x1xf32>
    %1488 = vector.shape_cast %1487 : vector<1x1x1xf32> to vector<1x1xf32>
    %1489 = vector.broadcast %1488 : vector<1x1xf32> to vector<2x16xf32>
    %1490 = arith.addf %1486, %1489 : vector<2x16xf32>
    %1491 = arith.truncf %1490 : vector<2x16xf32> to vector<2x16xbf16>
    %cst_531 = arith.constant dense<0.000000e+00> : vector<2x16xf32>
    %1492 = tpu.matmul %1491, %954, %cst_531 {dimension_numbers = #tpu.dot_dimension_numbers<[1], [0], [0], [1], [0, 0, 1, 1], [], []>} : vector<2x16xbf16>, vector<16x16xbf16>, vector<2x16xf32> -> vector<2x16xf32>
    %1493 = vector.broadcast %955 : vector<1x16xf32> to vector<2x16xf32>
    %1494 = arith.addf %1492, %1493 : vector<2x16xf32>
    %cst_532 = arith.constant 0.000000e+00 : f32
    %1495 = vector.broadcast %cst_532 : f32 to vector<2x16xf32>
    %1496 = arith.maximumf %1494, %1495 : vector<2x16xf32>
    %1497 = arith.truncf %1496 : vector<2x16xf32> to vector<2x16xbf16>
    %cst_533 = arith.constant dense<0.000000e+00> : vector<2x128xf32>
    %1498 = tpu.matmul %1497, %956, %cst_533 {dimension_numbers = #tpu.dot_dimension_numbers<[1], [0], [0], [1], [0, 0, 1, 1], [], []>} : vector<2x16xbf16>, vector<16x128xbf16>, vector<2x128xf32> -> vector<2x128xf32>
    %1499 = vector.broadcast %957 : vector<1x128xf32> to vector<2x128xf32>
    %1500 = arith.addf %1498, %1499 : vector<2x128xf32>
    %c12_534 = arith.constant 12 : index
    %c0_535 = arith.constant 0 : index
    %c0_536 = arith.constant 0 : index
    %1501 = vector.load %arg13[%c12_534, %c0_535, %c0_536] : memref<16x2x128xf32, #tpu.memory_space<vmem>>, vector<1x2x128xf32>
    %1502 = vector.shape_cast %1501 : vector<1x2x128xf32> to vector<2x128xf32>
    %1503 = vector.shape_cast %1500 : vector<2x128xf32> to vector<1x2x128xf32>
    tpu.vector_store %arg13[%c12_534, %c0_535, %c0_536], %1503 {strides = array<i32>} : memref<16x2x128xf32, #tpu.memory_space<vmem>>, vector<1x2x128xf32>,
    %c13 = arith.constant 13 : index
    %c0_537 = arith.constant 0 : index
    %c0_538 = arith.constant 0 : index
    %1504 = vector.load %arg14[%c13, %c0_537, %c0_538] : memref<16x2x16xf32, #tpu.memory_space<vmem>>, vector<1x2x16xf32>
    %1505 = vector.shape_cast %1504 : vector<1x2x16xf32> to vector<2x16xf32>
    %cst_539 = arith.constant dense<0.000000e+00> : vector<2xf32>
    %1506 = vector.multi_reduction <add>, %1505, %cst_539 [1] : vector<2x16xf32> to vector<2xf32>
    %1507 = vector.shape_cast %1506 : vector<2xf32> to vector<2x1xf32>
    %cst_540 = arith.constant dense<0.000000e+00> : vector<1xf32>
    %1508 = vector.multi_reduction <add>, %1507, %cst_540 [0] : vector<2x1xf32> to vector<1xf32>
    %1509 = vector.shape_cast %1508 : vector<1xf32> to vector<1x1xf32>
    %cst_541 = arith.constant 3.125000e-02 : f32
    %1510 = vector.broadcast %cst_541 : f32 to vector<1x1xf32>
    %1511 = arith.mulf %1509, %1510 : vector<1x1xf32>
    %1512 = vector.broadcast %1511 : vector<1x1xf32> to vector<2x16xf32>
    %1513 = arith.subf %1505, %1512 : vector<2x16xf32>
    %1514 = arith.mulf %1513, %1513 : vector<2x16xf32>
    %cst_542 = arith.constant dense<0.000000e+00> : vector<2xf32>
    %1515 = vector.multi_reduction <add>, %1514, %cst_542 [1] : vector<2x16xf32> to vector<2xf32>
    %1516 = vector.shape_cast %1515 : vector<2xf32> to vector<2x1xf32>
    %cst_543 = arith.constant dense<0.000000e+00> : vector<1xf32>
    %1517 = vector.multi_reduction <add>, %1516, %cst_543 [0] : vector<2x1xf32> to vector<1xf32>
    %1518 = vector.shape_cast %1517 : vector<1xf32> to vector<1x1xf32>
    %cst_544 = arith.constant 3.125000e-02 : f32
    %1519 = vector.broadcast %cst_544 : f32 to vector<1x1xf32>
    %1520 = arith.mulf %1518, %1519 : vector<1x1xf32>
    %c13_545 = arith.constant 13 : index
    %c0_546 = arith.constant 0 : index
    %c0_547 = arith.constant 0 : index
    %1521 = vector.load %arg7[%c13_545, %c0_546, %c0_547] : memref<16x1x1xf32, #tpu.memory_space<vmem>>, vector<1x1x1xf32>
    %1522 = vector.shape_cast %1521 : vector<1x1x1xf32> to vector<1x1xf32>
    %cst_548 = arith.constant 9.99999974E-6 : f32
    %1523 = vector.broadcast %cst_548 : f32 to vector<1x1xf32>
    %1524 = arith.addf %1520, %1523 : vector<1x1xf32>
    %1525 = math.rsqrt %1524 : vector<1x1xf32>
    %1526 = arith.mulf %1522, %1525 : vector<1x1xf32>
    %1527 = vector.broadcast %1526 : vector<1x1xf32> to vector<2x16xf32>
    %1528 = arith.mulf %1513, %1527 : vector<2x16xf32>
    %c13_549 = arith.constant 13 : index
    %c0_550 = arith.constant 0 : index
    %c0_551 = arith.constant 0 : index
    %1529 = vector.load %arg8[%c13_549, %c0_550, %c0_551] : memref<16x1x1xf32, #tpu.memory_space<vmem>>, vector<1x1x1xf32>
    %1530 = vector.shape_cast %1529 : vector<1x1x1xf32> to vector<1x1xf32>
    %1531 = vector.broadcast %1530 : vector<1x1xf32> to vector<2x16xf32>
    %1532 = arith.addf %1528, %1531 : vector<2x16xf32>
    %1533 = arith.truncf %1532 : vector<2x16xf32> to vector<2x16xbf16>
    %cst_552 = arith.constant dense<0.000000e+00> : vector<2x16xf32>
    %1534 = tpu.matmul %1533, %954, %cst_552 {dimension_numbers = #tpu.dot_dimension_numbers<[1], [0], [0], [1], [0, 0, 1, 1], [], []>} : vector<2x16xbf16>, vector<16x16xbf16>, vector<2x16xf32> -> vector<2x16xf32>
    %1535 = vector.broadcast %955 : vector<1x16xf32> to vector<2x16xf32>
    %1536 = arith.addf %1534, %1535 : vector<2x16xf32>
    %cst_553 = arith.constant 0.000000e+00 : f32
    %1537 = vector.broadcast %cst_553 : f32 to vector<2x16xf32>
    %1538 = arith.maximumf %1536, %1537 : vector<2x16xf32>
    %1539 = arith.truncf %1538 : vector<2x16xf32> to vector<2x16xbf16>
    %cst_554 = arith.constant dense<0.000000e+00> : vector<2x128xf32>
    %1540 = tpu.matmul %1539, %956, %cst_554 {dimension_numbers = #tpu.dot_dimension_numbers<[1], [0], [0], [1], [0, 0, 1, 1], [], []>} : vector<2x16xbf16>, vector<16x128xbf16>, vector<2x128xf32> -> vector<2x128xf32>
    %1541 = vector.broadcast %957 : vector<1x128xf32> to vector<2x128xf32>
    %1542 = arith.addf %1540, %1541 : vector<2x128xf32>
    %c13_555 = arith.constant 13 : index
    %c0_556 = arith.constant 0 : index
    %c0_557 = arith.constant 0 : index
    %1543 = vector.load %arg13[%c13_555, %c0_556, %c0_557] : memref<16x2x128xf32, #tpu.memory_space<vmem>>, vector<1x2x128xf32>
    %1544 = vector.shape_cast %1543 : vector<1x2x128xf32> to vector<2x128xf32>
    %1545 = vector.shape_cast %1542 : vector<2x128xf32> to vector<1x2x128xf32>
    tpu.vector_store %arg13[%c13_555, %c0_556, %c0_557], %1545 {strides = array<i32>} : memref<16x2x128xf32, #tpu.memory_space<vmem>>, vector<1x2x128xf32>,
    %c14 = arith.constant 14 : index
    %c0_558 = arith.constant 0 : index
    %c0_559 = arith.constant 0 : index
    %1546 = vector.load %arg14[%c14, %c0_558, %c0_559] : memref<16x2x16xf32, #tpu.memory_space<vmem>>, vector<1x2x16xf32>
    %1547 = vector.shape_cast %1546 : vector<1x2x16xf32> to vector<2x16xf32>
    %cst_560 = arith.constant dense<0.000000e+00> : vector<2xf32>
    %1548 = vector.multi_reduction <add>, %1547, %cst_560 [1] : vector<2x16xf32> to vector<2xf32>
    %1549 = vector.shape_cast %1548 : vector<2xf32> to vector<2x1xf32>
    %cst_561 = arith.constant dense<0.000000e+00> : vector<1xf32>
    %1550 = vector.multi_reduction <add>, %1549, %cst_561 [0] : vector<2x1xf32> to vector<1xf32>
    %1551 = vector.shape_cast %1550 : vector<1xf32> to vector<1x1xf32>
    %cst_562 = arith.constant 3.125000e-02 : f32
    %1552 = vector.broadcast %cst_562 : f32 to vector<1x1xf32>
    %1553 = arith.mulf %1551, %1552 : vector<1x1xf32>
    %1554 = vector.broadcast %1553 : vector<1x1xf32> to vector<2x16xf32>
    %1555 = arith.subf %1547, %1554 : vector<2x16xf32>
    %1556 = arith.mulf %1555, %1555 : vector<2x16xf32>
    %cst_563 = arith.constant dense<0.000000e+00> : vector<2xf32>
    %1557 = vector.multi_reduction <add>, %1556, %cst_563 [1] : vector<2x16xf32> to vector<2xf32>
    %1558 = vector.shape_cast %1557 : vector<2xf32> to vector<2x1xf32>
    %cst_564 = arith.constant dense<0.000000e+00> : vector<1xf32>
    %1559 = vector.multi_reduction <add>, %1558, %cst_564 [0] : vector<2x1xf32> to vector<1xf32>
    %1560 = vector.shape_cast %1559 : vector<1xf32> to vector<1x1xf32>
    %cst_565 = arith.constant 3.125000e-02 : f32
    %1561 = vector.broadcast %cst_565 : f32 to vector<1x1xf32>
    %1562 = arith.mulf %1560, %1561 : vector<1x1xf32>
    %c14_566 = arith.constant 14 : index
    %c0_567 = arith.constant 0 : index
    %c0_568 = arith.constant 0 : index
    %1563 = vector.load %arg7[%c14_566, %c0_567, %c0_568] : memref<16x1x1xf32, #tpu.memory_space<vmem>>, vector<1x1x1xf32>
    %1564 = vector.shape_cast %1563 : vector<1x1x1xf32> to vector<1x1xf32>
    %cst_569 = arith.constant 9.99999974E-6 : f32
    %1565 = vector.broadcast %cst_569 : f32 to vector<1x1xf32>
    %1566 = arith.addf %1562, %1565 : vector<1x1xf32>
    %1567 = math.rsqrt %1566 : vector<1x1xf32>
    %1568 = arith.mulf %1564, %1567 : vector<1x1xf32>
    %1569 = vector.broadcast %1568 : vector<1x1xf32> to vector<2x16xf32>
    %1570 = arith.mulf %1555, %1569 : vector<2x16xf32>
    %c14_570 = arith.constant 14 : index
    %c0_571 = arith.constant 0 : index
    %c0_572 = arith.constant 0 : index
    %1571 = vector.load %arg8[%c14_570, %c0_571, %c0_572] : memref<16x1x1xf32, #tpu.memory_space<vmem>>, vector<1x1x1xf32>
    %1572 = vector.shape_cast %1571 : vector<1x1x1xf32> to vector<1x1xf32>
    %1573 = vector.broadcast %1572 : vector<1x1xf32> to vector<2x16xf32>
    %1574 = arith.addf %1570, %1573 : vector<2x16xf32>
    %1575 = arith.truncf %1574 : vector<2x16xf32> to vector<2x16xbf16>
    %cst_573 = arith.constant dense<0.000000e+00> : vector<2x16xf32>
    %1576 = tpu.matmul %1575, %954, %cst_573 {dimension_numbers = #tpu.dot_dimension_numbers<[1], [0], [0], [1], [0, 0, 1, 1], [], []>} : vector<2x16xbf16>, vector<16x16xbf16>, vector<2x16xf32> -> vector<2x16xf32>
    %1577 = vector.broadcast %955 : vector<1x16xf32> to vector<2x16xf32>
    %1578 = arith.addf %1576, %1577 : vector<2x16xf32>
    %cst_574 = arith.constant 0.000000e+00 : f32
    %1579 = vector.broadcast %cst_574 : f32 to vector<2x16xf32>
    %1580 = arith.maximumf %1578, %1579 : vector<2x16xf32>
    %1581 = arith.truncf %1580 : vector<2x16xf32> to vector<2x16xbf16>
    %cst_575 = arith.constant dense<0.000000e+00> : vector<2x128xf32>
    %1582 = tpu.matmul %1581, %956, %cst_575 {dimension_numbers = #tpu.dot_dimension_numbers<[1], [0], [0], [1], [0, 0, 1, 1], [], []>} : vector<2x16xbf16>, vector<16x128xbf16>, vector<2x128xf32> -> vector<2x128xf32>
    %1583 = vector.broadcast %957 : vector<1x128xf32> to vector<2x128xf32>
    %1584 = arith.addf %1582, %1583 : vector<2x128xf32>
    %c14_576 = arith.constant 14 : index
    %c0_577 = arith.constant 0 : index
    %c0_578 = arith.constant 0 : index
    %1585 = vector.load %arg13[%c14_576, %c0_577, %c0_578] : memref<16x2x128xf32, #tpu.memory_space<vmem>>, vector<1x2x128xf32>
    %1586 = vector.shape_cast %1585 : vector<1x2x128xf32> to vector<2x128xf32>
    %1587 = vector.shape_cast %1584 : vector<2x128xf32> to vector<1x2x128xf32>
    tpu.vector_store %arg13[%c14_576, %c0_577, %c0_578], %1587 {strides = array<i32>} : memref<16x2x128xf32, #tpu.memory_space<vmem>>, vector<1x2x128xf32>,
    %c15 = arith.constant 15 : index
    %c0_579 = arith.constant 0 : index
    %c0_580 = arith.constant 0 : index
    %1588 = vector.load %arg14[%c15, %c0_579, %c0_580] : memref<16x2x16xf32, #tpu.memory_space<vmem>>, vector<1x2x16xf32>
    %1589 = vector.shape_cast %1588 : vector<1x2x16xf32> to vector<2x16xf32>
    %cst_581 = arith.constant dense<0.000000e+00> : vector<2xf32>
    %1590 = vector.multi_reduction <add>, %1589, %cst_581 [1] : vector<2x16xf32> to vector<2xf32>
    %1591 = vector.shape_cast %1590 : vector<2xf32> to vector<2x1xf32>
    %cst_582 = arith.constant dense<0.000000e+00> : vector<1xf32>
    %1592 = vector.multi_reduction <add>, %1591, %cst_582 [0] : vector<2x1xf32> to vector<1xf32>
    %1593 = vector.shape_cast %1592 : vector<1xf32> to vector<1x1xf32>
    %cst_583 = arith.constant 3.125000e-02 : f32
    %1594 = vector.broadcast %cst_583 : f32 to vector<1x1xf32>
    %1595 = arith.mulf %1593, %1594 : vector<1x1xf32>
    %1596 = vector.broadcast %1595 : vector<1x1xf32> to vector<2x16xf32>
    %1597 = arith.subf %1589, %1596 : vector<2x16xf32>
    %1598 = arith.mulf %1597, %1597 : vector<2x16xf32>
    %cst_584 = arith.constant dense<0.000000e+00> : vector<2xf32>
    %1599 = vector.multi_reduction <add>, %1598, %cst_584 [1] : vector<2x16xf32> to vector<2xf32>
    %1600 = vector.shape_cast %1599 : vector<2xf32> to vector<2x1xf32>
    %cst_585 = arith.constant dense<0.000000e+00> : vector<1xf32>
    %1601 = vector.multi_reduction <add>, %1600, %cst_585 [0] : vector<2x1xf32> to vector<1xf32>
    %1602 = vector.shape_cast %1601 : vector<1xf32> to vector<1x1xf32>
    %cst_586 = arith.constant 3.125000e-02 : f32
    %1603 = vector.broadcast %cst_586 : f32 to vector<1x1xf32>
    %1604 = arith.mulf %1602, %1603 : vector<1x1xf32>
    %c15_587 = arith.constant 15 : index
    %c0_588 = arith.constant 0 : index
    %c0_589 = arith.constant 0 : index
    %1605 = vector.load %arg7[%c15_587, %c0_588, %c0_589] : memref<16x1x1xf32, #tpu.memory_space<vmem>>, vector<1x1x1xf32>
    %1606 = vector.shape_cast %1605 : vector<1x1x1xf32> to vector<1x1xf32>
    %cst_590 = arith.constant 9.99999974E-6 : f32
    %1607 = vector.broadcast %cst_590 : f32 to vector<1x1xf32>
    %1608 = arith.addf %1604, %1607 : vector<1x1xf32>
    %1609 = math.rsqrt %1608 : vector<1x1xf32>
    %1610 = arith.mulf %1606, %1609 : vector<1x1xf32>
    %1611 = vector.broadcast %1610 : vector<1x1xf32> to vector<2x16xf32>
    %1612 = arith.mulf %1597, %1611 : vector<2x16xf32>
    %c15_591 = arith.constant 15 : index
    %c0_592 = arith.constant 0 : index
    %c0_593 = arith.constant 0 : index
    %1613 = vector.load %arg8[%c15_591, %c0_592, %c0_593] : memref<16x1x1xf32, #tpu.memory_space<vmem>>, vector<1x1x1xf32>
    %1614 = vector.shape_cast %1613 : vector<1x1x1xf32> to vector<1x1xf32>
    %1615 = vector.broadcast %1614 : vector<1x1xf32> to vector<2x16xf32>
    %1616 = arith.addf %1612, %1615 : vector<2x16xf32>
    %1617 = arith.truncf %1616 : vector<2x16xf32> to vector<2x16xbf16>
    %cst_594 = arith.constant dense<0.000000e+00> : vector<2x16xf32>
    %1618 = tpu.matmul %1617, %954, %cst_594 {dimension_numbers = #tpu.dot_dimension_numbers<[1], [0], [0], [1], [0, 0, 1, 1], [], []>} : vector<2x16xbf16>, vector<16x16xbf16>, vector<2x16xf32> -> vector<2x16xf32>
    %1619 = vector.broadcast %955 : vector<1x16xf32> to vector<2x16xf32>
    %1620 = arith.addf %1618, %1619 : vector<2x16xf32>
    %cst_595 = arith.constant 0.000000e+00 : f32
    %1621 = vector.broadcast %cst_595 : f32 to vector<2x16xf32>
    %1622 = arith.maximumf %1620, %1621 : vector<2x16xf32>
    %1623 = arith.truncf %1622 : vector<2x16xf32> to vector<2x16xbf16>
    %cst_596 = arith.constant dense<0.000000e+00> : vector<2x128xf32>
    %1624 = tpu.matmul %1623, %956, %cst_596 {dimension_numbers = #tpu.dot_dimension_numbers<[1], [0], [0], [1], [0, 0, 1, 1], [], []>} : vector<2x16xbf16>, vector<16x128xbf16>, vector<2x128xf32> -> vector<2x128xf32>
    %1625 = vector.broadcast %957 : vector<1x128xf32> to vector<2x128xf32>
    %1626 = arith.addf %1624, %1625 : vector<2x128xf32>
    %c15_597 = arith.constant 15 : index
    %c0_598 = arith.constant 0 : index
    %c0_599 = arith.constant 0 : index
    %1627 = vector.load %arg13[%c15_597, %c0_598, %c0_599] : memref<16x2x128xf32, #tpu.memory_space<vmem>>, vector<1x2x128xf32>
    %1628 = vector.shape_cast %1627 : vector<1x2x128xf32> to vector<2x128xf32>
    %1629 = vector.shape_cast %1626 : vector<2x128xf32> to vector<1x2x128xf32>
    tpu.vector_store %arg13[%c15_597, %c0_598, %c0_599], %1629 {strides = array<i32>} : memref<16x2x128xf32, #tpu.memory_space<vmem>>, vector<1x2x128xf32>,
    return
  }
}

</mosaic_0001>

<bundles_post_ra>
// kernel: forward_pallas.1
= control target key start
LH: loop header
LB: loop body
LE: loop exit
PB: predicated region body
PF: predicated region fallthrough
CT: control target
= control target key end

     0   :  { %vm104_vm0 = vcmask 1043456   ;;  %v7604_v0 = vmov 0.0   ;;  %vm7605_vm1 = vmmov 0   ;;  %vm100_vm2 = vcmask 64512   ;;  %s7607_s15 = smov 80   ;;  %s7608_s16 = smov 16   ;;  %s9081_s1 = inlined_call_operand.vmem [shape: bf16[8,64], index: 1, kind: input, shape index: {}]   ;;  %s9082_s2 = inlined_call_operand.vmem [shape: bf16[16,64], index: 2, kind: input, shape index: {}]   ;;  %s9083_s0 = inlined_call_operand.vmem [shape: bf16[16,2,8], index: 0, kind: input, shape index: {}]   ;;  %s9084_s3 = inlined_call_operand.vmem [shape: f32[1,64], index: 3, kind: input, shape index: {}]   ;;  %s9085_s4 = inlined_call_operand.vmem [shape: bf16[16,64], index: 4, kind: input, shape index: {}]   ;;  %s9086_s5 = inlined_call_operand.vmem [shape: bf16[16,64], index: 5, kind: input, shape index: {}]   ;;  %s9087_s6 = inlined_call_operand.vmem [shape: f32[1,64], index: 6, kind: input, shape index: {}]   ;;  %s9088_s7 = inlined_call_operand.vmem [shape: f32[16,1,1], index: 7, kind: input, shape index: {}]   ;;  %s9089_s8 = inlined_call_operand.vmem [shape: f32[16,1,1], index: 8, kind: input, shape index: {}]   ;;  %s9090_s9 = inlined_call_operand.vmem [shape: bf16[16,16], index: 9, kind: input, shape index: {}]   ;;  %s9091_s11 = inlined_call_operand.vmem [shape: bf16[16,128], index: 11, kind: input, shape index: {}]   ;;  %s9092_s10 = inlined_call_operand.vmem [shape: f32[1,16], index: 10, kind: input, shape index: {}]   ;;  %s9093_s12 = inlined_call_operand.vmem [shape: f32[1,128], index: 12, kind: input, shape index: {}]   ;;  %s9094_s13 = inlined_call_operand.vmem [shape: f32[16,2,128], index: 13, kind: output, shape index: {}]  }
   0x1   :  { %6727 = vmatprep.subr.bf16.mxu1 %v7604_v0  ;;  %6721 = vmatprep.subr.bf16.mxu0 %v7604_v0  ;;  %v45_v1 = vld [vmem:[%s9081_s1] sm:$0xf]  ;;  %v7606_v5 = vmov 0   ;;  %s7609_s19 = smov 96   ;;  %vm56_vm3 = vcmask 130048   ;;  %vm183_vm4 = vcmask 123904  }
   0x2   :  { %v7685_v2 = vsel %vm104_vm0, %v45_v1, 0  ;;  %v7690_v3 = vld [vmem:[%s9082_s2] sm:$0xff]   ;;  %6729 = vmatprep.mubr.msk.bf16.mxu1 %vm7605_vm1, %v7604_v0  ;;  %6723 = vmatprep.mubr.msk.bf16.mxu0 %vm7605_vm1, %v7604_v0  ;;  %vm4008_vm5 = vcmask 1041408  }
   0x3   :  { %6728 = vmatpush3.bf16.msra.mxu1 %v7685_v2  ;;  %v49_v4 = vld [vmem:[%s9083_s0] sm:$0x1]  ;;  %7303 = vset.pattern.permute.xlu0 %v7606_v5  ;;  %v6322_v27 = vld [vmem:[%s9083_s0 + $0x1] sm:$0x1]  ;;  %v6326_v53 = vld [vmem:[%s9083_s0 + $0x2] sm:$0x1] }
   0x4   :  { %6722 = vmatpush3.bf16.msra.mxu0 %v7690_v3  ;;  %6739 = vmatprep.subr.bf16.mxu1 %v7604_v0  ;;  %v7718_v7 = vld [vmem:[%s9084_s3] ss:$0 sm:$0xff] }
   0x5   :  { %6733 = vmatprep.subr.bf16.mxu0 %v7604_v0  ;;  %7304 = vset.pattern.permute.xlu1 %v7606_v5 }
   0x6   :  { %6730 = vmatmul.mubr.msk.bf16.vlgmr.msra.gmra.mrb[0].mxu1 %vm100_vm2, %v49_v4 }
   0x7   :  { %6724 = vmatmul.mubr.bf16.vlgmr.msra.gmra.mrb[0].mxu0 %v7606_v5  ;;  %6740 = vmatpush3.bf16.msra.mxu1 %v7685_v2 }
   0x8   :  { %6734 = vmatpush3.bf16.msra.mxu0 %v7690_v3  ;;  %6741 = vmatprep.mubr.msk.bf16.mxu1 %vm7605_vm1, %v7604_v0 }
   0x9   :  { %6735 = vmatprep.mubr.msk.bf16.mxu0 %vm7605_vm1, %v7604_v0  ;;  %6745 = vmatprep.subr.bf16.mxu0 %v7604_v0 }
   0xa   :  { %6751 = vmatprep.subr.bf16.mxu1 %v7604_v0 }
   0xe   :  { %6742 = vmatmul.mubr.msk.bf16.vlgmr.msra.gmra.mrb[4].mxu1 %vm100_vm2, %v6322_v27 }
   0xf   :  { %6752 = vmatpush3.bf16.msra.mxu1 %v7685_v2  ;;  %6753 = vmatprep.mubr.msk.bf16.mxu1 %vm7605_vm1, %v7604_v0 }
  0x10   :  { %6763 = vmatprep.subr.bf16.mxu1 %v7604_v0 }
  0x16   :  { %6754 = vmatmul.mubr.msk.bf16.vlgmr.msra.gmra.mrb[8].mxu1 %vm100_vm2, %v6326_v53 }
  0x17   :  { %6764 = vmatpush3.bf16.msra.mxu1 %v7685_v2  ;;  %6765 = vmatprep.mubr.msk.bf16.mxu1 %vm7605_vm1, %v7604_v0 }
  0x18   :  { %6775 = vmatprep.subr.bf16.mxu1 %v7604_v0 }
  0xd9   :  { %v142_v6 = vpop.f32.mrb[0].mxu1 }
  0xda   :  { %v94_v8 = vpop.f32.mrb[0].mxu0  ;;  %v6731_v9 = vpop.f32.mrb[1].mxu1 }
  0xdb   :  { %v143_v10 = vadd.f32 %v142_v6, %v94_v8  ;;  %v6725_v11 = vpop.f32.mrb[1].mxu0  ;;  %v145_v12 = vpop.f32.mrb[2].mxu1 }
  0xdc   :  { %v97_v13 = vpop.f32.mrb[2].mxu0  ;;  %v6732_v14 = vpop.f32.mrb[3].mxu1 }
  0xdd   :  { %v154_v15 = vadd.f32 %v7718_v7, %v143_v10  ;;  %v6726_v16 = vpop.f32.mrb[3].mxu0 }
  0xdf   :  { %7310 = vtanh.f32 %v154_v15  ;;  %v6321_v18 = vmul.f32 -1.442695, %v154_v15 }
  0xe1   :  { %7312 = vpow2.f32 %v6321_v18  ;;  %v271_v32 = vpop.f32.mrb[4].mxu1 }
  0xe2   :  { %v6743_v33 = vpop.f32.mrb[5].mxu1 }
  0xe3   :  { %v274_v34 = vpop.f32.mrb[6].mxu1 }
  0xe4   :  { %v6744_v35 = vpop.f32.mrb[7].mxu1 }
  0xe9   :  { %v7311_v17 = vpop.eup %7310  ;;  %v394_v58 = vpop.f32.mrb[8].mxu1 }
  0xea   :  { %164 = vrot.lane.b32.xlu0 %v7311_v17, %s7607_s15  ;;  %v6755_v59 = vpop.f32.mrb[9].mxu1 }
  0xeb   :  { %v7313_v19 = vpop.eup %7312  ;;  %v397_v60 = vpop.f32.mrb[10].mxu1 }
  0xec   :  { %v158_v20 = vadd.f32 1.0, %v7313_v19  ;;  %v6756_v61 = vpop.f32.mrb[11].mxu1 }
  0xee   :  { %7314 = vrcp.f32 %v158_v20  ;;  %v6330_v20 = vld [vmem:[%s9083_s0 + $0x3] sm:$0x1] }
  0xef   :  { %6766 = vmatmul.mubr.msk.bf16.vlgmr.msra.gmra.mrb[12].mxu1 %vm100_vm2, %v6330_v20 }
  0xf0   :  { %6776 = vmatpush3.bf16.msra.mxu1 %v7685_v2  ;;  %6777 = vmatprep.mubr.msk.bf16.mxu1 %vm7605_vm1, %v7604_v0 }
  0xf1   :  { %6787 = vmatprep.subr.bf16.mxu1 %v7604_v0 }
  0xf8   :  { %v7315_v21 = vpop.eup %7314 }
  0xf9   :  { %v162_v24 = vmul.f32 0.0, %v7315_v21 }
 0x15c   :  { %v165_v22 = vpop.permute.xlu0 %164 }
 0x15d   :  { %v167_v23 = vmul.f32 %v7315_v21, %v165_v22 }
 0x15f   :  { %169 = vrot.lane.b32.xlu0 %v167_v23, %s7608_s16 }
 0x1d1   :  { %v170_v25 = vpop.permute.xlu0 %169 }
 0x1d2   :  { %v172_v26 = vadd.f32 %v170_v25, %v162_v24  ;;  %v517_v25 = vpop.f32.mrb[12].mxu1 }
 0x1d4   :  { %7316 = vtanh.f32 %v172_v26 }
 0x1de   :  { %v7317_v28 = vpop.eup %7316 }
 0x1df   :  { %175 = vrot.lane.b32.xlu1 %v7317_v28, %s7608_s16 }
 0x251   :  { %v176_v29 = vpop.permute.xlu1 %175 }
 0x252   :  { %v7732_v30 = vmul.f32 %v7315_v21, %v176_v29 }
 0x254   :  { %v187_v31 = vpack.c.bf16 %v7732_v30, %v7732_v30 }
 0x256   :  { %189 = vrot.lane.b32.xlu1 %v187_v31, %s7609_s19 }
 0x2c8   :  { %v190_v36 = vpop.permute.xlu1 %189 }
 0x2c9   :  { %6736 = vmatmul.mubr.msk.bf16.vlgmr.msra.gmra.mrb[4].mxu0 %vm56_vm3, %v190_v36 }
 0x2ca   :  { %6746 = vmatpush3.bf16.msra.mxu0 %v7690_v3  ;;  %6747 = vmatprep.mubr.msk.bf16.mxu0 %vm7605_vm1, %v7604_v0 }
 0x2cb   :  { %6757 = vmatprep.subr.bf16.mxu0 %v7604_v0 }
 0x39c   :  { %v228_v37 = vpop.f32.mrb[4].mxu0 }
 0x39d   :  { %v272_v38 = vadd.f32 %v271_v32, %v228_v37  ;;  %v6737_v39 = vpop.f32.mrb[5].mxu0 }
 0x39e   :  { %v231_v40 = vpop.f32.mrb[6].mxu0 }
 0x39f   :  { %v277_v41 = vadd.f32 %v7718_v7, %v272_v38  ;;  %v6738_v42 = vpop.f32.mrb[7].mxu0 }
 0x3a1   :  { %7318 = vtanh.f32 %v277_v41  ;;  %v6325_v44 = vmul.f32 -1.442695, %v277_v41 }
 0x3a3   :  { %7320 = vpow2.f32 %v6325_v44 }
 0x3ab   :  { %v7319_v43 = vpop.eup %7318 }
 0x3ac   :  { %287 = vrot.lane.b32.xlu0 %v7319_v43, %s7607_s15 }
 0x3ad   :  { %v7321_v45 = vpop.eup %7320 }
 0x3ae   :  { %v281_v46 = vadd.f32 1.0, %v7321_v45 }
 0x3b0   :  { %7322 = vrcp.f32 %v281_v46 }
 0x3ba   :  { %v7323_v47 = vpop.eup %7322 }
 0x3bb   :  { %v285_v50 = vmul.f32 %v7323_v47, %v172_v26  ;;  %v6767_v26 = vpop.f32.mrb[13].mxu1 }
 0x3bc   :  { %v520_v27 = vpop.f32.mrb[14].mxu1 }
 0x3bd   :  { %v6768_v28 = vpop.f32.mrb[15].mxu1 }
 0x41e   :  { %v288_v48 = vpop.permute.xlu0 %287 }
 0x41f   :  { %v290_v49 = vmul.f32 %v7323_v47, %v288_v48 }
 0x421   :  { %292 = vrot.lane.b32.xlu1 %v290_v49, %s7608_s16 }
 0x493   :  { %v293_v51 = vpop.permute.xlu1 %292 }
 0x494   :  { %v295_v52 = vadd.f32 %v293_v51, %v285_v50 }
 0x496   :  { %7324 = vtanh.f32 %v295_v52 }
 0x4a0   :  { %v7325_v54 = vpop.eup %7324 }
 0x4a1   :  { %298 = vrot.lane.b32.xlu0 %v7325_v54, %s7608_s16 }
 0x513   :  { %v299_v55 = vpop.permute.xlu0 %298 }
 0x514   :  { %v7754_v56 = vmul.f32 %v7323_v47, %v299_v55  ;;  %v6334_v47 = vld [vmem:[%s9083_s0 + $0x4] sm:$0x1] }
 0x515   :  { %6778 = vmatmul.mubr.msk.bf16.vlgmr.msra.gmra.mrb[16].mxu1 %vm100_vm2, %v6334_v47 }
 0x516   :  { %v310_v57 = vpack.c.bf16 %v7754_v56, %v7754_v56  ;;  %6788 = vmatpush3.bf16.msra.mxu1 %v7685_v2  ;;  %6789 = vmatprep.mubr.msk.bf16.mxu1 %vm7605_vm1, %v7604_v0 }
 0x517   :  { %6799 = vmatprep.subr.bf16.mxu1 %v7604_v0 }
 0x518   :  { %312 = vrot.lane.b32.xlu1 %v310_v57, %s7609_s19 }
 0x58a   :  { %v313_v62 = vpop.permute.xlu1 %312 }
 0x58b   :  { %6748 = vmatmul.mubr.msk.bf16.vlgmr.msra.gmra.mrb[8].mxu0 %vm56_vm3, %v313_v62 }
 0x58c   :  { %6758 = vmatpush3.bf16.msra.mxu0 %v7690_v3  ;;  %6759 = vmatprep.mubr.msk.bf16.mxu0 %vm7605_vm1, %v7604_v0 }
 0x58d   :  { %6769 = vmatprep.subr.bf16.mxu0 %v7604_v0 }
 0x65e   :  { %v351_v63 = vpop.f32.mrb[8].mxu0 }
 0x65f   :  { %v395_v1 = vadd.f32 %v394_v58, %v351_v63  ;;  %v6749_v4 = vpop.f32.mrb[9].mxu0 }
 0x660   :  { %v354_v6 = vpop.f32.mrb[10].mxu0 }
 0x661   :  { %v400_v8 = vadd.f32 %v7718_v7, %v395_v1  ;;  %v6750_v9 = vpop.f32.mrb[11].mxu0 }
 0x663   :  { %7326 = vtanh.f32 %v400_v8  ;;  %v6329_v11 = vmul.f32 -1.442695, %v400_v8 }
 0x665   :  { %7328 = vpow2.f32 %v6329_v11 }
 0x66d   :  { %v7327_v10 = vpop.eup %7326 }
 0x66e   :  { %410 = vrot.lane.b32.xlu0 %v7327_v10, %s7607_s15 }
 0x66f   :  { %v7329_v12 = vpop.eup %7328 }
 0x670   :  { %v404_v13 = vadd.f32 1.0, %v7329_v12 }
 0x672   :  { %7330 = vrcp.f32 %v404_v13 }
 0x67c   :  { %v7331_v14 = vpop.eup %7330 }
 0x67d   :  { %v408_v17 = vmul.f32 %v7331_v14, %v295_v52  ;;  %v640_v52 = vpop.f32.mrb[16].mxu1 }
 0x67e   :  { %v6779_v53 = vpop.f32.mrb[17].mxu1 }
 0x67f   :  { %v643_v54 = vpop.f32.mrb[18].mxu1 }
 0x680   :  { %v6780_v55 = vpop.f32.mrb[19].mxu1 }
 0x6e0   :  { %v411_v15 = vpop.permute.xlu0 %410 }
 0x6e1   :  { %v413_v16 = vmul.f32 %v7331_v14, %v411_v15  ;;  %v6338_v15 = vld [vmem:[%s9083_s0 + $0x5] sm:$0x1] }
 0x6e2   :  { %6790 = vmatmul.mubr.msk.bf16.vlgmr.msra.gmra.mrb[20].mxu1 %vm100_vm2, %v6338_v15 }
 0x6e3   :  { %415 = vrot.lane.b32.xlu1 %v413_v16, %s7608_s16  ;;  %6800 = vmatpush3.bf16.msra.mxu1 %v7685_v2 }
 0x6e4   :  { %6801 = vmatprep.mubr.msk.bf16.mxu1 %vm7605_vm1, %v7604_v0  ;;  %6811 = vmatprep.subr.bf16.mxu1 %v7604_v0 }
 0x755   :  { %v416_v18 = vpop.permute.xlu1 %415 }
 0x756   :  { %v418_v19 = vadd.f32 %v416_v18, %v408_v17 }
 0x758   :  { %7332 = vtanh.f32 %v418_v19 }
 0x762   :  { %v7333_v21 = vpop.eup %7332 }
 0x763   :  { %421 = vrot.lane.b32.xlu0 %v7333_v21, %s7608_s16 }
 0x7b5   :  { %v763_v20 = vpop.f32.mrb[20].mxu1 }
 0x7b6   :  { %v6791_v21 = vpop.f32.mrb[21].mxu1 }
 0x7d5   :  { %v422_v22 = vpop.permute.xlu0 %421 }
 0x7d6   :  { %v7776_v23 = vmul.f32 %v7331_v14, %v422_v22  ;;  %v766_v22 = vpop.f32.mrb[22].mxu1 }
 0x7d8   :  { %v433_v24 = vpack.c.bf16 %v7776_v23, %v7776_v23 }
 0x7da   :  { %435 = vrot.lane.b32.xlu1 %v433_v24, %s7609_s19  ;;  %v6792_v24 = vpop.f32.mrb[23].mxu1 }
 0x84c   :  { %v436_v29 = vpop.permute.xlu1 %435 }
 0x84d   :  { %6760 = vmatmul.mubr.msk.bf16.vlgmr.msra.gmra.mrb[12].mxu0 %vm56_vm3, %v436_v29 }
 0x84e   :  { %6770 = vmatpush3.bf16.msra.mxu0 %v7690_v3  ;;  %6771 = vmatprep.mubr.msk.bf16.mxu0 %vm7605_vm1, %v7604_v0 }
 0x84f   :  { %6781 = vmatprep.subr.bf16.mxu0 %v7604_v0 }
 0x920   :  { %v474_v31 = vpop.f32.mrb[12].mxu0 }
 0x921   :  { %v518_v32 = vadd.f32 %v517_v25, %v474_v31  ;;  %v6761_v33 = vpop.f32.mrb[13].mxu0 }
 0x922   :  { %v477_v34 = vpop.f32.mrb[14].mxu0 }
 0x923   :  { %v523_v35 = vadd.f32 %v7718_v7, %v518_v32  ;;  %v6762_v36 = vpop.f32.mrb[15].mxu0 }
 0x925   :  { %7334 = vtanh.f32 %v523_v35  ;;  %v6333_v38 = vmul.f32 -1.442695, %v523_v35 }
 0x927   :  { %7336 = vpow2.f32 %v6333_v38 }
 0x92f   :  { %v7335_v37 = vpop.eup %7334 }
 0x930   :  { %533 = vrot.lane.b32.xlu0 %v7335_v37, %s7607_s15 }
 0x931   :  { %v7337_v39 = vpop.eup %7336 }
 0x932   :  { %v527_v40 = vadd.f32 1.0, %v7337_v39 }
 0x934   :  { %7338 = vrcp.f32 %v527_v40 }
 0x93e   :  { %v7339_v41 = vpop.eup %7338 }
 0x93f   :  { %v531_v44 = vmul.f32 %v7339_v41, %v418_v19 }
 0x9a2   :  { %v534_v42 = vpop.permute.xlu0 %533 }
 0x9a3   :  { %v536_v43 = vmul.f32 %v7339_v41, %v534_v42 }
 0x9a5   :  { %538 = vrot.lane.b32.xlu1 %v536_v43, %s7608_s16  ;;  %v6342_v43 = vld [vmem:[%s9083_s0 + $0x6] sm:$0x1] }
 0x9a6   :  { %6802 = vmatmul.mubr.msk.bf16.vlgmr.msra.gmra.mrb[24].mxu1 %vm100_vm2, %v6342_v43 }
 0x9a7   :  { %6812 = vmatpush3.bf16.msra.mxu1 %v7685_v2  ;;  %6813 = vmatprep.mubr.msk.bf16.mxu1 %vm7605_vm1, %v7604_v0 }
 0x9a8   :  { %6823 = vmatprep.subr.bf16.mxu1 %v7604_v0 }
 0xa17   :  { %v539_v45 = vpop.permute.xlu1 %538 }
 0xa18   :  { %v541_v46 = vadd.f32 %v539_v45, %v531_v44 }
 0xa1a   :  { %7340 = vtanh.f32 %v541_v46 }
 0xa24   :  { %v7341_v48 = vpop.eup %7340 }
 0xa25   :  { %544 = vrot.lane.b32.xlu0 %v7341_v48, %s7608_s16 }
 0xa79   :  { %v886_v48 = vpop.f32.mrb[24].mxu1 }
 0xa97   :  { %v545_v49 = vpop.permute.xlu0 %544 }
 0xa98   :  { %v7798_v50 = vmul.f32 %v7339_v41, %v545_v49  ;;  %v6803_v49 = vpop.f32.mrb[25].mxu1 }
 0xa9a   :  { %v556_v51 = vpack.c.bf16 %v7798_v50, %v7798_v50 }
 0xa9c   :  { %558 = vrot.lane.b32.xlu1 %v556_v51, %s7609_s19  ;;  %v889_v51 = vpop.f32.mrb[26].mxu1 }
 0xb0e   :  { %v559_v57 = vpop.permute.xlu1 %558 }
 0xb0f   :  { %6772 = vmatmul.mubr.msk.bf16.vlgmr.msra.gmra.mrb[16].mxu0 %vm56_vm3, %v559_v57 }
 0xb10   :  { %6782 = vmatpush3.bf16.msra.mxu0 %v7690_v3  ;;  %6783 = vmatprep.mubr.msk.bf16.mxu0 %vm7605_vm1, %v7604_v0 }
 0xb11   :  { %6793 = vmatprep.subr.bf16.mxu0 %v7604_v0 }
 0xbe2   :  { %v597_v58 = vpop.f32.mrb[16].mxu0 }
 0xbe3   :  { %v641_v59 = vadd.f32 %v640_v52, %v597_v58  ;;  %v6773_v60 = vpop.f32.mrb[17].mxu0  ;;  %v6804_v52 = vpop.f32.mrb[27].mxu1 }
 0xbe4   :  { %v600_v61 = vpop.f32.mrb[18].mxu0 }
 0xbe5   :  { %v646_v62 = vadd.f32 %v7718_v7, %v641_v59  ;;  %v6774_v63 = vpop.f32.mrb[19].mxu0 }
 0xbe7   :  { %7342 = vtanh.f32 %v646_v62  ;;  %v6337_v4 = vmul.f32 -1.442695, %v646_v62 }
 0xbe9   :  { %7344 = vpow2.f32 %v6337_v4 }
 0xbf1   :  { %v7343_v1 = vpop.eup %7342 }
 0xbf2   :  { %656 = vrot.lane.b32.xlu0 %v7343_v1, %s7607_s15 }
 0xbf3   :  { %v7345_v6 = vpop.eup %7344 }
 0xbf4   :  { %v650_v8 = vadd.f32 1.0, %v7345_v6 }
 0xbf6   :  { %7346 = vrcp.f32 %v650_v8 }
 0xc00   :  { %v7347_v9 = vpop.eup %7346 }
 0xc01   :  { %v654_v12 = vmul.f32 %v7347_v9, %v541_v46 }
 0xc64   :  { %v657_v10 = vpop.permute.xlu0 %656 }
 0xc65   :  { %v659_v11 = vmul.f32 %v7347_v9, %v657_v10 }
 0xc67   :  { %661 = vrot.lane.b32.xlu1 %v659_v11, %s7608_s16 }
 0xcd9   :  { %v662_v13 = vpop.permute.xlu1 %661 }
 0xcda   :  { %v664_v14 = vadd.f32 %v662_v13, %v654_v12  ;;  %v6346_v12 = vld [vmem:[%s9083_s0 + $0x7] sm:$0x1] }
 0xcdb   :  { %6814 = vmatmul.mubr.msk.bf16.vlgmr.msra.gmra.mrb[28].mxu1 %vm100_vm2, %v6346_v12 }
 0xcdc   :  { %7348 = vtanh.f32 %v664_v14  ;;  %6824 = vmatpush3.bf16.msra.mxu1 %v7685_v2  ;;  %6825 = vmatprep.mubr.msk.bf16.mxu1 %vm7605_vm1, %v7604_v0 }
 0xcdd   :  { %6835 = vmatprep.subr.bf16.mxu1 %v7604_v0 }
 0xce6   :  { %v7349_v16 = vpop.eup %7348 }
 0xce7   :  { %667 = vrot.lane.b32.xlu0 %v7349_v16, %s7608_s16 }
 0xd59   :  { %v668_v17 = vpop.permute.xlu0 %667 }
 0xd5a   :  { %v7820_v18 = vmul.f32 %v7347_v9, %v668_v17 }
 0xd5c   :  { %v679_v19 = vpack.c.bf16 %v7820_v18, %v7820_v18 }
 0xd5e   :  { %681 = vrot.lane.b32.xlu1 %v679_v19, %s7609_s19 }
 0xdae   :  { %v1009_v17 = vpop.f32.mrb[28].mxu1 }
 0xdaf   :  { %v6815_v19 = vpop.f32.mrb[29].mxu1 }
 0xdd0   :  { %v682_v25 = vpop.permute.xlu1 %681 }
 0xdd1   :  { %6784 = vmatmul.mubr.msk.bf16.vlgmr.msra.gmra.mrb[20].mxu0 %vm56_vm3, %v682_v25 }
 0xdd2   :  { %6794 = vmatpush3.bf16.msra.mxu0 %v7690_v3  ;;  %6795 = vmatprep.mubr.msk.bf16.mxu0 %vm7605_vm1, %v7604_v0 }
 0xdd3   :  { %6805 = vmatprep.subr.bf16.mxu0 %v7604_v0 }
 0xea4   :  { %v720_v26 = vpop.f32.mrb[20].mxu0 }
 0xea5   :  { %v764_v27 = vadd.f32 %v763_v20, %v720_v26  ;;  %v6785_v28 = vpop.f32.mrb[21].mxu0  ;;  %v1012_v20 = vpop.f32.mrb[30].mxu1 }
 0xea6   :  { %v723_v29 = vpop.f32.mrb[22].mxu0  ;;  %v6816_v21 = vpop.f32.mrb[31].mxu1 }
 0xea7   :  { %v769_v31 = vadd.f32 %v7718_v7, %v764_v27  ;;  %v6786_v32 = vpop.f32.mrb[23].mxu0 }
 0xea9   :  { %7350 = vtanh.f32 %v769_v31  ;;  %v6341_v34 = vmul.f32 -1.442695, %v769_v31 }
 0xeab   :  { %7352 = vpow2.f32 %v6341_v34 }
 0xeb3   :  { %v7351_v33 = vpop.eup %7350 }
 0xeb4   :  { %779 = vrot.lane.b32.xlu0 %v7351_v33, %s7607_s15 }
 0xeb5   :  { %v7353_v35 = vpop.eup %7352 }
 0xeb6   :  { %v773_v36 = vadd.f32 1.0, %v7353_v35 }
 0xeb8   :  { %7354 = vrcp.f32 %v773_v36 }
 0xec2   :  { %v7355_v37 = vpop.eup %7354 }
 0xec3   :  { %v777_v40 = vmul.f32 %v7355_v37, %v664_v14 }
 0xf26   :  { %v780_v38 = vpop.permute.xlu0 %779 }
 0xf27   :  { %v782_v39 = vmul.f32 %v7355_v37, %v780_v38 }
 0xf29   :  { %784 = vrot.lane.b32.xlu1 %v782_v39, %s7608_s16 }
 0xf9b   :  { %v785_v41 = vpop.permute.xlu1 %784 }
 0xf9c   :  { %v787_v42 = vadd.f32 %v785_v41, %v777_v40  ;;  %v6350_v41 = vld [vmem:[%s9083_s0 + $0x8] sm:$0x1] }
 0xf9d   :  { %6826 = vmatmul.mubr.msk.bf16.vlgmr.msra.gmra.mrb[32].mxu1 %vm100_vm2, %v6350_v41  ;;  %v6358_v41 = vld [vmem:[%s9083_s0 + $0xa] sm:$0x1] }
 0xf9e   :  { %7356 = vtanh.f32 %v787_v42  ;;  %6836 = vmatpush3.bf16.msra.mxu1 %v7685_v2  ;;  %6837 = vmatprep.mubr.msk.bf16.mxu1 %vm7605_vm1, %v7604_v0 }
 0xf9f   :  { %6847 = vmatprep.subr.bf16.mxu1 %v7604_v0 }
 0xfa8   :  { %v7357_v44 = vpop.eup %7356 }
 0xfa9   :  { %790 = vrot.lane.b32.xlu0 %v7357_v44, %s7608_s16 }
0x101b   :  { %v791_v45 = vpop.permute.xlu0 %790 }
0x101c   :  { %v7842_v46 = vmul.f32 %v7355_v37, %v791_v45 }
0x101e   :  { %v802_v47 = vpack.c.bf16 %v7842_v46, %v7842_v46 }
0x1020   :  { %804 = vrot.lane.b32.xlu1 %v802_v47, %s7609_s19 }
0x1070   :  { %v1132_v47 = vpop.f32.mrb[32].mxu1 }
0x1092   :  { %v805_v53 = vpop.permute.xlu1 %804 }
0x1093   :  { %6796 = vmatmul.mubr.msk.bf16.vlgmr.msra.gmra.mrb[24].mxu0 %vm56_vm3, %v805_v53 }
0x1094   :  { %6806 = vmatpush3.bf16.msra.mxu0 %v7690_v3  ;;  %6807 = vmatprep.mubr.msk.bf16.mxu0 %vm7605_vm1, %v7604_v0 }
0x1095   :  { %6817 = vmatprep.subr.bf16.mxu0 %v7604_v0 }
0x1166   :  { %v843_v54 = vpop.f32.mrb[24].mxu0 }
0x1167   :  { %v887_v55 = vadd.f32 %v886_v48, %v843_v54  ;;  %v6797_v57 = vpop.f32.mrb[25].mxu0  ;;  %v6827_v48 = vpop.f32.mrb[33].mxu1 }
0x1168   :  { %v846_v58 = vpop.f32.mrb[26].mxu0  ;;  %v1135_v49 = vpop.f32.mrb[34].mxu1 }
0x1169   :  { %v892_v59 = vadd.f32 %v7718_v7, %v887_v55  ;;  %v6798_v60 = vpop.f32.mrb[27].mxu0  ;;  %v6828_v51 = vpop.f32.mrb[35].mxu1 }
0x116b   :  { %7358 = vtanh.f32 %v892_v59  ;;  %v6345_v62 = vmul.f32 -1.442695, %v892_v59 }
0x116d   :  { %7360 = vpow2.f32 %v6345_v62 }
0x1175   :  { %v7359_v61 = vpop.eup %7358 }
0x1176   :  { %902 = vrot.lane.b32.xlu0 %v7359_v61, %s7607_s15 }
0x1177   :  { %v7361_v63 = vpop.eup %7360 }
0x1178   :  { %v896_v1 = vadd.f32 1.0, %v7361_v63 }
0x117a   :  { %7362 = vrcp.f32 %v896_v1 }
0x1184   :  { %v7363_v4 = vpop.eup %7362 }
0x1185   :  { %v900_v9 = vmul.f32 %v7363_v4, %v787_v42 }
0x11e8   :  { %v903_v6 = vpop.permute.xlu0 %902 }
0x11e9   :  { %v905_v8 = vmul.f32 %v7363_v4, %v903_v6 }
0x11eb   :  { %907 = vrot.lane.b32.xlu1 %v905_v8, %s7608_s16 }
0x125d   :  { %v908_v10 = vpop.permute.xlu1 %907 }
0x125e   :  { %v910_v11 = vadd.f32 %v908_v10, %v900_v9 }
0x1260   :  { %7364 = vtanh.f32 %v910_v11 }
0x126a   :  { %v7365_v13 = vpop.eup %7364 }
0x126b   :  { %913 = vrot.lane.b32.xlu0 %v7365_v13, %s7608_s16 }
0x12dd   :  { %v914_v14 = vpop.permute.xlu0 %913 }
0x12de   :  { %v7864_v15 = vmul.f32 %v7363_v4, %v914_v14 }
0x12e0   :  { %v925_v16 = vpack.c.bf16 %v7864_v15, %v7864_v15 }
0x12e2   :  { %927 = vrot.lane.b32.xlu1 %v925_v16, %s7609_s19 }
0x1354   :  { %v928_v22 = vpop.permute.xlu1 %927 }
0x1355   :  { %6808 = vmatmul.mubr.msk.bf16.vlgmr.msra.gmra.mrb[28].mxu0 %vm56_vm3, %v928_v22 }
0x1356   :  { %6818 = vmatpush3.bf16.msra.mxu0 %v7690_v3  ;;  %6819 = vmatprep.mubr.msk.bf16.mxu0 %vm7605_vm1, %v7604_v0 }
0x1357   :  { %6829 = vmatprep.subr.bf16.mxu0 %v7604_v0 }
0x1428   :  { %v966_v24 = vpop.f32.mrb[28].mxu0 }
0x1429   :  { %v1010_v25 = vadd.f32 %v1009_v17, %v966_v24  ;;  %v6809_v26 = vpop.f32.mrb[29].mxu0 }
0x142a   :  { %v969_v27 = vpop.f32.mrb[30].mxu0 }
0x142b   :  { %v1015_v28 = vadd.f32 %v7718_v7, %v1010_v25  ;;  %v6810_v29 = vpop.f32.mrb[31].mxu0 }
0x142d   :  { %7366 = vtanh.f32 %v1015_v28  ;;  %v6349_v32 = vmul.f32 -1.442695, %v1015_v28 }
0x142f   :  { %7368 = vpow2.f32 %v6349_v32 }
0x1437   :  { %v7367_v31 = vpop.eup %7366 }
0x1438   :  { %1025 = vrot.lane.b32.xlu0 %v7367_v31, %s7607_s15 }
0x1439   :  { %v7369_v33 = vpop.eup %7368 }
0x143a   :  { %v1019_v34 = vadd.f32 1.0, %v7369_v33 }
0x143c   :  { %7370 = vrcp.f32 %v1019_v34 }
0x1446   :  { %v7371_v35 = vpop.eup %7370 }
0x1447   :  { %v1023_v38 = vmul.f32 %v7371_v35, %v910_v11  ;;  %v6354_v11 = vld [vmem:[%s9083_s0 + $0x9] sm:$0x1] }
0x1448   :  { %6838 = vmatmul.mubr.msk.bf16.vlgmr.msra.gmra.mrb[36].mxu1 %vm100_vm2, %v6354_v11 }
0x1449   :  { %6848 = vmatpush3.bf16.msra.mxu1 %v7685_v2  ;;  %6849 = vmatprep.mubr.msk.bf16.mxu1 %vm7605_vm1, %v7604_v0 }
0x144a   :  { %6859 = vmatprep.subr.bf16.mxu1 %v7604_v0 }
0x1450   :  { %6850 = vmatmul.mubr.msk.bf16.vlgmr.msra.gmra.mrb[40].mxu1 %vm100_vm2, %v6358_v41 }
0x1451   :  { %6860 = vmatpush3.bf16.msra.mxu1 %v7685_v2  ;;  %6861 = vmatprep.mubr.msk.bf16.mxu1 %vm7605_vm1, %v7604_v0 }
0x1452   :  { %6871 = vmatprep.subr.bf16.mxu1 %v7604_v0 }
0x14aa   :  { %v1026_v36 = vpop.permute.xlu0 %1025 }
0x14ab   :  { %v1028_v37 = vmul.f32 %v7371_v35, %v1026_v36 }
0x14ad   :  { %1030 = vrot.lane.b32.xlu1 %v1028_v37, %s7608_s16 }
0x151b   :  { %v1255_v17 = vpop.f32.mrb[36].mxu1 }
0x151c   :  { %v6839_v19 = vpop.f32.mrb[37].mxu1 }
0x151d   :  { %v1258_v20 = vpop.f32.mrb[38].mxu1 }
0x151e   :  { %v6840_v21 = vpop.f32.mrb[39].mxu1 }
0x151f   :  { %v1031_v39 = vpop.permute.xlu1 %1030 }
0x1520   :  { %v1033_v40 = vadd.f32 %v1031_v39, %v1023_v38 }
0x1522   :  { %7372 = vtanh.f32 %v1033_v40 }
0x1523   :  { %v1378_v48 = vpop.f32.mrb[40].mxu1 }
0x1524   :  { %v6851_v49 = vpop.f32.mrb[41].mxu1 }
0x1525   :  { %v1381_v51 = vpop.f32.mrb[42].mxu1 }
0x152c   :  { %v7373_v42 = vpop.eup %7372 }
0x152d   :  { %1036 = vrot.lane.b32.xlu0 %v7373_v42, %s7608_s16 }
0x159f   :  { %v1037_v43 = vpop.permute.xlu0 %1036 }
0x15a0   :  { %v7886_v44 = vmul.f32 %v7371_v35, %v1037_v43 }
0x15a2   :  { %v1048_v45 = vpack.c.bf16 %v7886_v44, %v7886_v44 }
0x15a4   :  { %1050 = vrot.lane.b32.xlu1 %v1048_v45, %s7609_s19 }
0x1616   :  { %v1051_v52 = vpop.permute.xlu1 %1050 }
0x1617   :  { %6820 = vmatmul.mubr.msk.bf16.vlgmr.msra.gmra.mrb[32].mxu0 %vm56_vm3, %v1051_v52  ;;  %v6852_v52 = vpop.f32.mrb[43].mxu1 }
0x1618   :  { %6830 = vmatpush3.bf16.msra.mxu0 %v7690_v3  ;;  %6831 = vmatprep.mubr.msk.bf16.mxu0 %vm7605_vm1, %v7604_v0 }
0x1619   :  { %6841 = vmatprep.subr.bf16.mxu0 %v7604_v0 }
0x16ea   :  { %v1089_v53 = vpop.f32.mrb[32].mxu0 }
0x16eb   :  { %v1133_v54 = vadd.f32 %v1132_v47, %v1089_v53  ;;  %v6821_v55 = vpop.f32.mrb[33].mxu0 }
0x16ec   :  { %v1092_v57 = vpop.f32.mrb[34].mxu0 }
0x16ed   :  { %v1138_v58 = vadd.f32 %v7718_v7, %v1133_v54  ;;  %v6822_v59 = vpop.f32.mrb[35].mxu0 }
0x16ef   :  { %7374 = vtanh.f32 %v1138_v58  ;;  %v6353_v61 = vmul.f32 -1.442695, %v1138_v58 }
0x16f1   :  { %7376 = vpow2.f32 %v6353_v61 }
0x16f9   :  { %v7375_v60 = vpop.eup %7374 }
0x16fa   :  { %1148 = vrot.lane.b32.xlu0 %v7375_v60, %s7607_s15 }
0x16fb   :  { %v7377_v62 = vpop.eup %7376 }
0x16fc   :  { %v1142_v63 = vadd.f32 1.0, %v7377_v62 }
0x16fe   :  { %7378 = vrcp.f32 %v1142_v63 }
0x1708   :  { %v7379_v1 = vpop.eup %7378 }
0x1709   :  { %v1146_v8 = vmul.f32 %v7379_v1, %v1033_v40 }
0x176c   :  { %v1149_v4 = vpop.permute.xlu0 %1148 }
0x176d   :  { %v1151_v6 = vmul.f32 %v7379_v1, %v1149_v4 }
0x176f   :  { %1153 = vrot.lane.b32.xlu1 %v1151_v6, %s7608_s16 }
0x17e1   :  { %v1154_v9 = vpop.permute.xlu1 %1153 }
0x17e2   :  { %v1156_v10 = vadd.f32 %v1154_v9, %v1146_v8 }
0x17e4   :  { %7380 = vtanh.f32 %v1156_v10 }
0x17ee   :  { %v7381_v12 = vpop.eup %7380 }
0x17ef   :  { %1159 = vrot.lane.b32.xlu0 %v7381_v12, %s7608_s16  ;;  %v6362_v12 = vld [vmem:[%s9083_s0 + $0xb] sm:$0x1] }
0x17f0   :  { %6862 = vmatmul.mubr.msk.bf16.vlgmr.msra.gmra.mrb[44].mxu1 %vm100_vm2, %v6362_v12 }
0x17f1   :  { %6872 = vmatpush3.bf16.msra.mxu1 %v7685_v2  ;;  %6873 = vmatprep.mubr.msk.bf16.mxu1 %vm7605_vm1, %v7604_v0 }
0x17f2   :  { %6883 = vmatprep.subr.bf16.mxu1 %v7604_v0 }
0x1861   :  { %v1160_v13 = vpop.permute.xlu0 %1159 }
0x1862   :  { %v7908_v14 = vmul.f32 %v7379_v1, %v1160_v13 }
0x1864   :  { %v1171_v16 = vpack.c.bf16 %v7908_v14, %v7908_v14 }
0x1866   :  { %1173 = vrot.lane.b32.xlu1 %v1171_v16, %s7609_s19 }
0x18c3   :  { %v1501_v20 = vpop.f32.mrb[44].mxu1 }
0x18c4   :  { %v6863_v21 = vpop.f32.mrb[45].mxu1 }
0x18d8   :  { %v1174_v22 = vpop.permute.xlu1 %1173 }
0x18d9   :  { %6832 = vmatmul.mubr.msk.bf16.vlgmr.msra.gmra.mrb[36].mxu0 %vm56_vm3, %v1174_v22  ;;  %v1504_v22 = vpop.f32.mrb[46].mxu1 }
0x18da   :  { %6842 = vmatpush3.bf16.msra.mxu0 %v7690_v3  ;;  %6843 = vmatprep.mubr.msk.bf16.mxu0 %vm7605_vm1, %v7604_v0 }
0x18db   :  { %6853 = vmatprep.subr.bf16.mxu0 %v7604_v0 }
0x19ac   :  { %v1212_v24 = vpop.f32.mrb[36].mxu0 }
0x19ad   :  { %v1256_v25 = vadd.f32 %v1255_v17, %v1212_v24  ;;  %v6833_v26 = vpop.f32.mrb[37].mxu0  ;;  %v6864_v24 = vpop.f32.mrb[47].mxu1 }
0x19ae   :  { %v1215_v27 = vpop.f32.mrb[38].mxu0 }
0x19af   :  { %v1261_v28 = vadd.f32 %v7718_v7, %v1256_v25  ;;  %v6834_v29 = vpop.f32.mrb[39].mxu0 }
0x19b1   :  { %7382 = vtanh.f32 %v1261_v28  ;;  %v6357_v32 = vmul.f32 -1.442695, %v1261_v28 }
0x19b3   :  { %7384 = vpow2.f32 %v6357_v32 }
0x19bb   :  { %v7383_v31 = vpop.eup %7382 }
0x19bc   :  { %1271 = vrot.lane.b32.xlu0 %v7383_v31, %s7607_s15 }
0x19bd   :  { %v7385_v33 = vpop.eup %7384 }
0x19be   :  { %v1265_v34 = vadd.f32 1.0, %v7385_v33 }
0x19c0   :  { %7386 = vrcp.f32 %v1265_v34 }
0x19ca   :  { %v7387_v35 = vpop.eup %7386 }
0x19cb   :  { %v1269_v38 = vmul.f32 %v7387_v35, %v1156_v10 }
0x1a2e   :  { %v1272_v36 = vpop.permute.xlu0 %1271 }
0x1a2f   :  { %v1274_v37 = vmul.f32 %v7387_v35, %v1272_v36 }
0x1a31   :  { %1276 = vrot.lane.b32.xlu1 %v1274_v37, %s7608_s16 }
0x1aa3   :  { %v1277_v39 = vpop.permute.xlu1 %1276 }
0x1aa4   :  { %v1279_v40 = vadd.f32 %v1277_v39, %v1269_v38 }
0x1aa6   :  { %7388 = vtanh.f32 %v1279_v40 }
0x1ab0   :  { %v7389_v42 = vpop.eup %7388 }
0x1ab1   :  { %1282 = vrot.lane.b32.xlu0 %v7389_v42, %s7608_s16 }
0x1b23   :  { %v1283_v43 = vpop.permute.xlu0 %1282 }
0x1b24   :  { %v7930_v45 = vmul.f32 %v7387_v35, %v1283_v43 }
0x1b26   :  { %v1294_v47 = vpack.c.bf16 %v7930_v45, %v7930_v45 }
0x1b28   :  { %1296 = vrot.lane.b32.xlu1 %v1294_v47, %s7609_s19 }
0x1b9a   :  { %v1297_v53 = vpop.permute.xlu1 %1296 }
0x1b9b   :  { %6844 = vmatmul.mubr.msk.bf16.vlgmr.msra.gmra.mrb[40].mxu0 %vm56_vm3, %v1297_v53 }
0x1b9c   :  { %6854 = vmatpush3.bf16.msra.mxu0 %v7690_v3  ;;  %6855 = vmatprep.mubr.msk.bf16.mxu0 %vm7605_vm1, %v7604_v0 }
0x1b9d   :  { %6865 = vmatprep.subr.bf16.mxu0 %v7604_v0 }
0x1c6e   :  { %v1335_v54 = vpop.f32.mrb[40].mxu0 }
0x1c6f   :  { %v1379_v55 = vadd.f32 %v1378_v48, %v1335_v54  ;;  %v6845_v57 = vpop.f32.mrb[41].mxu0 }
0x1c70   :  { %v1338_v58 = vpop.f32.mrb[42].mxu0 }
0x1c71   :  { %v1384_v59 = vadd.f32 %v7718_v7, %v1379_v55  ;;  %v6846_v60 = vpop.f32.mrb[43].mxu0  ;;  %v7983_v55 = vld [vmem:[%s9082_s2] sm:$0xff]  }
0x1c73   :  { %7390 = vtanh.f32 %v1384_v59  ;;  %v6361_v62 = vmul.f32 -1.442695, %v1384_v59 }
0x1c75   :  { %7392 = vpow2.f32 %v6361_v62 }
0x1c7d   :  { %v7391_v61 = vpop.eup %7390 }
0x1c7e   :  { %1394 = vrot.lane.b32.xlu0 %v7391_v61, %s7607_s15  ;;  %v7992_v61 = vld [vmem:[%s9084_s3] ss:$0 sm:$0xff] }
0x1c7f   :  { %v7393_v63 = vpop.eup %7392 }
0x1c80   :  { %v1388_v1 = vadd.f32 1.0, %v7393_v63 }
0x1c82   :  { %7394 = vrcp.f32 %v1388_v1 }
0x1c8c   :  { %v7395_v4 = vpop.eup %7394 }
0x1c8d   :  { %v1392_v9 = vmul.f32 %v7395_v4, %v1279_v40 }
0x1cf0   :  { %v1395_v6 = vpop.permute.xlu0 %1394 }
0x1cf1   :  { %v1397_v8 = vmul.f32 %v7395_v4, %v1395_v6 }
0x1cf3   :  { %1399 = vrot.lane.b32.xlu1 %v1397_v8, %s7608_s16 }
0x1d65   :  { %v1400_v10 = vpop.permute.xlu1 %1399 }
0x1d66   :  { %v1402_v11 = vadd.f32 %v1400_v10, %v1392_v9 }
0x1d68   :  { %7396 = vtanh.f32 %v1402_v11 }
0x1d72   :  { %v7397_v13 = vpop.eup %7396 }
0x1d73   :  { %1405 = vrot.lane.b32.xlu0 %v7397_v13, %s7608_s16 }
0x1de5   :  { %v1406_v16 = vpop.permute.xlu0 %1405 }
0x1de6   :  { %v7952_v17 = vmul.f32 %v7395_v4, %v1406_v16 }
0x1de8   :  { %v1417_v19 = vpack.c.bf16 %v7952_v17, %v7952_v17 }
0x1dea   :  { %1419 = vrot.lane.b32.xlu1 %v1417_v19, %s7609_s19  ;;  %v6370_v19 = vld [vmem:[%s9083_s0 + $0xd] sm:$0x1] }
0x1e5c   :  { %v1420_v25 = vpop.permute.xlu1 %1419 }
0x1e5d   :  { %6856 = vmatmul.mubr.msk.bf16.vlgmr.msra.gmra.mrb[44].mxu0 %vm56_vm3, %v1420_v25 }
0x1e5e   :  { %6866 = vmatpush3.bf16.msra.mxu0 %v7690_v3  ;;  %6867 = vmatprep.mubr.msk.bf16.mxu0 %vm7605_vm1, %v7604_v0 }
0x1e5f   :  { %6877 = vmatprep.subr.bf16.mxu0 %v7604_v0 }
0x1f30   :  { %v1458_v26 = vpop.f32.mrb[44].mxu0 }
0x1f31   :  { %v1502_v27 = vadd.f32 %v1501_v20, %v1458_v26  ;;  %v6857_v28 = vpop.f32.mrb[45].mxu0 }
0x1f32   :  { %v1461_v29 = vpop.f32.mrb[46].mxu0 }
0x1f33   :  { %v1507_v31 = vadd.f32 %v7718_v7, %v1502_v27  ;;  %v6858_v32 = vpop.f32.mrb[47].mxu0  ;;  %v6366_v7 = vld [vmem:[%s9083_s0 + $0xc] sm:$0x1] }
0x1f34   :  { %6874 = vmatmul.mubr.msk.bf16.vlgmr.msra.gmra.mrb[48].mxu1 %vm100_vm2, %v6366_v7 }
0x1f35   :  { %7398 = vtanh.f32 %v1507_v31  ;;  %v6365_v34 = vmul.f32 -1.442695, %v1507_v31  ;;  %6884 = vmatpush3.bf16.msra.mxu1 %v7685_v2  ;;  %6885 = vmatprep.mubr.msk.bf16.mxu1 %vm7605_vm1, %v7604_v0 }
0x1f36   :  { %6895 = vmatprep.subr.bf16.mxu1 %v7604_v0 }
0x1f37   :  { %7400 = vpow2.f32 %v6365_v34 }
0x1f3c   :  { %6886 = vmatmul.mubr.msk.bf16.vlgmr.msra.gmra.mrb[52].mxu1 %vm100_vm2, %v6370_v19 }
0x1f3d   :  { %6896 = vmatpush3.bf16.msra.mxu1 %v7685_v2  ;;  %6897 = vmatprep.mubr.msk.bf16.mxu1 %vm7605_vm1, %v7604_v0 }
0x1f3e   :  { %6907 = vmatprep.subr.bf16.mxu1 %v7604_v0 }
0x1f3f   :  { %v7399_v33 = vpop.eup %7398 }
0x1f40   :  { %1517 = vrot.lane.b32.xlu0 %v7399_v33, %s7607_s15 }
0x1f41   :  { %v7401_v35 = vpop.eup %7400 }
0x1f42   :  { %v1511_v3 = vadd.f32 1.0, %v7401_v35 }
0x1f44   :  { %7402 = vrcp.f32 %v1511_v3 }
0x1f4e   :  { %v7403_v36 = vpop.eup %7402 }
0x1f4f   :  { %v1515_v39 = vmul.f32 %v7403_v36, %v1402_v11 }
0x1fb2   :  { %v1518_v37 = vpop.permute.xlu0 %1517 }
0x1fb3   :  { %v1520_v38 = vmul.f32 %v7403_v36, %v1518_v37 }
0x1fb5   :  { %1522 = vrot.lane.b32.xlu1 %v1520_v38, %s7608_s16 }
0x2007   :  { %v1624_v49 = vpop.f32.mrb[48].mxu1 }
0x2008   :  { %v6875_v51 = vpop.f32.mrb[49].mxu1 }
0x2009   :  { %v1627_v52 = vpop.f32.mrb[50].mxu1 }
0x200a   :  { %v6876_v53 = vpop.f32.mrb[51].mxu1 }
0x200f   :  { %v1747_v25 = vpop.f32.mrb[52].mxu1 }
0x2010   :  { %v6887_v26 = vpop.f32.mrb[53].mxu1 }
0x2011   :  { %v1750_v27 = vpop.f32.mrb[54].mxu1 }
0x2012   :  { %v6888_v28 = vpop.f32.mrb[55].mxu1 }
0x2027   :  { %v1523_v40 = vpop.permute.xlu1 %1522 }
0x2028   :  { %v1525_v41 = vadd.f32 %v1523_v40, %v1515_v39 }
0x202a   :  { %7404 = vtanh.f32 %v1525_v41 }
0x2034   :  { %v7405_v42 = vpop.eup %7404 }
0x2035   :  { %1528 = vrot.lane.b32.xlu0 %v7405_v42, %s7608_s16 }
0x20a7   :  { %v1529_v43 = vpop.permute.xlu0 %1528 }
0x20a8   :  { %v7974_v47 = vmul.f32 %v7403_v36, %v1529_v43 }
0x20aa   :  { %v1540_v48 = vpack.c.bf16 %v7974_v47, %v7974_v47 }
0x20ac   :  { %1542 = vrot.lane.b32.xlu1 %v1540_v48, %s7609_s19 }
0x211e   :  { %v1543_v54 = vpop.permute.xlu1 %1542 }
0x211f   :  { %6868 = vmatmul.mubr.msk.bf16.vlgmr.msra.gmra.mrb[48].mxu0 %vm56_vm3, %v1543_v54 }
0x2120   :  { %6878 = vmatpush3.bf16.msra.mxu0 %v7983_v55  ;;  %6879 = vmatprep.mubr.msk.bf16.mxu0 %vm7605_vm1, %v7604_v0 }
0x2121   :  { %6889 = vmatprep.subr.bf16.mxu0 %v7604_v0 }
0x21f2   :  { %v1581_v57 = vpop.f32.mrb[48].mxu0 }
0x21f3   :  { %v1625_v58 = vadd.f32 %v1624_v49, %v1581_v57  ;;  %v6869_v59 = vpop.f32.mrb[49].mxu0  ;;  %v6374_v49 = vld [vmem:[%s9083_s0 + $0xe] sm:$0x1] }
0x21f4   :  { %v1584_v60 = vpop.f32.mrb[50].mxu0  ;;  %6898 = vmatmul.mubr.msk.bf16.vlgmr.msra.gmra.mrb[56].mxu1 %vm100_vm2, %v6374_v49  ;;  %v8091_v49 = vld [vmem:[%s9087_s6] ss:$0 sm:$0xff] }
0x21f5   :  { %v1630_v62 = vadd.f32 %v7992_v61, %v1625_v58  ;;  %v6870_v63 = vpop.f32.mrb[51].mxu0  ;;  %6908 = vmatpush3.bf16.msra.mxu1 %v7685_v2  ;;  %6909 = vmatprep.mubr.msk.bf16.mxu1 %vm7605_vm1, %v7604_v0 }
0x21f6   :  { %6919 = vmatprep.subr.bf16.mxu1 %v7604_v0 }
0x21f7   :  { %7406 = vtanh.f32 %v1630_v62  ;;  %v6369_v4 = vmul.f32 -1.442695, %v1630_v62 }
0x21f9   :  { %7408 = vpow2.f32 %v6369_v4 }
0x2201   :  { %v7407_v1 = vpop.eup %7406 }
0x2202   :  { %1640 = vrot.lane.b32.xlu0 %v7407_v1, %s7607_s15 }
0x2203   :  { %v7409_v6 = vpop.eup %7408 }
0x2204   :  { %v1634_v8 = vadd.f32 1.0, %v7409_v6 }
0x2206   :  { %7410 = vrcp.f32 %v1634_v8 }
0x2210   :  { %v7411_v9 = vpop.eup %7410 }
0x2211   :  { %v1638_v12 = vmul.f32 %v7411_v9, %v1525_v41 }
0x2274   :  { %v1641_v10 = vpop.permute.xlu0 %1640 }
0x2275   :  { %v1643_v11 = vmul.f32 %v7411_v9, %v1641_v10 }
0x2277   :  { %1645 = vrot.lane.b32.xlu1 %v1643_v11, %s7608_s16 }
0x22c7   :  { %v1870_v57 = vpop.f32.mrb[56].mxu1 }
0x22c8   :  { %v6899_v58 = vpop.f32.mrb[57].mxu1 }
0x22c9   :  { %v1873_v59 = vpop.f32.mrb[58].mxu1 }
0x22ca   :  { %v6900_v2 = vpop.f32.mrb[59].mxu1 }
0x22e9   :  { %v1646_v13 = vpop.permute.xlu1 %1645 }
0x22ea   :  { %v1648_v16 = vadd.f32 %v1646_v13, %v1638_v12  ;;  %v6378_v12 = vld [vmem:[%s9083_s0 + $0xf] sm:$0x1] }
0x22eb   :  { %6910 = vmatmul.mubr.msk.bf16.vlgmr.msra.gmra.mrb[60].mxu1 %vm100_vm2, %v6378_v12 }
0x22ec   :  { %7412 = vtanh.f32 %v1648_v16  ;;  %6921 = vmatprep.mubr.msk.bf16.mxu1 %vm7605_vm1, %v7604_v0 }
0x22f6   :  { %v7413_v20 = vpop.eup %7412 }
0x22f7   :  { %1651 = vrot.lane.b32.xlu0 %v7413_v20, %s7608_s16 }
0x2369   :  { %v1652_v21 = vpop.permute.xlu0 %1651 }
0x236a   :  { %v8006_v22 = vmul.f32 %v7411_v9, %v1652_v21 }
0x236c   :  { %v1663_v24 = vpack.c.bf16 %v8006_v22, %v8006_v22 }
0x236e   :  { %1665 = vrot.lane.b32.xlu1 %v1663_v24, %s7609_s19 }
0x23e0   :  { %v1666_v29 = vpop.permute.xlu1 %1665 }
0x23e1   :  { %6880 = vmatmul.mubr.msk.bf16.vlgmr.msra.gmra.mrb[52].mxu0 %vm56_vm3, %v1666_v29 }
0x23e2   :  { %6890 = vmatpush3.bf16.msra.mxu0 %v7983_v55  ;;  %6891 = vmatprep.mubr.msk.bf16.mxu0 %vm7605_vm1, %v7604_v0 }
0x23e3   :  { %6901 = vmatprep.subr.bf16.mxu0 %v7604_v0 }
0x24b4   :  { %v1704_v31 = vpop.f32.mrb[52].mxu0 }
0x24b5   :  { %v1748_v32 = vadd.f32 %v1747_v25, %v1704_v31  ;;  %v6881_v33 = vpop.f32.mrb[53].mxu0 }
0x24b6   :  { %v1707_v34 = vpop.f32.mrb[54].mxu0 }
0x24b7   :  { %v1753_v35 = vadd.f32 %v7992_v61, %v1748_v32  ;;  %v6882_v3 = vpop.f32.mrb[55].mxu0 }
0x24b9   :  { %7414 = vtanh.f32 %v1753_v35  ;;  %v6373_v37 = vmul.f32 -1.442695, %v1753_v35 }
0x24bb   :  { %7416 = vpow2.f32 %v6373_v37 }
0x24c3   :  { %v7415_v36 = vpop.eup %7414 }
0x24c4   :  { %1763 = vrot.lane.b32.xlu0 %v7415_v36, %s7607_s15 }
0x24c5   :  { %v7417_v38 = vpop.eup %7416 }
0x24c6   :  { %v1757_v39 = vadd.f32 1.0, %v7417_v38 }
0x24c8   :  { %7418 = vrcp.f32 %v1757_v39  ;;  %v8074_v39 = vld [vmem:[%s9086_s5] sm:$0xff]  }
0x24d2   :  { %v7419_v40 = vpop.eup %7418 }
0x24d3   :  { %v1761_v42 = vmul.f32 %v7419_v40, %v1648_v16 }
0x2536   :  { %v1764_v41 = vpop.permute.xlu0 %1763 }
0x2537   :  { %v1766_v7 = vmul.f32 %v7419_v40, %v1764_v41 }
0x2539   :  { %1768 = vrot.lane.b32.xlu1 %v1766_v7, %s7608_s16 }
0x25ab   :  { %v1769_v43 = vpop.permute.xlu1 %1768 }
0x25ac   :  { %v1771_v48 = vadd.f32 %v1769_v43, %v1761_v42 }
0x25ae   :  { %7420 = vtanh.f32 %v1771_v48 }
0x25b8   :  { %v7421_v51 = vpop.eup %7420 }
0x25b9   :  { %1774 = vrot.lane.b32.xlu0 %v7421_v51, %s7608_s16 }
0x262b   :  { %v1775_v52 = vpop.permute.xlu0 %1774 }
0x262c   :  { %v8028_v53 = vmul.f32 %v7419_v40, %v1775_v52 }
0x262e   :  { %v1786_v54 = vpack.c.bf16 %v8028_v53, %v8028_v53 }
0x2630   :  { %1788 = vrot.lane.b32.xlu1 %v1786_v54, %s7609_s19 }
0x26a2   :  { %v1789_v60 = vpop.permute.xlu1 %1788 }
0x26a3   :  { %6892 = vmatmul.mubr.msk.bf16.vlgmr.msra.gmra.mrb[56].mxu0 %vm56_vm3, %v1789_v60 }
0x26a4   :  { %6902 = vmatpush3.bf16.msra.mxu0 %v7983_v55  ;;  %6903 = vmatprep.mubr.msk.bf16.mxu0 %vm7605_vm1, %v7604_v0 }
0x26a5   :  { %6913 = vmatprep.subr.bf16.mxu0 %v7604_v0 }
0x2776   :  { %v1827_v62 = vpop.f32.mrb[56].mxu0 }
0x2777   :  { %v1871_v63 = vadd.f32 %v1870_v57, %v1827_v62  ;;  %v6893_v1 = vpop.f32.mrb[57].mxu0 }
0x2778   :  { %v1830_v4 = vpop.f32.mrb[58].mxu0 }
0x2779   :  { %v1876_v6 = vadd.f32 %v7992_v61, %v1871_v63  ;;  %v6894_v8 = vpop.f32.mrb[59].mxu0  ;;  %v8047_v61 = vld [vmem:[%s9085_s4] sm:$0xff]  }
0x277a   :  { %6920 = vmatpush3.bf16.msra.mxu1 %v8047_v61 }
0x277b   :  { %7422 = vtanh.f32 %v1876_v6  ;;  %v6377_v10 = vmul.f32 -1.442695, %v1876_v6  ;;  %6931 = vmatprep.subr.bf16.mxu1 %v7604_v0 }
0x277d   :  { %7424 = vpow2.f32 %v6377_v10 }
0x2785   :  { %v7423_v9 = vpop.eup %7422 }
0x2786   :  { %1886 = vrot.lane.b32.xlu0 %v7423_v9, %s7607_s15 }
0x2787   :  { %v7425_v11 = vpop.eup %7424 }
0x2788   :  { %v1880_v55 = vadd.f32 1.0, %v7425_v11 }
0x278a   :  { %7426 = vrcp.f32 %v1880_v55 }
0x2794   :  { %v7427_v13 = vpop.eup %7426 }
0x2795   :  { %v1884_v20 = vmul.f32 %v7427_v13, %v1771_v48 }
0x27f8   :  { %v1887_v16 = vpop.permute.xlu0 %1886 }
0x27f9   :  { %v1889_v19 = vmul.f32 %v7427_v13, %v1887_v16 }
0x27fb   :  { %1891 = vrot.lane.b32.xlu1 %v1889_v19, %s7608_s16 }
0x27ff   :  { %180 = vrot.lane.b32.xlu1 %v7732_v30, %s7609_s19  ;;  %v1993_v30 = vpop.f32.mrb[60].mxu1 }
0x2800   :  { %v6911_v29 = vpop.f32.mrb[61].mxu1 }
0x2801   :  { %v1996_v31 = vpop.f32.mrb[62].mxu1 }
0x2802   :  { %v6912_v32 = vpop.f32.mrb[63].mxu1 }
0x286d   :  { %v1892_v21 = vpop.permute.xlu1 %1891 }
0x286e   :  { %v8056_v24 = vadd.f32 %v1892_v21, %v1884_v20 }
0x2870   :  { %7428 = vtanh.f32 %v8056_v24 }
0x2871   :  { %v181_v25 = vpop.permute.xlu1 %180 }
0x2872   :  { %184 = vst.msk [vmem:[#allocation2] sm:$0x3] %vm183_vm4, %v181_v25 }
0x2879   :  { %v2035_v26 = vld [vmem:[#allocation2] sm:$0x3] }
0x287a   :  { %v7429_v27 = vpop.eup %7428  ;;  %v2036_v28 = vpack.c.bf16 %v2035_v26, %v2035_v26 }
0x287b   :  { %1897 = vrot.lane.b32.xlu0 %v7429_v27, %s7608_s16 }
0x287c   :  { %6922 = vmatmul.mubr.msk.bf16.vlgmr.msra.gmra.mrb[64].mxu1 %vm56_vm3, %v2036_v28 }
0x287d   :  { %6932 = vmatpush3.bf16.msra.mxu1 %v8047_v61  ;;  %6933 = vmatprep.mubr.msk.bf16.mxu1 %vm7605_vm1, %v7604_v0 }
0x287e   :  { %6943 = vmatprep.subr.bf16.mxu1 %v7604_v0 }
0x28ed   :  { %v1898_v33 = vpop.permute.xlu0 %1897 }
0x28ee   :  { %v8066_v34 = vmul.f32 %v7427_v13, %v1898_v33 }
0x28f0   :  { %v1909_v35 = vpack.c.bf16 %v8066_v34, %v8066_v34 }
0x28f2   :  { %1911 = vrot.lane.b32.xlu0 %v1909_v35, %s7609_s19 }
0x294f   :  { %v2126_v3 = vpop.f32.mrb[64].mxu1 }
0x2950   :  { %v6923_v36 = vpop.f32.mrb[65].mxu1 }
0x2951   :  { %v2129_v37 = vpop.f32.mrb[66].mxu1 }
0x2952   :  { %v6924_v38 = vpop.f32.mrb[67].mxu1 }
0x2964   :  { %v1912_v40 = vpop.permute.xlu0 %1911 }
0x2965   :  { %6904 = vmatmul.mubr.msk.bf16.vlgmr.msra.gmra.mrb[60].mxu0 %vm56_vm3, %v1912_v40 }
0x2966   :  { %6914 = vmatpush3.bf16.msra.mxu0 %v8074_v39  ;;  %6915 = vmatprep.mubr.msk.bf16.mxu0 %vm7605_vm1, %v7604_v0 }
0x2967   :  { %6925 = vmatprep.subr.bf16.mxu0 %v7604_v0 }
0x296d   :  { %6916 = vmatmul.mubr.bf16.vlgmr.msra.gmra.mrb[64].mxu0 %v7606_v5 }
0x296e   :  { %6926 = vmatpush3.bf16.msra.mxu0 %v8074_v39  ;;  %6927 = vmatprep.mubr.msk.bf16.mxu0 %vm7605_vm1, %v7604_v0 }
0x296f   :  { %6937 = vmatprep.subr.bf16.mxu0 %v7604_v0 }
0x2a38   :  { %v1950_v41 = vpop.f32.mrb[60].mxu0 }
0x2a39   :  { %v8086_v7 = vadd.f32 %v1993_v30, %v1950_v41  ;;  %v6905_v42 = vpop.f32.mrb[61].mxu0 }
0x2a3a   :  { %v1953_v43 = vpop.f32.mrb[62].mxu0 }
0x2a3b   :  { %v6906_v48 = vpop.f32.mrb[63].mxu0 }
0x2a40   :  { %v2077_v51 = vpop.f32.mrb[64].mxu0 }
0x2a41   :  { %v2127_v5 = vadd.f32 %v2126_v3, %v2077_v51  ;;  %v6917_v52 = vpop.f32.mrb[65].mxu0 }
0x2a42   :  { %v2080_v54 = vpop.f32.mrb[66].mxu0 }
0x2a43   :  { %v2138_v57 = vadd.f32 %v8091_v49, %v2127_v5  ;;  %v6918_v58 = vpop.f32.mrb[67].mxu0 }
0x2a45   :  { %7430 = vtanh.f32 %v2138_v57  ;;  %v6386_v2 = vmul.f32 -1.442695, %v2138_v57 }
0x2a47   :  { %7432 = vpow2.f32 %v6386_v2 }
0x2a4f   :  { %v7431_v59 = vpop.eup %7430 }
0x2a50   :  { %2148 = vrot.lane.b32.xlu1 %v7431_v59, %s7607_s15 }
0x2a51   :  { %v7433_v60 = vpop.eup %7432 }
0x2a52   :  { %v2142_v62 = vadd.f32 1.0, %v7433_v60 }
0x2a54   :  { %7434 = vrcp.f32 %v2142_v62 }
0x2a5e   :  { %v7435_v63 = vpop.eup %7434 }
0x2a5f   :  { %v2146_v6 = vmul.f32 0.0, %v7435_v63 }
0x2ac2   :  { %v2149_v1 = vpop.permute.xlu1 %2148 }
0x2ac3   :  { %v2151_v4 = vmul.f32 %v7435_v63, %v2149_v1 }
0x2ac5   :  { %2153 = vrot.lane.b32.xlu0 %v2151_v4, %s7608_s16 }
0x2ac9   :  { %303 = vrot.lane.b32.xlu0 %v7754_v56, %s7609_s19 }
0x2b37   :  { %v2154_v8 = vpop.permute.xlu0 %2153 }
0x2b38   :  { %v2156_v9 = vadd.f32 %v2154_v8, %v2146_v6 }
0x2b3a   :  { %7436 = vtanh.f32 %v2156_v9 }
0x2b3b   :  { %v304_v10 = vpop.permute.xlu0 %303 }
0x2b3c   :  { %307 = vst.msk [vmem:[#allocation2 + $0x2] sm:$0x3] %vm183_vm4, %v304_v10 }
0x2b43   :  { %v2168_v11 = vld [vmem:[#allocation2 + $0x2] sm:$0x3] }
0x2b44   :  { %v7437_v55 = vpop.eup %7436  ;;  %v2169_v12 = vpack.c.bf16 %v2168_v11, %v2168_v11 }
0x2b45   :  { %2159 = vrot.lane.b32.xlu1 %v7437_v55, %s7608_s16 }
0x2b46   :  { %6934 = vmatmul.mubr.msk.bf16.vlgmr.msra.gmra.mrb[68].mxu1 %vm56_vm3, %v2169_v12 }
0x2b47   :  { %6944 = vmatpush3.bf16.msra.mxu1 %v8047_v61  ;;  %6945 = vmatprep.mubr.msk.bf16.mxu1 %vm7605_vm1, %v7604_v0 }
0x2b48   :  { %6955 = vmatprep.subr.bf16.mxu1 %v7604_v0 }
0x2bb7   :  { %v2160_v56 = vpop.permute.xlu1 %2159 }
0x2bb8   :  { %v8105_v13 = vmul.f32 %v7435_v63, %v2160_v56 }
0x2bba   :  { %v2170_v16 = vpack.c.bf16 %v8105_v13, %v8105_v13 }
0x2bbc   :  { %2172 = vrot.lane.b32.xlu1 %v2170_v16, %s7609_s19 }
0x2c19   :  { %v2254_v19 = vpop.f32.mrb[68].mxu1 }
0x2c1a   :  { %v6935_v20 = vpop.f32.mrb[69].mxu1 }
0x2c1b   :  { %v2257_v21 = vpop.f32.mrb[70].mxu1 }
0x2c1c   :  { %v6936_v25 = vpop.f32.mrb[71].mxu1 }
0x2c2e   :  { %v2173_v26 = vpop.permute.xlu1 %2172 }
0x2c2f   :  { %6928 = vmatmul.mubr.msk.bf16.vlgmr.msra.gmra.mrb[68].mxu0 %vm56_vm3, %v2173_v26 }
0x2c30   :  { %6938 = vmatpush3.bf16.msra.mxu0 %v8074_v39  ;;  %6939 = vmatprep.mubr.msk.bf16.mxu0 %vm7605_vm1, %v7604_v0 }
0x2c31   :  { %6949 = vmatprep.subr.bf16.mxu0 %v7604_v0 }
0x2d02   :  { %v2211_v27 = vpop.f32.mrb[68].mxu0 }
0x2d03   :  { %v2255_v28 = vadd.f32 %v2254_v19, %v2211_v27  ;;  %v6929_v30 = vpop.f32.mrb[69].mxu0 }
0x2d04   :  { %v2214_v29 = vpop.f32.mrb[70].mxu0 }
0x2d05   :  { %v2260_v31 = vadd.f32 %v8091_v49, %v2255_v28  ;;  %v6930_v32 = vpop.f32.mrb[71].mxu0 }
0x2d07   :  { %7438 = vtanh.f32 %v2260_v31  ;;  %v6389_v35 = vmul.f32 -1.442695, %v2260_v31 }
0x2d09   :  { %7440 = vpow2.f32 %v6389_v35 }
0x2d11   :  { %v7439_v33 = vpop.eup %7438 }
0x2d12   :  { %2270 = vrot.lane.b32.xlu0 %v7439_v33, %s7607_s15 }
0x2d13   :  { %v7441_v3 = vpop.eup %7440 }
0x2d14   :  { %v2264_v36 = vadd.f32 1.0, %v7441_v3 }
0x2d16   :  { %7442 = vrcp.f32 %v2264_v36 }
0x2d20   :  { %v7443_v37 = vpop.eup %7442 }
0x2d21   :  { %v2268_v41 = vmul.f32 %v7443_v37, %v2156_v9 }
0x2d84   :  { %v2271_v38 = vpop.permute.xlu0 %2270 }
0x2d85   :  { %v2273_v40 = vmul.f32 %v7443_v37, %v2271_v38 }
0x2d87   :  { %2275 = vrot.lane.b32.xlu1 %v2273_v40, %s7608_s16 }
0x2d8b   :  { %426 = vrot.lane.b32.xlu1 %v7776_v23, %s7609_s19 }
0x2df9   :  { %v2276_v42 = vpop.permute.xlu1 %2275 }
0x2dfa   :  { %v2278_v43 = vadd.f32 %v2276_v42, %v2268_v41 }
0x2dfc   :  { %7444 = vtanh.f32 %v2278_v43 }
0x2dfd   :  { %v427_v48 = vpop.permute.xlu1 %426 }
0x2dfe   :  { %430 = vst.msk [vmem:[#allocation2 + $0x4] sm:$0x3] %vm183_vm4, %v427_v48 }
0x2e05   :  { %v2290_v51 = vld [vmem:[#allocation2 + $0x4] sm:$0x3] }
0x2e06   :  { %v7445_v5 = vpop.eup %7444  ;;  %v2291_v52 = vpack.c.bf16 %v2290_v51, %v2290_v51 }
0x2e07   :  { %2281 = vrot.lane.b32.xlu0 %v7445_v5, %s7608_s16 }
0x2e08   :  { %6946 = vmatmul.mubr.msk.bf16.vlgmr.msra.gmra.mrb[72].mxu1 %vm56_vm3, %v2291_v52 }
0x2e09   :  { %6956 = vmatpush3.bf16.msra.mxu1 %v8047_v61  ;;  %6957 = vmatprep.mubr.msk.bf16.mxu1 %vm7605_vm1, %v7604_v0 }
0x2e0a   :  { %6967 = vmatprep.subr.bf16.mxu1 %v7604_v0 }
0x2e79   :  { %v2282_v23 = vpop.permute.xlu0 %2281 }
0x2e7a   :  { %v8127_v54 = vmul.f32 %v7443_v37, %v2282_v23 }
0x2e7c   :  { %v2292_v57 = vpack.c.bf16 %v8127_v54, %v8127_v54 }
0x2e7e   :  { %2294 = vrot.lane.b32.xlu0 %v2292_v57, %s7609_s19 }
0x2edb   :  { %v2376_v58 = vpop.f32.mrb[72].mxu1 }
0x2edc   :  { %v6947_v59 = vpop.f32.mrb[73].mxu1 }
0x2edd   :  { %v2379_v2 = vpop.f32.mrb[74].mxu1 }
0x2ede   :  { %v6948_v60 = vpop.f32.mrb[75].mxu1 }
0x2ef0   :  { %v2295_v62 = vpop.permute.xlu0 %2294 }
0x2ef1   :  { %6940 = vmatmul.mubr.msk.bf16.vlgmr.msra.gmra.mrb[72].mxu0 %vm56_vm3, %v2295_v62 }
0x2ef2   :  { %6950 = vmatpush3.bf16.msra.mxu0 %v8074_v39  ;;  %6951 = vmatprep.mubr.msk.bf16.mxu0 %vm7605_vm1, %v7604_v0 }
0x2ef3   :  { %6961 = vmatprep.subr.bf16.mxu0 %v7604_v0 }
0x2fc4   :  { %v2333_v63 = vpop.f32.mrb[72].mxu0 }
0x2fc5   :  { %v2377_v1 = vadd.f32 %v2376_v58, %v2333_v63  ;;  %v6941_v4 = vpop.f32.mrb[73].mxu0 }
0x2fc6   :  { %v2336_v6 = vpop.f32.mrb[74].mxu0 }
0x2fc7   :  { %v2382_v8 = vadd.f32 %v8091_v49, %v2377_v1  ;;  %v6942_v9 = vpop.f32.mrb[75].mxu0 }
0x2fc9   :  { %7446 = vtanh.f32 %v2382_v8  ;;  %v6392_v11 = vmul.f32 -1.442695, %v2382_v8 }
0x2fcb   :  { %7448 = vpow2.f32 %v6392_v11 }
0x2fd3   :  { %v7447_v10 = vpop.eup %7446 }
0x2fd4   :  { %2392 = vrot.lane.b32.xlu1 %v7447_v10, %s7607_s15 }
0x2fd5   :  { %v7449_v55 = vpop.eup %7448 }
0x2fd6   :  { %v2386_v12 = vadd.f32 1.0, %v7449_v55 }
0x2fd8   :  { %7450 = vrcp.f32 %v2386_v12 }
0x2fe2   :  { %v7451_v56 = vpop.eup %7450 }
0x2fe3   :  { %v2390_v20 = vmul.f32 %v7451_v56, %v2278_v43 }
0x3046   :  { %v2393_v16 = vpop.permute.xlu1 %2392 }
0x3047   :  { %v2395_v19 = vmul.f32 %v7451_v56, %v2393_v16 }
0x3049   :  { %2397 = vrot.lane.b32.xlu0 %v2395_v19, %s7608_s16 }
0x304d   :  { %549 = vrot.lane.b32.xlu0 %v7798_v50, %s7609_s19 }
0x30bb   :  { %v2398_v21 = vpop.permute.xlu0 %2397 }
0x30bc   :  { %v2400_v25 = vadd.f32 %v2398_v21, %v2390_v20 }
0x30be   :  { %7452 = vtanh.f32 %v2400_v25 }
0x30bf   :  { %v550_v26 = vpop.permute.xlu0 %549 }
0x30c0   :  { %553 = vst.msk [vmem:[#allocation2 + $0x6] sm:$0x3] %vm183_vm4, %v550_v26 }
0x30c7   :  { %v2412_v27 = vld [vmem:[#allocation2 + $0x6] sm:$0x3] }
0x30c8   :  { %v7453_v28 = vpop.eup %7452  ;;  %v2413_v30 = vpack.c.bf16 %v2412_v27, %v2412_v27 }
0x30c9   :  { %2403 = vrot.lane.b32.xlu1 %v7453_v28, %s7608_s16 }
0x30ca   :  { %6958 = vmatmul.mubr.msk.bf16.vlgmr.msra.gmra.mrb[76].mxu1 %vm56_vm3, %v2413_v30 }
0x30cb   :  { %6968 = vmatpush3.bf16.msra.mxu1 %v8047_v61  ;;  %6969 = vmatprep.mubr.msk.bf16.mxu1 %vm7605_vm1, %v7604_v0 }
0x30cc   :  { %6979 = vmatprep.subr.bf16.mxu1 %v7604_v0 }
0x313b   :  { %v2404_v50 = vpop.permute.xlu1 %2403 }
0x313c   :  { %v8149_v29 = vmul.f32 %v7451_v56, %v2404_v50 }
0x313e   :  { %v2414_v31 = vpack.c.bf16 %v8149_v29, %v8149_v29 }
0x3140   :  { %2416 = vrot.lane.b32.xlu1 %v2414_v31, %s7609_s19 }
0x319d   :  { %v2498_v32 = vpop.f32.mrb[76].mxu1 }
0x319e   :  { %v6959_v33 = vpop.f32.mrb[77].mxu1 }
0x319f   :  { %v2501_v35 = vpop.f32.mrb[78].mxu1 }
0x31a0   :  { %v6960_v3 = vpop.f32.mrb[79].mxu1 }
0x31b2   :  { %v2417_v36 = vpop.permute.xlu1 %2416 }
0x31b3   :  { %6952 = vmatmul.mubr.msk.bf16.vlgmr.msra.gmra.mrb[76].mxu0 %vm56_vm3, %v2417_v36 }
0x31b4   :  { %6962 = vmatpush3.bf16.msra.mxu0 %v8074_v39  ;;  %6963 = vmatprep.mubr.msk.bf16.mxu0 %vm7605_vm1, %v7604_v0 }
0x31b5   :  { %6973 = vmatprep.subr.bf16.mxu0 %v7604_v0 }
0x3286   :  { %v2455_v37 = vpop.f32.mrb[76].mxu0 }
0x3287   :  { %v2499_v38 = vadd.f32 %v2498_v32, %v2455_v37  ;;  %v6953_v40 = vpop.f32.mrb[77].mxu0 }
0x3288   :  { %v2458_v41 = vpop.f32.mrb[78].mxu0 }
0x3289   :  { %v2504_v42 = vadd.f32 %v8091_v49, %v2499_v38  ;;  %v6954_v43 = vpop.f32.mrb[79].mxu0 }
0x328b   :  { %7454 = vtanh.f32 %v2504_v42  ;;  %v6395_v51 = vmul.f32 -1.442695, %v2504_v42 }
0x328d   :  { %7456 = vpow2.f32 %v6395_v51 }
0x3295   :  { %v7455_v48 = vpop.eup %7454 }
0x3296   :  { %2514 = vrot.lane.b32.xlu0 %v7455_v48, %s7607_s15 }
0x3297   :  { %v7457_v5 = vpop.eup %7456 }
0x3298   :  { %v2508_v52 = vadd.f32 1.0, %v7457_v5 }
0x329a   :  { %7458 = vrcp.f32 %v2508_v52 }
0x32a4   :  { %v7459_v23 = vpop.eup %7458 }
0x32a5   :  { %v2512_v59 = vmul.f32 %v7459_v23, %v2400_v25 }
0x3308   :  { %v2515_v57 = vpop.permute.xlu0 %2514 }
0x3309   :  { %v2517_v58 = vmul.f32 %v7459_v23, %v2515_v57 }
0x330b   :  { %2519 = vrot.lane.b32.xlu1 %v2517_v58, %s7608_s16 }
0x330f   :  { %672 = vrot.lane.b32.xlu1 %v7820_v18, %s7609_s19 }
0x337d   :  { %v2520_v2 = vpop.permute.xlu1 %2519 }
0x337e   :  { %v2522_v60 = vadd.f32 %v2520_v2, %v2512_v59 }
0x3380   :  { %7460 = vtanh.f32 %v2522_v60 }
0x3381   :  { %v673_v62 = vpop.permute.xlu1 %672 }
0x3382   :  { %676 = vst.msk [vmem:[#allocation2 + $0x8] sm:$0x3] %vm183_vm4, %v673_v62 }
0x3389   :  { %v2534_v63 = vld [vmem:[#allocation2 + $0x8] sm:$0x3] }
0x338a   :  { %v7461_v1 = vpop.eup %7460  ;;  %v2535_v4 = vpack.c.bf16 %v2534_v63, %v2534_v63 }
0x338b   :  { %2525 = vrot.lane.b32.xlu0 %v7461_v1, %s7608_s16 }
0x338c   :  { %6970 = vmatmul.mubr.msk.bf16.vlgmr.msra.gmra.mrb[80].mxu1 %vm56_vm3, %v2535_v4 }
0x338d   :  { %6980 = vmatpush3.bf16.msra.mxu1 %v8047_v61  ;;  %6981 = vmatprep.mubr.msk.bf16.mxu1 %vm7605_vm1, %v7604_v0 }
0x338e   :  { %6991 = vmatprep.subr.bf16.mxu1 %v7604_v0 }
0x33fd   :  { %v2526_v18 = vpop.permute.xlu0 %2525 }
0x33fe   :  { %v8171_v6 = vmul.f32 %v7459_v23, %v2526_v18 }
0x3400   :  { %v2536_v8 = vpack.c.bf16 %v8171_v6, %v8171_v6 }
0x3402   :  { %2538 = vrot.lane.b32.xlu0 %v2536_v8, %s7609_s19 }
0x345f   :  { %v2620_v9 = vpop.f32.mrb[80].mxu1 }
0x3460   :  { %v6971_v10 = vpop.f32.mrb[81].mxu1 }
0x3461   :  { %v2623_v11 = vpop.f32.mrb[82].mxu1 }
0x3462   :  { %v6972_v55 = vpop.f32.mrb[83].mxu1 }
0x3474   :  { %v2539_v12 = vpop.permute.xlu0 %2538 }
0x3475   :  { %6964 = vmatmul.mubr.msk.bf16.vlgmr.msra.gmra.mrb[80].mxu0 %vm56_vm3, %v2539_v12 }
0x3476   :  { %6974 = vmatpush3.bf16.msra.mxu0 %v8074_v39  ;;  %6975 = vmatprep.mubr.msk.bf16.mxu0 %vm7605_vm1, %v7604_v0 }
0x3477   :  { %6985 = vmatprep.subr.bf16.mxu0 %v7604_v0 }
0x3548   :  { %v2577_v56 = vpop.f32.mrb[80].mxu0 }
0x3549   :  { %v2621_v16 = vadd.f32 %v2620_v9, %v2577_v56  ;;  %v6965_v19 = vpop.f32.mrb[81].mxu0 }
0x354a   :  { %v2580_v20 = vpop.f32.mrb[82].mxu0 }
0x354b   :  { %v2626_v21 = vadd.f32 %v8091_v49, %v2621_v16  ;;  %v6966_v25 = vpop.f32.mrb[83].mxu0 }
0x354d   :  { %7462 = vtanh.f32 %v2626_v21  ;;  %v6398_v27 = vmul.f32 -1.442695, %v2626_v21 }
0x354f   :  { %7464 = vpow2.f32 %v6398_v27 }
0x3557   :  { %v7463_v26 = vpop.eup %7462 }
0x3558   :  { %2636 = vrot.lane.b32.xlu1 %v7463_v26, %s7607_s15 }
0x3559   :  { %v7465_v28 = vpop.eup %7464 }
0x355a   :  { %v2630_v30 = vadd.f32 1.0, %v7465_v28 }
0x355c   :  { %7466 = vrcp.f32 %v2630_v30 }
0x3566   :  { %v7467_v50 = vpop.eup %7466 }
0x3567   :  { %v2634_v33 = vmul.f32 %v7467_v50, %v2522_v60 }
0x35ca   :  { %v2637_v31 = vpop.permute.xlu1 %2636 }
0x35cb   :  { %v2639_v32 = vmul.f32 %v7467_v50, %v2637_v31 }
0x35cd   :  { %2641 = vrot.lane.b32.xlu0 %v2639_v32, %s7608_s16 }
0x35d1   :  { %795 = vrot.lane.b32.xlu0 %v7842_v46, %s7609_s19 }
0x363f   :  { %v2642_v35 = vpop.permute.xlu0 %2641 }
0x3640   :  { %v2644_v3 = vadd.f32 %v2642_v35, %v2634_v33 }
0x3642   :  { %7468 = vtanh.f32 %v2644_v3 }
0x3643   :  { %v796_v36 = vpop.permute.xlu0 %795 }
0x3644   :  { %799 = vst.msk [vmem:[#allocation2 + $0xa] sm:$0x3] %vm183_vm4, %v796_v36 }
0x364b   :  { %v2656_v37 = vld [vmem:[#allocation2 + $0xa] sm:$0x3] }
0x364c   :  { %v7469_v38 = vpop.eup %7468  ;;  %v2657_v40 = vpack.c.bf16 %v2656_v37, %v2656_v37 }
0x364d   :  { %2647 = vrot.lane.b32.xlu1 %v7469_v38, %s7608_s16 }
0x364e   :  { %6982 = vmatmul.mubr.msk.bf16.vlgmr.msra.gmra.mrb[84].mxu1 %vm56_vm3, %v2657_v40 }
0x364f   :  { %6992 = vmatpush3.bf16.msra.mxu1 %v8047_v61  ;;  %6993 = vmatprep.mubr.msk.bf16.mxu1 %vm7605_vm1, %v7604_v0 }
0x3650   :  { %7003 = vmatprep.subr.bf16.mxu1 %v7604_v0 }
0x36bf   :  { %v2648_v46 = vpop.permute.xlu1 %2647 }
0x36c0   :  { %v8193_v41 = vmul.f32 %v7467_v50, %v2648_v46 }
0x36c2   :  { %v2658_v42 = vpack.c.bf16 %v8193_v41, %v8193_v41 }
0x36c4   :  { %2660 = vrot.lane.b32.xlu1 %v2658_v42, %s7609_s19 }
0x3721   :  { %v2742_v43 = vpop.f32.mrb[84].mxu1 }
0x3722   :  { %v6983_v48 = vpop.f32.mrb[85].mxu1 }
0x3723   :  { %v2745_v51 = vpop.f32.mrb[86].mxu1 }
0x3724   :  { %v6984_v5 = vpop.f32.mrb[87].mxu1 }
0x3736   :  { %v2661_v52 = vpop.permute.xlu1 %2660 }
0x3737   :  { %6976 = vmatmul.mubr.msk.bf16.vlgmr.msra.gmra.mrb[84].mxu0 %vm56_vm3, %v2661_v52 }
0x3738   :  { %6986 = vmatpush3.bf16.msra.mxu0 %v8074_v39  ;;  %6987 = vmatprep.mubr.msk.bf16.mxu0 %vm7605_vm1, %v7604_v0 }
0x3739   :  { %6997 = vmatprep.subr.bf16.mxu0 %v7604_v0 }
0x380a   :  { %v2699_v23 = vpop.f32.mrb[84].mxu0 }
0x380b   :  { %v2743_v57 = vadd.f32 %v2742_v43, %v2699_v23  ;;  %v6977_v58 = vpop.f32.mrb[85].mxu0 }
0x380c   :  { %v2702_v59 = vpop.f32.mrb[86].mxu0 }
0x380d   :  { %v2748_v2 = vadd.f32 %v8091_v49, %v2743_v57  ;;  %v6978_v60 = vpop.f32.mrb[87].mxu0 }
0x380f   :  { %7470 = vtanh.f32 %v2748_v2  ;;  %v6401_v63 = vmul.f32 -1.442695, %v2748_v2 }
0x3811   :  { %7472 = vpow2.f32 %v6401_v63 }
0x3819   :  { %v7471_v62 = vpop.eup %7470 }
0x381a   :  { %2758 = vrot.lane.b32.xlu0 %v7471_v62, %s7607_s15 }
0x381b   :  { %v7473_v1 = vpop.eup %7472 }
0x381c   :  { %v2752_v4 = vadd.f32 1.0, %v7473_v1 }
0x381e   :  { %7474 = vrcp.f32 %v2752_v4 }
0x3828   :  { %v7475_v18 = vpop.eup %7474 }
0x3829   :  { %v2756_v10 = vmul.f32 %v7475_v18, %v2644_v3 }
0x388c   :  { %v2759_v8 = vpop.permute.xlu0 %2758 }
0x388d   :  { %v2761_v9 = vmul.f32 %v7475_v18, %v2759_v8 }
0x388f   :  { %2763 = vrot.lane.b32.xlu1 %v2761_v9, %s7608_s16 }
0x3893   :  { %918 = vrot.lane.b32.xlu1 %v7864_v15, %s7609_s19 }
0x3901   :  { %v2764_v11 = vpop.permute.xlu1 %2763 }
0x3902   :  { %v2766_v55 = vadd.f32 %v2764_v11, %v2756_v10 }
0x3904   :  { %7476 = vtanh.f32 %v2766_v55 }
0x3905   :  { %v919_v12 = vpop.permute.xlu1 %918 }
0x3906   :  { %922 = vst.msk [vmem:[#allocation2 + $0xc] sm:$0x3] %vm183_vm4, %v919_v12 }
0x390d   :  { %v2778_v56 = vld [vmem:[#allocation2 + $0xc] sm:$0x3] }
0x390e   :  { %v7477_v16 = vpop.eup %7476  ;;  %v2779_v19 = vpack.c.bf16 %v2778_v56, %v2778_v56 }
0x390f   :  { %2769 = vrot.lane.b32.xlu0 %v7477_v16, %s7608_s16 }
0x3910   :  { %6994 = vmatmul.mubr.msk.bf16.vlgmr.msra.gmra.mrb[88].mxu1 %vm56_vm3, %v2779_v19 }
0x3911   :  { %7004 = vmatpush3.bf16.msra.mxu1 %v8047_v61  ;;  %7005 = vmatprep.mubr.msk.bf16.mxu1 %vm7605_vm1, %v7604_v0 }
0x3912   :  { %7015 = vmatprep.subr.bf16.mxu1 %v7604_v0 }
0x3981   :  { %v2770_v15 = vpop.permute.xlu0 %2769 }
0x3982   :  { %v8215_v20 = vmul.f32 %v7475_v18, %v2770_v15 }
0x3984   :  { %v2780_v21 = vpack.c.bf16 %v8215_v20, %v8215_v20 }
0x3986   :  { %2782 = vrot.lane.b32.xlu0 %v2780_v21, %s7609_s19 }
0x39e3   :  { %v2864_v25 = vpop.f32.mrb[88].mxu1 }
0x39e4   :  { %v6995_v26 = vpop.f32.mrb[89].mxu1 }
0x39e5   :  { %v2867_v27 = vpop.f32.mrb[90].mxu1 }
0x39e6   :  { %v6996_v28 = vpop.f32.mrb[91].mxu1 }
0x39f8   :  { %v2783_v30 = vpop.permute.xlu0 %2782 }
0x39f9   :  { %6988 = vmatmul.mubr.msk.bf16.vlgmr.msra.gmra.mrb[88].mxu0 %vm56_vm3, %v2783_v30 }
0x39fa   :  { %6998 = vmatpush3.bf16.msra.mxu0 %v8074_v39  ;;  %6999 = vmatprep.mubr.msk.bf16.mxu0 %vm7605_vm1, %v7604_v0 }
0x39fb   :  { %7009 = vmatprep.subr.bf16.mxu0 %v7604_v0 }
0x3acc   :  { %v2821_v50 = vpop.f32.mrb[88].mxu0 }
0x3acd   :  { %v2865_v31 = vadd.f32 %v2864_v25, %v2821_v50  ;;  %v6989_v32 = vpop.f32.mrb[89].mxu0 }
0x3ace   :  { %v2824_v33 = vpop.f32.mrb[90].mxu0 }
0x3acf   :  { %v2870_v35 = vadd.f32 %v8091_v49, %v2865_v31  ;;  %v6990_v3 = vpop.f32.mrb[91].mxu0 }
0x3ad1   :  { %7478 = vtanh.f32 %v2870_v35  ;;  %v6404_v37 = vmul.f32 -1.442695, %v2870_v35 }
0x3ad3   :  { %7480 = vpow2.f32 %v6404_v37 }
0x3adb   :  { %v7479_v36 = vpop.eup %7478 }
0x3adc   :  { %2880 = vrot.lane.b32.xlu1 %v7479_v36, %s7607_s15 }
0x3add   :  { %v7481_v38 = vpop.eup %7480 }
0x3ade   :  { %v2874_v40 = vadd.f32 1.0, %v7481_v38 }
0x3ae0   :  { %7482 = vrcp.f32 %v2874_v40 }
0x3aea   :  { %v7483_v46 = vpop.eup %7482 }
0x3aeb   :  { %v2878_v48 = vmul.f32 %v7483_v46, %v2766_v55 }
0x3b4e   :  { %v2881_v42 = vpop.permute.xlu1 %2880 }
0x3b4f   :  { %v2883_v43 = vmul.f32 %v7483_v46, %v2881_v42 }
0x3b51   :  { %2885 = vrot.lane.b32.xlu0 %v2883_v43, %s7608_s16 }
0x3b55   :  { %1041 = vrot.lane.b32.xlu0 %v7886_v44, %s7609_s19 }
0x3bc3   :  { %v2886_v51 = vpop.permute.xlu0 %2885 }
0x3bc4   :  { %v2888_v5 = vadd.f32 %v2886_v51, %v2878_v48 }
0x3bc6   :  { %7484 = vtanh.f32 %v2888_v5 }
0x3bc7   :  { %v1042_v52 = vpop.permute.xlu0 %1041 }
0x3bc8   :  { %1045 = vst.msk [vmem:[#allocation2 + $0xe] sm:$0x3] %vm183_vm4, %v1042_v52 }
0x3bcf   :  { %v2900_v23 = vld [vmem:[#allocation2 + $0xe] sm:$0x3] }
0x3bd0   :  { %v7485_v57 = vpop.eup %7484  ;;  %v2901_v58 = vpack.c.bf16 %v2900_v23, %v2900_v23 }
0x3bd1   :  { %2891 = vrot.lane.b32.xlu1 %v7485_v57, %s7608_s16 }
0x3bd2   :  { %7006 = vmatmul.mubr.msk.bf16.vlgmr.msra.gmra.mrb[92].mxu1 %vm56_vm3, %v2901_v58 }
0x3bd3   :  { %7016 = vmatpush3.bf16.msra.mxu1 %v8047_v61  ;;  %7017 = vmatprep.mubr.msk.bf16.mxu1 %vm7605_vm1, %v7604_v0 }
0x3bd4   :  { %7027 = vmatprep.subr.bf16.mxu1 %v7604_v0 }
0x3c43   :  { %v2892_v44 = vpop.permute.xlu1 %2891 }
0x3c44   :  { %v8237_v59 = vmul.f32 %v7483_v46, %v2892_v44 }
0x3c46   :  { %v2902_v2 = vpack.c.bf16 %v8237_v59, %v8237_v59 }
0x3c48   :  { %2904 = vrot.lane.b32.xlu1 %v2902_v2, %s7609_s19 }
0x3ca5   :  { %v2986_v60 = vpop.f32.mrb[92].mxu1 }
0x3ca6   :  { %v7007_v62 = vpop.f32.mrb[93].mxu1 }
0x3ca7   :  { %v2989_v63 = vpop.f32.mrb[94].mxu1 }
0x3ca8   :  { %v7008_v1 = vpop.f32.mrb[95].mxu1 }
0x3cba   :  { %v2905_v4 = vpop.permute.xlu1 %2904 }
0x3cbb   :  { %7000 = vmatmul.mubr.msk.bf16.vlgmr.msra.gmra.mrb[92].mxu0 %vm56_vm3, %v2905_v4 }
0x3cbc   :  { %7010 = vmatpush3.bf16.msra.mxu0 %v8074_v39  ;;  %7011 = vmatprep.mubr.msk.bf16.mxu0 %vm7605_vm1, %v7604_v0 }
0x3cbd   :  { %7021 = vmatprep.subr.bf16.mxu0 %v7604_v0 }
0x3d8e   :  { %v2943_v18 = vpop.f32.mrb[92].mxu0 }
0x3d8f   :  { %v2987_v8 = vadd.f32 %v2986_v60, %v2943_v18  ;;  %v7001_v9 = vpop.f32.mrb[93].mxu0 }
0x3d90   :  { %v2946_v10 = vpop.f32.mrb[94].mxu0 }
0x3d91   :  { %v2992_v11 = vadd.f32 %v8091_v49, %v2987_v8  ;;  %v7002_v55 = vpop.f32.mrb[95].mxu0 }
0x3d93   :  { %7486 = vtanh.f32 %v2992_v11  ;;  %v6407_v56 = vmul.f32 -1.442695, %v2992_v11 }
0x3d95   :  { %7488 = vpow2.f32 %v6407_v56 }
0x3d9d   :  { %v7487_v12 = vpop.eup %7486 }
0x3d9e   :  { %3002 = vrot.lane.b32.xlu0 %v7487_v12, %s7607_s15 }
0x3d9f   :  { %v7489_v16 = vpop.eup %7488 }
0x3da0   :  { %v2996_v19 = vadd.f32 1.0, %v7489_v16 }
0x3da2   :  { %7490 = vrcp.f32 %v2996_v19 }
0x3dac   :  { %v7491_v15 = vpop.eup %7490 }
0x3dad   :  { %v3000_v26 = vmul.f32 %v7491_v15, %v2888_v5 }
0x3e10   :  { %v3003_v21 = vpop.permute.xlu0 %3002 }
0x3e11   :  { %v3005_v25 = vmul.f32 %v7491_v15, %v3003_v21 }
0x3e13   :  { %3007 = vrot.lane.b32.xlu1 %v3005_v25, %s7608_s16 }
0x3e17   :  { %1164 = vrot.lane.b32.xlu1 %v7908_v14, %s7609_s19 }
0x3e85   :  { %v3008_v27 = vpop.permute.xlu1 %3007 }
0x3e86   :  { %v3010_v28 = vadd.f32 %v3008_v27, %v3000_v26 }
0x3e88   :  { %7492 = vtanh.f32 %v3010_v28 }
0x3e89   :  { %v1165_v30 = vpop.permute.xlu1 %1164 }
0x3e8a   :  { %1168 = vst.msk [vmem:[#allocation2 + $0x10] sm:$0x3] %vm183_vm4, %v1165_v30 }
0x3e91   :  { %v3022_v50 = vld [vmem:[#allocation2 + $0x10] sm:$0x3] }
0x3e92   :  { %v7493_v31 = vpop.eup %7492  ;;  %v3023_v32 = vpack.c.bf16 %v3022_v50, %v3022_v50 }
0x3e93   :  { %3013 = vrot.lane.b32.xlu0 %v7493_v31, %s7608_s16 }
0x3e94   :  { %7018 = vmatmul.mubr.msk.bf16.vlgmr.msra.gmra.mrb[96].mxu1 %vm56_vm3, %v3023_v32 }
0x3e95   :  { %7028 = vmatpush3.bf16.msra.mxu1 %v8047_v61  ;;  %7029 = vmatprep.mubr.msk.bf16.mxu1 %vm7605_vm1, %v7604_v0 }
0x3e96   :  { %7039 = vmatprep.subr.bf16.mxu1 %v7604_v0 }
0x3f05   :  { %v3014_v14 = vpop.permute.xlu0 %3013 }
0x3f06   :  { %v8259_v33 = vmul.f32 %v7491_v15, %v3014_v14 }
0x3f08   :  { %v3024_v35 = vpack.c.bf16 %v8259_v33, %v8259_v33 }
0x3f0a   :  { %3026 = vrot.lane.b32.xlu0 %v3024_v35, %s7609_s19 }
0x3f67   :  { %v3108_v3 = vpop.f32.mrb[96].mxu1 }
0x3f68   :  { %v7019_v36 = vpop.f32.mrb[97].mxu1 }
0x3f69   :  { %v3111_v37 = vpop.f32.mrb[98].mxu1 }
0x3f6a   :  { %v7020_v38 = vpop.f32.mrb[99].mxu1 }
0x3f7c   :  { %v3027_v40 = vpop.permute.xlu0 %3026 }
0x3f7d   :  { %7012 = vmatmul.mubr.msk.bf16.vlgmr.msra.gmra.mrb[96].mxu0 %vm56_vm3, %v3027_v40 }
0x3f7e   :  { %7022 = vmatpush3.bf16.msra.mxu0 %v8074_v39  ;;  %7023 = vmatprep.mubr.msk.bf16.mxu0 %vm7605_vm1, %v7604_v0 }
0x3f7f   :  { %7033 = vmatprep.subr.bf16.mxu0 %v7604_v0 }
0x4050   :  { %v3065_v46 = vpop.f32.mrb[96].mxu0 }
0x4051   :  { %v3109_v42 = vadd.f32 %v3108_v3, %v3065_v46  ;;  %v7013_v43 = vpop.f32.mrb[97].mxu0 }
0x4052   :  { %v3068_v48 = vpop.f32.mrb[98].mxu0 }
0x4053   :  { %v3114_v51 = vadd.f32 %v8091_v49, %v3109_v42  ;;  %v7014_v5 = vpop.f32.mrb[99].mxu0 }
0x4055   :  { %7494 = vtanh.f32 %v3114_v51  ;;  %v6410_v23 = vmul.f32 -1.442695, %v3114_v51 }
0x4057   :  { %7496 = vpow2.f32 %v6410_v23 }
0x405f   :  { %v7495_v52 = vpop.eup %7494 }
0x4060   :  { %3124 = vrot.lane.b32.xlu1 %v7495_v52, %s7607_s15 }
0x4061   :  { %v7497_v57 = vpop.eup %7496 }
0x4062   :  { %v3118_v58 = vadd.f32 1.0, %v7497_v57 }
0x4064   :  { %7498 = vrcp.f32 %v3118_v58 }
0x406e   :  { %v7499_v44 = vpop.eup %7498 }
0x406f   :  { %v3122_v62 = vmul.f32 %v7499_v44, %v3010_v28 }
0x40d2   :  { %v3125_v2 = vpop.permute.xlu1 %3124 }
0x40d3   :  { %v3127_v60 = vmul.f32 %v7499_v44, %v3125_v2 }
0x40d5   :  { %3129 = vrot.lane.b32.xlu0 %v3127_v60, %s7608_s16 }
0x40d9   :  { %1287 = vrot.lane.b32.xlu0 %v7930_v45, %s7609_s19 }
0x4147   :  { %v3130_v63 = vpop.permute.xlu0 %3129 }
0x4148   :  { %v3132_v1 = vadd.f32 %v3130_v63, %v3122_v62 }
0x414a   :  { %7500 = vtanh.f32 %v3132_v1 }
0x414b   :  { %v1288_v4 = vpop.permute.xlu0 %1287 }
0x414c   :  { %1291 = vst.msk [vmem:[#allocation2 + $0x12] sm:$0x3] %vm183_vm4, %v1288_v4 }
0x4153   :  { %v3144_v18 = vld [vmem:[#allocation2 + $0x12] sm:$0x3] }
0x4154   :  { %v7501_v8 = vpop.eup %7500  ;;  %v3145_v9 = vpack.c.bf16 %v3144_v18, %v3144_v18 }
0x4155   :  { %3135 = vrot.lane.b32.xlu1 %v7501_v8, %s7608_s16 }
0x4156   :  { %7030 = vmatmul.mubr.msk.bf16.vlgmr.msra.gmra.mrb[100].mxu1 %vm56_vm3, %v3145_v9 }
0x4157   :  { %7040 = vmatpush3.bf16.msra.mxu1 %v8047_v61  ;;  %7041 = vmatprep.mubr.msk.bf16.mxu1 %vm7605_vm1, %v7604_v0 }
0x4158   :  { %7051 = vmatprep.subr.bf16.mxu1 %v7604_v0 }
0x41c7   :  { %v3136_v45 = vpop.permute.xlu1 %3135 }
0x41c8   :  { %v8281_v10 = vmul.f32 %v7499_v44, %v3136_v45 }
0x41ca   :  { %v3146_v11 = vpack.c.bf16 %v8281_v10, %v8281_v10 }
0x41cc   :  { %3148 = vrot.lane.b32.xlu1 %v3146_v11, %s7609_s19 }
0x4229   :  { %v3230_v55 = vpop.f32.mrb[100].mxu1 }
0x422a   :  { %v7031_v12 = vpop.f32.mrb[101].mxu1 }
0x422b   :  { %v3233_v56 = vpop.f32.mrb[102].mxu1 }
0x422c   :  { %v7032_v16 = vpop.f32.mrb[103].mxu1 }
0x423e   :  { %v3149_v19 = vpop.permute.xlu1 %3148 }
0x423f   :  { %7024 = vmatmul.mubr.msk.bf16.vlgmr.msra.gmra.mrb[100].mxu0 %vm56_vm3, %v3149_v19 }
0x4240   :  { %7034 = vmatpush3.bf16.msra.mxu0 %v8074_v39  ;;  %7035 = vmatprep.mubr.msk.bf16.mxu0 %vm7605_vm1, %v7604_v0 }
0x4241   :  { %7045 = vmatprep.subr.bf16.mxu0 %v7604_v0 }
0x4312   :  { %v3187_v15 = vpop.f32.mrb[100].mxu0 }
0x4313   :  { %v3231_v21 = vadd.f32 %v3230_v55, %v3187_v15  ;;  %v7025_v25 = vpop.f32.mrb[101].mxu0 }
0x4314   :  { %v3190_v26 = vpop.f32.mrb[102].mxu0 }
0x4315   :  { %v3236_v27 = vadd.f32 %v8091_v49, %v3231_v21  ;;  %v7026_v28 = vpop.f32.mrb[103].mxu0  ;;  %v8324_v21 = vld [vmem:[%s9085_s4] sm:$0xff]  }
0x4317   :  { %7502 = vtanh.f32 %v3236_v27  ;;  %v6413_v50 = vmul.f32 -1.442695, %v3236_v27 }
0x4319   :  { %7504 = vpow2.f32 %v6413_v50 }
0x4321   :  { %v7503_v30 = vpop.eup %7502 }
0x4322   :  { %3246 = vrot.lane.b32.xlu0 %v7503_v30, %s7607_s15 }
0x4323   :  { %v7505_v31 = vpop.eup %7504 }
0x4324   :  { %v3240_v32 = vadd.f32 1.0, %v7505_v31 }
0x4326   :  { %7506 = vrcp.f32 %v3240_v32  ;;  %v8339_v32 = vld [vmem:[%s9086_s5] sm:$0xff]  }
0x4330   :  { %v7507_v14 = vpop.eup %7506 }
0x4331   :  { %v3244_v36 = vmul.f32 %v7507_v14, %v3132_v1 }
0x4394   :  { %v3247_v35 = vpop.permute.xlu0 %3246 }
0x4395   :  { %v3249_v3 = vmul.f32 %v7507_v14, %v3247_v35 }
0x4397   :  { %3251 = vrot.lane.b32.xlu1 %v3249_v3, %s7608_s16 }
0x439b   :  { %1410 = vrot.lane.b32.xlu1 %v7952_v17, %s7609_s19 }
0x4409   :  { %v3252_v37 = vpop.permute.xlu1 %3251 }
0x440a   :  { %v3254_v38 = vadd.f32 %v3252_v37, %v3244_v36 }
0x440c   :  { %7508 = vtanh.f32 %v3254_v38 }
0x440d   :  { %v1411_v40 = vpop.permute.xlu1 %1410 }
0x440e   :  { %1414 = vst.msk [vmem:[#allocation2 + $0x14] sm:$0x3] %vm183_vm4, %v1411_v40 }
0x4415   :  { %v3266_v46 = vld [vmem:[#allocation2 + $0x14] sm:$0x3] }
0x4416   :  { %v7509_v42 = vpop.eup %7508  ;;  %v3267_v43 = vpack.c.bf16 %v3266_v46, %v3266_v46 }
0x4417   :  { %3257 = vrot.lane.b32.xlu0 %v7509_v42, %s7608_s16 }
0x4418   :  { %7042 = vmatmul.mubr.msk.bf16.vlgmr.msra.gmra.mrb[104].mxu1 %vm56_vm3, %v3267_v43 }
0x4419   :  { %7052 = vmatpush3.bf16.msra.mxu1 %v8047_v61  ;;  %7053 = vmatprep.mubr.msk.bf16.mxu1 %vm7605_vm1, %v7604_v0 }
0x441a   :  { %7063 = vmatprep.subr.bf16.mxu1 %v7604_v0 }
0x4489   :  { %v3258_v17 = vpop.permute.xlu0 %3257 }
0x448a   :  { %v8303_v48 = vmul.f32 %v7507_v14, %v3258_v17 }
0x448c   :  { %v3268_v51 = vpack.c.bf16 %v8303_v48, %v8303_v48 }
0x448e   :  { %3270 = vrot.lane.b32.xlu0 %v3268_v51, %s7609_s19 }
0x44eb   :  { %v3352_v5 = vpop.f32.mrb[104].mxu1 }
0x44ec   :  { %v7043_v52 = vpop.f32.mrb[105].mxu1 }
0x44ed   :  { %v3355_v23 = vpop.f32.mrb[106].mxu1 }
0x44ee   :  { %v7044_v57 = vpop.f32.mrb[107].mxu1 }
0x4500   :  { %v3271_v58 = vpop.permute.xlu0 %3270 }
0x4501   :  { %7036 = vmatmul.mubr.msk.bf16.vlgmr.msra.gmra.mrb[104].mxu0 %vm56_vm3, %v3271_v58 }
0x4502   :  { %7046 = vmatpush3.bf16.msra.mxu0 %v8074_v39  ;;  %7047 = vmatprep.mubr.msk.bf16.mxu0 %vm7605_vm1, %v7604_v0 }
0x4503   :  { %7057 = vmatprep.subr.bf16.mxu0 %v7604_v0 }
0x45d4   :  { %v3309_v61 = vpop.f32.mrb[104].mxu0 }
0x45d5   :  { %v3353_v44 = vadd.f32 %v3352_v5, %v3309_v61  ;;  %v7037_v2 = vpop.f32.mrb[105].mxu0 }
0x45d6   :  { %v3312_v60 = vpop.f32.mrb[106].mxu0 }
0x45d7   :  { %v3358_v62 = vadd.f32 %v8091_v49, %v3353_v44  ;;  %v7038_v63 = vpop.f32.mrb[107].mxu0 }
0x45d9   :  { %7510 = vtanh.f32 %v3358_v62  ;;  %v6416_v4 = vmul.f32 -1.442695, %v3358_v62 }
0x45db   :  { %7512 = vpow2.f32 %v6416_v4 }
0x45e3   :  { %v7511_v1 = vpop.eup %7510 }
0x45e4   :  { %3368 = vrot.lane.b32.xlu1 %v7511_v1, %s7607_s15 }
0x45e5   :  { %v7513_v18 = vpop.eup %7512 }
0x45e6   :  { %v3362_v39 = vadd.f32 1.0, %v7513_v18 }
0x45e8   :  { %7514 = vrcp.f32 %v3362_v39 }
0x45f2   :  { %v7515_v8 = vpop.eup %7514 }
0x45f3   :  { %v3366_v11 = vmul.f32 %v7515_v8, %v3254_v38 }
0x4656   :  { %v3369_v9 = vpop.permute.xlu1 %3368 }
0x4657   :  { %v3371_v45 = vmul.f32 %v7515_v8, %v3369_v9 }
0x4659   :  { %3373 = vrot.lane.b32.xlu0 %v3371_v45, %s7608_s16 }
0x465d   :  { %1533 = vrot.lane.b32.xlu0 %v7974_v47, %s7609_s19 }
0x46cb   :  { %v3374_v55 = vpop.permute.xlu0 %3373 }
0x46cc   :  { %v3376_v12 = vadd.f32 %v3374_v55, %v3366_v11  ;;  %v8370_v11 = vld [vmem:[%s9087_s6] ss:$0 sm:$0xff] }
0x46ce   :  { %7516 = vtanh.f32 %v3376_v12 }
0x46cf   :  { %v1534_v56 = vpop.permute.xlu0 %1533 }
0x46d0   :  { %1537 = vst.msk [vmem:[#allocation2 + $0x16] sm:$0x3] %vm183_vm4, %v1534_v56 }
0x46d7   :  { %v3388_v16 = vld [vmem:[#allocation2 + $0x16] sm:$0x3] }
0x46d8   :  { %v7517_v19 = vpop.eup %7516  ;;  %v3389_v15 = vpack.c.bf16 %v3388_v16, %v3388_v16 }
0x46d9   :  { %3379 = vrot.lane.b32.xlu1 %v7517_v19, %s7608_s16 }
0x46da   :  { %7054 = vmatmul.mubr.msk.bf16.vlgmr.msra.gmra.mrb[108].mxu1 %vm56_vm3, %v3389_v15 }
0x46db   :  { %7064 = vmatpush3.bf16.msra.mxu1 %v8324_v21  ;;  %7065 = vmatprep.mubr.msk.bf16.mxu1 %vm7605_vm1, %v7604_v0 }
0x46dc   :  { %7075 = vmatprep.subr.bf16.mxu1 %v7604_v0 }
0x474b   :  { %v3380_v47 = vpop.permute.xlu1 %3379 }
0x474c   :  { %v8330_v25 = vmul.f32 %v7515_v8, %v3380_v47 }
0x474e   :  { %v3390_v26 = vpack.c.bf16 %v8330_v25, %v8330_v25 }
0x4750   :  { %3392 = vrot.lane.b32.xlu1 %v3390_v26, %s7609_s19 }
0x47ad   :  { %v3474_v27 = vpop.f32.mrb[108].mxu1 }
0x47ae   :  { %v7055_v28 = vpop.f32.mrb[109].mxu1 }
0x47af   :  { %v3477_v30 = vpop.f32.mrb[110].mxu1 }
0x47b0   :  { %v7056_v50 = vpop.f32.mrb[111].mxu1 }
0x47c2   :  { %v3393_v31 = vpop.permute.xlu1 %3392 }
0x47c3   :  { %7048 = vmatmul.mubr.msk.bf16.vlgmr.msra.gmra.mrb[108].mxu0 %vm56_vm3, %v3393_v31 }
0x47c4   :  { %7058 = vmatpush3.bf16.msra.mxu0 %v8339_v32  ;;  %7059 = vmatprep.mubr.msk.bf16.mxu0 %vm7605_vm1, %v7604_v0 }
0x47c5   :  { %7069 = vmatprep.subr.bf16.mxu0 %v7604_v0 }
0x4896   :  { %v3431_v14 = vpop.f32.mrb[108].mxu0 }
0x4897   :  { %v3475_v35 = vadd.f32 %v3474_v27, %v3431_v14  ;;  %v7049_v3 = vpop.f32.mrb[109].mxu0 }
0x4898   :  { %v3434_v36 = vpop.f32.mrb[110].mxu0 }
0x4899   :  { %v3480_v37 = vadd.f32 %v8091_v49, %v3475_v35  ;;  %v7050_v38 = vpop.f32.mrb[111].mxu0 }
0x489b   :  { %7518 = vtanh.f32 %v3480_v37  ;;  %v6419_v46 = vmul.f32 -1.442695, %v3480_v37 }
0x489d   :  { %7520 = vpow2.f32 %v6419_v46 }
0x48a5   :  { %v7519_v40 = vpop.eup %7518 }
0x48a6   :  { %3490 = vrot.lane.b32.xlu0 %v7519_v40, %s7607_s15 }
0x48a7   :  { %v7521_v42 = vpop.eup %7520 }
0x48a8   :  { %v3484_v43 = vadd.f32 1.0, %v7521_v42 }
0x48aa   :  { %7522 = vrcp.f32 %v3484_v43 }
0x48b4   :  { %v7523_v17 = vpop.eup %7522 }
0x48b5   :  { %v3488_v52 = vmul.f32 %v7523_v17, %v3376_v12 }
0x4918   :  { %v3491_v51 = vpop.permute.xlu0 %3490 }
0x4919   :  { %v3493_v5 = vmul.f32 %v7523_v17, %v3491_v51 }
0x491b   :  { %3495 = vrot.lane.b32.xlu1 %v3493_v5, %s7608_s16 }
0x491f   :  { %1656 = vrot.lane.b32.xlu1 %v8006_v22, %s7609_s19 }
0x498d   :  { %v3496_v49 = vpop.permute.xlu1 %3495 }
0x498e   :  { %v3498_v23 = vadd.f32 %v3496_v49, %v3488_v52 }
0x4990   :  { %7524 = vtanh.f32 %v3498_v23 }
0x4991   :  { %v1657_v57 = vpop.permute.xlu1 %1656 }
0x4992   :  { %1660 = vst.msk [vmem:[#allocation2 + $0x18] sm:$0x3] %vm183_vm4, %v1657_v57 }
0x4999   :  { %v3510_v58 = vld [vmem:[#allocation2 + $0x18] sm:$0x3] }
0x499a   :  { %v7525_v61 = vpop.eup %7524  ;;  %v3511_v44 = vpack.c.bf16 %v3510_v58, %v3510_v58 }
0x499b   :  { %3501 = vrot.lane.b32.xlu0 %v7525_v61, %s7608_s16 }
0x499c   :  { %7066 = vmatmul.mubr.msk.bf16.vlgmr.msra.gmra.mrb[112].mxu1 %vm56_vm3, %v3511_v44 }
0x499d   :  { %7076 = vmatpush3.bf16.msra.mxu1 %v8324_v21  ;;  %7077 = vmatprep.mubr.msk.bf16.mxu1 %vm7605_vm1, %v7604_v0 }
0x499e   :  { %7087 = vmatprep.subr.bf16.mxu1 %v7604_v0 }
0x4a0d   :  { %v3502_v22 = vpop.permute.xlu0 %3501 }
0x4a0e   :  { %v8357_v2 = vmul.f32 %v7523_v17, %v3502_v22  ;;  %v7603_v22 = vld [vmem:[%s9084_s3] ss:$0 sm:$0xff] }
0x4a10   :  { %v3512_v60 = vpack.c.bf16 %v8357_v2, %v8357_v2 }
0x4a12   :  { %3514 = vrot.lane.b32.xlu0 %v3512_v60, %s7609_s19  ;;  %v1999_v60 = vadd.f32 %v7603_v22, %v8086_v7 }
0x4a6f   :  { %v3596_v62 = vpop.f32.mrb[112].mxu1 }
0x4a70   :  { %v7067_v63 = vpop.f32.mrb[113].mxu1 }
0x4a71   :  { %v3599_v1 = vpop.f32.mrb[114].mxu1 }
0x4a72   :  { %v7068_v4 = vpop.f32.mrb[115].mxu1 }
0x4a84   :  { %v3515_v18 = vpop.permute.xlu0 %3514 }
0x4a85   :  { %7060 = vmatmul.mubr.msk.bf16.vlgmr.msra.gmra.mrb[112].mxu0 %vm56_vm3, %v3515_v18  ;;  %v6381_v18 = vmul.f32 -1.442695, %v1999_v60 }
0x4a86   :  { %7070 = vmatpush3.bf16.msra.mxu0 %v8339_v32  ;;  %7071 = vmatprep.mubr.msk.bf16.mxu0 %vm7605_vm1, %v7604_v0 }
0x4a87   :  { %7081 = vmatprep.subr.bf16.mxu0 %v7604_v0 }
0x4b58   :  { %v3553_v39 = vpop.f32.mrb[112].mxu0 }
0x4b59   :  { %v3597_v8 = vadd.f32 %v3596_v62, %v3553_v39  ;;  %v7061_v9 = vpop.f32.mrb[113].mxu0 }
0x4b5a   :  { %v3556_v45 = vpop.f32.mrb[114].mxu0 }
0x4b5b   :  { %v3602_v55 = vadd.f32 %v8370_v11, %v3597_v8  ;;  %v7062_v12 = vpop.f32.mrb[115].mxu0 }
0x4b5d   :  { %7526 = vtanh.f32 %v3602_v55  ;;  %v6422_v16 = vmul.f32 -1.442695, %v3602_v55 }
0x4b5f   :  { %7528 = vpow2.f32 %v6422_v16 }
0x4b67   :  { %v7527_v56 = vpop.eup %7526 }
0x4b68   :  { %3612 = vrot.lane.b32.xlu1 %v7527_v56, %s7607_s15 }
0x4b69   :  { %v7529_v19 = vpop.eup %7528 }
0x4b6a   :  { %v3606_v15 = vadd.f32 1.0, %v7529_v19 }
0x4b6c   :  { %7530 = vrcp.f32 %v3606_v15 }
0x4b76   :  { %v7531_v47 = vpop.eup %7530 }
0x4b77   :  { %v3610_v28 = vmul.f32 %v7531_v47, %v3498_v23 }
0x4bda   :  { %v3613_v26 = vpop.permute.xlu1 %3612 }
0x4bdb   :  { %v3615_v27 = vmul.f32 %v7531_v47, %v3613_v26 }
0x4bdd   :  { %3617 = vrot.lane.b32.xlu0 %v3615_v27, %s7608_s16 }
0x4be1   :  { %1779 = vrot.lane.b32.xlu0 %v8028_v53, %s7609_s19 }
0x4c4f   :  { %v3618_v30 = vpop.permute.xlu0 %3617 }
0x4c50   :  { %v3620_v50 = vadd.f32 %v3618_v30, %v3610_v28 }
0x4c52   :  { %7532 = vtanh.f32 %v3620_v50 }
0x4c53   :  { %v1780_v31 = vpop.permute.xlu0 %1779 }
0x4c54   :  { %1783 = vst.msk [vmem:[#allocation2 + $0x1a] sm:$0x3] %vm183_vm4, %v1780_v31 }
0x4c5b   :  { %v3632_v14 = vld [vmem:[#allocation2 + $0x1a] sm:$0x3] }
0x4c5c   :  { %v7533_v35 = vpop.eup %7532  ;;  %v3633_v3 = vpack.c.bf16 %v3632_v14, %v3632_v14 }
0x4c5d   :  { %3623 = vrot.lane.b32.xlu1 %v7533_v35, %s7608_s16 }
0x4c5e   :  { %7078 = vmatmul.mubr.msk.bf16.vlgmr.msra.gmra.mrb[116].mxu1 %vm56_vm3, %v3633_v3 }
0x4c5f   :  { %7088 = vmatpush3.bf16.msra.mxu1 %v8324_v21  ;;  %7089 = vmatprep.mubr.msk.bf16.mxu1 %vm7605_vm1, %v7604_v0 }
0x4c60   :  { %7099 = vmatprep.subr.bf16.mxu1 %v7604_v0 }
0x4ccf   :  { %v3624_v53 = vpop.permute.xlu1 %3623 }
0x4cd0   :  { %v8384_v36 = vmul.f32 %v7531_v47, %v3624_v53 }
0x4cd2   :  { %v3634_v37 = vpack.c.bf16 %v8384_v36, %v8384_v36 }
0x4cd4   :  { %3636 = vrot.lane.b32.xlu1 %v3634_v37, %s7609_s19 }
0x4d31   :  { %v3718_v38 = vpop.f32.mrb[116].mxu1 }
0x4d32   :  { %v7079_v40 = vpop.f32.mrb[117].mxu1 }
0x4d33   :  { %v3721_v46 = vpop.f32.mrb[118].mxu1 }
0x4d34   :  { %v7080_v42 = vpop.f32.mrb[119].mxu1 }
0x4d46   :  { %v3637_v43 = vpop.permute.xlu1 %3636 }
0x4d47   :  { %7072 = vmatmul.mubr.msk.bf16.vlgmr.msra.gmra.mrb[116].mxu0 %vm56_vm3, %v3637_v43 }
0x4d48   :  { %7082 = vmatpush3.bf16.msra.mxu0 %v8339_v32  ;;  %7083 = vmatprep.mubr.msk.bf16.mxu0 %vm7605_vm1, %v7604_v0 }
0x4d49   :  { %7093 = vmatprep.subr.bf16.mxu0 %v7604_v0 }
0x4e1a   :  { %v3675_v17 = vpop.f32.mrb[116].mxu0 }
0x4e1b   :  { %v3719_v51 = vadd.f32 %v3718_v38, %v3675_v17  ;;  %v7073_v5 = vpop.f32.mrb[117].mxu0 }
0x4e1c   :  { %v3678_v52 = vpop.f32.mrb[118].mxu0 }
0x4e1d   :  { %v3724_v49 = vadd.f32 %v8370_v11, %v3719_v51  ;;  %v7074_v23 = vpop.f32.mrb[119].mxu0 }
0x4e1f   :  { %7534 = vtanh.f32 %v3724_v49  ;;  %v6425_v58 = vmul.f32 -1.442695, %v3724_v49 }
0x4e21   :  { %7536 = vpow2.f32 %v6425_v58 }
0x4e29   :  { %v7535_v57 = vpop.eup %7534 }
0x4e2a   :  { %3734 = vrot.lane.b32.xlu0 %v7535_v57, %s7607_s15 }
0x4e2b   :  { %v7537_v61 = vpop.eup %7536 }
0x4e2c   :  { %v3728_v44 = vadd.f32 1.0, %v7537_v61 }
0x4e2e   :  { %7538 = vrcp.f32 %v3728_v44 }
0x4e2f   :  { %7540 = vtanh.f32 %v1999_v60 }
0x4e30   :  { %7542 = vpow2.f32 %v6381_v18 }
0x4e38   :  { %v7539_v62 = vpop.eup %7538 }
0x4e39   :  { %v7541_v4 = vpop.eup %7540  ;;  %v3732_v9 = vmul.f32 %v7539_v62, %v3620_v50 }
0x4e3a   :  { %v7543_v39 = vpop.eup %7542 }
0x4e3b   :  { %v2003_v8 = vadd.f32 1.0, %v7543_v39 }
0x4e3d   :  { %7544 = vrcp.f32 %v2003_v8 }
0x4e47   :  { %v7545_v12 = vpop.eup %7544 }
0x4e48   :  { %v2007_v47 = vmul.f32 %v7545_v12, %v8056_v24 }
0x4e9c   :  { %v3735_v63 = vpop.permute.xlu0 %3734 }
0x4e9d   :  { %v3737_v1 = vmul.f32 %v7539_v62, %v3735_v63 }
0x4e9f   :  { %3739 = vrot.lane.b32.xlu1 %v3737_v1, %s7608_s16 }
0x4ea3   :  { %1902 = vrot.lane.b32.xlu1 %v8066_v34, %s7609_s19 }
0x4ea7   :  { %2009 = vrot.lane.b32.xlu1 %v7541_v4, %s7607_s15 }
0x4f11   :  { %v3740_v45 = vpop.permute.xlu1 %3739 }
0x4f12   :  { %v8404_v7 = vadd.f32 %v3740_v45, %v3732_v9 }
0x4f14   :  { %7546 = vtanh.f32 %v8404_v7 }
0x4f15   :  { %v1903_v55 = vpop.permute.xlu1 %1902 }
0x4f16   :  { %1906 = vst.msk [vmem:[#allocation2 + $0x1c] sm:$0x3] %vm183_vm4, %v1903_v55 }
0x4f19   :  { %v2010_v56 = vpop.permute.xlu1 %2009 }
0x4f1a   :  { %v2012_v34 = vmul.f32 %v7545_v12, %v2010_v56 }
0x4f1c   :  { %2014 = vrot.lane.b32.xlu1 %v2012_v34, %s7608_s16 }
0x4f1d   :  { %v3754_v16 = vld [vmem:[#allocation2 + $0x1c] sm:$0x3] }
0x4f1e   :  { %v7547_v19 = vpop.eup %7546  ;;  %v3755_v15 = vpack.c.bf16 %v3754_v16, %v3754_v16 }
0x4f1f   :  { %3745 = vrot.lane.b32.xlu0 %v7547_v19, %s7608_s16 }
0x4f20   :  { %7090 = vmatmul.mubr.msk.bf16.vlgmr.msra.gmra.mrb[120].mxu1 %vm56_vm3, %v3755_v15 }
0x4f21   :  { %7100 = vmatpush3.bf16.msra.mxu1 %v8324_v21  ;;  %7101 = vmatprep.mubr.msk.bf16.mxu1 %vm7605_vm1, %v7604_v0 }
0x4f22   :  { %7111 = vmatprep.subr.bf16.mxu1 %v7604_v0 }
0x4f8e   :  { %v2015_v26 = vpop.permute.xlu1 %2014 }
0x4f8f   :  { %v2017_v27 = vadd.f32 %v2015_v26, %v2007_v47 }
0x4f91   :  { %7548 = vtanh.f32 %v2017_v27  ;;  %v3746_v28 = vpop.permute.xlu0 %3745 }
0x4f92   :  { %v8416_v30 = vmul.f32 %v7539_v62, %v3746_v28 }
0x4f94   :  { %v3756_v50 = vpack.c.bf16 %v8416_v30, %v8416_v30 }
0x4f96   :  { %3758 = vrot.lane.b32.xlu0 %v3756_v50, %s7609_s19 }
0x4f9b   :  { %v7549_v31 = vpop.eup %7548 }
0x4f9c   :  { %2020 = vrot.lane.b32.xlu1 %v7549_v31, %s7608_s16 }
0x4ff3   :  { %v3840_v21 = vpop.f32.mrb[120].mxu1 }
0x4ff4   :  { %v7091_v14 = vpop.f32.mrb[121].mxu1 }
0x4ff5   :  { %v3843_v35 = vpop.f32.mrb[122].mxu1 }
0x4ff6   :  { %v7092_v3 = vpop.f32.mrb[123].mxu1 }
0x5008   :  { %v3759_v53 = vpop.permute.xlu0 %3758 }
0x5009   :  { %7084 = vmatmul.mubr.msk.bf16.vlgmr.msra.gmra.mrb[120].mxu0 %vm56_vm3, %v3759_v53 }
0x500a   :  { %7094 = vmatpush3.bf16.msra.mxu0 %v8339_v32  ;;  %7095 = vmatprep.mubr.msk.bf16.mxu0 %vm7605_vm1, %v7604_v0 }
0x500b   :  { %7105 = vmatprep.subr.bf16.mxu0 %v7604_v0 }
0x500e   :  { %v2021_v24 = vpop.permute.xlu1 %2020 }
0x500f   :  { %v2023_v37 = vmul.f32 %v7545_v12, %v2021_v24 }
0x5011   :  { %2025 = vrot.lane.b32.xlu1 %v2023_v37, %s7609_s19 }
0x5083   :  { %v2026_v38 = vpop.permute.xlu1 %2025 }
0x5084   :  { %2029 = vst.msk [vmem:[#allocation2 + $0x1e] sm:$0x3] %vm183_vm4, %v2026_v38 }
0x508b   :  { %v3876_v40 = vld [vmem:[#allocation2 + $0x1e] sm:$0x3] }
0x508c   :  { %v3877_v46 = vpack.c.bf16 %v3876_v40, %v3876_v40 }
0x508e   :  { %7102 = vmatmul.mubr.msk.bf16.vlgmr.msra.gmra.mrb[124].mxu1 %vm56_vm3, %v3877_v46 }
0x508f   :  { %7113 = vmatprep.mubr.msk.bf16.mxu1 %vm7605_vm1, %v7604_v0 }
0x50dc   :  { %v3797_v32 = vpop.f32.mrb[120].mxu0 }
0x50dd   :  { %v3841_v42 = vadd.f32 %v3840_v21, %v3797_v32  ;;  %v7085_v43 = vpop.f32.mrb[121].mxu0 }
0x50de   :  { %v3800_v17 = vpop.f32.mrb[122].mxu0 }
0x50df   :  { %v3846_v51 = vadd.f32 %v8370_v11, %v3841_v42  ;;  %v7086_v5 = vpop.f32.mrb[123].mxu0 }
0x50e1   :  { %7550 = vtanh.f32 %v3846_v51  ;;  %v6428_v49 = vmul.f32 -1.442695, %v3846_v51 }
0x50e3   :  { %7552 = vpow2.f32 %v6428_v49 }
0x50eb   :  { %v7551_v52 = vpop.eup %7550 }
0x50ec   :  { %3856 = vrot.lane.b32.xlu0 %v7551_v52, %s7607_s15 }
0x50ed   :  { %v7553_v23 = vpop.eup %7552 }
0x50ee   :  { %v3850_v57 = vadd.f32 1.0, %v7553_v23 }
0x50f0   :  { %7554 = vrcp.f32 %v3850_v57 }
0x50fa   :  { %v7555_v58 = vpop.eup %7554 }
0x50fb   :  { %v3854_v1 = vmul.f32 %v7555_v58, %v8404_v7 }
0x515e   :  { %v3857_v61 = vpop.permute.xlu0 %3856 }
0x515f   :  { %v3859_v44 = vmul.f32 %v7555_v58, %v3857_v61 }
0x5161   :  { %3861 = vrot.lane.b32.xlu0 %v3859_v44, %s7608_s16  ;;  %v3962_v22 = vpop.f32.mrb[124].mxu1 }
0x5162   :  { %v7103_v60 = vpop.f32.mrb[125].mxu1 }
0x5163   :  { %v3965_v62 = vpop.f32.mrb[126].mxu1 }
0x5164   :  { %v7104_v63 = vpop.f32.mrb[127].mxu1 }
0x51d3   :  { %v3862_v4 = vpop.permute.xlu0 %3861 }
0x51d4   :  { %v8436_v18 = vadd.f32 %v3862_v4, %v3854_v1 }
0x51d6   :  { %7556 = vtanh.f32 %v8436_v18 }
0x51e0   :  { %v7557_v39 = vpop.eup %7556 }
0x51e1   :  { %3867 = vrot.lane.b32.xlu0 %v7557_v39, %s7608_s16 }
0x5253   :  { %v3868_v8 = vpop.permute.xlu0 %3867 }
0x5254   :  { %v8440_v9 = vmul.f32 %v7555_v58, %v3868_v8 }
0x5256   :  { %v3878_v45 = vpack.c.bf16 %v8440_v9, %v8440_v9 }
0x5258   :  { %3880 = vrot.lane.b32.xlu0 %v3878_v45, %s7609_s19 }
0x525c   :  { %2286 = vrot.lane.b32.xlu0 %v8127_v54, %s7609_s19 }
0x5260   :  { %2530 = vrot.lane.b32.xlu0 %v8171_v6, %s7609_s19 }
0x5264   :  { %2774 = vrot.lane.b32.xlu0 %v8215_v20, %s7609_s19 }
0x5268   :  { %3018 = vrot.lane.b32.xlu0 %v8259_v33, %s7609_s19 }
0x526c   :  { %3140 = vrot.lane.b32.xlu0 %v8281_v10, %s7609_s19 }
0x5270   :  { %3262 = vrot.lane.b32.xlu0 %v8303_v48, %s7609_s19 }
0x52ca   :  { %v3881_v7 = vpop.permute.xlu0 %3880 }
0x52cb   :  { %7096 = vmatmul.mubr.msk.bf16.vlgmr.msra.gmra.mrb[124].mxu0 %vm56_vm3, %v3881_v7 }
0x52cc   :  { %7107 = vmatprep.mubr.msk.bf16.mxu0 %vm7605_vm1, %v7604_v0 }
0x52ce   :  { %v2287_v54 = vpop.permute.xlu0 %2286 }
0x52cf   :  { %2289 = vst.msk [vmem:[#allocation2 + $0x2] sm:$0x3] %vm183_vm4, %v2287_v54 }
0x52d2   :  { %v2531_v6 = vpop.permute.xlu0 %2530 }
0x52d3   :  { %2533 = vst.msk [vmem:[#allocation2 + $0x6] sm:$0x3] %vm183_vm4, %v2531_v6 }
0x52d6   :  { %v2775_v20 = vpop.permute.xlu0 %2774  ;;  %v8462_v33 = vld [vmem:[#allocation2 + $0x2] sm:$0x3] }
0x52d7   :  { %2777 = vst.msk [vmem:[#allocation2 + $0xa] sm:$0x3] %vm183_vm4, %v2775_v20  ;;  %v4170_v10 = vsel %vm183_vm4, %v8462_v33, 0.0 }
0x52d8   :  { %4171 = vadd.xlane.f32.xlu0 %v4170_v10 }
0x52da   :  { %v3019_v48 = vpop.permute.xlu0 %3018  ;;  %v8516_v17 = vld [vmem:[#allocation2 + $0x6] sm:$0x3] }
0x52db   :  { %3021 = vst.msk [vmem:[#allocation2 + $0xe] sm:$0x3] %vm183_vm4, %v3019_v48  ;;  %v4456_v51 = vsel %vm183_vm4, %v8516_v17, 0.0 }
0x52de   :  { %v3141_v55 = vpop.permute.xlu0 %3140  ;;  %v8506_v38 = vld [vmem:[#allocation2 + $0xa] sm:$0x3] }
0x52df   :  { %3143 = vst.msk [vmem:[#allocation2 + $0x10] sm:$0x3] %vm183_vm4, %v3141_v55 }
0x52e2   :  { %v3263_v12 = vpop.permute.xlu0 %3262 }
0x52e3   :  { %3265 = vst.msk [vmem:[#allocation2 + $0x12] sm:$0x3] %vm183_vm4, %v3263_v12 }
0x52e6   :  { %v8531_v7 = vld [vmem:[#allocation2 + $0x10] sm:$0x3] }
0x52e7   :  { %v5171_v10 = vsel %vm183_vm4, %v8531_v7, 0.0 }
0x52ea   :  { %v8535_v48 = vld [vmem:[#allocation2 + $0x12] sm:$0x3] }
0x5365   :  { %v4172_v40 = vpop.xlane.xlu0 %4171 }
0x5366   :  { %v4173_v58 = vsel %vm4008_vm5, %v4172_v40, 0.0 }
0x5367   :  { %v4174_v61 = vrot.slane %v4173_v58, 4 }
0x5369   :  { %v4175_v60 = vadd.f32 %v4174_v61, %v4173_v58 }
0x536b   :  { %v4176_v1 = vrot.slane %v4175_v60, 2 }
0x536d   :  { %v4177_v8 = vadd.f32 %v4176_v1, %v4175_v60 }
0x536f   :  { %v4178_v54 = vrot.slane %v4177_v8, 1 }
0x5371   :  { %v4179_v55 = vadd.f32 %v4178_v54, %v4177_v8 }
0x539e   :  { %v3919_v56 = vpop.f32.mrb[124].mxu0 }
0x539f   :  { %v3963_v34 = vadd.f32 %v3962_v22, %v3919_v56  ;;  %v7097_v16 = vpop.f32.mrb[125].mxu0 }
0x53a0   :  { %v3922_v19 = vpop.f32.mrb[126].mxu0 }
0x53a1   :  { %v3968_v15 = vadd.f32 %v8370_v11, %v3963_v34  ;;  %v7098_v47 = vpop.f32.mrb[127].mxu0  ;;  %v5314_v34 = vsel %vm183_vm4, %v8535_v48, 0.0  ;;  %v4180_v19 = vmul.f32 0.03125, %v4179_v55 }
0x53a3   :  { %7558 = vtanh.f32 %v3968_v15  ;;  %v6431_v27 = vmul.f32 -1.442695, %v3968_v15 }
0x53a5   :  { %7560 = vpow2.f32 %v6431_v27 }
0x53ad   :  { %v7559_v26 = vpop.eup %7558 }
0x53ae   :  { %3978 = vrot.lane.b32.xlu1 %v7559_v26, %s7607_s15 }
0x53af   :  { %v7561_v11 = vpop.eup %7560 }
0x53b0   :  { %v3972_v28 = vadd.f32 1.0, %v7561_v11 }
0x53b2   :  { %2164 = vrot.lane.b32.xlu1 %v8105_v13, %s7609_s19  ;;  %7562 = vrcp.f32 %v3972_v28 }
0x53b6   :  { %2408 = vrot.lane.b32.xlu1 %v8149_v29, %s7609_s19 }
0x53ba   :  { %2652 = vrot.lane.b32.xlu1 %v8193_v41, %s7609_s19 }
0x53bc   :  { %v8480_v50 = vpop.eup %7562 }
0x53bd   :  { %v3976_v46 = vmul.f32 %v8480_v50, %v8436_v18 }
0x53be   :  { %2896 = vrot.lane.b32.xlu1 %v8237_v59, %s7609_s19 }
0x5420   :  { %v3979_v31 = vpop.permute.xlu1 %3978 }
0x5421   :  { %v3981_v21 = vmul.f32 %v8480_v50, %v3979_v31 }
0x5423   :  { %3983 = vrot.lane.b32.xlu0 %v3981_v21, %s7608_s16 }
0x5424   :  { %v2165_v13 = vpop.permute.xlu1 %2164 }
0x5425   :  { %2167 = vst.msk [vmem:[#allocation2] sm:$0x3] %vm183_vm4, %v2165_v13  ;;  %v8553_v13 = vsub.f32 %v8462_v33, %v4180_v19 }
0x5428   :  { %v2409_v29 = vpop.permute.xlu1 %2408 }
0x5429   :  { %2411 = vst.msk [vmem:[#allocation2 + $0x4] sm:$0x3] %vm183_vm4, %v2409_v29 }
0x542c   :  { %v2653_v41 = vpop.permute.xlu1 %2652  ;;  %v8486_v59 = vld [vmem:[#allocation2] sm:$0x3] }
0x542d   :  { %2655 = vst.msk [vmem:[#allocation2 + $0x8] sm:$0x3] %vm183_vm4, %v2653_v41  ;;  %v4005_v14 = vsel %vm183_vm4, %v8486_v59, 0.0 }
0x542e   :  { %4006 = vadd.xlane.f32.xlu1 %v4005_v14 }
0x5430   :  { %v2897_v35 = vpop.permute.xlu1 %2896  ;;  %v8492_v3 = vld [vmem:[#allocation2 + $0x4] sm:$0x3] }
0x5431   :  { %2899 = vst.msk [vmem:[#allocation2 + $0xc] sm:$0x3] %vm183_vm4, %v2897_v35  ;;  %v4313_v53 = vsel %vm183_vm4, %v8492_v3, 0.0 }
0x5434   :  { %v8502_v24 = vld [vmem:[#allocation2 + $0x8] sm:$0x3] }
0x5435   :  { %v4599_v37 = vsel %vm183_vm4, %v8502_v24, 0.0 }
0x5438   :  { %v8527_v39 = vld [vmem:[#allocation2 + $0xc] sm:$0x3] }
0x5439   :  { %v4885_v45 = vsel %vm183_vm4, %v8527_v39, 0.0 }
0x543f   :  { %3384 = vrot.lane.b32.xlu1 %v8330_v25, %s7609_s19  ;;  %v4742_v25 = vsel %vm183_vm4, %v8506_v38, 0.0 }
0x5442   :  { %4314 = vadd.xlane.f32.xlu0 %v4313_v53 }
0x5458   :  { %3506 = vrot.lane.b32.xlu0 %v8357_v2, %s7609_s19 }
0x545c   :  { %3628 = vrot.lane.b32.xlu0 %v8384_v36, %s7609_s19 }
0x547b   :  { %4600 = vadd.xlane.f32.xlu0 %v4599_v37 }
0x547f   :  { %4743 = vadd.xlane.f32.xlu0 %v4742_v25 }
0x5495   :  { %3872 = vrot.lane.b32.xlu0 %v8440_v9, %s7609_s19  ;;  %v3984_v2 = vpop.permute.xlu0 %3983 }
0x5496   :  { %v3986_v36 = vadd.f32 %v3984_v2, %v3976_v46 }
0x5498   :  { %7564 = vtanh.f32 %v3986_v36 }
0x54a2   :  { %v7565_v32 = vpop.eup %7564 }
0x54a3   :  { %3989 = vrot.lane.b32.xlu1 %v7565_v32, %s7608_s16 }
0x54bb   :  { %v4007_v42 = vpop.xlane.xlu1 %4006 }
0x54bc   :  { %v4009_v23 = vsel %vm4008_vm5, %v4007_v42, 0.0 }
0x54bd   :  { %v4010_v57 = vrot.slane %v4009_v23, 4 }
0x54bf   :  { %v3385_v43 = vpop.permute.xlu1 %3384  ;;  %v4011_v44 = vadd.f32 %v4010_v57, %v4009_v23 }
0x54c0   :  { %3387 = vst.msk [vmem:[#allocation2 + $0x14] sm:$0x3] %vm183_vm4, %v3385_v43 }
0x54c1   :  { %v4012_v62 = vrot.slane %v4011_v44, 2 }
0x54c3   :  { %v4013_v4 = vadd.f32 %v4012_v62, %v4011_v44 }
0x54c7   :  { %4457 = vadd.xlane.f32.xlu1 %v4456_v51  ;;  %v8539_v16 = vld [vmem:[#allocation2 + $0x14] sm:$0x3] }
0x54c8   :  { %v5457_v47 = vsel %vm183_vm4, %v8539_v16, 0.0 }
0x54cf   :  { %v4315_v5 = vpop.xlane.xlu0 %4314 }
0x54d0   :  { %v4316_v22 = vsel %vm4008_vm5, %v4315_v5, 0.0 }
0x54d1   :  { %v4317_v63 = vrot.slane %v4316_v22, 4 }
0x54d3   :  { %v3507_v52 = vpop.permute.xlu0 %3506  ;;  %v4318_v18 = vadd.f32 %v4317_v63, %v4316_v22 }
0x54d4   :  { %3509 = vst.msk [vmem:[#allocation2 + $0x16] sm:$0x3] %vm183_vm4, %v3507_v52 }
0x54d5   :  { %v4319_v9 = vrot.slane %v4318_v18, 2 }
0x54d7   :  { %v3629_v49 = vpop.permute.xlu0 %3628  ;;  %v4320_v20 = vadd.f32 %v4319_v9, %v4318_v18 }
0x54d8   :  { %3631 = vst.msk [vmem:[#allocation2 + $0x18] sm:$0x3] %vm183_vm4, %v3629_v49  ;;  %3750 = vrot.lane.b32.xlu1 %v8416_v30, %s7609_s19  ;;  %v4014_v30 = vrot.slane %v4013_v4, 1 }
0x54d9   :  { %v4321_v56 = vrot.slane %v4320_v20, 1 }
0x54da   :  { %v4015_v6 = vadd.f32 %v4014_v30, %v4013_v4 }
0x54db   :  { %v4322_v15 = vadd.f32 %v4321_v56, %v4320_v20  ;;  %v8546_v11 = vld [vmem:[#allocation2 + $0x16] sm:$0x3] }
0x54dc   :  { %v4016_v12 = vmul.f32 0.03125, %v4015_v6  ;;  %v5600_v31 = vsel %vm183_vm4, %v8546_v11, 0.0 }
0x54dd   :  { %v4323_v28 = vmul.f32 0.03125, %v4322_v15 }
0x54de   :  { %v8544_v26 = vsub.f32 %v8486_v59, %v4016_v12  ;;  %v4182_v59 = vmul.f32 %v8553_v13, %v8553_v13 }
0x54df   :  { %v8559_v14 = vsub.f32 %v8492_v3, %v4323_v28  ;;  %v8568_v3 = vld [vmem:[#allocation2 + $0xe] sm:$0x3]  ;;  %v8572_v2 = vld [vmem:[#allocation2 + $0x18] sm:$0x3] }
0x54e0   :  { %v4018_v21 = vmul.f32 %v8544_v26, %v8544_v26  ;;  %v4183_v53 = vsel %vm183_vm4, %v4182_v59, 0.0  ;;  %v5028_v46 = vsel %vm183_vm4, %v8568_v3, 0.0  ;;  %v5743_v36 = vsel %vm183_vm4, %v8572_v2, 0.0 }
0x54e1   :  { %v4325_v33 = vmul.f32 %v8559_v14, %v8559_v14 }
0x54e2   :  { %v4019_v41 = vsel %vm183_vm4, %v4018_v21, 0.0 }
0x54e3   :  { %v4326_v40 = vsel %vm183_vm4, %v4325_v33, 0.0 }
0x54fc   :  { %4886 = vadd.xlane.f32.xlu1 %v4885_v45 }
0x5500   :  { %5172 = vadd.xlane.f32.xlu1 %v5171_v10 }
0x5504   :  { %5315 = vadd.xlane.f32.xlu1 %v5314_v34 }
0x5508   :  { %v4601_v27 = vpop.xlane.xlu0 %4600  ;;  %5458 = vadd.xlane.f32.xlu1 %v5457_v47 }
0x550c   :  { %v4744_v29 = vpop.xlane.xlu0 %4743  ;;  %5601 = vadd.xlane.f32.xlu1 %v5600_v31 }
0x550d   :  { %v4745_v32 = vsel %vm4008_vm5, %v4744_v29, 0.0 }
0x550e   :  { %v4746_v42 = vrot.slane %v4745_v32, 4 }
0x5510   :  { %v3873_v35 = vpop.permute.xlu0 %3872  ;;  %4020 = vadd.xlane.f32.xlu1 %v4019_v41  ;;  %v4747_v51 = vadd.f32 %v4746_v42, %v4745_v32 }
0x5511   :  { %3875 = vst.msk [vmem:[#allocation2 + $0x1c] sm:$0x3] %vm183_vm4, %v3873_v35 }
0x5512   :  { %v4748_v52 = vrot.slane %v4747_v51, 2 }
0x5514   :  { %4184 = vadd.xlane.f32.xlu1 %v4183_v53  ;;  %v4749_v23 = vadd.f32 %v4748_v52, %v4747_v51 }
0x5515   :  { %v3990_v37 = vpop.permute.xlu1 %3989 }
0x5516   :  { %v3992_v25 = vmul.f32 %v8480_v50, %v3990_v37  ;;  %v4602_v50 = vsel %vm4008_vm5, %v4601_v27, 0.0  ;;  %v4750_v61 = vrot.slane %v4749_v23, 1 }
0x5517   :  { %v4603_v43 = vrot.slane %v4602_v50, 4 }
0x5518   :  { %4327 = vadd.xlane.f32.xlu1 %v4326_v40  ;;  %3994 = vrot.lane.b32.xlu0 %v3992_v25, %s7609_s19  ;;  %v4751_v1 = vadd.f32 %v4750_v61, %v4749_v23  ;;  %v8587_v12 = vld [vmem:[#allocation2 + $0x1c] sm:$0x3] }
0x5519   :  { %v4604_v5 = vadd.f32 %v4603_v43, %v4602_v50  ;;  %v6029_v19 = vsel %vm183_vm4, %v8587_v12, 0.0 }
0x551a   :  { %v4752_v30 = vmul.f32 0.03125, %v4751_v1 }
0x551b   :  { %v4605_v49 = vrot.slane %v4604_v5, 2 }
0x551c   :  { %v8585_v10 = vsub.f32 %v8506_v38, %v4752_v30 }
0x551d   :  { %v4606_v57 = vadd.f32 %v4605_v49, %v4604_v5 }
0x551e   :  { %v4754_v15 = vmul.f32 %v8585_v10, %v8585_v10 }
0x551f   :  { %v4607_v60 = vrot.slane %v4606_v57, 1 }
0x5521   :  { %v4608_v18 = vadd.f32 %v4607_v60, %v4606_v57 }
0x5523   :  { %v4609_v45 = vmul.f32 0.03125, %v4608_v18 }
0x5525   :  { %v8593_v34 = vsub.f32 %v8502_v24, %v4609_v45 }
0x5527   :  { %v4611_v27 = vmul.f32 %v8593_v34, %v8593_v34 }
0x5529   :  { %v4612_v24 = vsel %vm183_vm4, %v4611_v27, 0.0 }
0x5537   :  { %5029 = vadd.xlane.f32.xlu0 %v5028_v46 }
0x553b   :  { %5744 = vadd.xlane.f32.xlu0 %v5743_v36 }
0x5554   :  { %v4458_v58 = vpop.xlane.xlu1 %4457 }
0x5555   :  { %v4459_v44 = vsel %vm4008_vm5, %v4458_v58, 0.0 }
0x5556   :  { %v4460_v22 = vrot.slane %v4459_v44, 4 }
0x5558   :  { %v4461_v62 = vadd.f32 %v4460_v22, %v4459_v44  ;;  %v3751_v63 = vpop.permute.xlu1 %3750 }
0x5559   :  { %3753 = vst.msk [vmem:[#allocation2 + $0x1a] sm:$0x3] %vm183_vm4, %v3751_v63 }
0x555a   :  { %v4462_v4 = vrot.slane %v4461_v62, 2 }
0x555c   :  { %v4463_v8 = vadd.f32 %v4462_v4, %v4461_v62 }
0x555e   :  { %v4464_v9 = vrot.slane %v4463_v8, 1 }
0x5560   :  { %v4465_v54 = vadd.f32 %v4464_v9, %v4463_v8  ;;  %v8580_v6 = vld [vmem:[#allocation2 + $0x1a] sm:$0x3] }
0x5561   :  { %v5886_v20 = vsel %vm183_vm4, %v8580_v6, 0.0 }
0x5562   :  { %v4466_v55 = vmul.f32 0.03125, %v4465_v54  ;;  %5887 = vadd.xlane.f32.xlu0 %v5886_v20 }
0x5564   :  { %v8590_v56 = vsub.f32 %v8516_v17, %v4466_v55  ;;  %v4755_v17 = vsel %vm183_vm4, %v4754_v15, 0.0 }
0x5566   :  { %6030 = vadd.xlane.f32.xlu0 %v6029_v19  ;;  %v4468_v38 = vmul.f32 %v8590_v56, %v8590_v56 }
0x5568   :  { %v4469_v47 = vsel %vm183_vm4, %v4468_v38, 0.0 }
0x5569   :  { %4470 = vadd.xlane.f32.xlu1 %v4469_v47 }
0x556a   :  { %4756 = vadd.xlane.f32.xlu0 %v4755_v17 }
0x556d   :  { %4613 = vadd.xlane.f32.xlu1 %v4612_v24 }
0x5589   :  { %v4887_v28 = vpop.xlane.xlu1 %4886 }
0x558a   :  { %v4888_v31 = vsel %vm4008_vm5, %v4887_v28, 0.0  ;;  %v3995_v21 = vpop.permute.xlu0 %3994 }
0x558b   :  { %v4889_v29 = vrot.slane %v4888_v31, 4  ;;  %3997 = vst.msk [vmem:[#allocation2 + $0x1e] sm:$0x3] %vm183_vm4, %v3995_v21 }
0x558d   :  { %v4890_v41 = vadd.f32 %v4889_v29, %v4888_v31  ;;  %v5173_v59 = vpop.xlane.xlu1 %5172 }
0x558e   :  { %v5174_v35 = vsel %vm4008_vm5, %v5173_v59, 0.0 }
0x558f   :  { %v4891_v53 = vrot.slane %v4890_v41, 2  ;;  %v5175_v33 = vrot.slane %v5174_v35, 4 }
0x5591   :  { %v4892_v37 = vadd.f32 %v4891_v53, %v4890_v41  ;;  %v5176_v25 = vadd.f32 %v5175_v33, %v5174_v35  ;;  %v5316_v40 = vpop.xlane.xlu1 %5315 }
0x5592   :  { %v8609_v46 = vld [vmem:[#allocation2 + $0x1e] sm:$0x3]  ;;  %v5317_v54 = vsel %vm4008_vm5, %v5316_v40, 0.0 }
0x5593   :  { %v4893_v36 = vrot.slane %v4892_v37, 1  ;;  %v5177_v32 = vrot.slane %v5176_v25, 2  ;;  %v6172_v50 = vsel %vm183_vm4, %v8609_v46, 0.0  ;;  %v5318_v55 = vrot.slane %v5317_v54, 4 }
0x5594   :  { %6173 = vadd.xlane.f32.xlu0 %v6172_v50 }
0x5595   :  { %v4894_v42 = vadd.f32 %v4893_v36, %v4892_v37  ;;  %v5178_v43 = vadd.f32 %v5177_v32, %v5176_v25  ;;  %v5459_v51 = vpop.xlane.xlu1 %5458  ;;  %v5319_v38 = vadd.f32 %v5318_v55, %v5317_v54 }
0x5596   :  { %v5460_v5 = vsel %vm4008_vm5, %v5459_v51, 0.0 }
0x5597   :  { %v4895_v52 = vmul.f32 0.03125, %v4894_v42  ;;  %v5179_v49 = vrot.slane %v5178_v43, 1  ;;  %v5461_v23 = vrot.slane %v5460_v5, 4  ;;  %v5320_v27 = vrot.slane %v5319_v38, 2 }
0x5599   :  { %v5180_v57 = vadd.f32 %v5179_v49, %v5178_v43  ;;  %v5462_v58 = vadd.f32 %v5461_v23, %v5460_v5  ;;  %v8615_v61 = vsub.f32 %v8527_v39, %v4895_v52  ;;  %v5602_v20 = vpop.xlane.xlu1 %5601  ;;  %v5321_v28 = vadd.f32 %v5320_v27, %v5319_v38 }
0x559a   :  { %v5603_v19 = vsel %vm4008_vm5, %v5602_v20, 0.0 }
0x559b   :  { %v5181_v44 = vmul.f32 0.03125, %v5180_v57  ;;  %v5463_v22 = vrot.slane %v5462_v58, 2  ;;  %v4897_v60 = vmul.f32 %v8615_v61, %v8615_v61  ;;  %v5604_v47 = vrot.slane %v5603_v19, 4 }
0x559c   :  { %v5322_v53 = vrot.slane %v5321_v28, 1 }
0x559d   :  { %v5464_v62 = vadd.f32 %v5463_v22, %v5462_v58  ;;  %v8620_v63 = vsub.f32 %v8531_v7, %v5181_v44  ;;  %v4898_v1 = vsel %vm183_vm4, %v4897_v60, 0.0  ;;  %v4021_v15 = vpop.xlane.xlu1 %4020  ;;  %v5605_v17 = vadd.f32 %v5604_v47, %v5603_v19 }
0x559e   :  { %4899 = vadd.xlane.f32.xlu1 %v4898_v1  ;;  %v5323_v43 = vadd.f32 %v5322_v53, %v5321_v28 }
0x559f   :  { %v5465_v4 = vrot.slane %v5464_v62, 1  ;;  %v5183_v18 = vmul.f32 %v8620_v63, %v8620_v63  ;;  %v5606_v21 = vrot.slane %v5605_v17, 2 }
0x55a0   :  { %v5324_v44 = vmul.f32 0.03125, %v5323_v43 }
0x55a1   :  { %v5466_v8 = vadd.f32 %v5465_v4, %v5464_v62  ;;  %v5184_v39 = vsel %vm183_vm4, %v5183_v18, 0.0  ;;  %v4185_v24 = vpop.xlane.xlu1 %4184  ;;  %v5607_v37 = vadd.f32 %v5606_v21, %v5605_v17 }
0x55a2   :  { %5185 = vadd.xlane.f32.xlu1 %v5184_v39 }
0x55a3   :  { %v5467_v30 = vmul.f32 0.03125, %v5466_v8  ;;  %v5608_v5 = vrot.slane %v5607_v37, 1 }
0x55a5   :  { %v8627_v9 = vsub.f32 %v8539_v16, %v5467_v30  ;;  %v4022_v16 = vsel %vm4008_vm5, %v4021_v15, 0.0  ;;  %v4328_v59 = vpop.xlane.xlu1 %4327  ;;  %v5609_v60 = vadd.f32 %v5608_v5, %v5607_v37  ;;  %v8639_v30 = vsub.f32 %v8535_v48, %v5324_v44 }
0x55a6   :  { %v4023_v31 = vrot.slane %v4022_v16, 4  ;;  %v4329_v36 = vsel %vm4008_vm5, %v4328_v59, 0.0  ;;  %v4186_v59 = vsel %vm4008_vm5, %v4185_v24, 0.0  ;;  %v4035_v37 = vlaneseq }
0x55a7   :  { %v5469_v45 = vmul.f32 %v8627_v9, %v8627_v9  ;;  %v4330_v52 = vrot.slane %v4329_v36, 4  ;;  %v5326_v38 = vmul.f32 %v8639_v30, %v8639_v30  ;;  %v4187_v53 = vrot.slane %v4186_v59, 4 }
0x55a8   :  { %v4024_v33 = vadd.f32 %v4023_v31, %v4022_v16 }
0x55a9   :  { %v5470_v7 = vsel %vm183_vm4, %v5469_v45, 0.0  ;;  %v4331_v62 = vadd.f32 %v4330_v52, %v4329_v36  ;;  %v5610_v45 = vmul.f32 0.03125, %v5609_v60  ;;  %v5327_v16 = vsel %vm183_vm4, %v5326_v38, 0.0 }
0x55aa   :  { %5471 = vadd.xlane.f32.xlu1 %v5470_v7  ;;  %v4025_v51 = vrot.slane %v4024_v33, 2 }
0x55ab   :  { %v4332_v7 = vrot.slane %v4331_v62, 2  ;;  %v8653_v17 = vsub.f32 %v8546_v11, %v5610_v45 }
0x55ac   :  { %v4026_v22 = vadd.f32 %v4025_v51, %v4024_v33 }
0x55ad   :  { %v4333_v47 = vadd.f32 %v4332_v7, %v4331_v62  ;;  %v6441_v62 = vld [vmem:[%s9089_s8 + $0x1] ss:$0 sm:$0xff] }
0x55ae   :  { %v4027_v39 = vrot.slane %v4026_v22, 1 }
0x55af   :  { %v4334_v31 = vrot.slane %v4333_v47, 1 }
0x55b0   :  { %v4028_v15 = vadd.f32 %v4027_v39, %v4026_v22  ;;  %v6445_v22 = vld [vmem:[%s9088_s7 + $0x2] sm:$0x1] }
0x55b2   :  { %v4029_v28 = vmul.f32 0.03125, %v4028_v15 }
0x55c4   :  { %v5030_v29 = vpop.xlane.xlu0 %5029 }
0x55c5   :  { %v5031_v41 = vsel %vm4008_vm5, %v5030_v29, 0.0  ;;  %v5612_v29 = vmul.f32 %v8653_v17, %v8653_v17 }
0x55c6   :  { %v5032_v35 = vrot.slane %v5031_v41, 4 }
0x55c7   :  { %v5613_v11 = vsel %vm183_vm4, %v5612_v29, 0.0 }
0x55c8   :  { %v5033_v25 = vadd.f32 %v5032_v35, %v5031_v41  ;;  %v5745_v40 = vpop.xlane.xlu0 %5744  ;;  %v4335_v41 = vadd.f32 %v4334_v31, %v4333_v47  ;;  %v6439_v47 = vld [vmem:[%s9088_s7 + $0x1] sm:$0x1] }
0x55c9   :  { %v5746_v32 = vsel %vm4008_vm5, %v5745_v40, 0.0  ;;  %v4036_v40 = vshrl.u32 %v4035_v37, 7 }
0x55ca   :  { %v5034_v50 = vrot.slane %v5033_v25, 2  ;;  %v5747_v42 = vrot.slane %v5746_v32, 4  ;;  %v4336_v35 = vmul.f32 0.03125, %v4335_v41 }
0x55cb   :  { %v8667_v24 = vsub.s32 0, %v4036_v40 }
0x55cc   :  { %v5035_v49 = vadd.f32 %v5034_v50, %v5033_v25  ;;  %v5748_v23 = vadd.f32 %v5747_v42, %v5746_v32  ;;  %v4339_v33 = vadd.f32 1e-05, %v4336_v35  ;;  %v4188_v25 = vadd.f32 %v4187_v53, %v4186_v59  ;;  %v4030_v50 = vld [vmem:[%s9088_s7] sm:$0x1] }
0x55ce   :  { %v5036_v57 = vrot.slane %v5035_v49, 1  ;;  %v5749_v58 = vrot.slane %v5748_v23, 2  ;;  %v4189_v32 = vrot.slane %v4188_v25, 2 }
0x55d0   :  { %v5037_v1 = vadd.f32 %v5036_v57, %v5035_v49  ;;  %v5750_v4 = vadd.f32 %v5749_v58, %v5748_v23  ;;  %v4190_v52 = vadd.f32 %v4189_v32, %v4188_v25 }
0x55d2   :  { %v5038_v18 = vmul.f32 0.03125, %v5037_v1  ;;  %v5751_v8 = vrot.slane %v5750_v4, 1  ;;  %v4191_v44 = vrot.slane %v4190_v52, 1 }
0x55d4   :  { %v5752_v54 = vadd.f32 %v5751_v8, %v5750_v4  ;;  %v8642_v20 = vsub.f32 %v8568_v3, %v5038_v18  ;;  %v4192_v18 = vadd.f32 %v4191_v44, %v4190_v52 }
0x55d6   :  { %v5753_v55 = vmul.f32 0.03125, %v5752_v54  ;;  %v5040_v19 = vmul.f32 %v8642_v20, %v8642_v20  ;;  %v4193_v7 = vmul.f32 0.03125, %v4192_v18 }
0x55d8   :  { %v5041_v27 = vsel %vm183_vm4, %v5040_v19, 0.0  ;;  %v8650_v48 = vsub.f32 %v8572_v2, %v5753_v55  ;;  %v4031_v2 = vadd.f32 1e-05, %v4029_v28  ;;  %v4196_v19 = vadd.f32 1e-05, %v4193_v7  ;;  %v8693_v28 = vld [vmem:[%s9090_s9] sm:$0xff]  }
0x55d9   :  { %5042 = vadd.xlane.f32.xlu0 %v5041_v27  ;;  %7106 = vmatpush3.bf16.msra.mxu0 %v8693_v28 }
0x55da   :  { %v5755_v3 = vmul.f32 %v8650_v48, %v8650_v48  ;;  %7566 = vrsqrt.f32 %v4031_v2  ;;  %7117 = vmatprep.subr.bf16.mxu0 %v7604_v0 }
0x55db   :  { %7568 = vrsqrt.f32 %v4339_v33 }
0x55dc   :  { %v5756_v21 = vsel %vm183_vm4, %v5755_v3, 0.0  ;;  %7570 = vrsqrt.f32 %v4196_v19  ;;  %v6432_v3 = vld [vmem:[%s9089_s8] ss:$0 sm:$0xff] }
0x55dd   :  { %5328 = vadd.xlane.f32.xlu0 %v5327_v16  ;;  %5757 = vadd.xlane.f32.xlu1 %v5756_v21 }
0x55e1   :  { %5614 = vadd.xlane.f32.xlu0 %v5613_v11 }
0x55e4   :  { %v7567_v36 = vpop.eup %7566 }
0x55e5   :  { %v4033_v5 = vmul.f32 %v7567_v36, %v4030_v50  ;;  %v7569_v58 = vpop.eup %7568 }
0x55e6   :  { %v4341_v4 = vmul.f32 %v7569_v58, %v6445_v22  ;;  %v7571_v38 = vpop.eup %7570 }
0x55e7   :  { %v4038_v57 = vrot.slane %v4033_v5, %v8667_v24 }
0x55e8   :  { %v4346_v45 = vrot.slane %v4341_v4, %v8667_v24 }
0x55ef   :  { %v5888_v42 = vpop.xlane.xlu0 %5887 }
0x55f0   :  { %v5889_v43 = vsel %vm4008_vm5, %v5888_v42, 0.0 }
0x55f1   :  { %v5890_v51 = vrot.slane %v5889_v43, 4 }
0x55f3   :  { %v5891_v49 = vadd.f32 %v5890_v51, %v5889_v43  ;;  %v6031_v27 = vpop.xlane.xlu0 %6030 }
0x55f4   :  { %v6032_v16 = vsel %vm4008_vm5, %v6031_v27, 0.0 }
0x55f5   :  { %v5892_v23 = vrot.slane %v5891_v49, 2  ;;  %v6033_v29 = vrot.slane %v6032_v16, 4 }
0x55f6   :  { %v4471_v31 = vpop.xlane.xlu1 %4470 }
0x55f7   :  { %v5893_v60 = vadd.f32 %v5892_v23, %v5891_v49  ;;  %4040 = vperm.xlu0 %7303, %v4038_v57   ;;  %v6034_v2 = vadd.f32 %v6033_v29, %v6032_v16  ;;  %v4472_v41 = vsel %vm4008_vm5, %v4471_v31, 0.0  ;;  %v4757_v11 = vpop.xlane.xlu0 %4756 }
0x55f8   :  { %v4473_v35 = vrot.slane %v4472_v41, 4  ;;  %v4758_v51 = vsel %vm4008_vm5, %v4757_v11, 0.0 }
0x55f9   :  { %v5894_v1 = vrot.slane %v5893_v60, 1  ;;  %v6035_v53 = vrot.slane %v6034_v2, 2  ;;  %v4759_v57 = vrot.slane %v4758_v51, 4 }
0x55fa   :  { %v4614_v59 = vpop.xlane.xlu1 %4613  ;;  %v4474_v40 = vadd.f32 %v4473_v35, %v4472_v41 }
0x55fb   :  { %v5895_v8 = vadd.f32 %v5894_v1, %v5893_v60  ;;  %4217 = vperm.xlu0 %7303, %v6441_v62   ;;  %v4615_v33 = vsel %vm4008_vm5, %v4614_v59, 0.0  ;;  %v6036_v50 = vadd.f32 %v6035_v53, %v6034_v2  ;;  %v4760_v4 = vadd.f32 %v4759_v57, %v4758_v51  ;;  %v6447_v51 = vld [vmem:[%s9089_s8 + $0x2] ss:$0 sm:$0xff] }
0x55fc   :  { %v4616_v36 = vrot.slane %v4615_v33, 4  ;;  %v4475_v43 = vrot.slane %v4474_v40, 2 }
0x55fd   :  { %v5896_v39 = vmul.f32 0.03125, %v5895_v8  ;;  %v6037_v49 = vrot.slane %v6036_v50, 1  ;;  %v4761_v19 = vrot.slane %v4760_v4, 2 }
0x55fe   :  { %v4617_v5 = vadd.f32 %v4616_v36, %v4615_v33  ;;  %v4476_v58 = vadd.f32 %v4475_v43, %v4474_v40 }
0x55ff   :  { %4348 = vperm.xlu0 %7303, %v4346_v45   ;;  %v8678_v54 = vsub.f32 %v8580_v6, %v5896_v39  ;;  %v4198_v6 = vmul.f32 %v7571_v38, %v6439_v47  ;;  %v6038_v60 = vadd.f32 %v6037_v49, %v6036_v50  ;;  %v4762_v31 = vadd.f32 %v4761_v19, %v4760_v4  ;;  %v6453_v50 = vld [vmem:[%s9089_s8 + $0x3] ss:$0 sm:$0xff]  ;;  %v6457_v49 = vld [vmem:[%s9088_s7 + $0x4] sm:$0x1] }
0x5600   :  { %v4618_v44 = vrot.slane %v4617_v5, 2  ;;  %v4477_v18 = vrot.slane %v4476_v58, 1 }
0x5601   :  { %v5898_v55 = vmul.f32 %v8678_v54, %v8678_v54  ;;  %v4203_v21 = vrot.slane %v4198_v6, %v8667_v24  ;;  %v6039_v45 = vmul.f32 0.03125, %v6038_v60  ;;  %v4763_v41 = vrot.slane %v4762_v31, 1 }
0x5602   :  { %v4619_v8 = vadd.f32 %v4618_v44, %v4617_v5 }
0x5603   :  { %v5899_v15 = vsel %vm183_vm4, %v5898_v55, 0.0 }
0x5604   :  { %5900 = vadd.xlane.f32.xlu1 %v5899_v15  ;;  %v4478_v15 = vadd.f32 %v4477_v18, %v4476_v58  ;;  %v4620_v38 = vrot.slane %v4619_v8, 1  ;;  %v6459_v18 = vld [vmem:[%s9089_s8 + $0x4] ss:$0 sm:$0xff] }
0x5606   :  { %v4479_v16 = vmul.f32 0.03125, %v4478_v15 }
0x5608   :  { %v4482_v2 = vadd.f32 1e-05, %v4479_v16 }
0x560a   :  { %7572 = vrsqrt.f32 %v4482_v2 }
0x5615   :  { %4051 = vperm.xlu1 %7304, %v6432_v3   ;;  %v8709_v3 = vsub.f32 %v8587_v12, %v6039_v45  ;;  %v4764_v12 = vadd.f32 %v4763_v41, %v4762_v31 }
0x5619   :  { %4205 = vperm.xlu1 %7304, %v4203_v21   ;;  %v4621_v21 = vadd.f32 %v4620_v38, %v4619_v8  ;;  %v6469_v38 = vld [vmem:[%s9088_s7 + $0x6] sm:$0x1] }
0x561b   :  { %v4622_v11 = vmul.f32 0.03125, %v4621_v21 }
0x561d   :  { %v4625_v53 = vadd.f32 1e-05, %v4622_v11 }
0x561f   :  { %7574 = vrsqrt.f32 %v4625_v53 }
0x5621   :  { %v6174_v37 = vpop.xlane.xlu0 %6173 }
0x5622   :  { %v6175_v25 = vsel %vm4008_vm5, %v6174_v37, 0.0  ;;  %v4765_v37 = vmul.f32 0.03125, %v4764_v12 }
0x5623   :  { %v6176_v32 = vrot.slane %v6175_v25, 4 }
0x5624   :  { %v4768_v40 = vadd.f32 1e-05, %v4765_v37 }
0x5625   :  { %v6177_v42 = vadd.f32 %v6176_v32, %v6175_v25  ;;  %v7573_v32 = vpop.eup %7572 }
0x5626   :  { %7576 = vrsqrt.f32 %v4768_v40 }
0x5627   :  { %v6178_v52 = vrot.slane %v6177_v42, 2 }
0x5629   :  { %v6179_v23 = vadd.f32 %v6178_v52, %v6177_v42  ;;  %v6451_v42 = vld [vmem:[%s9088_s7 + $0x3] sm:$0x1]  ;;  %v7575_v52 = vpop.eup %7574 }
0x562a   :  { %v4484_v5 = vmul.f32 %v7573_v32, %v6451_v42  ;;  %v4627_v58 = vmul.f32 %v7575_v52, %v6457_v49  ;;  %v6477_v32 = vld [vmem:[%s9089_s8 + $0x7] ss:$0 sm:$0xff] }
0x562b   :  { %v6180_v22 = vrot.slane %v6179_v23, 1  ;;  %v4900_v1 = vpop.xlane.xlu1 %4899 }
0x562c   :  { %v4901_v7 = vsel %vm4008_vm5, %v4900_v1, 0.0  ;;  %v4489_v57 = vrot.slane %v4484_v5, %v8667_v24  ;;  %v4632_v60 = vrot.slane %v4627_v58, %v8667_v24  ;;  %v6463_v1 = vld [vmem:[%s9088_s7 + $0x5] sm:$0x1] }
0x562d   :  { %v6181_v62 = vadd.f32 %v6180_v22, %v6179_v23  ;;  %v4902_v47 = vrot.slane %v4901_v7, 4 }
0x562f   :  { %v6182_v39 = vmul.f32 0.03125, %v6181_v62  ;;  %v4903_v29 = vadd.f32 %v4902_v47, %v4901_v7  ;;  %v5186_v44 = vpop.xlane.xlu1 %5185 }
0x5630   :  { %v5187_v22 = vsel %vm4008_vm5, %v5186_v44, 0.0  ;;  %v7577_v62 = vpop.eup %7576  ;;  %v6483_v44 = vld [vmem:[%s9089_s8 + $0x8] ss:$0 sm:$0xff] }
0x5631   :  { %v8704_v55 = vsub.f32 %v8609_v46, %v6182_v39  ;;  %v6041_v46 = vmul.f32 %v8709_v3, %v8709_v3  ;;  %v4904_v59 = vrot.slane %v4903_v29, 2  ;;  %v5188_v4 = vrot.slane %v5187_v22, 4 }
0x5632   :  { %v4770_v8 = vmul.f32 %v7577_v62, %v6463_v1 }
0x5633   :  { %v6184_v27 = vmul.f32 %v8704_v55, %v8704_v55  ;;  %v6042_v35 = vsel %vm183_vm4, %v6041_v46, 0.0  ;;  %v4905_v33 = vadd.f32 %v4904_v59, %v4903_v29  ;;  %v5189_v45 = vadd.f32 %v5188_v4, %v5187_v22  ;;  %v6471_v59 = vld [vmem:[%s9089_s8 + $0x6] ss:$0 sm:$0xff] }
0x5634   :  { %v4775_v19 = vrot.slane %v4770_v8, %v8667_v24 }
0x5635   :  { %v6185_v6 = vsel %vm183_vm4, %v6184_v27, 0.0  ;;  %v4906_v25 = vrot.slane %v4905_v33, 1  ;;  %v5190_v47 = vrot.slane %v5189_v45, 2 }
0x5636   :  { %6186 = vadd.xlane.f32.xlu0 %v6185_v6  ;;  %v6465_v6 = vld [vmem:[%s9089_s8 + $0x5] ss:$0 sm:$0xff] }
0x5637   :  { %v4907_v36 = vadd.f32 %v4906_v25, %v4905_v33  ;;  %v5472_v39 = vpop.xlane.xlu1 %5471  ;;  %v5191_v31 = vadd.f32 %v5190_v47, %v5189_v45 }
0x5638   :  { %v5473_v7 = vsel %vm4008_vm5, %v5472_v39, 0.0 }
0x5639   :  { %v4908_v43 = vmul.f32 0.03125, %v4907_v36  ;;  %v5474_v27 = vrot.slane %v5473_v7, 4  ;;  %v5192_v2 = vrot.slane %v5191_v31, 1 }
0x563b   :  { %v4911_v23 = vadd.f32 1e-05, %v4908_v43  ;;  %v5475_v21 = vadd.f32 %v5474_v27, %v5473_v7  ;;  %v5193_v37 = vadd.f32 %v5192_v2, %v5191_v31  ;;  %v6489_v7 = vld [vmem:[%s9089_s8 + $0x9] ss:$0 sm:$0xff] }
0x563d   :  { %6043 = vadd.xlane.f32.xlu1 %v6042_v35  ;;  %7578 = vrsqrt.f32 %v4911_v23  ;;  %v5476_v41 = vrot.slane %v5475_v21, 2  ;;  %v5194_v23 = vmul.f32 0.03125, %v5193_v37 }
0x563f   :  { %v5477_v25 = vadd.f32 %v5476_v41, %v5475_v21  ;;  %v5197_v39 = vadd.f32 1e-05, %v5194_v23  ;;  %v6495_v21 = vld [vmem:[%s9089_s8 + $0xa] ss:$0 sm:$0xff]  ;;  %v6487_v23 = vld [vmem:[%s9088_s7 + $0x9] sm:$0x1] }
0x5641   :  { %7580 = vrsqrt.f32 %v5197_v39 }
0x5647   :  { %v7579_v15 = vpop.eup %7578 }
0x5648   :  { %v4913_v16 = vmul.f32 %v7579_v15, %v6469_v38 }
0x564a   :  { %v4918_v29 = vrot.slane %v4913_v16, %v8667_v24 }
0x564c   :  { %4503 = vperm.xlu0 %7303, %v6453_v50  }
0x564e   :  { %4360 = vperm.xlu1 %7304, %v6447_v51  }
0x5652   :  { %4491 = vperm.xlu1 %7304, %v4489_v57   ;;  %v5478_v57 = vrot.slane %v5477_v25, 1 }
0x5654   :  { %v5479_v45 = vadd.f32 %v5478_v57, %v5477_v25  ;;  %v6519_v57 = vld [vmem:[%s9089_s8 + $0xe] ss:$0 sm:$0xff] }
0x5656   :  { %4634 = vperm.xlu1 %7304, %v4632_v60   ;;  %v5480_v31 = vmul.f32 0.03125, %v5479_v45 }
0x565a   :  { %4646 = vperm.xlu1 %7304, %v6459_v18  }
0x565e   :  { %4777 = vperm.xlu1 %7304, %v4775_v19  }
0x5662   :  { %4789 = vperm.xlu1 %7304, %v6465_v6  }
0x5666   :  { %v5043_v46 = vpop.xlane.xlu0 %5042  ;;  %4920 = vperm.xlu1 %7304, %v4918_v29  }
0x5667   :  { %v5044_v11 = vsel %vm4008_vm5, %v5043_v46, 0.0 }
0x5668   :  { %v5045_v35 = vrot.slane %v5044_v11, 4 }
0x566a   :  { %v5046_v12 = vadd.f32 %v5045_v35, %v5044_v11  ;;  %v5329_v53 = vpop.xlane.xlu0 %5328  ;;  %4932 = vperm.xlu1 %7304, %v6471_v59   ;;  %v5758_v33 = vpop.xlane.xlu1 %5757  ;;  %v6501_v59 = vld [vmem:[%s9089_s8 + $0xb] ss:$0 sm:$0xff]  ;;  %v5483_v35 = vadd.f32 1e-05, %v5480_v31 }
0x566b   :  { %v5330_v40 = vsel %vm4008_vm5, %v5329_v53, 0.0  ;;  %v5759_v36 = vsel %vm4008_vm5, %v5758_v33, 0.0  ;;  %v6507_v33 = vld [vmem:[%s9089_s8 + $0xc] ss:$0 sm:$0xff] }
0x566c   :  { %v5047_v50 = vrot.slane %v5046_v12, 2  ;;  %v5331_v42 = vrot.slane %v5330_v40, 4  ;;  %v5760_v43 = vrot.slane %v5759_v36, 4 }
0x566e   :  { %v5048_v51 = vadd.f32 %v5047_v50, %v5046_v12  ;;  %v5332_v5 = vadd.f32 %v5331_v42, %v5330_v40  ;;  %v5761_v52 = vadd.f32 %v5760_v43, %v5759_v36  ;;  %v5615_v49 = vpop.xlane.xlu0 %5614  ;;  %5075 = vperm.xlu1 %7304, %v6477_v32   ;;  %v6475_v40 = vld [vmem:[%s9088_s7 + $0x7] sm:$0x1]  ;;  %v7581_v36 = vpop.eup %7580  ;;  %v6481_v50 = vld [vmem:[%s9088_s7 + $0x8] sm:$0x1]  ;;  %v6513_v42 = vld [vmem:[%s9089_s8 + $0xd] ss:$0 sm:$0xff] }
0x566f   :  { %v5616_v58 = vsel %vm4008_vm5, %v5615_v49, 0.0 }
0x5670   :  { %v5049_v22 = vrot.slane %v5048_v51, 1  ;;  %v5333_v60 = vrot.slane %v5332_v5, 2  ;;  %v5762_v62 = vrot.slane %v5761_v52, 2  ;;  %v5617_v1 = vrot.slane %v5616_v58, 4 }
0x5672   :  { %v5050_v4 = vadd.f32 %v5049_v22, %v5048_v51  ;;  %v5334_v18 = vadd.f32 %v5333_v60, %v5332_v5  ;;  %v5618_v8 = vadd.f32 %v5617_v1, %v5616_v58  ;;  %5218 = vperm.xlu1 %7304, %v6483_v44   ;;  %v5763_v38 = vadd.f32 %v5762_v62, %v5761_v52  ;;  %v6493_v60 = vld [vmem:[%s9088_s7 + $0xa] sm:$0x1]  ;;  %v6525_v62 = vld [vmem:[%s9089_s8 + $0xf] ss:$0 sm:$0xff] }
0x5673   :  { %v5199_v52 = vmul.f32 %v7581_v36, %v6481_v50 }
0x5674   :  { %v5051_v19 = vmul.f32 0.03125, %v5050_v4  ;;  %v5335_v15 = vrot.slane %v5334_v18, 1  ;;  %v5619_v47 = vrot.slane %v5618_v8, 2  ;;  %v5764_v46 = vrot.slane %v5763_v38, 1 }
0x5675   :  { %v5204_v58 = vrot.slane %v5199_v52, %v8667_v24 }
0x5676   :  { %v5054_v27 = vadd.f32 1e-05, %v5051_v19  ;;  %v5336_v6 = vadd.f32 %v5335_v15, %v5334_v18  ;;  %v5620_v16 = vadd.f32 %v5619_v47, %v5618_v8  ;;  %5361 = vperm.xlu1 %7304, %v6489_v7   ;;  %v5765_v12 = vadd.f32 %v5764_v46, %v5763_v38  ;;  %v6499_v8 = vld [vmem:[%s9088_s7 + $0xb] sm:$0x1]  ;;  %v4041_v39 = vpop.permute.xlu0 %4040  ;;  %v6505_v47 = vld [vmem:[%s9088_s7 + $0xc] sm:$0x1] }
0x5678   :  { %7582 = vrsqrt.f32 %v5054_v27  ;;  %v5337_v29 = vmul.f32 0.03125, %v5336_v6  ;;  %v5621_v2 = vrot.slane %v5620_v16, 1  ;;  %v5766_v37 = vmul.f32 0.03125, %v5765_v12 }
0x5679   :  { %v4043_v6 = vmul.f32 %v4041_v39, %v8544_v26 }
0x567a   :  { %v5340_v41 = vadd.f32 1e-05, %v5337_v29  ;;  %v5622_v11 = vadd.f32 %v5621_v2, %v5620_v16  ;;  %5504 = vperm.xlu1 %7304, %v6495_v21   ;;  %v5769_v51 = vadd.f32 1e-05, %v5766_v37 }
0x567c   :  { %7584 = vrsqrt.f32 %v5340_v41  ;;  %v5623_v53 = vmul.f32 0.03125, %v5622_v11 }
0x567d   :  { %7586 = vrsqrt.f32 %v5483_v35 }
0x567e   :  { %5647 = vperm.xlu1 %7304, %v6501_v59   ;;  %v5626_v25 = vadd.f32 1e-05, %v5623_v53  ;;  %v4218_v53 = vpop.permute.xlu0 %4217 }
0x5680   :  { %7588 = vrsqrt.f32 %v5626_v25 }
0x5681   :  { %7590 = vrsqrt.f32 %v5769_v51 }
0x5682   :  { %v7583_v32 = vpop.eup %7582  ;;  %5790 = vperm.xlu1 %7304, %v6507_v33  }
0x5683   :  { %v5056_v43 = vmul.f32 %v7583_v32, %v6475_v40 }
0x5685   :  { %v5061_v5 = vrot.slane %v5056_v43, %v8667_v24  ;;  %v4349_v43 = vpop.permute.xlu0 %4348 }
0x5686   :  { %v7585_v49 = vpop.eup %7584  ;;  %5933 = vperm.xlu1 %7304, %v6513_v42  }
0x5687   :  { %5063 = vperm.xlu0 %7303, %v5061_v5   ;;  %v5342_v44 = vmul.f32 %v7585_v49, %v6487_v23  ;;  %v7587_v22 = vpop.eup %7586 }
0x5688   :  { %v5485_v4 = vmul.f32 %v7587_v22, %v6493_v60  ;;  %v4351_v60 = vmul.f32 %v4349_v43, %v8559_v14 }
0x5689   :  { %v5347_v1 = vrot.slane %v5342_v44, %v8667_v24 }
0x568a   :  { %6076 = vperm.xlu1 %7304, %v6519_v57   ;;  %v7589_v18 = vpop.eup %7588  ;;  %v5490_v7 = vrot.slane %v5485_v4, %v8667_v24 }
0x568b   :  { %5206 = vperm.xlu0 %7303, %v5204_v58   ;;  %v5628_v19 = vmul.f32 %v7589_v18, %v6499_v8  ;;  %v7591_v15 = vpop.eup %7590 }
0x568c   :  { %v5771_v29 = vmul.f32 %v7591_v15, %v6505_v47 }
0x568d   :  { %v5633_v21 = vrot.slane %v5628_v19, %v8667_v24 }
0x568e   :  { %6219 = vperm.xlu1 %7304, %v6525_v62   ;;  %v5776_v35 = vrot.slane %v5771_v29, %v8667_v24 }
0x568f   :  { %5349 = vperm.xlu0 %7303, %v5347_v1  }
0x5691   :  { %v5901_v45 = vpop.xlane.xlu1 %5900 }
0x5692   :  { %v5902_v38 = vsel %vm4008_vm5, %v5901_v45, 0.0 }
0x5693   :  { %v5903_v27 = vrot.slane %v5902_v38, 4  ;;  %5492 = vperm.xlu0 %7303, %v5490_v7  }
0x5695   :  { %v5904_v16 = vadd.f32 %v5903_v27, %v5902_v38  ;;  %v4052_v31 = vpop.permute.xlu1 %4051 }
0x5696   :  { %v4054_v46 = vadd.f32 %v4052_v31, %v4043_v6 }
0x5697   :  { %v5905_v2 = vrot.slane %v5904_v16, 2  ;;  %5635 = vperm.xlu0 %7303, %v5633_v21  }
0x5698   :  { %v4055_v41 = vpack.c.bf16 %v4054_v46, %v4054_v46 }
0x5699   :  { %v5906_v11 = vadd.f32 %v5905_v2, %v5904_v16  ;;  %v4206_v59 = vpop.permute.xlu1 %4205 }
0x569a   :  { %v4208_v12 = vmul.f32 %v4206_v59, %v8553_v13  ;;  %7108 = vmatmul.mubr.msk.bf16.vlgmr.msra.gmra.mrb[128].mxu0 %vm56_vm3, %v4055_v41  ;;  %v6511_v13 = vld [vmem:[%s9088_s7 + $0xd] sm:$0x1] }
0x569b   :  { %v5907_v33 = vrot.slane %v5906_v11, 1  ;;  %5778 = vperm.xlu0 %7303, %v5776_v35   ;;  %7118 = vmatpush3.bf16.msra.mxu0 %v8693_v28 }
0x569c   :  { %v4220_v26 = vadd.f32 %v4218_v53, %v4208_v12  ;;  %7119 = vmatprep.mubr.msk.bf16.mxu0 %vm7605_vm1, %v7604_v0  ;;  %7129 = vmatprep.subr.bf16.mxu0 %v7604_v0 }
0x569d   :  { %v5908_v37 = vadd.f32 %v5907_v33, %v5906_v11 }
0x569e   :  { %v4221_v40 = vpack.c.bf16 %v4220_v26, %v4220_v26 }
0x569f   :  { %v5909_v25 = vmul.f32 0.03125, %v5908_v37 }
0x56a1   :  { %v5912_v36 = vadd.f32 1e-05, %v5909_v25 }
0x56a2   :  { %7120 = vmatmul.mubr.msk.bf16.vlgmr.msra.gmra.mrb[132].mxu0 %vm56_vm3, %v4221_v40 }
0x56a3   :  { %7592 = vrsqrt.f32 %v5912_v36  ;;  %7130 = vmatpush3.bf16.msra.mxu0 %v8693_v28  ;;  %7131 = vmatprep.mubr.msk.bf16.mxu0 %vm7605_vm1, %v7604_v0 }
0x56a4   :  { %7141 = vmatprep.subr.bf16.mxu0 %v7604_v0 }
0x56ad   :  { %v7593_v32 = vpop.eup %7592 }
0x56ae   :  { %v5914_v50 = vmul.f32 %v7593_v32, %v6511_v13 }
0x56b0   :  { %v5919_v42 = vrot.slane %v5914_v50, %v8667_v24 }
0x56b2   :  { %5921 = vperm.xlu0 %7303, %v5919_v42  }
0x56c3   :  { %v6187_v51 = vpop.xlane.xlu0 %6186 }
0x56c4   :  { %v6188_v5 = vsel %vm4008_vm5, %v6187_v51, 0.0  ;;  %v8858_v51 = vld [vmem:[%s9091_s11] sm:$0xff]  }
0x56c5   :  { %v6189_v52 = vrot.slane %v6188_v5, 4  ;;  %7112 = vmatpush3.bf16.msra.mxu1 %v8858_v51 }
0x56c6   :  { %7123 = vmatprep.subr.bf16.mxu1 %v7604_v0 }
0x56c7   :  { %v6190_v49 = vadd.f32 %v6189_v52, %v6188_v5 }
0x56c9   :  { %v6191_v23 = vrot.slane %v6190_v49, 2 }
0x56ca   :  { %v6044_v57 = vpop.xlane.xlu1 %6043 }
0x56cb   :  { %v6192_v58 = vadd.f32 %v6191_v23, %v6190_v49  ;;  %v6045_v44 = vsel %vm4008_vm5, %v6044_v57, 0.0  ;;  %v4504_v27 = vpop.permute.xlu0 %4503 }
0x56cc   :  { %v6046_v22 = vrot.slane %v6045_v44, 4 }
0x56cd   :  { %v6193_v62 = vrot.slane %v6192_v58, 1 }
0x56ce   :  { %v6047_v1 = vadd.f32 %v6046_v22, %v6045_v44  ;;  %v4361_v4 = vpop.permute.xlu1 %4360 }
0x56cf   :  { %v6194_v18 = vadd.f32 %v6193_v62, %v6192_v58  ;;  %v4363_v8 = vadd.f32 %v4361_v4, %v4351_v60 }
0x56d0   :  { %v6048_v39 = vrot.slane %v6047_v1, 2 }
0x56d1   :  { %v4364_v45 = vpack.c.bf16 %v4363_v8, %v4363_v8  ;;  %v6195_v15 = vmul.f32 0.03125, %v6194_v18 }
0x56d2   :  { %v6049_v7 = vadd.f32 %v6048_v39, %v6047_v1  ;;  %v4492_v19 = vpop.permute.xlu1 %4491 }
0x56d3   :  { %v4494_v38 = vmul.f32 %v4492_v19, %v8590_v56  ;;  %7132 = vmatmul.mubr.msk.bf16.vlgmr.msra.gmra.mrb[136].mxu0 %vm56_vm3, %v4364_v45  ;;  %v6198_v31 = vadd.f32 1e-05, %v6195_v15 }
0x56d4   :  { %v6050_v47 = vrot.slane %v6049_v7, 1  ;;  %7142 = vmatpush3.bf16.msra.mxu0 %v8693_v28  ;;  %7143 = vmatprep.mubr.msk.bf16.mxu0 %vm7605_vm1, %v7604_v0 }
0x56d5   :  { %v4506_v14 = vadd.f32 %v4504_v27, %v4494_v38  ;;  %7153 = vmatprep.subr.bf16.mxu0 %v7604_v0  ;;  %7594 = vrsqrt.f32 %v6198_v31 }
0x56d6   :  { %v6051_v6 = vadd.f32 %v6050_v47, %v6049_v7  ;;  %v4635_v16 = vpop.permute.xlu1 %4634 }
0x56d7   :  { %v4507_v29 = vpack.c.bf16 %v4506_v14, %v4506_v14  ;;  %v4637_v56 = vmul.f32 %v4635_v16, %v8593_v34  ;;  %v6517_v34 = vld [vmem:[%s9088_s7 + $0xe] sm:$0x1] }
0x56d8   :  { %v6052_v21 = vmul.f32 0.03125, %v6051_v6 }
0x56da   :  { %v6055_v46 = vadd.f32 1e-05, %v6052_v21  ;;  %v4647_v2 = vpop.permute.xlu1 %4646 }
0x56db   :  { %7144 = vmatmul.mubr.msk.bf16.vlgmr.msra.gmra.mrb[140].mxu0 %vm56_vm3, %v4507_v29  ;;  %v4649_v41 = vadd.f32 %v4647_v2, %v4637_v56  ;;  %v8913_v2 = vld [vmem:[%s9092_s10] ss:$0 sm:$0xff] }
0x56dc   :  { %7596 = vrsqrt.f32 %v6055_v46  ;;  %7154 = vmatpush3.bf16.msra.mxu0 %v8693_v28  ;;  %7155 = vmatprep.mubr.msk.bf16.mxu0 %vm7605_vm1, %v7604_v0 }
0x56dd   :  { %7165 = vmatprep.subr.bf16.mxu0 %v7604_v0  ;;  %v4650_v59 = vpack.c.bf16 %v4649_v41, %v4649_v41 }
0x56de   :  { %v4778_v11 = vpop.permute.xlu1 %4777 }
0x56df   :  { %v4780_v12 = vmul.f32 %v4778_v11, %v8585_v10  ;;  %v7595_v53 = vpop.eup %7594  ;;  %v6523_v10 = vld [vmem:[%s9088_s7 + $0xf] sm:$0x1] }
0x56e0   :  { %v6200_v13 = vmul.f32 %v7595_v53, %v6523_v10 }
0x56e2   :  { %v4790_v35 = vpop.permute.xlu1 %4789  ;;  %v6205_v43 = vrot.slane %v6200_v13, %v8667_v24 }
0x56e3   :  { %7156 = vmatmul.mubr.msk.bf16.vlgmr.msra.gmra.mrb[144].mxu0 %vm56_vm3, %v4650_v59  ;;  %v4792_v33 = vadd.f32 %v4790_v35, %v4780_v12 }
0x56e4   :  { %7166 = vmatpush3.bf16.msra.mxu0 %v8693_v28  ;;  %7167 = vmatprep.mubr.msk.bf16.mxu0 %vm7605_vm1, %v7604_v0 }
0x56e5   :  { %7177 = vmatprep.subr.bf16.mxu0 %v7604_v0  ;;  %v4793_v40 = vpack.c.bf16 %v4792_v33, %v4792_v33 }
0x56e6   :  { %v7597_v26 = vpop.eup %7596  ;;  %v4921_v37 = vpop.permute.xlu1 %4920 }
0x56e7   :  { %v6057_v25 = vmul.f32 %v7597_v26, %v6517_v34  ;;  %v4923_v50 = vmul.f32 %v4921_v37, %v8615_v61 }
0x56e9   :  { %v6062_v36 = vrot.slane %v6057_v25, %v8667_v24 }
0x56ea   :  { %v4933_v32 = vpop.permute.xlu1 %4932 }
0x56eb   :  { %6064 = vperm.xlu0 %7303, %v6062_v36   ;;  %7168 = vmatmul.mubr.msk.bf16.vlgmr.msra.gmra.mrb[148].mxu0 %vm56_vm3, %v4793_v40  ;;  %v4935_v42 = vadd.f32 %v4933_v32, %v4923_v50 }
0x56ec   :  { %7178 = vmatpush3.bf16.msra.mxu0 %v8693_v28  ;;  %7179 = vmatprep.mubr.msk.bf16.mxu0 %vm7605_vm1, %v7604_v0 }
0x56ed   :  { %7189 = vmatprep.subr.bf16.mxu0 %v7604_v0  ;;  %v4936_v61 = vpack.c.bf16 %v4935_v42, %v4935_v42 }
0x56ee   :  { %v5076_v52 = vpop.permute.xlu1 %5075 }
0x56ef   :  { %6207 = vperm.xlu0 %7303, %v6205_v43  }
0x56f2   :  { %v5219_v44 = vpop.permute.xlu1 %5218 }
0x56f3   :  { %7180 = vmatmul.mubr.msk.bf16.vlgmr.msra.gmra.mrb[152].mxu0 %vm56_vm3, %v4936_v61 }
0x56f4   :  { %7190 = vmatpush3.bf16.msra.mxu0 %v8693_v28  ;;  %7191 = vmatprep.mubr.msk.bf16.mxu0 %vm7605_vm1, %v7604_v0 }
0x56f5   :  { %7201 = vmatprep.subr.bf16.mxu0 %v7604_v0 }
0x56f6   :  { %v5362_v1 = vpop.permute.xlu1 %5361 }
0x56fa   :  { %v5505_v39 = vpop.permute.xlu1 %5504 }
0x56fe   :  { %v5648_v15 = vpop.permute.xlu1 %5647 }
0x5702   :  { %v5791_v14 = vpop.permute.xlu1 %5790 }
0x5706   :  { %v5064_v24 = vpop.permute.xlu0 %5063  ;;  %v5934_v21 = vpop.permute.xlu1 %5933 }
0x5707   :  { %v5066_v5 = vmul.f32 %v5064_v24, %v8642_v20 }
0x5709   :  { %v5078_v49 = vadd.f32 %v5076_v52, %v5066_v5 }
0x570a   :  { %v5207_v23 = vpop.permute.xlu0 %5206  ;;  %v6077_v56 = vpop.permute.xlu1 %6076 }
0x570b   :  { %v5079_v57 = vpack.c.bf16 %v5078_v49, %v5078_v49  ;;  %v5209_v58 = vmul.f32 %v5207_v23, %v8620_v63 }
0x570d   :  { %7192 = vmatmul.mubr.msk.bf16.vlgmr.msra.gmra.mrb[156].mxu0 %vm56_vm3, %v5079_v57  ;;  %v5221_v22 = vadd.f32 %v5219_v44, %v5209_v58 }
0x570e   :  { %7202 = vmatpush3.bf16.msra.mxu0 %v8693_v28  ;;  %7203 = vmatprep.mubr.msk.bf16.mxu0 %vm7605_vm1, %v7604_v0  ;;  %v5350_v60 = vpop.permute.xlu0 %5349 }
0x570f   :  { %7213 = vmatprep.subr.bf16.mxu0 %v7604_v0  ;;  %v5222_v62 = vpack.c.bf16 %v5221_v22, %v5221_v22  ;;  %v5352_v20 = vmul.f32 %v5350_v60, %v8639_v30 }
0x5711   :  { %v5364_v63 = vadd.f32 %v5362_v1, %v5352_v20 }
0x5712   :  { %v5493_v4 = vpop.permute.xlu0 %5492 }
0x5713   :  { %v5365_v18 = vpack.c.bf16 %v5364_v63, %v5364_v63  ;;  %v5495_v8 = vmul.f32 %v5493_v4, %v8627_v9 }
0x5715   :  { %7204 = vmatmul.mubr.msk.bf16.vlgmr.msra.gmra.mrb[160].mxu0 %vm56_vm3, %v5222_v62  ;;  %v5507_v30 = vadd.f32 %v5505_v39, %v5495_v8 }
0x5716   :  { %7214 = vmatpush3.bf16.msra.mxu0 %v8693_v28  ;;  %7215 = vmatprep.mubr.msk.bf16.mxu0 %vm7605_vm1, %v7604_v0  ;;  %v5636_v45 = vpop.permute.xlu0 %5635 }
0x5717   :  { %7225 = vmatprep.subr.bf16.mxu0 %v7604_v0  ;;  %v5508_v7 = vpack.c.bf16 %v5507_v30, %v5507_v30  ;;  %v5638_v19 = vmul.f32 %v5636_v45, %v8653_v17 }
0x5719   :  { %v5650_v9 = vadd.f32 %v5648_v15, %v5638_v19 }
0x571a   :  { %v5779_v38 = vpop.permute.xlu0 %5778 }
0x571b   :  { %v5651_v47 = vpack.c.bf16 %v5650_v9, %v5650_v9  ;;  %v5781_v27 = vmul.f32 %v5779_v38, %v8650_v48 }
0x571d   :  { %7216 = vmatmul.mubr.msk.bf16.vlgmr.msra.gmra.mrb[164].mxu0 %vm56_vm3, %v5365_v18  ;;  %v5793_v17 = vadd.f32 %v5791_v14, %v5781_v27 }
0x571e   :  { %7226 = vmatpush3.bf16.msra.mxu0 %v8693_v28  ;;  %7227 = vmatprep.mubr.msk.bf16.mxu0 %vm7605_vm1, %v7604_v0 }
0x571f   :  { %7237 = vmatprep.subr.bf16.mxu0 %v7604_v0  ;;  %v5794_v16 = vpack.c.bf16 %v5793_v17, %v5793_v17 }
0x5725   :  { %7228 = vmatmul.mubr.msk.bf16.vlgmr.msra.gmra.mrb[168].mxu0 %vm56_vm3, %v5508_v7 }
0x5726   :  { %7238 = vmatpush3.bf16.msra.mxu0 %v8693_v28  ;;  %7239 = vmatprep.mubr.msk.bf16.mxu0 %vm7605_vm1, %v7604_v0 }
0x5727   :  { %7249 = vmatprep.subr.bf16.mxu0 %v7604_v0 }
0x572d   :  { %7240 = vmatmul.mubr.msk.bf16.vlgmr.msra.gmra.mrb[172].mxu0 %vm56_vm3, %v5651_v47 }
0x572e   :  { %7250 = vmatpush3.bf16.msra.mxu0 %v8693_v28  ;;  %7251 = vmatprep.mubr.msk.bf16.mxu0 %vm7605_vm1, %v7604_v0 }
0x572f   :  { %7261 = vmatprep.subr.bf16.mxu0 %v7604_v0 }
0x5731   :  { %v5922_v6 = vpop.permute.xlu0 %5921 }
0x5732   :  { %v5924_v31 = vmul.f32 %v5922_v6, %v8678_v54 }
0x5734   :  { %v5936_v48 = vadd.f32 %v5934_v21, %v5924_v31 }
0x5735   :  { %7252 = vmatmul.mubr.msk.bf16.vlgmr.msra.gmra.mrb[176].mxu0 %vm56_vm3, %v5794_v16 }
0x5736   :  { %7262 = vmatpush3.bf16.msra.mxu0 %v8693_v28  ;;  %7263 = vmatprep.mubr.msk.bf16.mxu0 %vm7605_vm1, %v7604_v0  ;;  %v5937_v29 = vpack.c.bf16 %v5936_v48, %v5936_v48 }
0x5737   :  { %7273 = vmatprep.subr.bf16.mxu0 %v7604_v0 }
0x573d   :  { %7264 = vmatmul.mubr.msk.bf16.vlgmr.msra.gmra.mrb[180].mxu0 %vm56_vm3, %v5937_v29 }
0x573e   :  { %7274 = vmatpush3.bf16.msra.mxu0 %v8693_v28  ;;  %7275 = vmatprep.mubr.msk.bf16.mxu0 %vm7605_vm1, %v7604_v0 }
0x573f   :  { %7285 = vmatprep.subr.bf16.mxu0 %v7604_v0 }
0x576a   :  { %v6065_v54 = vpop.permute.xlu0 %6064 }
0x576b   :  { %v6067_v46 = vmul.f32 %v6065_v54, %v8709_v3  ;;  %v6220_v3 = vpop.permute.xlu1 %6219 }
0x576d   :  { %v6079_v41 = vadd.f32 %v6077_v56, %v6067_v46  ;;  %v4105_v11 = vpop.f32.mrb[128].mxu0 }
0x576e   :  { %v4106_v59 = vadd.f32 %v8913_v2, %v4105_v11  ;;  %v7109_v35 = vpop.f32.mrb[129].mxu0  ;;  %v6208_v12 = vpop.permute.xlu0 %6207 }
0x576f   :  { %v6080_v34 = vpack.c.bf16 %v6079_v41, %v6079_v41  ;;  %v6210_v53 = vmul.f32 %v6208_v12, %v8704_v55  ;;  %v4108_v33 = vpop.f32.mrb[130].mxu0 }
0x5770   :  { %v4111_v26 = vmax.f32 %v4106_v59, 0.0  ;;  %v7110_v37 = vpop.f32.mrb[131].mxu0 }
0x5771   :  { %7276 = vmatmul.mubr.msk.bf16.vlgmr.msra.gmra.mrb[184].mxu0 %vm56_vm3, %v6080_v34  ;;  %v6222_v25 = vadd.f32 %v6220_v3, %v6210_v53 }
0x5772   :  { %v4112_v10 = vpack.c.bf16 %v4111_v26, %v4111_v26  ;;  %7286 = vmatpush3.bf16.msra.mxu0 %v8693_v28  ;;  %7287 = vmatprep.mubr.msk.bf16.mxu0 %vm7605_vm1, %v7604_v0 }
0x5773   :  { %v6223_v13 = vpack.c.bf16 %v6222_v25, %v6222_v25 }
0x5774   :  { %7114 = vmatmul.mubr.msk.bf16.vlgmr.msra.gmra.mrb[128].mxu1 %vm56_vm3, %v4112_v10 }
0x5775   :  { %v4259_v40 = vpop.f32.mrb[132].mxu0  ;;  %7124 = vmatpush3.bf16.msra.mxu1 %v8858_v51  ;;  %7125 = vmatprep.mubr.msk.bf16.mxu1 %vm7605_vm1, %v7604_v0 }
0x5776   :  { %v4260_v55 = vadd.f32 %v8913_v2, %v4259_v40  ;;  %v7121_v36 = vpop.f32.mrb[133].mxu0  ;;  %7135 = vmatprep.subr.bf16.mxu1 %v7604_v0 }
0x5777   :  { %v4262_v32 = vpop.f32.mrb[134].mxu0 }
0x5778   :  { %v4265_v28 = vmax.f32 %v4260_v55, 0.0  ;;  %v7122_v50 = vpop.f32.mrb[135].mxu0 }
0x5779   :  { %7288 = vmatmul.mubr.msk.bf16.vlgmr.msra.gmra.mrb[188].mxu0 %vm56_vm3, %v6223_v13 }
0x577a   :  { %v4266_v42 = vpack.c.bf16 %v4265_v28, %v4265_v28 }
0x577c   :  { %7126 = vmatmul.mubr.msk.bf16.vlgmr.msra.gmra.mrb[132].mxu1 %vm56_vm3, %v4266_v42 }
0x577d   :  { %7136 = vmatpush3.bf16.msra.mxu1 %v8858_v51  ;;  %7137 = vmatprep.mubr.msk.bf16.mxu1 %vm7605_vm1, %v7604_v0 }
0x577e   :  { %7147 = vmatprep.subr.bf16.mxu1 %v7604_v0 }
0x57a6   :  { %v4402_v43 = vpop.f32.mrb[136].mxu0 }
0x57a7   :  { %v4403_v61 = vadd.f32 %v8913_v2, %v4402_v43  ;;  %v7133_v24 = vpop.f32.mrb[137].mxu0 }
0x57a8   :  { %v4405_v5 = vpop.f32.mrb[138].mxu0 }
0x57a9   :  { %v4408_v52 = vmax.f32 %v4403_v61, 0.0  ;;  %v7134_v49 = vpop.f32.mrb[139].mxu0 }
0x57ab   :  { %v4409_v23 = vpack.c.bf16 %v4408_v52, %v4408_v52 }
0x57ad   :  { %7138 = vmatmul.mubr.msk.bf16.vlgmr.msra.gmra.mrb[136].mxu1 %vm56_vm3, %v4409_v23 }
0x57ae   :  { %v4545_v57 = vpop.f32.mrb[140].mxu0  ;;  %7148 = vmatpush3.bf16.msra.mxu1 %v8858_v51  ;;  %7149 = vmatprep.mubr.msk.bf16.mxu1 %vm7605_vm1, %v7604_v0 }
0x57af   :  { %v4546_v58 = vadd.f32 %v8913_v2, %v4545_v57  ;;  %v7145_v44 = vpop.f32.mrb[141].mxu0  ;;  %7159 = vmatprep.subr.bf16.mxu1 %v7604_v0 }
0x57b0   :  { %v4548_v22 = vpop.f32.mrb[142].mxu0 }
0x57b1   :  { %v4551_v60 = vmax.f32 %v4546_v58, 0.0  ;;  %v7146_v62 = vpop.f32.mrb[143].mxu0 }
0x57b3   :  { %v4552_v20 = vpack.c.bf16 %v4551_v60, %v4551_v60 }
0x57b5   :  { %7150 = vmatmul.mubr.msk.bf16.vlgmr.msra.gmra.mrb[140].mxu1 %vm56_vm3, %v4552_v20 }
0x57b6   :  { %v4688_v1 = vpop.f32.mrb[144].mxu0  ;;  %7160 = vmatpush3.bf16.msra.mxu1 %v8858_v51  ;;  %7161 = vmatprep.mubr.msk.bf16.mxu1 %vm7605_vm1, %v7604_v0 }
0x57b7   :  { %v4689_v63 = vadd.f32 %v8913_v2, %v4688_v1  ;;  %v7157_v4 = vpop.f32.mrb[145].mxu0  ;;  %7171 = vmatprep.subr.bf16.mxu1 %v7604_v0 }
0x57b8   :  { %v4691_v18 = vpop.f32.mrb[146].mxu0 }
0x57b9   :  { %v4694_v8 = vmax.f32 %v4689_v63, 0.0  ;;  %v7158_v39 = vpop.f32.mrb[147].mxu0 }
0x57bb   :  { %v4695_v30 = vpack.c.bf16 %v4694_v8, %v4694_v8 }
0x57bd   :  { %7162 = vmatmul.mubr.msk.bf16.vlgmr.msra.gmra.mrb[144].mxu1 %vm56_vm3, %v4695_v30 }
0x57be   :  { %v4831_v45 = vpop.f32.mrb[148].mxu0  ;;  %7172 = vmatpush3.bf16.msra.mxu1 %v8858_v51  ;;  %7173 = vmatprep.mubr.msk.bf16.mxu1 %vm7605_vm1, %v7604_v0 }
0x57bf   :  { %v4832_v7 = vadd.f32 %v8913_v2, %v4831_v45  ;;  %v7169_v19 = vpop.f32.mrb[149].mxu0  ;;  %7183 = vmatprep.subr.bf16.mxu1 %v7604_v0 }
0x57c0   :  { %v4834_v15 = vpop.f32.mrb[150].mxu0 }
0x57c1   :  { %v4837_v9 = vmax.f32 %v4832_v7, 0.0  ;;  %v7170_v38 = vpop.f32.mrb[151].mxu0 }
0x57c2   :  { %v9009_v38 = vld [vmem:[%s9093_s12] ss:$0 sm:$0xff] }
0x57c3   :  { %v4838_v47 = vpack.c.bf16 %v4837_v9, %v4837_v9 }
0x57c5   :  { %7174 = vmatmul.mubr.msk.bf16.vlgmr.msra.gmra.mrb[148].mxu1 %vm56_vm3, %v4838_v47 }
0x57c6   :  { %v4974_v27 = vpop.f32.mrb[152].mxu0  ;;  %7184 = vmatpush3.bf16.msra.mxu1 %v8858_v51  ;;  %7185 = vmatprep.mubr.msk.bf16.mxu1 %vm7605_vm1, %v7604_v0 }
0x57c7   :  { %v4975_v14 = vadd.f32 %v8913_v2, %v4974_v27  ;;  %v7181_v17 = vpop.f32.mrb[153].mxu0  ;;  %7195 = vmatprep.subr.bf16.mxu1 %v7604_v0 }
0x57c8   :  { %v4977_v6 = vpop.f32.mrb[154].mxu0 }
0x57c9   :  { %v4980_v16 = vmax.f32 %v4975_v14, 0.0  ;;  %v7182_v31 = vpop.f32.mrb[155].mxu0 }
0x57cb   :  { %v4981_v21 = vpack.c.bf16 %v4980_v16, %v4980_v16 }
0x57cd   :  { %7186 = vmatmul.mubr.msk.bf16.vlgmr.msra.gmra.mrb[152].mxu1 %vm56_vm3, %v4981_v21 }
0x57ce   :  { %7196 = vmatpush3.bf16.msra.mxu1 %v8858_v51  ;;  %7197 = vmatprep.mubr.msk.bf16.mxu1 %vm7605_vm1, %v7604_v0 }
0x57cf   :  { %7207 = vmatprep.subr.bf16.mxu1 %v7604_v0 }
0x57e0   :  { %v5117_v48 = vpop.f32.mrb[156].mxu0 }
0x57e1   :  { %v5118_v29 = vadd.f32 %v8913_v2, %v5117_v48  ;;  %v7193_v54 = vpop.f32.mrb[157].mxu0 }
0x57e2   :  { %v5120_v46 = vpop.f32.mrb[158].mxu0 }
0x57e3   :  { %v5123_v56 = vmax.f32 %v5118_v29, 0.0  ;;  %v7194_v41 = vpop.f32.mrb[159].mxu0 }
0x57e5   :  { %v5124_v11 = vpack.c.bf16 %v5123_v56, %v5123_v56 }
0x57e7   :  { %7198 = vmatmul.mubr.msk.bf16.vlgmr.msra.gmra.mrb[156].mxu1 %vm56_vm3, %v5124_v11 }
0x57e8   :  { %v5260_v59 = vpop.f32.mrb[160].mxu0  ;;  %7208 = vmatpush3.bf16.msra.mxu1 %v8858_v51  ;;  %7209 = vmatprep.mubr.msk.bf16.mxu1 %vm7605_vm1, %v7604_v0 }
0x57e9   :  { %v5261_v35 = vadd.f32 %v8913_v2, %v5260_v59  ;;  %v7205_v12 = vpop.f32.mrb[161].mxu0  ;;  %7219 = vmatprep.subr.bf16.mxu1 %v7604_v0 }
0x57ea   :  { %v5263_v34 = vpop.f32.mrb[162].mxu0 }
0x57eb   :  { %v5266_v53 = vmax.f32 %v5261_v35, 0.0  ;;  %v7206_v33 = vpop.f32.mrb[163].mxu0 }
0x57ed   :  { %v5267_v26 = vpack.c.bf16 %v5266_v53, %v5266_v53 }
0x57ef   :  { %7210 = vmatmul.mubr.msk.bf16.vlgmr.msra.gmra.mrb[160].mxu1 %vm56_vm3, %v5267_v26 }
0x57f0   :  { %v5403_v37 = vpop.f32.mrb[164].mxu0  ;;  %7220 = vmatpush3.bf16.msra.mxu1 %v8858_v51  ;;  %7221 = vmatprep.mubr.msk.bf16.mxu1 %vm7605_vm1, %v7604_v0 }
0x57f1   :  { %v5404_v3 = vadd.f32 %v8913_v2, %v5403_v37  ;;  %v7217_v10 = vpop.f32.mrb[165].mxu0  ;;  %7231 = vmatprep.subr.bf16.mxu1 %v7604_v0 }
0x57f2   :  { %v5406_v25 = vpop.f32.mrb[166].mxu0 }
0x57f3   :  { %v5409_v40 = vmax.f32 %v5404_v3, 0.0  ;;  %v7218_v55 = vpop.f32.mrb[167].mxu0 }
0x57f5   :  { %v5410_v36 = vpack.c.bf16 %v5409_v40, %v5409_v40 }
0x57f7   :  { %7222 = vmatmul.mubr.msk.bf16.vlgmr.msra.gmra.mrb[164].mxu1 %vm56_vm3, %v5410_v36 }
0x57f8   :  { %v5546_v13 = vpop.f32.mrb[168].mxu0  ;;  %7232 = vmatpush3.bf16.msra.mxu1 %v8858_v51  ;;  %7233 = vmatprep.mubr.msk.bf16.mxu1 %vm7605_vm1, %v7604_v0 }
0x57f9   :  { %v5547_v32 = vadd.f32 %v8913_v2, %v5546_v13  ;;  %v7229_v28 = vpop.f32.mrb[169].mxu0  ;;  %7243 = vmatprep.subr.bf16.mxu1 %v7604_v0 }
0x57fa   :  { %v5549_v50 = vpop.f32.mrb[170].mxu0 }
0x57fb   :  { %v5552_v42 = vmax.f32 %v5547_v32, 0.0  ;;  %v7230_v43 = vpop.f32.mrb[171].mxu0 }
0x57fd   :  { %v5553_v61 = vpack.c.bf16 %v5552_v42, %v5552_v42 }
0x57ff   :  { %7234 = vmatmul.mubr.msk.bf16.vlgmr.msra.gmra.mrb[168].mxu1 %vm56_vm3, %v5553_v61 }
0x5800   :  { %v5689_v24 = vpop.f32.mrb[172].mxu0  ;;  %7244 = vmatpush3.bf16.msra.mxu1 %v8858_v51  ;;  %7245 = vmatprep.mubr.msk.bf16.mxu1 %vm7605_vm1, %v7604_v0 }
0x5801   :  { %v5690_v5 = vadd.f32 %v8913_v2, %v5689_v24  ;;  %v7241_v52 = vpop.f32.mrb[173].mxu0  ;;  %7255 = vmatprep.subr.bf16.mxu1 %v7604_v0 }
0x5802   :  { %v5692_v49 = vpop.f32.mrb[174].mxu0 }
0x5803   :  { %v5695_v23 = vmax.f32 %v5690_v5, 0.0  ;;  %v7242_v57 = vpop.f32.mrb[175].mxu0 }
0x5805   :  { %v5696_v58 = vpack.c.bf16 %v5695_v23, %v5695_v23 }
0x5807   :  { %7246 = vmatmul.mubr.msk.bf16.vlgmr.msra.gmra.mrb[172].mxu1 %vm56_vm3, %v5696_v58 }
0x5808   :  { %v5832_v44 = vpop.f32.mrb[176].mxu0  ;;  %7256 = vmatpush3.bf16.msra.mxu1 %v8858_v51  ;;  %7257 = vmatprep.mubr.msk.bf16.mxu1 %vm7605_vm1, %v7604_v0 }
0x5809   :  { %v5833_v22 = vadd.f32 %v8913_v2, %v5832_v44  ;;  %v7253_v60 = vpop.f32.mrb[177].mxu0  ;;  %7267 = vmatprep.subr.bf16.mxu1 %v7604_v0 }
0x580a   :  { %v5835_v62 = vpop.f32.mrb[178].mxu0 }
0x580b   :  { %v5838_v20 = vmax.f32 %v5833_v22, 0.0  ;;  %v7254_v1 = vpop.f32.mrb[179].mxu0 }
0x580d   :  { %v5839_v63 = vpack.c.bf16 %v5838_v20, %v5838_v20 }
0x580f   :  { %7258 = vmatmul.mubr.msk.bf16.vlgmr.msra.gmra.mrb[176].mxu1 %vm56_vm3, %v5839_v63 }
0x5810   :  { %v5975_v4 = vpop.f32.mrb[180].mxu0  ;;  %7268 = vmatpush3.bf16.msra.mxu1 %v8858_v51  ;;  %7269 = vmatprep.mubr.msk.bf16.mxu1 %vm7605_vm1, %v7604_v0 }
0x5811   :  { %v5976_v18 = vadd.f32 %v8913_v2, %v5975_v4  ;;  %v7265_v8 = vpop.f32.mrb[181].mxu0  ;;  %7279 = vmatprep.subr.bf16.mxu1 %v7604_v0 }
0x5812   :  { %v5978_v39 = vpop.f32.mrb[182].mxu0 }
0x5813   :  { %v5981_v30 = vmax.f32 %v5976_v18, 0.0  ;;  %v7266_v45 = vpop.f32.mrb[183].mxu0 }
0x5815   :  { %v5982_v7 = vpack.c.bf16 %v5981_v30, %v5981_v30 }
0x5817   :  { %7270 = vmatmul.mubr.msk.bf16.vlgmr.msra.gmra.mrb[180].mxu1 %vm56_vm3, %v5982_v7 }
0x5818   :  { %7280 = vmatpush3.bf16.msra.mxu1 %v8858_v51  ;;  %7281 = vmatprep.mubr.msk.bf16.mxu1 %vm7605_vm1, %v7604_v0 }
0x5819   :  { %7291 = vmatprep.subr.bf16.mxu1 %v7604_v0 }
0x5844   :  { %v6118_v19 = vpop.f32.mrb[184].mxu0 }
0x5845   :  { %v6119_v15 = vadd.f32 %v8913_v2, %v6118_v19  ;;  %v7277_v9 = vpop.f32.mrb[185].mxu0 }
0x5846   :  { %v6121_v47 = vpop.f32.mrb[186].mxu0 }
0x5847   :  { %v6124_v27 = vmax.f32 %v6119_v15, 0.0  ;;  %v4162_v14 = vpop.f32.mrb[128].mxu1  ;;  %v7278_v17 = vpop.f32.mrb[187].mxu0 }
0x5848   :  { %v4163_v6 = vadd.f32 %v9009_v38, %v4162_v14  ;;  %v7115_v16 = vpop.f32.mrb[129].mxu1 }
0x5849   :  { %v6125_v31 = vpack.c.bf16 %v6124_v27, %v6124_v27  ;;  %v4165_v21 = vpop.f32.mrb[130].mxu1 }
0x584a   :  { %4168 = vst [vmem:[%s9094_s13] sm:$0x3] %v4163_v6  ;;  %v7116_v48 = vpop.f32.mrb[131].mxu1 }
0x584b   :  { %7282 = vmatmul.mubr.msk.bf16.vlgmr.msra.gmra.mrb[184].mxu1 %vm56_vm3, %v6125_v31 }
0x584c   :  { %7292 = vmatpush3.bf16.msra.mxu1 %v8858_v51  ;;  %v6261_v29 = vpop.f32.mrb[188].mxu0  ;;  %7293 = vmatprep.mubr.msk.bf16.mxu1 %vm7605_vm1, %v7604_v0 }
0x584d   :  { %v6262_v54 = vadd.f32 %v8913_v2, %v6261_v29  ;;  %v7289_v46 = vpop.f32.mrb[189].mxu0 }
0x584e   :  { %v6264_v56 = vpop.f32.mrb[190].mxu0 }
0x584f   :  { %v6267_v41 = vmax.f32 %v6262_v54, 0.0  ;;  %v4304_v11 = vpop.f32.mrb[132].mxu1  ;;  %v7290_v59 = vpop.f32.mrb[191].mxu0 }
0x5850   :  { %v4305_v35 = vadd.f32 %v9009_v38, %v4304_v11  ;;  %v7127_v12 = vpop.f32.mrb[133].mxu1 }
0x5851   :  { %v6268_v34 = vpack.c.bf16 %v6267_v41, %v6267_v41  ;;  %v4307_v53 = vpop.f32.mrb[134].mxu1 }
0x5852   :  { %6444 = vst [vmem:[%s9094_s13 + $0x2] sm:$0x3] %v4305_v35  ;;  %v7128_v51 = vpop.f32.mrb[135].mxu1 }
0x5853   :  { %7294 = vmatmul.mubr.msk.bf16.vlgmr.msra.gmra.mrb[188].mxu1 %vm56_vm3, %v6268_v34 }
0x5880   :  { %v4447_v0 = vpop.f32.mrb[136].mxu1 }
0x5881   :  { %v4448_v2 = vadd.f32 %v9009_v38, %v4447_v0  ;;  %v7139_v33 = vpop.f32.mrb[137].mxu1 }
0x5882   :  { %v4450_v26 = vpop.f32.mrb[138].mxu1 }
0x5883   :  { %6450 = vst [vmem:[%s9094_s13 + $0x4] sm:$0x3] %v4448_v2  ;;  %v7140_v37 = vpop.f32.mrb[139].mxu1 }
0x5888   :  { %v4590_v3 = vpop.f32.mrb[140].mxu1 }
0x5889   :  { %v4591_v10 = vadd.f32 %v9009_v38, %v4590_v3  ;;  %v7151_v25 = vpop.f32.mrb[141].mxu1 }
0x588a   :  { %v4593_v40 = vpop.f32.mrb[142].mxu1 }
0x588b   :  { %6456 = vst [vmem:[%s9094_s13 + $0x6] sm:$0x3] %v4591_v10  ;;  %v7152_v55 = vpop.f32.mrb[143].mxu1 }
0x5890   :  { %v4733_v36 = vpop.f32.mrb[144].mxu1 }
0x5891   :  { %v4734_v13 = vadd.f32 %v9009_v38, %v4733_v36  ;;  %v7163_v32 = vpop.f32.mrb[145].mxu1 }
0x5892   :  { %v4736_v28 = vpop.f32.mrb[146].mxu1 }
0x5893   :  { %6462 = vst [vmem:[%s9094_s13 + $0x8] sm:$0x3] %v4734_v13  ;;  %v7164_v50 = vpop.f32.mrb[147].mxu1 }
0x5898   :  { %v4876_v42 = vpop.f32.mrb[148].mxu1 }
0x5899   :  { %v4877_v43 = vadd.f32 %v9009_v38, %v4876_v42  ;;  %v7175_v61 = vpop.f32.mrb[149].mxu1 }
0x589a   :  { %v4879_v24 = vpop.f32.mrb[150].mxu1 }
0x589b   :  { %6468 = vst [vmem:[%s9094_s13 + $0xa] sm:$0x3] %v4877_v43  ;;  %v7176_v5 = vpop.f32.mrb[151].mxu1 }
0x58a0   :  { %v5019_v52 = vpop.f32.mrb[152].mxu1 }
0x58a1   :  { %v5020_v49 = vadd.f32 %v9009_v38, %v5019_v52  ;;  %v7187_v23 = vpop.f32.mrb[153].mxu1 }
0x58a2   :  { %v5022_v57 = vpop.f32.mrb[154].mxu1 }
0x58a3   :  { %6474 = vst [vmem:[%s9094_s13 + $0xc] sm:$0x3] %v5020_v49  ;;  %v7188_v58 = vpop.f32.mrb[155].mxu1 }
0x58ba   :  { %v5162_v44 = vpop.f32.mrb[156].mxu1 }
0x58bb   :  { %v5163_v22 = vadd.f32 %v9009_v38, %v5162_v44  ;;  %v7199_v60 = vpop.f32.mrb[157].mxu1 }
0x58bc   :  { %v5165_v62 = vpop.f32.mrb[158].mxu1 }
0x58bd   :  { %6480 = vst [vmem:[%s9094_s13 + $0xe] sm:$0x3] %v5163_v22  ;;  %v7200_v20 = vpop.f32.mrb[159].mxu1 }
0x58c2   :  { %v5305_v1 = vpop.f32.mrb[160].mxu1 }
0x58c3   :  { %v5306_v63 = vadd.f32 %v9009_v38, %v5305_v1  ;;  %v7211_v4 = vpop.f32.mrb[161].mxu1 }
0x58c4   :  { %v5308_v18 = vpop.f32.mrb[162].mxu1 }
0x58c5   :  { %6486 = vst [vmem:[%s9094_s13 + $0x10] sm:$0x3] %v5306_v63  ;;  %v7212_v8 = vpop.f32.mrb[163].mxu1 }
0x58ca   :  { %v5448_v39 = vpop.f32.mrb[164].mxu1 }
0x58cb   :  { %v5449_v30 = vadd.f32 %v9009_v38, %v5448_v39  ;;  %v7223_v45 = vpop.f32.mrb[165].mxu1 }
0x58cc   :  { %v5451_v7 = vpop.f32.mrb[166].mxu1 }
0x58cd   :  { %6492 = vst [vmem:[%s9094_s13 + $0x12] sm:$0x3] %v5449_v30  ;;  %v7224_v19 = vpop.f32.mrb[167].mxu1 }
0x58d2   :  { %v5591_v15 = vpop.f32.mrb[168].mxu1 }
0x58d3   :  { %v5592_v9 = vadd.f32 %v9009_v38, %v5591_v15  ;;  %v7235_v47 = vpop.f32.mrb[169].mxu1 }
0x58d4   :  { %v5594_v27 = vpop.f32.mrb[170].mxu1 }
0x58d5   :  { %6498 = vst [vmem:[%s9094_s13 + $0x14] sm:$0x3] %v5592_v9  ;;  %v7236_v14 = vpop.f32.mrb[171].mxu1 }
0x58da   :  { %v5734_v17 = vpop.f32.mrb[172].mxu1 }
0x58db   :  { %v5735_v6 = vadd.f32 %v9009_v38, %v5734_v17  ;;  %v7247_v16 = vpop.f32.mrb[173].mxu1 }
0x58dc   :  { %v5737_v31 = vpop.f32.mrb[174].mxu1 }
0x58dd   :  { %6504 = vst [vmem:[%s9094_s13 + $0x16] sm:$0x3] %v5735_v6  ;;  %v7248_v21 = vpop.f32.mrb[175].mxu1 }
0x58e2   :  { %v5877_v48 = vpop.f32.mrb[176].mxu1 }
0x58e3   :  { %v5878_v29 = vadd.f32 %v9009_v38, %v5877_v48  ;;  %v7259_v54 = vpop.f32.mrb[177].mxu1 }
0x58e4   :  { %v5880_v46 = vpop.f32.mrb[178].mxu1 }
0x58e5   :  { %6510 = vst [vmem:[%s9094_s13 + $0x18] sm:$0x3] %v5878_v29  ;;  %v7260_v56 = vpop.f32.mrb[179].mxu1 }
0x58ea   :  { %v6020_v41 = vpop.f32.mrb[180].mxu1 }
0x58eb   :  { %v6021_v11 = vadd.f32 %v9009_v38, %v6020_v41  ;;  %v7271_v59 = vpop.f32.mrb[181].mxu1 }
0x58ec   :  { %v6023_v35 = vpop.f32.mrb[182].mxu1 }
0x58ed   :  { %6516 = vst [vmem:[%s9094_s13 + $0x1a] sm:$0x3] %v6021_v11  ;;  %v7272_v12 = vpop.f32.mrb[183].mxu1 }
0x591e   :  { %v6163_v34 = vpop.f32.mrb[184].mxu1 }
0x591f   :  { %v6164_v53 = vadd.f32 %v9009_v38, %v6163_v34  ;;  %v7283_v51 = vpop.f32.mrb[185].mxu1 }
0x5920   :  { %v6166_v0 = vpop.f32.mrb[186].mxu1 }
0x5921   :  { %6522 = vst [vmem:[%s9094_s13 + $0x1c] sm:$0x3] %v6164_v53  ;;  %v7284_v2 = vpop.f32.mrb[187].mxu1 }
0x5926   :  { %v6306_v33 = vpop.f32.mrb[188].mxu1 }
0x5927   :  { %v6307_v26 = vadd.f32 %v9009_v38, %v6306_v33  ;;  %v7295_v37 = vpop.f32.mrb[189].mxu1 }
0x5928   :  { %v6309_v3 = vpop.f32.mrb[190].mxu1 }
0x5929   :  { %6528 = vst [vmem:[%s9094_s13 + $0x1e] sm:$0x3] %v6307_v26  ;;  %v7296_v10 = vpop.f32.mrb[191].mxu1 }

</bundles_post_ra>
